<compile_context>
chip_gen: v7x
topology: tpu7x:2x2x1
jax: 0.10.0
libtpu: 0.0.40
codegen_flags: <defaults>
</compile_context>

<pallas_src>
import functools

import jax
import jax.numpy as jnp
from jax import lax
from jax.experimental import pallas as pl
from jax.experimental.pallas import tpu as pltpu


def _round_up(x, m):
    return (x + m - 1) // m * m


def _fused_dilated_block_kernel(x_ref, w_ref, b_ref, mask_ref, o_ref,
                                buf0_ref, buf1_ref, *,
                                dilations, C, Wp, M, wo, Lx, slope, Bt,
                                op_dtype):
    """Fused dilatedConvBlock for Bt batch elements.

    x_ref:    (Bt, C, Lx)  padded inputs, flattened row-major over (Hp, Wp),
                           embedded so the output window starts at lane `wo`
                           (128-aligned).
    w_ref:    (L, 9, C, C) per-layer, per-tap (cout, cin) weights (op_dtype)
    b_ref:    (L, C, 1)    biases (f32)
    mask_ref: (1, M)       1.0 on real image columns inside the true window
    o_ref:    (Bt, C, M)   last layer's activation over the output window
    buf0/1:   (C, Lx)      VMEM frames holding intermediates in zero padding
    """
    n_layers = len(dilations)
    mask = mask_ref[...]                                   # (1, M) f32

    if n_layers > 1:
        # Zero ONLY the guard bands; [wo, wo+M) is fully overwritten and
        # re-masked every layer.  Guards are 128-aligned -> unmasked vst.
        gz_lo = jnp.zeros((C, wo), jnp.float32)
        gz_hi = jnp.zeros((C, Lx - wo - M), jnp.float32)
        buf0_ref[:, :wo] = gz_lo
        buf0_ref[:, wo + M:] = gz_hi
        buf1_ref[:, :wo] = gz_lo
        buf1_ref[:, wo + M:] = gz_hi

    bufs = (buf0_ref, buf1_ref)
    for b in range(Bt):                                    # static unroll
        for li, d in enumerate(dilations):
            if li == 0:
                src = x_ref[b]                             # (C, Lx)
            else:
                src = bufs[(li - 1) % 2][...]              # (C, Lx)

            # Nine accumulating K=C MXU matmuls straight off the shifted
            # views: no im2col buffer, no extra stores on the vst slot.
            z = None
            for ky in range(3):
                for kx in range(3):
                    t = ky * 3 + kx
                    s = wo + (ky - 1) * d * Wp + (kx - 1) * d
                    rhs = src[:, s:s + M].astype(op_dtype)
                    p = jnp.dot(w_ref[li, t], rhs,
                                preferred_element_type=jnp.float32)
                    z = p if z is None else z + p

            z = z + b_ref[li]                              # bias (f32)
            z = jnp.where(z >= 0, z, slope * z)            # LeakyReLU (f32)
            z = z * mask                                   # restore 0-padding

            if li == n_layers - 1:
                o_ref[b] = z.astype(o_ref.dtype)
            else:
                bufs[li % 2][:, wo:wo + M] = z             # aligned, unmasked


def dilated_conv_block(x_nchw, params, slope=0.01, matmul_dtype=jnp.bfloat16):
    """Forward pass matching dilatedConvBlock.forward (NCHW in, NCHW out)."""
    N, C, H, W = x_nchw.shape
    n_layers = len(params)
    dilations = tuple(range(1, n_layers + 1))
    D = max(dilations)                  # shared padding margin
    Hp, Wp = H + 2 * D, W + 2 * D
    M_true = H * Wp                     # true flattened output window
    M = _round_up(M_true, 128)          # lane-dense / unmasked stores

    # Geometry: output window starts at a 128-aligned lane `wo`, with enough
    # guard on both sides for the largest tap reach.
    reach = D * Wp + D
    wo = _round_up(reach, 128)
    G = wo - D * Wp
    Lx = _round_up(wo + M + reach, 128)

    # VMEM budget per chip generation (~3/4 of physical, capped).
    try:
        vmem_cap = pltpu.get_tpu_info().vmem_capacity_bytes
    except Exception:
        vmem_cap = 64 * 1024 * 1024
    vmem_limit = int(min(vmem_cap * 3 // 4, 100 * 1024 * 1024))

    # Batch elements per grid step (amortize per-step overhead on small imgs).
    per_elem = (C * Lx + C * M) * 4 * 2          # x + out, double-buffered
    fixed = 2 * C * Lx * 4 + n_layers * 9 * C * C * 4 + 4 * M
    budget = vmem_limit // 2
    Bt = 1
    for cand in range(1, min(N, 4) + 1):
        if fixed + cand * per_elem <= budget:
            Bt = cand
    Npad = _round_up(N, Bt)

    # Glue (pure JAX in HBM): zero-pad spatially, flatten (Hp, Wp) row-major,
    # embed at lane offset G.  NCHW throughout -> no activation transposes.
    xp = jnp.pad(x_nchw, ((0, 0), (0, 0), (D, D), (D, D)))
    xf = jnp.pad(xp.reshape(N, C, Hp * Wp),
                 ((0, 0), (0, 0), (G, Lx - G - Hp * Wp)))
    if Npad != N:
        xf = jnp.pad(xf, ((0, Npad - N), (0, 0), (0, 0)))

    # Weights: HWIO -> (L, 9, Cout, Cin), matmul dtype only (review: cast
    # operands, keep everything else f32).  Biases (L, C, 1) f32.
    w_stack = jnp.stack(
        [jnp.transpose(w, (0, 1, 3, 2)).reshape(9, C, C) for w, _ in params]
    ).astype(matmul_dtype)
    b_stack = jnp.stack([b.reshape(C, 1) for _, b in params]).astype(jnp.float32)

    # Column-validity mask; also zeroes the rounded-up tail [M_true, M).
    m_idx = jnp.arange(M, dtype=jnp.int32)
    cols = m_idx % Wp
    mask = ((cols >= D) & (cols < D + W) & (m_idx < M_true)
            ).astype(jnp.float32).reshape(1, M)

    kernel = functools.partial(
        _fused_dilated_block_kernel,
        dilations=dilations, C=C, Wp=Wp, M=M, wo=wo, Lx=Lx,
        slope=slope, Bt=Bt, op_dtype=matmul_dtype)

    # TODO(synk): add H row-band tiling (halo = sum(dilations) rows/side read
    # from the padded HBM input) so very large images fit v7x's 64 MiB VMEM;
    # whole-image-per-step blocks are used here.
    out_flat = pl.pallas_call(
        kernel,
        out_shape=jax.ShapeDtypeStruct((Npad, C, M), x_nchw.dtype),
        grid_spec=pltpu.PrefetchScalarGridSpec(
            num_scalar_prefetch=0,
            grid=(Npad // Bt,),
            in_specs=[
                pl.BlockSpec((Bt, C, Lx), lambda n: (n, 0, 0)),
                pl.BlockSpec((n_layers, 9, C, C), lambda n: (0, 0, 0, 0)),
                pl.BlockSpec((n_layers, C, 1), lambda n: (0, 0, 0)),
                pl.BlockSpec((1, M), lambda n: (0, 0)),
            ],
            out_specs=pl.BlockSpec((Bt, C, M), lambda n: (n, 0, 0)),
            scratch_shapes=[
                pltpu.VMEM((C, Lx), jnp.float32),      # activation frame A
                pltpu.VMEM((C, Lx), jnp.float32),      # activation frame B
            ],
        ),
        compiler_params=pltpu.CompilerParams(
            dimension_semantics=("parallel",),
            vmem_limit_bytes=vmem_limit,
        ),
    )(xf, w_stack, b_stack, mask)

    # Drop batch padding / rounded tail / Wp-padding columns -> NCHW output.
    out = out_flat[:N, :, :M_true].reshape(N, C, H, Wp)[:, :, :, D:D + W]
    return out


def init_params(key, i_conv_num=3, channels=32, ksize=3):
    """Deterministic PyTorch-Conv2d-style init: U(-1/sqrt(fan_in), +)."""
    params = []
    fan_in = channels * ksize * ksize
    bound = 1.0 / jnp.sqrt(jnp.float32(fan_in))
    for _ in range(i_conv_num):
        key, kw, kb = jax.random.split(key, 3)
        w = jax.random.uniform(kw, (ksize, ksize, channels, channels),
                               jnp.float32, -bound, bound)   # HWIO
        b = jax.random.uniform(kb, (channels,), jnp.float32, -bound, bound)
        params.append((w, b))
    return params


def _reference(x_nchw, params, slope=0.01):
    """Pure-JAX reference (XLA conv) for validation."""
    x = x_nchw
    for i, (w, b) in enumerate(params, start=1):
        y = lax.conv_general_dilated(
            x, w,
            window_strides=(1, 1),
            padding=[(i, i), (i, i)],
            rhs_dilation=(i, i),
            dimension_numbers=("NCHW", "HWIO", "NCHW"),
        ) + b[None, :, None, None]
        x = jnp.where(y >= 0, y, slope * y)
    return x


if __name__ == "__main__":
    key = jax.random.PRNGKey(0)
    kx, kp = jax.random.split(key)

    N, C, H, W = 2, 32, 16, 16          # channels fixed at 32 by the module
    x = jax.random.normal(kx, (N, C, H, W), jnp.float32)
    params = init_params(kp, i_conv_num=3, channels=C, ksize=3)

    ref = jax.block_until_ready(_reference(x, params))

    # Exact-precision path (f32 matmul operands) -- tight tolerance.
    out_f32 = jax.block_until_ready(
        dilated_conv_block(x, params, matmul_dtype=jnp.float32))
    assert out_f32.shape == (N, C, H, W)
    assert jnp.allclose(out_f32, ref, atol=1e-4, rtol=1e-4)

    # Default fast path (bf16 matmul operands, f32 accumulation everywhere).
    out = jax.block_until_ready(dilated_conv_block(x, params))
    assert out.shape == (N, C, H, W)
    assert jnp.allclose(out, ref, atol=2e-2, rtol=2e-2)

    print("KERNEL_OK")
</pallas_src>

<mosaic_0001>
module attributes {stable_mosaic.version = 11 : i64} {
  func.func @_fused_dilated_block_kernel(%arg0: i32, %arg1: memref<2x32x640xf32, #tpu.memory_space<vmem>>, %arg2: memref<3x9x32x32xf32, #tpu.memory_space<vmem>>, %arg3: memref<3x32x1xf32, #tpu.memory_space<vmem>>, %arg4: memref<1x384xf32, #tpu.memory_space<vmem>>, %arg5: memref<2x32x384xf32, #tpu.memory_space<vmem>>, %arg6: memref<32x640xf32, #tpu.memory_space<vmem>>, %arg7: memref<32x640xf32, #tpu.memory_space<vmem>>) attributes {dimension_semantics = [#tpu.dimension_semantics<parallel>], iteration_bounds = array<i64: 1>, scalar_prefetch = 0 : i64, scratch_operands = 2 : i64, tpu.core_type = #tpu.core_type<tc>, window_params = [{transform_indices = @transform_0, window_bounds = array<i64: 2, 32, 640>}, {pipeline_mode = #tpu.pipeline_mode<synchronous>, transform_indices = @transform_1, window_bounds = array<i64: 3, 9, 32, 32>}, {pipeline_mode = #tpu.pipeline_mode<synchronous>, transform_indices = @transform_2, window_bounds = array<i64: 3, 32, 1>}, {pipeline_mode = #tpu.pipeline_mode<synchronous>, transform_indices = @transform_3, window_bounds = array<i64: 1, 384>}, {transform_indices = @transform_4, window_bounds = array<i64: 2, 32, 384>}]} {
    %c0 = arith.constant 0 : index
    %c0_0 = arith.constant 0 : index
    %0 = vector.load %arg4[%c0, %c0_0] : memref<1x384xf32, #tpu.memory_space<vmem>>, vector<1x384xf32>
    %cst = arith.constant 0.000000e+00 : f32
    %1 = vector.broadcast %cst : f32 to vector<32x128xf32>
    %cst_1 = arith.constant 0.000000e+00 : f32
    %2 = vector.broadcast %cst_1 : f32 to vector<32x128xf32>
    %c0_2 = arith.constant 0 : index
    %c0_3 = arith.constant 0 : index
    %3 = vector.load %arg6[%c0_2, %c0_3] : memref<32x640xf32, #tpu.memory_space<vmem>>, vector<32x128xf32>
    tpu.vector_store %arg6[%c0_2, %c0_3], %1 {strides = array<i32>} : memref<32x640xf32, #tpu.memory_space<vmem>>, vector<32x128xf32>,
    %c0_4 = arith.constant 0 : index
    %c512 = arith.constant 512 : index
    %4 = vector.load %arg6[%c0_4, %c512] : memref<32x640xf32, #tpu.memory_space<vmem>>, vector<32x128xf32>
    tpu.vector_store %arg6[%c0_4, %c512], %2 {strides = array<i32>} : memref<32x640xf32, #tpu.memory_space<vmem>>, vector<32x128xf32>,
    %c0_5 = arith.constant 0 : index
    %c0_6 = arith.constant 0 : index
    %5 = vector.load %arg7[%c0_5, %c0_6] : memref<32x640xf32, #tpu.memory_space<vmem>>, vector<32x128xf32>
    tpu.vector_store %arg7[%c0_5, %c0_6], %1 {strides = array<i32>} : memref<32x640xf32, #tpu.memory_space<vmem>>, vector<32x128xf32>,
    %c0_7 = arith.constant 0 : index
    %c512_8 = arith.constant 512 : index
    %6 = vector.load %arg7[%c0_7, %c512_8] : memref<32x640xf32, #tpu.memory_space<vmem>>, vector<32x128xf32>
    tpu.vector_store %arg7[%c0_7, %c512_8], %2 {strides = array<i32>} : memref<32x640xf32, #tpu.memory_space<vmem>>, vector<32x128xf32>,
    %c0_9 = arith.constant 0 : index
    %c0_10 = arith.constant 0 : index
    %c0_11 = arith.constant 0 : index
    %7 = vector.load %arg1[%c0_9, %c0_10, %c0_11] : memref<2x32x640xf32, #tpu.memory_space<vmem>>, vector<1x32x640xf32>
    %8 = vector.shape_cast %7 : vector<1x32x640xf32> to vector<32x640xf32>
    %9 = vector.extract_strided_slice %8 {offsets = [0, 105], sizes = [32, 384], strides = [1, 1]} : vector<32x640xf32> to vector<32x384xf32>
    %c0_12 = arith.constant 0 : index
    %c0_13 = arith.constant 0 : index
    %c0_14 = arith.constant 0 : index
    %c0_15 = arith.constant 0 : index
    %10 = vector.load %arg2[%c0_12, %c0_13, %c0_14, %c0_15] : memref<3x9x32x32xf32, #tpu.memory_space<vmem>>, vector<1x1x32x32xf32>
    %11 = vector.shape_cast %10 : vector<1x1x32x32xf32> to vector<32x32xf32>
    %cst_16 = arith.constant dense<0.000000e+00> : vector<32x384xf32>
    %12 = tpu.matmul %11, %9, %cst_16 {dimension_numbers = #tpu.dot_dimension_numbers<[1], [0], [0], [1], [0, 0, 1, 1], [], []>} : vector<32x32xf32>, vector<32x384xf32>, vector<32x384xf32> -> vector<32x384xf32>
    %13 = vector.extract_strided_slice %8 {offsets = [0, 106], sizes = [32, 384], strides = [1, 1]} : vector<32x640xf32> to vector<32x384xf32>
    %c0_17 = arith.constant 0 : index
    %c1 = arith.constant 1 : index
    %c0_18 = arith.constant 0 : index
    %c0_19 = arith.constant 0 : index
    %14 = vector.load %arg2[%c0_17, %c1, %c0_18, %c0_19] : memref<3x9x32x32xf32, #tpu.memory_space<vmem>>, vector<1x1x32x32xf32>
    %15 = vector.shape_cast %14 : vector<1x1x32x32xf32> to vector<32x32xf32>
    %cst_20 = arith.constant dense<0.000000e+00> : vector<32x384xf32>
    %16 = tpu.matmul %15, %13, %cst_20 {dimension_numbers = #tpu.dot_dimension_numbers<[1], [0], [0], [1], [0, 0, 1, 1], [], []>} : vector<32x32xf32>, vector<32x384xf32>, vector<32x384xf32> -> vector<32x384xf32>
    %17 = arith.addf %12, %16 : vector<32x384xf32>
    %18 = vector.extract_strided_slice %8 {offsets = [0, 107], sizes = [32, 384], strides = [1, 1]} : vector<32x640xf32> to vector<32x384xf32>
    %c0_21 = arith.constant 0 : index
    %c2 = arith.constant 2 : index
    %c0_22 = arith.constant 0 : index
    %c0_23 = arith.constant 0 : index
    %19 = vector.load %arg2[%c0_21, %c2, %c0_22, %c0_23] : memref<3x9x32x32xf32, #tpu.memory_space<vmem>>, vector<1x1x32x32xf32>
    %20 = vector.shape_cast %19 : vector<1x1x32x32xf32> to vector<32x32xf32>
    %cst_24 = arith.constant dense<0.000000e+00> : vector<32x384xf32>
    %21 = tpu.matmul %20, %18, %cst_24 {dimension_numbers = #tpu.dot_dimension_numbers<[1], [0], [0], [1], [0, 0, 1, 1], [], []>} : vector<32x32xf32>, vector<32x384xf32>, vector<32x384xf32> -> vector<32x384xf32>
    %22 = arith.addf %17, %21 : vector<32x384xf32>
    %23 = vector.extract_strided_slice %8 {offsets = [0, 127], sizes = [32, 384], strides = [1, 1]} : vector<32x640xf32> to vector<32x384xf32>
    %c0_25 = arith.constant 0 : index
    %c3 = arith.constant 3 : index
    %c0_26 = arith.constant 0 : index
    %c0_27 = arith.constant 0 : index
    %24 = vector.load %arg2[%c0_25, %c3, %c0_26, %c0_27] : memref<3x9x32x32xf32, #tpu.memory_space<vmem>>, vector<1x1x32x32xf32>
    %25 = vector.shape_cast %24 : vector<1x1x32x32xf32> to vector<32x32xf32>
    %cst_28 = arith.constant dense<0.000000e+00> : vector<32x384xf32>
    %26 = tpu.matmul %25, %23, %cst_28 {dimension_numbers = #tpu.dot_dimension_numbers<[1], [0], [0], [1], [0, 0, 1, 1], [], []>} : vector<32x32xf32>, vector<32x384xf32>, vector<32x384xf32> -> vector<32x384xf32>
    %27 = arith.addf %22, %26 : vector<32x384xf32>
    %28 = vector.extract_strided_slice %8 {offsets = [0, 128], sizes = [32, 384], strides = [1, 1]} : vector<32x640xf32> to vector<32x384xf32>
    %c0_29 = arith.constant 0 : index
    %c4 = arith.constant 4 : index
    %c0_30 = arith.constant 0 : index
    %c0_31 = arith.constant 0 : index
    %29 = vector.load %arg2[%c0_29, %c4, %c0_30, %c0_31] : memref<3x9x32x32xf32, #tpu.memory_space<vmem>>, vector<1x1x32x32xf32>
    %30 = vector.shape_cast %29 : vector<1x1x32x32xf32> to vector<32x32xf32>
    %cst_32 = arith.constant dense<0.000000e+00> : vector<32x384xf32>
    %31 = tpu.matmul %30, %28, %cst_32 {dimension_numbers = #tpu.dot_dimension_numbers<[1], [0], [0], [1], [0, 0, 1, 1], [], []>} : vector<32x32xf32>, vector<32x384xf32>, vector<32x384xf32> -> vector<32x384xf32>
    %32 = arith.addf %27, %31 : vector<32x384xf32>
    %33 = vector.extract_strided_slice %8 {offsets = [0, 129], sizes = [32, 384], strides = [1, 1]} : vector<32x640xf32> to vector<32x384xf32>
    %c0_33 = arith.constant 0 : index
    %c5 = arith.constant 5 : index
    %c0_34 = arith.constant 0 : index
    %c0_35 = arith.constant 0 : index
    %34 = vector.load %arg2[%c0_33, %c5, %c0_34, %c0_35] : memref<3x9x32x32xf32, #tpu.memory_space<vmem>>, vector<1x1x32x32xf32>
    %35 = vector.shape_cast %34 : vector<1x1x32x32xf32> to vector<32x32xf32>
    %cst_36 = arith.constant dense<0.000000e+00> : vector<32x384xf32>
    %36 = tpu.matmul %35, %33, %cst_36 {dimension_numbers = #tpu.dot_dimension_numbers<[1], [0], [0], [1], [0, 0, 1, 1], [], []>} : vector<32x32xf32>, vector<32x384xf32>, vector<32x384xf32> -> vector<32x384xf32>
    %37 = arith.addf %32, %36 : vector<32x384xf32>
    %38 = vector.extract_strided_slice %8 {offsets = [0, 149], sizes = [32, 384], strides = [1, 1]} : vector<32x640xf32> to vector<32x384xf32>
    %c0_37 = arith.constant 0 : index
    %c6 = arith.constant 6 : index
    %c0_38 = arith.constant 0 : index
    %c0_39 = arith.constant 0 : index
    %39 = vector.load %arg2[%c0_37, %c6, %c0_38, %c0_39] : memref<3x9x32x32xf32, #tpu.memory_space<vmem>>, vector<1x1x32x32xf32>
    %40 = vector.shape_cast %39 : vector<1x1x32x32xf32> to vector<32x32xf32>
    %cst_40 = arith.constant dense<0.000000e+00> : vector<32x384xf32>
    %41 = tpu.matmul %40, %38, %cst_40 {dimension_numbers = #tpu.dot_dimension_numbers<[1], [0], [0], [1], [0, 0, 1, 1], [], []>} : vector<32x32xf32>, vector<32x384xf32>, vector<32x384xf32> -> vector<32x384xf32>
    %42 = arith.addf %37, %41 : vector<32x384xf32>
    %43 = vector.extract_strided_slice %8 {offsets = [0, 150], sizes = [32, 384], strides = [1, 1]} : vector<32x640xf32> to vector<32x384xf32>
    %c0_41 = arith.constant 0 : index
    %c7 = arith.constant 7 : index
    %c0_42 = arith.constant 0 : index
    %c0_43 = arith.constant 0 : index
    %44 = vector.load %arg2[%c0_41, %c7, %c0_42, %c0_43] : memref<3x9x32x32xf32, #tpu.memory_space<vmem>>, vector<1x1x32x32xf32>
    %45 = vector.shape_cast %44 : vector<1x1x32x32xf32> to vector<32x32xf32>
    %cst_44 = arith.constant dense<0.000000e+00> : vector<32x384xf32>
    %46 = tpu.matmul %45, %43, %cst_44 {dimension_numbers = #tpu.dot_dimension_numbers<[1], [0], [0], [1], [0, 0, 1, 1], [], []>} : vector<32x32xf32>, vector<32x384xf32>, vector<32x384xf32> -> vector<32x384xf32>
    %47 = arith.addf %42, %46 : vector<32x384xf32>
    %48 = vector.extract_strided_slice %8 {offsets = [0, 151], sizes = [32, 384], strides = [1, 1]} : vector<32x640xf32> to vector<32x384xf32>
    %c0_45 = arith.constant 0 : index
    %c8 = arith.constant 8 : index
    %c0_46 = arith.constant 0 : index
    %c0_47 = arith.constant 0 : index
    %49 = vector.load %arg2[%c0_45, %c8, %c0_46, %c0_47] : memref<3x9x32x32xf32, #tpu.memory_space<vmem>>, vector<1x1x32x32xf32>
    %50 = vector.shape_cast %49 : vector<1x1x32x32xf32> to vector<32x32xf32>
    %cst_48 = arith.constant dense<0.000000e+00> : vector<32x384xf32>
    %51 = tpu.matmul %50, %48, %cst_48 {dimension_numbers = #tpu.dot_dimension_numbers<[1], [0], [0], [1], [0, 0, 1, 1], [], []>} : vector<32x32xf32>, vector<32x384xf32>, vector<32x384xf32> -> vector<32x384xf32>
    %52 = arith.addf %47, %51 : vector<32x384xf32>
    %c0_49 = arith.constant 0 : index
    %c0_50 = arith.constant 0 : index
    %c0_51 = arith.constant 0 : index
    %53 = vector.load %arg3[%c0_49, %c0_50, %c0_51] : memref<3x32x1xf32, #tpu.memory_space<vmem>>, vector<1x32x1xf32>
    %54 = vector.shape_cast %53 : vector<1x32x1xf32> to vector<32x1xf32>
    %55 = vector.broadcast %54 : vector<32x1xf32> to vector<32x384xf32>
    %56 = arith.addf %52, %55 : vector<32x384xf32>
    %cst_52 = arith.constant 0.000000e+00 : f32
    %57 = vector.broadcast %cst_52 : f32 to vector<32x384xf32>
    %58 = arith.cmpf oge, %56, %57 : vector<32x384xf32>
    %cst_53 = arith.constant 0.00999999977 : f32
    %59 = vector.broadcast %cst_53 : f32 to vector<32x384xf32>
    %60 = arith.mulf %59, %56 : vector<32x384xf32>
    %61 = arith.select %58, %56, %60 : vector<32x384xi1>, vector<32x384xf32>
    %62 = vector.broadcast %0 : vector<1x384xf32> to vector<32x384xf32>
    %63 = arith.mulf %61, %62 : vector<32x384xf32>
    %c0_54 = arith.constant 0 : index
    %c128 = arith.constant 128 : index
    %64 = vector.load %arg6[%c0_54, %c128] : memref<32x640xf32, #tpu.memory_space<vmem>>, vector<32x384xf32>
    tpu.vector_store %arg6[%c0_54, %c128], %63 {strides = array<i32>} : memref<32x640xf32, #tpu.memory_space<vmem>>, vector<32x384xf32>,
    %c0_55 = arith.constant 0 : index
    %c0_56 = arith.constant 0 : index
    %65 = vector.load %arg6[%c0_55, %c0_56] : memref<32x640xf32, #tpu.memory_space<vmem>>, vector<32x640xf32>
    %66 = vector.extract_strided_slice %65 {offsets = [0, 82], sizes = [32, 384], strides = [1, 1]} : vector<32x640xf32> to vector<32x384xf32>
    %c1_57 = arith.constant 1 : index
    %c0_58 = arith.constant 0 : index
    %c0_59 = arith.constant 0 : index
    %c0_60 = arith.constant 0 : index
    %67 = vector.load %arg2[%c1_57, %c0_58, %c0_59, %c0_60] : memref<3x9x32x32xf32, #tpu.memory_space<vmem>>, vector<1x1x32x32xf32>
    %68 = vector.shape_cast %67 : vector<1x1x32x32xf32> to vector<32x32xf32>
    %cst_61 = arith.constant dense<0.000000e+00> : vector<32x384xf32>
    %69 = tpu.matmul %68, %66, %cst_61 {dimension_numbers = #tpu.dot_dimension_numbers<[1], [0], [0], [1], [0, 0, 1, 1], [], []>} : vector<32x32xf32>, vector<32x384xf32>, vector<32x384xf32> -> vector<32x384xf32>
    %70 = vector.extract_strided_slice %65 {offsets = [0, 84], sizes = [32, 384], strides = [1, 1]} : vector<32x640xf32> to vector<32x384xf32>
    %c1_62 = arith.constant 1 : index
    %c1_63 = arith.constant 1 : index
    %c0_64 = arith.constant 0 : index
    %c0_65 = arith.constant 0 : index
    %71 = vector.load %arg2[%c1_62, %c1_63, %c0_64, %c0_65] : memref<3x9x32x32xf32, #tpu.memory_space<vmem>>, vector<1x1x32x32xf32>
    %72 = vector.shape_cast %71 : vector<1x1x32x32xf32> to vector<32x32xf32>
    %cst_66 = arith.constant dense<0.000000e+00> : vector<32x384xf32>
    %73 = tpu.matmul %72, %70, %cst_66 {dimension_numbers = #tpu.dot_dimension_numbers<[1], [0], [0], [1], [0, 0, 1, 1], [], []>} : vector<32x32xf32>, vector<32x384xf32>, vector<32x384xf32> -> vector<32x384xf32>
    %74 = arith.addf %69, %73 : vector<32x384xf32>
    %75 = vector.extract_strided_slice %65 {offsets = [0, 86], sizes = [32, 384], strides = [1, 1]} : vector<32x640xf32> to vector<32x384xf32>
    %c1_67 = arith.constant 1 : index
    %c2_68 = arith.constant 2 : index
    %c0_69 = arith.constant 0 : index
    %c0_70 = arith.constant 0 : index
    %76 = vector.load %arg2[%c1_67, %c2_68, %c0_69, %c0_70] : memref<3x9x32x32xf32, #tpu.memory_space<vmem>>, vector<1x1x32x32xf32>
    %77 = vector.shape_cast %76 : vector<1x1x32x32xf32> to vector<32x32xf32>
    %cst_71 = arith.constant dense<0.000000e+00> : vector<32x384xf32>
    %78 = tpu.matmul %77, %75, %cst_71 {dimension_numbers = #tpu.dot_dimension_numbers<[1], [0], [0], [1], [0, 0, 1, 1], [], []>} : vector<32x32xf32>, vector<32x384xf32>, vector<32x384xf32> -> vector<32x384xf32>
    %79 = arith.addf %74, %78 : vector<32x384xf32>
    %80 = vector.extract_strided_slice %65 {offsets = [0, 126], sizes = [32, 384], strides = [1, 1]} : vector<32x640xf32> to vector<32x384xf32>
    %c1_72 = arith.constant 1 : index
    %c3_73 = arith.constant 3 : index
    %c0_74 = arith.constant 0 : index
    %c0_75 = arith.constant 0 : index
    %81 = vector.load %arg2[%c1_72, %c3_73, %c0_74, %c0_75] : memref<3x9x32x32xf32, #tpu.memory_space<vmem>>, vector<1x1x32x32xf32>
    %82 = vector.shape_cast %81 : vector<1x1x32x32xf32> to vector<32x32xf32>
    %cst_76 = arith.constant dense<0.000000e+00> : vector<32x384xf32>
    %83 = tpu.matmul %82, %80, %cst_76 {dimension_numbers = #tpu.dot_dimension_numbers<[1], [0], [0], [1], [0, 0, 1, 1], [], []>} : vector<32x32xf32>, vector<32x384xf32>, vector<32x384xf32> -> vector<32x384xf32>
    %84 = arith.addf %79, %83 : vector<32x384xf32>
    %85 = vector.extract_strided_slice %65 {offsets = [0, 128], sizes = [32, 384], strides = [1, 1]} : vector<32x640xf32> to vector<32x384xf32>
    %c1_77 = arith.constant 1 : index
    %c4_78 = arith.constant 4 : index
    %c0_79 = arith.constant 0 : index
    %c0_80 = arith.constant 0 : index
    %86 = vector.load %arg2[%c1_77, %c4_78, %c0_79, %c0_80] : memref<3x9x32x32xf32, #tpu.memory_space<vmem>>, vector<1x1x32x32xf32>
    %87 = vector.shape_cast %86 : vector<1x1x32x32xf32> to vector<32x32xf32>
    %cst_81 = arith.constant dense<0.000000e+00> : vector<32x384xf32>
    %88 = tpu.matmul %87, %85, %cst_81 {dimension_numbers = #tpu.dot_dimension_numbers<[1], [0], [0], [1], [0, 0, 1, 1], [], []>} : vector<32x32xf32>, vector<32x384xf32>, vector<32x384xf32> -> vector<32x384xf32>
    %89 = arith.addf %84, %88 : vector<32x384xf32>
    %90 = vector.extract_strided_slice %65 {offsets = [0, 130], sizes = [32, 384], strides = [1, 1]} : vector<32x640xf32> to vector<32x384xf32>
    %c1_82 = arith.constant 1 : index
    %c5_83 = arith.constant 5 : index
    %c0_84 = arith.constant 0 : index
    %c0_85 = arith.constant 0 : index
    %91 = vector.load %arg2[%c1_82, %c5_83, %c0_84, %c0_85] : memref<3x9x32x32xf32, #tpu.memory_space<vmem>>, vector<1x1x32x32xf32>
    %92 = vector.shape_cast %91 : vector<1x1x32x32xf32> to vector<32x32xf32>
    %cst_86 = arith.constant dense<0.000000e+00> : vector<32x384xf32>
    %93 = tpu.matmul %92, %90, %cst_86 {dimension_numbers = #tpu.dot_dimension_numbers<[1], [0], [0], [1], [0, 0, 1, 1], [], []>} : vector<32x32xf32>, vector<32x384xf32>, vector<32x384xf32> -> vector<32x384xf32>
    %94 = arith.addf %89, %93 : vector<32x384xf32>
    %95 = vector.extract_strided_slice %65 {offsets = [0, 170], sizes = [32, 384], strides = [1, 1]} : vector<32x640xf32> to vector<32x384xf32>
    %c1_87 = arith.constant 1 : index
    %c6_88 = arith.constant 6 : index
    %c0_89 = arith.constant 0 : index
    %c0_90 = arith.constant 0 : index
    %96 = vector.load %arg2[%c1_87, %c6_88, %c0_89, %c0_90] : memref<3x9x32x32xf32, #tpu.memory_space<vmem>>, vector<1x1x32x32xf32>
    %97 = vector.shape_cast %96 : vector<1x1x32x32xf32> to vector<32x32xf32>
    %cst_91 = arith.constant dense<0.000000e+00> : vector<32x384xf32>
    %98 = tpu.matmul %97, %95, %cst_91 {dimension_numbers = #tpu.dot_dimension_numbers<[1], [0], [0], [1], [0, 0, 1, 1], [], []>} : vector<32x32xf32>, vector<32x384xf32>, vector<32x384xf32> -> vector<32x384xf32>
    %99 = arith.addf %94, %98 : vector<32x384xf32>
    %100 = vector.extract_strided_slice %65 {offsets = [0, 172], sizes = [32, 384], strides = [1, 1]} : vector<32x640xf32> to vector<32x384xf32>
    %c1_92 = arith.constant 1 : index
    %c7_93 = arith.constant 7 : index
    %c0_94 = arith.constant 0 : index
    %c0_95 = arith.constant 0 : index
    %101 = vector.load %arg2[%c1_92, %c7_93, %c0_94, %c0_95] : memref<3x9x32x32xf32, #tpu.memory_space<vmem>>, vector<1x1x32x32xf32>
    %102 = vector.shape_cast %101 : vector<1x1x32x32xf32> to vector<32x32xf32>
    %cst_96 = arith.constant dense<0.000000e+00> : vector<32x384xf32>
    %103 = tpu.matmul %102, %100, %cst_96 {dimension_numbers = #tpu.dot_dimension_numbers<[1], [0], [0], [1], [0, 0, 1, 1], [], []>} : vector<32x32xf32>, vector<32x384xf32>, vector<32x384xf32> -> vector<32x384xf32>
    %104 = arith.addf %99, %103 : vector<32x384xf32>
    %105 = vector.extract_strided_slice %65 {offsets = [0, 174], sizes = [32, 384], strides = [1, 1]} : vector<32x640xf32> to vector<32x384xf32>
    %c1_97 = arith.constant 1 : index
    %c8_98 = arith.constant 8 : index
    %c0_99 = arith.constant 0 : index
    %c0_100 = arith.constant 0 : index
    %106 = vector.load %arg2[%c1_97, %c8_98, %c0_99, %c0_100] : memref<3x9x32x32xf32, #tpu.memory_space<vmem>>, vector<1x1x32x32xf32>
    %107 = vector.shape_cast %106 : vector<1x1x32x32xf32> to vector<32x32xf32>
    %cst_101 = arith.constant dense<0.000000e+00> : vector<32x384xf32>
    %108 = tpu.matmul %107, %105, %cst_101 {dimension_numbers = #tpu.dot_dimension_numbers<[1], [0], [0], [1], [0, 0, 1, 1], [], []>} : vector<32x32xf32>, vector<32x384xf32>, vector<32x384xf32> -> vector<32x384xf32>
    %109 = arith.addf %104, %108 : vector<32x384xf32>
    %c1_102 = arith.constant 1 : index
    %c0_103 = arith.constant 0 : index
    %c0_104 = arith.constant 0 : index
    %110 = vector.load %arg3[%c1_102, %c0_103, %c0_104] : memref<3x32x1xf32, #tpu.memory_space<vmem>>, vector<1x32x1xf32>
    %111 = vector.shape_cast %110 : vector<1x32x1xf32> to vector<32x1xf32>
    %112 = vector.broadcast %111 : vector<32x1xf32> to vector<32x384xf32>
    %113 = arith.addf %109, %112 : vector<32x384xf32>
    %cst_105 = arith.constant 0.000000e+00 : f32
    %114 = vector.broadcast %cst_105 : f32 to vector<32x384xf32>
    %115 = arith.cmpf oge, %113, %114 : vector<32x384xf32>
    %cst_106 = arith.constant 0.00999999977 : f32
    %116 = vector.broadcast %cst_106 : f32 to vector<32x384xf32>
    %117 = arith.mulf %116, %113 : vector<32x384xf32>
    %118 = arith.select %115, %113, %117 : vector<32x384xi1>, vector<32x384xf32>
    %119 = vector.broadcast %0 : vector<1x384xf32> to vector<32x384xf32>
    %120 = arith.mulf %118, %119 : vector<32x384xf32>
    %c0_107 = arith.constant 0 : index
    %c128_108 = arith.constant 128 : index
    %121 = vector.load %arg7[%c0_107, %c128_108] : memref<32x640xf32, #tpu.memory_space<vmem>>, vector<32x384xf32>
    tpu.vector_store %arg7[%c0_107, %c128_108], %120 {strides = array<i32>} : memref<32x640xf32, #tpu.memory_space<vmem>>, vector<32x384xf32>,
    %c0_109 = arith.constant 0 : index
    %c0_110 = arith.constant 0 : index
    %122 = vector.load %arg7[%c0_109, %c0_110] : memref<32x640xf32, #tpu.memory_space<vmem>>, vector<32x640xf32>
    %123 = vector.extract_strided_slice %122 {offsets = [0, 59], sizes = [32, 384], strides = [1, 1]} : vector<32x640xf32> to vector<32x384xf32>
    %c2_111 = arith.constant 2 : index
    %c0_112 = arith.constant 0 : index
    %c0_113 = arith.constant 0 : index
    %c0_114 = arith.constant 0 : index
    %124 = vector.load %arg2[%c2_111, %c0_112, %c0_113, %c0_114] : memref<3x9x32x32xf32, #tpu.memory_space<vmem>>, vector<1x1x32x32xf32>
    %125 = vector.shape_cast %124 : vector<1x1x32x32xf32> to vector<32x32xf32>
    %cst_115 = arith.constant dense<0.000000e+00> : vector<32x384xf32>
    %126 = tpu.matmul %125, %123, %cst_115 {dimension_numbers = #tpu.dot_dimension_numbers<[1], [0], [0], [1], [0, 0, 1, 1], [], []>} : vector<32x32xf32>, vector<32x384xf32>, vector<32x384xf32> -> vector<32x384xf32>
    %127 = vector.extract_strided_slice %122 {offsets = [0, 62], sizes = [32, 384], strides = [1, 1]} : vector<32x640xf32> to vector<32x384xf32>
    %c2_116 = arith.constant 2 : index
    %c1_117 = arith.constant 1 : index
    %c0_118 = arith.constant 0 : index
    %c0_119 = arith.constant 0 : index
    %128 = vector.load %arg2[%c2_116, %c1_117, %c0_118, %c0_119] : memref<3x9x32x32xf32, #tpu.memory_space<vmem>>, vector<1x1x32x32xf32>
    %129 = vector.shape_cast %128 : vector<1x1x32x32xf32> to vector<32x32xf32>
    %cst_120 = arith.constant dense<0.000000e+00> : vector<32x384xf32>
    %130 = tpu.matmul %129, %127, %cst_120 {dimension_numbers = #tpu.dot_dimension_numbers<[1], [0], [0], [1], [0, 0, 1, 1], [], []>} : vector<32x32xf32>, vector<32x384xf32>, vector<32x384xf32> -> vector<32x384xf32>
    %131 = arith.addf %126, %130 : vector<32x384xf32>
    %132 = vector.extract_strided_slice %122 {offsets = [0, 65], sizes = [32, 384], strides = [1, 1]} : vector<32x640xf32> to vector<32x384xf32>
    %c2_121 = arith.constant 2 : index
    %c2_122 = arith.constant 2 : index
    %c0_123 = arith.constant 0 : index
    %c0_124 = arith.constant 0 : index
    %133 = vector.load %arg2[%c2_121, %c2_122, %c0_123, %c0_124] : memref<3x9x32x32xf32, #tpu.memory_space<vmem>>, vector<1x1x32x32xf32>
    %134 = vector.shape_cast %133 : vector<1x1x32x32xf32> to vector<32x32xf32>
    %cst_125 = arith.constant dense<0.000000e+00> : vector<32x384xf32>
    %135 = tpu.matmul %134, %132, %cst_125 {dimension_numbers = #tpu.dot_dimension_numbers<[1], [0], [0], [1], [0, 0, 1, 1], [], []>} : vector<32x32xf32>, vector<32x384xf32>, vector<32x384xf32> -> vector<32x384xf32>
    %136 = arith.addf %131, %135 : vector<32x384xf32>
    %137 = vector.extract_strided_slice %122 {offsets = [0, 125], sizes = [32, 384], strides = [1, 1]} : vector<32x640xf32> to vector<32x384xf32>
    %c2_126 = arith.constant 2 : index
    %c3_127 = arith.constant 3 : index
    %c0_128 = arith.constant 0 : index
    %c0_129 = arith.constant 0 : index
    %138 = vector.load %arg2[%c2_126, %c3_127, %c0_128, %c0_129] : memref<3x9x32x32xf32, #tpu.memory_space<vmem>>, vector<1x1x32x32xf32>
    %139 = vector.shape_cast %138 : vector<1x1x32x32xf32> to vector<32x32xf32>
    %cst_130 = arith.constant dense<0.000000e+00> : vector<32x384xf32>
    %140 = tpu.matmul %139, %137, %cst_130 {dimension_numbers = #tpu.dot_dimension_numbers<[1], [0], [0], [1], [0, 0, 1, 1], [], []>} : vector<32x32xf32>, vector<32x384xf32>, vector<32x384xf32> -> vector<32x384xf32>
    %141 = arith.addf %136, %140 : vector<32x384xf32>
    %142 = vector.extract_strided_slice %122 {offsets = [0, 128], sizes = [32, 384], strides = [1, 1]} : vector<32x640xf32> to vector<32x384xf32>
    %c2_131 = arith.constant 2 : index
    %c4_132 = arith.constant 4 : index
    %c0_133 = arith.constant 0 : index
    %c0_134 = arith.constant 0 : index
    %143 = vector.load %arg2[%c2_131, %c4_132, %c0_133, %c0_134] : memref<3x9x32x32xf32, #tpu.memory_space<vmem>>, vector<1x1x32x32xf32>
    %144 = vector.shape_cast %143 : vector<1x1x32x32xf32> to vector<32x32xf32>
    %cst_135 = arith.constant dense<0.000000e+00> : vector<32x384xf32>
    %145 = tpu.matmul %144, %142, %cst_135 {dimension_numbers = #tpu.dot_dimension_numbers<[1], [0], [0], [1], [0, 0, 1, 1], [], []>} : vector<32x32xf32>, vector<32x384xf32>, vector<32x384xf32> -> vector<32x384xf32>
    %146 = arith.addf %141, %145 : vector<32x384xf32>
    %147 = vector.extract_strided_slice %122 {offsets = [0, 131], sizes = [32, 384], strides = [1, 1]} : vector<32x640xf32> to vector<32x384xf32>
    %c2_136 = arith.constant 2 : index
    %c5_137 = arith.constant 5 : index
    %c0_138 = arith.constant 0 : index
    %c0_139 = arith.constant 0 : index
    %148 = vector.load %arg2[%c2_136, %c5_137, %c0_138, %c0_139] : memref<3x9x32x32xf32, #tpu.memory_space<vmem>>, vector<1x1x32x32xf32>
    %149 = vector.shape_cast %148 : vector<1x1x32x32xf32> to vector<32x32xf32>
    %cst_140 = arith.constant dense<0.000000e+00> : vector<32x384xf32>
    %150 = tpu.matmul %149, %147, %cst_140 {dimension_numbers = #tpu.dot_dimension_numbers<[1], [0], [0], [1], [0, 0, 1, 1], [], []>} : vector<32x32xf32>, vector<32x384xf32>, vector<32x384xf32> -> vector<32x384xf32>
    %151 = arith.addf %146, %150 : vector<32x384xf32>
    %152 = vector.extract_strided_slice %122 {offsets = [0, 191], sizes = [32, 384], strides = [1, 1]} : vector<32x640xf32> to vector<32x384xf32>
    %c2_141 = arith.constant 2 : index
    %c6_142 = arith.constant 6 : index
    %c0_143 = arith.constant 0 : index
    %c0_144 = arith.constant 0 : index
    %153 = vector.load %arg2[%c2_141, %c6_142, %c0_143, %c0_144] : memref<3x9x32x32xf32, #tpu.memory_space<vmem>>, vector<1x1x32x32xf32>
    %154 = vector.shape_cast %153 : vector<1x1x32x32xf32> to vector<32x32xf32>
    %cst_145 = arith.constant dense<0.000000e+00> : vector<32x384xf32>
    %155 = tpu.matmul %154, %152, %cst_145 {dimension_numbers = #tpu.dot_dimension_numbers<[1], [0], [0], [1], [0, 0, 1, 1], [], []>} : vector<32x32xf32>, vector<32x384xf32>, vector<32x384xf32> -> vector<32x384xf32>
    %156 = arith.addf %151, %155 : vector<32x384xf32>
    %157 = vector.extract_strided_slice %122 {offsets = [0, 194], sizes = [32, 384], strides = [1, 1]} : vector<32x640xf32> to vector<32x384xf32>
    %c2_146 = arith.constant 2 : index
    %c7_147 = arith.constant 7 : index
    %c0_148 = arith.constant 0 : index
    %c0_149 = arith.constant 0 : index
    %158 = vector.load %arg2[%c2_146, %c7_147, %c0_148, %c0_149] : memref<3x9x32x32xf32, #tpu.memory_space<vmem>>, vector<1x1x32x32xf32>
    %159 = vector.shape_cast %158 : vector<1x1x32x32xf32> to vector<32x32xf32>
    %cst_150 = arith.constant dense<0.000000e+00> : vector<32x384xf32>
    %160 = tpu.matmul %159, %157, %cst_150 {dimension_numbers = #tpu.dot_dimension_numbers<[1], [0], [0], [1], [0, 0, 1, 1], [], []>} : vector<32x32xf32>, vector<32x384xf32>, vector<32x384xf32> -> vector<32x384xf32>
    %161 = arith.addf %156, %160 : vector<32x384xf32>
    %162 = vector.extract_strided_slice %122 {offsets = [0, 197], sizes = [32, 384], strides = [1, 1]} : vector<32x640xf32> to vector<32x384xf32>
    %c2_151 = arith.constant 2 : index
    %c8_152 = arith.constant 8 : index
    %c0_153 = arith.constant 0 : index
    %c0_154 = arith.constant 0 : index
    %163 = vector.load %arg2[%c2_151, %c8_152, %c0_153, %c0_154] : memref<3x9x32x32xf32, #tpu.memory_space<vmem>>, vector<1x1x32x32xf32>
    %164 = vector.shape_cast %163 : vector<1x1x32x32xf32> to vector<32x32xf32>
    %cst_155 = arith.constant dense<0.000000e+00> : vector<32x384xf32>
    %165 = tpu.matmul %164, %162, %cst_155 {dimension_numbers = #tpu.dot_dimension_numbers<[1], [0], [0], [1], [0, 0, 1, 1], [], []>} : vector<32x32xf32>, vector<32x384xf32>, vector<32x384xf32> -> vector<32x384xf32>
    %166 = arith.addf %161, %165 : vector<32x384xf32>
    %c2_156 = arith.constant 2 : index
    %c0_157 = arith.constant 0 : index
    %c0_158 = arith.constant 0 : index
    %167 = vector.load %arg3[%c2_156, %c0_157, %c0_158] : memref<3x32x1xf32, #tpu.memory_space<vmem>>, vector<1x32x1xf32>
    %168 = vector.shape_cast %167 : vector<1x32x1xf32> to vector<32x1xf32>
    %169 = vector.broadcast %168 : vector<32x1xf32> to vector<32x384xf32>
    %170 = arith.addf %166, %169 : vector<32x384xf32>
    %cst_159 = arith.constant 0.000000e+00 : f32
    %171 = vector.broadcast %cst_159 : f32 to vector<32x384xf32>
    %172 = arith.cmpf oge, %170, %171 : vector<32x384xf32>
    %cst_160 = arith.constant 0.00999999977 : f32
    %173 = vector.broadcast %cst_160 : f32 to vector<32x384xf32>
    %174 = arith.mulf %173, %170 : vector<32x384xf32>
    %175 = arith.select %172, %170, %174 : vector<32x384xi1>, vector<32x384xf32>
    %176 = vector.broadcast %0 : vector<1x384xf32> to vector<32x384xf32>
    %177 = arith.mulf %175, %176 : vector<32x384xf32>
    %c0_161 = arith.constant 0 : index
    %c0_162 = arith.constant 0 : index
    %c0_163 = arith.constant 0 : index
    %178 = vector.load %arg5[%c0_161, %c0_162, %c0_163] : memref<2x32x384xf32, #tpu.memory_space<vmem>>, vector<1x32x384xf32>
    %179 = vector.shape_cast %178 : vector<1x32x384xf32> to vector<32x384xf32>
    %180 = vector.shape_cast %177 : vector<32x384xf32> to vector<1x32x384xf32>
    tpu.vector_store %arg5[%c0_161, %c0_162, %c0_163], %180 {strides = array<i32>} : memref<2x32x384xf32, #tpu.memory_space<vmem>>, vector<1x32x384xf32>,
    %c1_164 = arith.constant 1 : index
    %c0_165 = arith.constant 0 : index
    %c0_166 = arith.constant 0 : index
    %181 = vector.load %arg1[%c1_164, %c0_165, %c0_166] : memref<2x32x640xf32, #tpu.memory_space<vmem>>, vector<1x32x640xf32>
    %182 = vector.shape_cast %181 : vector<1x32x640xf32> to vector<32x640xf32>
    %183 = vector.extract_strided_slice %182 {offsets = [0, 105], sizes = [32, 384], strides = [1, 1]} : vector<32x640xf32> to vector<32x384xf32>
    %c0_167 = arith.constant 0 : index
    %c0_168 = arith.constant 0 : index
    %c0_169 = arith.constant 0 : index
    %c0_170 = arith.constant 0 : index
    %184 = vector.load %arg2[%c0_167, %c0_168, %c0_169, %c0_170] : memref<3x9x32x32xf32, #tpu.memory_space<vmem>>, vector<1x1x32x32xf32>
    %185 = vector.shape_cast %184 : vector<1x1x32x32xf32> to vector<32x32xf32>
    %cst_171 = arith.constant dense<0.000000e+00> : vector<32x384xf32>
    %186 = tpu.matmul %185, %183, %cst_171 {dimension_numbers = #tpu.dot_dimension_numbers<[1], [0], [0], [1], [0, 0, 1, 1], [], []>} : vector<32x32xf32>, vector<32x384xf32>, vector<32x384xf32> -> vector<32x384xf32>
    %187 = vector.extract_strided_slice %182 {offsets = [0, 106], sizes = [32, 384], strides = [1, 1]} : vector<32x640xf32> to vector<32x384xf32>
    %c0_172 = arith.constant 0 : index
    %c1_173 = arith.constant 1 : index
    %c0_174 = arith.constant 0 : index
    %c0_175 = arith.constant 0 : index
    %188 = vector.load %arg2[%c0_172, %c1_173, %c0_174, %c0_175] : memref<3x9x32x32xf32, #tpu.memory_space<vmem>>, vector<1x1x32x32xf32>
    %189 = vector.shape_cast %188 : vector<1x1x32x32xf32> to vector<32x32xf32>
    %cst_176 = arith.constant dense<0.000000e+00> : vector<32x384xf32>
    %190 = tpu.matmul %189, %187, %cst_176 {dimension_numbers = #tpu.dot_dimension_numbers<[1], [0], [0], [1], [0, 0, 1, 1], [], []>} : vector<32x32xf32>, vector<32x384xf32>, vector<32x384xf32> -> vector<32x384xf32>
    %191 = arith.addf %186, %190 : vector<32x384xf32>
    %192 = vector.extract_strided_slice %182 {offsets = [0, 107], sizes = [32, 384], strides = [1, 1]} : vector<32x640xf32> to vector<32x384xf32>
    %c0_177 = arith.constant 0 : index
    %c2_178 = arith.constant 2 : index
    %c0_179 = arith.constant 0 : index
    %c0_180 = arith.constant 0 : index
    %193 = vector.load %arg2[%c0_177, %c2_178, %c0_179, %c0_180] : memref<3x9x32x32xf32, #tpu.memory_space<vmem>>, vector<1x1x32x32xf32>
    %194 = vector.shape_cast %193 : vector<1x1x32x32xf32> to vector<32x32xf32>
    %cst_181 = arith.constant dense<0.000000e+00> : vector<32x384xf32>
    %195 = tpu.matmul %194, %192, %cst_181 {dimension_numbers = #tpu.dot_dimension_numbers<[1], [0], [0], [1], [0, 0, 1, 1], [], []>} : vector<32x32xf32>, vector<32x384xf32>, vector<32x384xf32> -> vector<32x384xf32>
    %196 = arith.addf %191, %195 : vector<32x384xf32>
    %197 = vector.extract_strided_slice %182 {offsets = [0, 127], sizes = [32, 384], strides = [1, 1]} : vector<32x640xf32> to vector<32x384xf32>
    %c0_182 = arith.constant 0 : index
    %c3_183 = arith.constant 3 : index
    %c0_184 = arith.constant 0 : index
    %c0_185 = arith.constant 0 : index
    %198 = vector.load %arg2[%c0_182, %c3_183, %c0_184, %c0_185] : memref<3x9x32x32xf32, #tpu.memory_space<vmem>>, vector<1x1x32x32xf32>
    %199 = vector.shape_cast %198 : vector<1x1x32x32xf32> to vector<32x32xf32>
    %cst_186 = arith.constant dense<0.000000e+00> : vector<32x384xf32>
    %200 = tpu.matmul %199, %197, %cst_186 {dimension_numbers = #tpu.dot_dimension_numbers<[1], [0], [0], [1], [0, 0, 1, 1], [], []>} : vector<32x32xf32>, vector<32x384xf32>, vector<32x384xf32> -> vector<32x384xf32>
    %201 = arith.addf %196, %200 : vector<32x384xf32>
    %202 = vector.extract_strided_slice %182 {offsets = [0, 128], sizes = [32, 384], strides = [1, 1]} : vector<32x640xf32> to vector<32x384xf32>
    %c0_187 = arith.constant 0 : index
    %c4_188 = arith.constant 4 : index
    %c0_189 = arith.constant 0 : index
    %c0_190 = arith.constant 0 : index
    %203 = vector.load %arg2[%c0_187, %c4_188, %c0_189, %c0_190] : memref<3x9x32x32xf32, #tpu.memory_space<vmem>>, vector<1x1x32x32xf32>
    %204 = vector.shape_cast %203 : vector<1x1x32x32xf32> to vector<32x32xf32>
    %cst_191 = arith.constant dense<0.000000e+00> : vector<32x384xf32>
    %205 = tpu.matmul %204, %202, %cst_191 {dimension_numbers = #tpu.dot_dimension_numbers<[1], [0], [0], [1], [0, 0, 1, 1], [], []>} : vector<32x32xf32>, vector<32x384xf32>, vector<32x384xf32> -> vector<32x384xf32>
    %206 = arith.addf %201, %205 : vector<32x384xf32>
    %207 = vector.extract_strided_slice %182 {offsets = [0, 129], sizes = [32, 384], strides = [1, 1]} : vector<32x640xf32> to vector<32x384xf32>
    %c0_192 = arith.constant 0 : index
    %c5_193 = arith.constant 5 : index
    %c0_194 = arith.constant 0 : index
    %c0_195 = arith.constant 0 : index
    %208 = vector.load %arg2[%c0_192, %c5_193, %c0_194, %c0_195] : memref<3x9x32x32xf32, #tpu.memory_space<vmem>>, vector<1x1x32x32xf32>
    %209 = vector.shape_cast %208 : vector<1x1x32x32xf32> to vector<32x32xf32>
    %cst_196 = arith.constant dense<0.000000e+00> : vector<32x384xf32>
    %210 = tpu.matmul %209, %207, %cst_196 {dimension_numbers = #tpu.dot_dimension_numbers<[1], [0], [0], [1], [0, 0, 1, 1], [], []>} : vector<32x32xf32>, vector<32x384xf32>, vector<32x384xf32> -> vector<32x384xf32>
    %211 = arith.addf %206, %210 : vector<32x384xf32>
    %212 = vector.extract_strided_slice %182 {offsets = [0, 149], sizes = [32, 384], strides = [1, 1]} : vector<32x640xf32> to vector<32x384xf32>
    %c0_197 = arith.constant 0 : index
    %c6_198 = arith.constant 6 : index
    %c0_199 = arith.constant 0 : index
    %c0_200 = arith.constant 0 : index
    %213 = vector.load %arg2[%c0_197, %c6_198, %c0_199, %c0_200] : memref<3x9x32x32xf32, #tpu.memory_space<vmem>>, vector<1x1x32x32xf32>
    %214 = vector.shape_cast %213 : vector<1x1x32x32xf32> to vector<32x32xf32>
    %cst_201 = arith.constant dense<0.000000e+00> : vector<32x384xf32>
    %215 = tpu.matmul %214, %212, %cst_201 {dimension_numbers = #tpu.dot_dimension_numbers<[1], [0], [0], [1], [0, 0, 1, 1], [], []>} : vector<32x32xf32>, vector<32x384xf32>, vector<32x384xf32> -> vector<32x384xf32>
    %216 = arith.addf %211, %215 : vector<32x384xf32>
    %217 = vector.extract_strided_slice %182 {offsets = [0, 150], sizes = [32, 384], strides = [1, 1]} : vector<32x640xf32> to vector<32x384xf32>
    %c0_202 = arith.constant 0 : index
    %c7_203 = arith.constant 7 : index
    %c0_204 = arith.constant 0 : index
    %c0_205 = arith.constant 0 : index
    %218 = vector.load %arg2[%c0_202, %c7_203, %c0_204, %c0_205] : memref<3x9x32x32xf32, #tpu.memory_space<vmem>>, vector<1x1x32x32xf32>
    %219 = vector.shape_cast %218 : vector<1x1x32x32xf32> to vector<32x32xf32>
    %cst_206 = arith.constant dense<0.000000e+00> : vector<32x384xf32>
    %220 = tpu.matmul %219, %217, %cst_206 {dimension_numbers = #tpu.dot_dimension_numbers<[1], [0], [0], [1], [0, 0, 1, 1], [], []>} : vector<32x32xf32>, vector<32x384xf32>, vector<32x384xf32> -> vector<32x384xf32>
    %221 = arith.addf %216, %220 : vector<32x384xf32>
    %222 = vector.extract_strided_slice %182 {offsets = [0, 151], sizes = [32, 384], strides = [1, 1]} : vector<32x640xf32> to vector<32x384xf32>
    %c0_207 = arith.constant 0 : index
    %c8_208 = arith.constant 8 : index
    %c0_209 = arith.constant 0 : index
    %c0_210 = arith.constant 0 : index
    %223 = vector.load %arg2[%c0_207, %c8_208, %c0_209, %c0_210] : memref<3x9x32x32xf32, #tpu.memory_space<vmem>>, vector<1x1x32x32xf32>
    %224 = vector.shape_cast %223 : vector<1x1x32x32xf32> to vector<32x32xf32>
    %cst_211 = arith.constant dense<0.000000e+00> : vector<32x384xf32>
    %225 = tpu.matmul %224, %222, %cst_211 {dimension_numbers = #tpu.dot_dimension_numbers<[1], [0], [0], [1], [0, 0, 1, 1], [], []>} : vector<32x32xf32>, vector<32x384xf32>, vector<32x384xf32> -> vector<32x384xf32>
    %226 = arith.addf %221, %225 : vector<32x384xf32>
    %c0_212 = arith.constant 0 : index
    %c0_213 = arith.constant 0 : index
    %c0_214 = arith.constant 0 : index
    %227 = vector.load %arg3[%c0_212, %c0_213, %c0_214] : memref<3x32x1xf32, #tpu.memory_space<vmem>>, vector<1x32x1xf32>
    %228 = vector.shape_cast %227 : vector<1x32x1xf32> to vector<32x1xf32>
    %229 = vector.broadcast %228 : vector<32x1xf32> to vector<32x384xf32>
    %230 = arith.addf %226, %229 : vector<32x384xf32>
    %cst_215 = arith.constant 0.000000e+00 : f32
    %231 = vector.broadcast %cst_215 : f32 to vector<32x384xf32>
    %232 = arith.cmpf oge, %230, %231 : vector<32x384xf32>
    %cst_216 = arith.constant 0.00999999977 : f32
    %233 = vector.broadcast %cst_216 : f32 to vector<32x384xf32>
    %234 = arith.mulf %233, %230 : vector<32x384xf32>
    %235 = arith.select %232, %230, %234 : vector<32x384xi1>, vector<32x384xf32>
    %236 = vector.broadcast %0 : vector<1x384xf32> to vector<32x384xf32>
    %237 = arith.mulf %235, %236 : vector<32x384xf32>
    %c0_217 = arith.constant 0 : index
    %c128_218 = arith.constant 128 : index
    %238 = vector.load %arg6[%c0_217, %c128_218] : memref<32x640xf32, #tpu.memory_space<vmem>>, vector<32x384xf32>
    tpu.vector_store %arg6[%c0_217, %c128_218], %237 {strides = array<i32>} : memref<32x640xf32, #tpu.memory_space<vmem>>, vector<32x384xf32>,
    %c0_219 = arith.constant 0 : index
    %c0_220 = arith.constant 0 : index
    %239 = vector.load %arg6[%c0_219, %c0_220] : memref<32x640xf32, #tpu.memory_space<vmem>>, vector<32x640xf32>
    %240 = vector.extract_strided_slice %239 {offsets = [0, 82], sizes = [32, 384], strides = [1, 1]} : vector<32x640xf32> to vector<32x384xf32>
    %c1_221 = arith.constant 1 : index
    %c0_222 = arith.constant 0 : index
    %c0_223 = arith.constant 0 : index
    %c0_224 = arith.constant 0 : index
    %241 = vector.load %arg2[%c1_221, %c0_222, %c0_223, %c0_224] : memref<3x9x32x32xf32, #tpu.memory_space<vmem>>, vector<1x1x32x32xf32>
    %242 = vector.shape_cast %241 : vector<1x1x32x32xf32> to vector<32x32xf32>
    %cst_225 = arith.constant dense<0.000000e+00> : vector<32x384xf32>
    %243 = tpu.matmul %242, %240, %cst_225 {dimension_numbers = #tpu.dot_dimension_numbers<[1], [0], [0], [1], [0, 0, 1, 1], [], []>} : vector<32x32xf32>, vector<32x384xf32>, vector<32x384xf32> -> vector<32x384xf32>
    %244 = vector.extract_strided_slice %239 {offsets = [0, 84], sizes = [32, 384], strides = [1, 1]} : vector<32x640xf32> to vector<32x384xf32>
    %c1_226 = arith.constant 1 : index
    %c1_227 = arith.constant 1 : index
    %c0_228 = arith.constant 0 : index
    %c0_229 = arith.constant 0 : index
    %245 = vector.load %arg2[%c1_226, %c1_227, %c0_228, %c0_229] : memref<3x9x32x32xf32, #tpu.memory_space<vmem>>, vector<1x1x32x32xf32>
    %246 = vector.shape_cast %245 : vector<1x1x32x32xf32> to vector<32x32xf32>
    %cst_230 = arith.constant dense<0.000000e+00> : vector<32x384xf32>
    %247 = tpu.matmul %246, %244, %cst_230 {dimension_numbers = #tpu.dot_dimension_numbers<[1], [0], [0], [1], [0, 0, 1, 1], [], []>} : vector<32x32xf32>, vector<32x384xf32>, vector<32x384xf32> -> vector<32x384xf32>
    %248 = arith.addf %243, %247 : vector<32x384xf32>
    %249 = vector.extract_strided_slice %239 {offsets = [0, 86], sizes = [32, 384], strides = [1, 1]} : vector<32x640xf32> to vector<32x384xf32>
    %c1_231 = arith.constant 1 : index
    %c2_232 = arith.constant 2 : index
    %c0_233 = arith.constant 0 : index
    %c0_234 = arith.constant 0 : index
    %250 = vector.load %arg2[%c1_231, %c2_232, %c0_233, %c0_234] : memref<3x9x32x32xf32, #tpu.memory_space<vmem>>, vector<1x1x32x32xf32>
    %251 = vector.shape_cast %250 : vector<1x1x32x32xf32> to vector<32x32xf32>
    %cst_235 = arith.constant dense<0.000000e+00> : vector<32x384xf32>
    %252 = tpu.matmul %251, %249, %cst_235 {dimension_numbers = #tpu.dot_dimension_numbers<[1], [0], [0], [1], [0, 0, 1, 1], [], []>} : vector<32x32xf32>, vector<32x384xf32>, vector<32x384xf32> -> vector<32x384xf32>
    %253 = arith.addf %248, %252 : vector<32x384xf32>
    %254 = vector.extract_strided_slice %239 {offsets = [0, 126], sizes = [32, 384], strides = [1, 1]} : vector<32x640xf32> to vector<32x384xf32>
    %c1_236 = arith.constant 1 : index
    %c3_237 = arith.constant 3 : index
    %c0_238 = arith.constant 0 : index
    %c0_239 = arith.constant 0 : index
    %255 = vector.load %arg2[%c1_236, %c3_237, %c0_238, %c0_239] : memref<3x9x32x32xf32, #tpu.memory_space<vmem>>, vector<1x1x32x32xf32>
    %256 = vector.shape_cast %255 : vector<1x1x32x32xf32> to vector<32x32xf32>
    %cst_240 = arith.constant dense<0.000000e+00> : vector<32x384xf32>
    %257 = tpu.matmul %256, %254, %cst_240 {dimension_numbers = #tpu.dot_dimension_numbers<[1], [0], [0], [1], [0, 0, 1, 1], [], []>} : vector<32x32xf32>, vector<32x384xf32>, vector<32x384xf32> -> vector<32x384xf32>
    %258 = arith.addf %253, %257 : vector<32x384xf32>
    %259 = vector.extract_strided_slice %239 {offsets = [0, 128], sizes = [32, 384], strides = [1, 1]} : vector<32x640xf32> to vector<32x384xf32>
    %c1_241 = arith.constant 1 : index
    %c4_242 = arith.constant 4 : index
    %c0_243 = arith.constant 0 : index
    %c0_244 = arith.constant 0 : index
    %260 = vector.load %arg2[%c1_241, %c4_242, %c0_243, %c0_244] : memref<3x9x32x32xf32, #tpu.memory_space<vmem>>, vector<1x1x32x32xf32>
    %261 = vector.shape_cast %260 : vector<1x1x32x32xf32> to vector<32x32xf32>
    %cst_245 = arith.constant dense<0.000000e+00> : vector<32x384xf32>
    %262 = tpu.matmul %261, %259, %cst_245 {dimension_numbers = #tpu.dot_dimension_numbers<[1], [0], [0], [1], [0, 0, 1, 1], [], []>} : vector<32x32xf32>, vector<32x384xf32>, vector<32x384xf32> -> vector<32x384xf32>
    %263 = arith.addf %258, %262 : vector<32x384xf32>
    %264 = vector.extract_strided_slice %239 {offsets = [0, 130], sizes = [32, 384], strides = [1, 1]} : vector<32x640xf32> to vector<32x384xf32>
    %c1_246 = arith.constant 1 : index
    %c5_247 = arith.constant 5 : index
    %c0_248 = arith.constant 0 : index
    %c0_249 = arith.constant 0 : index
    %265 = vector.load %arg2[%c1_246, %c5_247, %c0_248, %c0_249] : memref<3x9x32x32xf32, #tpu.memory_space<vmem>>, vector<1x1x32x32xf32>
    %266 = vector.shape_cast %265 : vector<1x1x32x32xf32> to vector<32x32xf32>
    %cst_250 = arith.constant dense<0.000000e+00> : vector<32x384xf32>
    %267 = tpu.matmul %266, %264, %cst_250 {dimension_numbers = #tpu.dot_dimension_numbers<[1], [0], [0], [1], [0, 0, 1, 1], [], []>} : vector<32x32xf32>, vector<32x384xf32>, vector<32x384xf32> -> vector<32x384xf32>
    %268 = arith.addf %263, %267 : vector<32x384xf32>
    %269 = vector.extract_strided_slice %239 {offsets = [0, 170], sizes = [32, 384], strides = [1, 1]} : vector<32x640xf32> to vector<32x384xf32>
    %c1_251 = arith.constant 1 : index
    %c6_252 = arith.constant 6 : index
    %c0_253 = arith.constant 0 : index
    %c0_254 = arith.constant 0 : index
    %270 = vector.load %arg2[%c1_251, %c6_252, %c0_253, %c0_254] : memref<3x9x32x32xf32, #tpu.memory_space<vmem>>, vector<1x1x32x32xf32>
    %271 = vector.shape_cast %270 : vector<1x1x32x32xf32> to vector<32x32xf32>
    %cst_255 = arith.constant dense<0.000000e+00> : vector<32x384xf32>
    %272 = tpu.matmul %271, %269, %cst_255 {dimension_numbers = #tpu.dot_dimension_numbers<[1], [0], [0], [1], [0, 0, 1, 1], [], []>} : vector<32x32xf32>, vector<32x384xf32>, vector<32x384xf32> -> vector<32x384xf32>
    %273 = arith.addf %268, %272 : vector<32x384xf32>
    %274 = vector.extract_strided_slice %239 {offsets = [0, 172], sizes = [32, 384], strides = [1, 1]} : vector<32x640xf32> to vector<32x384xf32>
    %c1_256 = arith.constant 1 : index
    %c7_257 = arith.constant 7 : index
    %c0_258 = arith.constant 0 : index
    %c0_259 = arith.constant 0 : index
    %275 = vector.load %arg2[%c1_256, %c7_257, %c0_258, %c0_259] : memref<3x9x32x32xf32, #tpu.memory_space<vmem>>, vector<1x1x32x32xf32>
    %276 = vector.shape_cast %275 : vector<1x1x32x32xf32> to vector<32x32xf32>
    %cst_260 = arith.constant dense<0.000000e+00> : vector<32x384xf32>
    %277 = tpu.matmul %276, %274, %cst_260 {dimension_numbers = #tpu.dot_dimension_numbers<[1], [0], [0], [1], [0, 0, 1, 1], [], []>} : vector<32x32xf32>, vector<32x384xf32>, vector<32x384xf32> -> vector<32x384xf32>
    %278 = arith.addf %273, %277 : vector<32x384xf32>
    %279 = vector.extract_strided_slice %239 {offsets = [0, 174], sizes = [32, 384], strides = [1, 1]} : vector<32x640xf32> to vector<32x384xf32>
    %c1_261 = arith.constant 1 : index
    %c8_262 = arith.constant 8 : index
    %c0_263 = arith.constant 0 : index
    %c0_264 = arith.constant 0 : index
    %280 = vector.load %arg2[%c1_261, %c8_262, %c0_263, %c0_264] : memref<3x9x32x32xf32, #tpu.memory_space<vmem>>, vector<1x1x32x32xf32>
    %281 = vector.shape_cast %280 : vector<1x1x32x32xf32> to vector<32x32xf32>
    %cst_265 = arith.constant dense<0.000000e+00> : vector<32x384xf32>
    %282 = tpu.matmul %281, %279, %cst_265 {dimension_numbers = #tpu.dot_dimension_numbers<[1], [0], [0], [1], [0, 0, 1, 1], [], []>} : vector<32x32xf32>, vector<32x384xf32>, vector<32x384xf32> -> vector<32x384xf32>
    %283 = arith.addf %278, %282 : vector<32x384xf32>
    %c1_266 = arith.constant 1 : index
    %c0_267 = arith.constant 0 : index
    %c0_268 = arith.constant 0 : index
    %284 = vector.load %arg3[%c1_266, %c0_267, %c0_268] : memref<3x32x1xf32, #tpu.memory_space<vmem>>, vector<1x32x1xf32>
    %285 = vector.shape_cast %284 : vector<1x32x1xf32> to vector<32x1xf32>
    %286 = vector.broadcast %285 : vector<32x1xf32> to vector<32x384xf32>
    %287 = arith.addf %283, %286 : vector<32x384xf32>
    %cst_269 = arith.constant 0.000000e+00 : f32
    %288 = vector.broadcast %cst_269 : f32 to vector<32x384xf32>
    %289 = arith.cmpf oge, %287, %288 : vector<32x384xf32>
    %cst_270 = arith.constant 0.00999999977 : f32
    %290 = vector.broadcast %cst_270 : f32 to vector<32x384xf32>
    %291 = arith.mulf %290, %287 : vector<32x384xf32>
    %292 = arith.select %289, %287, %291 : vector<32x384xi1>, vector<32x384xf32>
    %293 = vector.broadcast %0 : vector<1x384xf32> to vector<32x384xf32>
    %294 = arith.mulf %292, %293 : vector<32x384xf32>
    %c0_271 = arith.constant 0 : index
    %c128_272 = arith.constant 128 : index
    %295 = vector.load %arg7[%c0_271, %c128_272] : memref<32x640xf32, #tpu.memory_space<vmem>>, vector<32x384xf32>
    tpu.vector_store %arg7[%c0_271, %c128_272], %294 {strides = array<i32>} : memref<32x640xf32, #tpu.memory_space<vmem>>, vector<32x384xf32>,
    %c0_273 = arith.constant 0 : index
    %c0_274 = arith.constant 0 : index
    %296 = vector.load %arg7[%c0_273, %c0_274] : memref<32x640xf32, #tpu.memory_space<vmem>>, vector<32x640xf32>
    %297 = vector.extract_strided_slice %296 {offsets = [0, 59], sizes = [32, 384], strides = [1, 1]} : vector<32x640xf32> to vector<32x384xf32>
    %c2_275 = arith.constant 2 : index
    %c0_276 = arith.constant 0 : index
    %c0_277 = arith.constant 0 : index
    %c0_278 = arith.constant 0 : index
    %298 = vector.load %arg2[%c2_275, %c0_276, %c0_277, %c0_278] : memref<3x9x32x32xf32, #tpu.memory_space<vmem>>, vector<1x1x32x32xf32>
    %299 = vector.shape_cast %298 : vector<1x1x32x32xf32> to vector<32x32xf32>
    %cst_279 = arith.constant dense<0.000000e+00> : vector<32x384xf32>
    %300 = tpu.matmul %299, %297, %cst_279 {dimension_numbers = #tpu.dot_dimension_numbers<[1], [0], [0], [1], [0, 0, 1, 1], [], []>} : vector<32x32xf32>, vector<32x384xf32>, vector<32x384xf32> -> vector<32x384xf32>
    %301 = vector.extract_strided_slice %296 {offsets = [0, 62], sizes = [32, 384], strides = [1, 1]} : vector<32x640xf32> to vector<32x384xf32>
    %c2_280 = arith.constant 2 : index
    %c1_281 = arith.constant 1 : index
    %c0_282 = arith.constant 0 : index
    %c0_283 = arith.constant 0 : index
    %302 = vector.load %arg2[%c2_280, %c1_281, %c0_282, %c0_283] : memref<3x9x32x32xf32, #tpu.memory_space<vmem>>, vector<1x1x32x32xf32>
    %303 = vector.shape_cast %302 : vector<1x1x32x32xf32> to vector<32x32xf32>
    %cst_284 = arith.constant dense<0.000000e+00> : vector<32x384xf32>
    %304 = tpu.matmul %303, %301, %cst_284 {dimension_numbers = #tpu.dot_dimension_numbers<[1], [0], [0], [1], [0, 0, 1, 1], [], []>} : vector<32x32xf32>, vector<32x384xf32>, vector<32x384xf32> -> vector<32x384xf32>
    %305 = arith.addf %300, %304 : vector<32x384xf32>
    %306 = vector.extract_strided_slice %296 {offsets = [0, 65], sizes = [32, 384], strides = [1, 1]} : vector<32x640xf32> to vector<32x384xf32>
    %c2_285 = arith.constant 2 : index
    %c2_286 = arith.constant 2 : index
    %c0_287 = arith.constant 0 : index
    %c0_288 = arith.constant 0 : index
    %307 = vector.load %arg2[%c2_285, %c2_286, %c0_287, %c0_288] : memref<3x9x32x32xf32, #tpu.memory_space<vmem>>, vector<1x1x32x32xf32>
    %308 = vector.shape_cast %307 : vector<1x1x32x32xf32> to vector<32x32xf32>
    %cst_289 = arith.constant dense<0.000000e+00> : vector<32x384xf32>
    %309 = tpu.matmul %308, %306, %cst_289 {dimension_numbers = #tpu.dot_dimension_numbers<[1], [0], [0], [1], [0, 0, 1, 1], [], []>} : vector<32x32xf32>, vector<32x384xf32>, vector<32x384xf32> -> vector<32x384xf32>
    %310 = arith.addf %305, %309 : vector<32x384xf32>
    %311 = vector.extract_strided_slice %296 {offsets = [0, 125], sizes = [32, 384], strides = [1, 1]} : vector<32x640xf32> to vector<32x384xf32>
    %c2_290 = arith.constant 2 : index
    %c3_291 = arith.constant 3 : index
    %c0_292 = arith.constant 0 : index
    %c0_293 = arith.constant 0 : index
    %312 = vector.load %arg2[%c2_290, %c3_291, %c0_292, %c0_293] : memref<3x9x32x32xf32, #tpu.memory_space<vmem>>, vector<1x1x32x32xf32>
    %313 = vector.shape_cast %312 : vector<1x1x32x32xf32> to vector<32x32xf32>
    %cst_294 = arith.constant dense<0.000000e+00> : vector<32x384xf32>
    %314 = tpu.matmul %313, %311, %cst_294 {dimension_numbers = #tpu.dot_dimension_numbers<[1], [0], [0], [1], [0, 0, 1, 1], [], []>} : vector<32x32xf32>, vector<32x384xf32>, vector<32x384xf32> -> vector<32x384xf32>
    %315 = arith.addf %310, %314 : vector<32x384xf32>
    %316 = vector.extract_strided_slice %296 {offsets = [0, 128], sizes = [32, 384], strides = [1, 1]} : vector<32x640xf32> to vector<32x384xf32>
    %c2_295 = arith.constant 2 : index
    %c4_296 = arith.constant 4 : index
    %c0_297 = arith.constant 0 : index
    %c0_298 = arith.constant 0 : index
    %317 = vector.load %arg2[%c2_295, %c4_296, %c0_297, %c0_298] : memref<3x9x32x32xf32, #tpu.memory_space<vmem>>, vector<1x1x32x32xf32>
    %318 = vector.shape_cast %317 : vector<1x1x32x32xf32> to vector<32x32xf32>
    %cst_299 = arith.constant dense<0.000000e+00> : vector<32x384xf32>
    %319 = tpu.matmul %318, %316, %cst_299 {dimension_numbers = #tpu.dot_dimension_numbers<[1], [0], [0], [1], [0, 0, 1, 1], [], []>} : vector<32x32xf32>, vector<32x384xf32>, vector<32x384xf32> -> vector<32x384xf32>
    %320 = arith.addf %315, %319 : vector<32x384xf32>
    %321 = vector.extract_strided_slice %296 {offsets = [0, 131], sizes = [32, 384], strides = [1, 1]} : vector<32x640xf32> to vector<32x384xf32>
    %c2_300 = arith.constant 2 : index
    %c5_301 = arith.constant 5 : index
    %c0_302 = arith.constant 0 : index
    %c0_303 = arith.constant 0 : index
    %322 = vector.load %arg2[%c2_300, %c5_301, %c0_302, %c0_303] : memref<3x9x32x32xf32, #tpu.memory_space<vmem>>, vector<1x1x32x32xf32>
    %323 = vector.shape_cast %322 : vector<1x1x32x32xf32> to vector<32x32xf32>
    %cst_304 = arith.constant dense<0.000000e+00> : vector<32x384xf32>
    %324 = tpu.matmul %323, %321, %cst_304 {dimension_numbers = #tpu.dot_dimension_numbers<[1], [0], [0], [1], [0, 0, 1, 1], [], []>} : vector<32x32xf32>, vector<32x384xf32>, vector<32x384xf32> -> vector<32x384xf32>
    %325 = arith.addf %320, %324 : vector<32x384xf32>
    %326 = vector.extract_strided_slice %296 {offsets = [0, 191], sizes = [32, 384], strides = [1, 1]} : vector<32x640xf32> to vector<32x384xf32>
    %c2_305 = arith.constant 2 : index
    %c6_306 = arith.constant 6 : index
    %c0_307 = arith.constant 0 : index
    %c0_308 = arith.constant 0 : index
    %327 = vector.load %arg2[%c2_305, %c6_306, %c0_307, %c0_308] : memref<3x9x32x32xf32, #tpu.memory_space<vmem>>, vector<1x1x32x32xf32>
    %328 = vector.shape_cast %327 : vector<1x1x32x32xf32> to vector<32x32xf32>
    %cst_309 = arith.constant dense<0.000000e+00> : vector<32x384xf32>
    %329 = tpu.matmul %328, %326, %cst_309 {dimension_numbers = #tpu.dot_dimension_numbers<[1], [0], [0], [1], [0, 0, 1, 1], [], []>} : vector<32x32xf32>, vector<32x384xf32>, vector<32x384xf32> -> vector<32x384xf32>
    %330 = arith.addf %325, %329 : vector<32x384xf32>
    %331 = vector.extract_strided_slice %296 {offsets = [0, 194], sizes = [32, 384], strides = [1, 1]} : vector<32x640xf32> to vector<32x384xf32>
    %c2_310 = arith.constant 2 : index
    %c7_311 = arith.constant 7 : index
    %c0_312 = arith.constant 0 : index
    %c0_313 = arith.constant 0 : index
    %332 = vector.load %arg2[%c2_310, %c7_311, %c0_312, %c0_313] : memref<3x9x32x32xf32, #tpu.memory_space<vmem>>, vector<1x1x32x32xf32>
    %333 = vector.shape_cast %332 : vector<1x1x32x32xf32> to vector<32x32xf32>
    %cst_314 = arith.constant dense<0.000000e+00> : vector<32x384xf32>
    %334 = tpu.matmul %333, %331, %cst_314 {dimension_numbers = #tpu.dot_dimension_numbers<[1], [0], [0], [1], [0, 0, 1, 1], [], []>} : vector<32x32xf32>, vector<32x384xf32>, vector<32x384xf32> -> vector<32x384xf32>
    %335 = arith.addf %330, %334 : vector<32x384xf32>
    %336 = vector.extract_strided_slice %296 {offsets = [0, 197], sizes = [32, 384], strides = [1, 1]} : vector<32x640xf32> to vector<32x384xf32>
    %c2_315 = arith.constant 2 : index
    %c8_316 = arith.constant 8 : index
    %c0_317 = arith.constant 0 : index
    %c0_318 = arith.constant 0 : index
    %337 = vector.load %arg2[%c2_315, %c8_316, %c0_317, %c0_318] : memref<3x9x32x32xf32, #tpu.memory_space<vmem>>, vector<1x1x32x32xf32>
    %338 = vector.shape_cast %337 : vector<1x1x32x32xf32> to vector<32x32xf32>
    %cst_319 = arith.constant dense<0.000000e+00> : vector<32x384xf32>
    %339 = tpu.matmul %338, %336, %cst_319 {dimension_numbers = #tpu.dot_dimension_numbers<[1], [0], [0], [1], [0, 0, 1, 1], [], []>} : vector<32x32xf32>, vector<32x384xf32>, vector<32x384xf32> -> vector<32x384xf32>
    %340 = arith.addf %335, %339 : vector<32x384xf32>
    %c2_320 = arith.constant 2 : index
    %c0_321 = arith.constant 0 : index
    %c0_322 = arith.constant 0 : index
    %341 = vector.load %arg3[%c2_320, %c0_321, %c0_322] : memref<3x32x1xf32, #tpu.memory_space<vmem>>, vector<1x32x1xf32>
    %342 = vector.shape_cast %341 : vector<1x32x1xf32> to vector<32x1xf32>
    %343 = vector.broadcast %342 : vector<32x1xf32> to vector<32x384xf32>
    %344 = arith.addf %340, %343 : vector<32x384xf32>
    %cst_323 = arith.constant 0.000000e+00 : f32
    %345 = vector.broadcast %cst_323 : f32 to vector<32x384xf32>
    %346 = arith.cmpf oge, %344, %345 : vector<32x384xf32>
    %cst_324 = arith.constant 0.00999999977 : f32
    %347 = vector.broadcast %cst_324 : f32 to vector<32x384xf32>
    %348 = arith.mulf %347, %344 : vector<32x384xf32>
    %349 = arith.select %346, %344, %348 : vector<32x384xi1>, vector<32x384xf32>
    %350 = vector.broadcast %0 : vector<1x384xf32> to vector<32x384xf32>
    %351 = arith.mulf %349, %350 : vector<32x384xf32>
    %c1_325 = arith.constant 1 : index
    %c0_326 = arith.constant 0 : index
    %c0_327 = arith.constant 0 : index
    %352 = vector.load %arg5[%c1_325, %c0_326, %c0_327] : memref<2x32x384xf32, #tpu.memory_space<vmem>>, vector<1x32x384xf32>
    %353 = vector.shape_cast %352 : vector<1x32x384xf32> to vector<32x384xf32>
    %354 = vector.shape_cast %351 : vector<32x384xf32> to vector<1x32x384xf32>
    tpu.vector_store %arg5[%c1_325, %c0_326, %c0_327], %354 {strides = array<i32>} : memref<2x32x384xf32, #tpu.memory_space<vmem>>, vector<1x32x384xf32>,
    return
  }
  func.func @transform_0(%arg0: i32) -> (i32, i32, i32) {
    %c0_i32 = arith.constant 0 : i32
    %c0_i32_0 = arith.constant 0 : i32
    %c0_i32_1 = arith.constant 0 : i32
    return %arg0, %c0_i32, %c0_i32_0 : i32, i32, i32
  }
  func.func @transform_1(%arg0: i32) -> (i32, i32, i32, i32) {
    %c0_i32 = arith.constant 0 : i32
    %c0_i32_0 = arith.constant 0 : i32
    %c0_i32_1 = arith.constant 0 : i32
    %c0_i32_2 = arith.constant 0 : i32
    %c0_i32_3 = arith.constant 0 : i32
    return %c0_i32, %c0_i32_0, %c0_i32_1, %c0_i32_2 : i32, i32, i32, i32
  }
  func.func @transform_2(%arg0: i32) -> (i32, i32, i32) {
    %c0_i32 = arith.constant 0 : i32
    %c0_i32_0 = arith.constant 0 : i32
    %c0_i32_1 = arith.constant 0 : i32
    %c0_i32_2 = arith.constant 0 : i32
    return %c0_i32, %c0_i32_0, %c0_i32_1 : i32, i32, i32
  }
  func.func @transform_3(%arg0: i32) -> (i32, i32) {
    %c0_i32 = arith.constant 0 : i32
    %c0_i32_0 = arith.constant 0 : i32
    %c0_i32_1 = arith.constant 0 : i32
    return %c0_i32, %c0_i32_0 : i32, i32
  }
  func.func @transform_4(%arg0: i32) -> (i32, i32, i32) {
    %c0_i32 = arith.constant 0 : i32
    %c0_i32_0 = arith.constant 0 : i32
    %c0_i32_1 = arith.constant 0 : i32
    return %arg0, %c0_i32, %c0_i32_0 : i32, i32, i32
  }
}

</mosaic_0001>

<bundles_post_ra>
// kernel: tpu_custom_call.1
= control target key start
LH: loop header
LB: loop body
LE: loop exit
PB: predicated region body
PF: predicated region fallthrough
CT: control target
= control target key end

     0   :  { %9 = vsyncpa [#allocation5], 0  ;;  %s23564_s0 = inlined_call_operand.hbm [shape: f32[2,32,640], index: 0, kind: input, shape index: {}]   ;;  %s23565_s1 = inlined_call_operand.hbm [shape: f32[3,9,32,32], index: 1, kind: input, shape index: {}]   ;;  %s23566_s2 = inlined_call_operand.vmem [shape: f32[3,32,1], index: 2, kind: input, shape index: {}]   ;;  %s23567_s3 = inlined_call_operand.vmem [shape: f32[1,384], index: 3, kind: input, shape index: {}]   ;;  %s23568_s4 = inlined_call_operand.hbm [shape: f32[2,32,384], index: 4, kind: output, shape index: {}]  }
   0x1   :  { %10 = vsyncpa [#allocation8], 0 }
   0x2   :  { %11 = vsyncpa [#allocation6], 0  ;;  %s19537_s15 = smov [#allocation4]   ;;  %s19465_s19 = scalar_lea.hbm %s23564_s0, 5120 }
   0x3   :  { %s17_s16 = sshll.u32 %s19537_s15, 4  ;;  %p19466_p0 = scmp.ne.s32.totalorder %s23564_s0, %s19465_s19  ;;  %s18_s16 = int_to_ptr.vmem [resolvable:$true] %s17_s16 }
   0x4   :  { %p19469_p1 = scmp.lt.u32.totalorder %s19465_s19, %s23564_s0 }
   0x6   :  { %p19471_p2 = pnand %p19469_p1, %p19466_p0 }
   0x8   :  { %19474 = shalt.err (!%p19471_p2)
}
   0x9   :  { %s19475_s24 = scalar_lea.vmem %s18_s16, 5120  ;;  %p19480_p4 = scmp.lt.s32.totalorder %s18_s16, %s18_s16 }
   0xa   :  { %p19476_p3 = scmp.ne.s32.totalorder %s18_s16, %s19475_s24  ;;  %p19481_p5 = scmp.lt.s32.totalorder %s19475_s24, %s19475_s24 }
   0xc   :  { %p19482_p6 = por %p19481_p5, %p19480_p4 }
   0xe   :  { %p19483_p7 = pnand %p19482_p6, %p19476_p3 }
  0x10   :  { %19486 = shalt.err (!%p19483_p7)
}
  0x11   :  { %s19538_s25 = smov 640   ;;  %s19539_s26 = smov 40  }
  0x12   :  { %23 = dma.hbm_to_vmem [thread:$0]  %s23564_s0, 5120, %s18_s16, [#allocation5], %s19538_s25, %s19538_s25, %s19539_s26  }
  0x13   :  { %s19540_s29 = smov [#allocation7]   ;;  %s19487_s7 = scalar_lea.hbm %s23565_s1, 13824 }
  0x14   :  { %s29_s30 = sshll.u32 %s19540_s29, 4  ;;  %p19488_p8 = scmp.ne.s32.totalorder %s23565_s1, %s19487_s7  ;;  %s30_s30 = int_to_ptr.vmem [resolvable:$true] %s29_s30 }
  0x15   :  { %p19491_p9 = scmp.lt.u32.totalorder %s19487_s7, %s23565_s1 }
  0x17   :  { %p19493_p10 = pnand %p19491_p9, %p19488_p8 }
  0x19   :  { %19496 = shalt.err (!%p19493_p10)
}
  0x1a   :  { %s19497_s12 = scalar_lea.vmem %s30_s30, 13824  ;;  %p19502_p12 = scmp.lt.s32.totalorder %s30_s30, %s30_s30 }
  0x1b   :  { %p19498_p11 = scmp.ne.s32.totalorder %s30_s30, %s19497_s12  ;;  %p19503_p13 = scmp.lt.s32.totalorder %s19497_s12, %s19497_s12 }
  0x1d   :  { %p19504_p0 = por %p19503_p13, %p19502_p12 }
  0x1f   :  { %p19505_p1 = pnand %p19504_p0, %p19498_p11 }
  0x21   :  { %19508 = shalt.err (!%p19505_p1)
}
  0x22   :  { %s19541_s0 = smov 128   ;;  %s19542_s13 = smov 8  }
  0x23   :  { %35 = dma.hbm_to_vmem [thread:$0]  %s23565_s1, 13824, %s30_s30, [#allocation8], %s19541_s0, %s19541_s0, %s19542_s13  }
  0x24   :  { %19531 = dma.done.wait [#allocation5], 5120  }
  0x25   :  { %19532 = vsyncadd [#allocation5], 4294962176 }
  0x26   :  { %19533 = dma.done.wait [#allocation8], 13824  }
  0x27   :  { %19534 = vsyncadd [#allocation8], 4294953472  ;;  %v19621_v0 = vld [vmem:[#allocation4 + $0x8] sm:$0xff]  ;;  %v19623_v1 = vld [vmem:[#allocation4 + $0x10] sm:$0xff]  ;;  %s19543_s1 = smov 22   ;;  %v23577_v25 = vmov 0.0  }
  0x28   :  { %v63_v2 = vld [vmem:[#allocation4] sm:$0xff]  ;;  %v17531_v3 = vpack.i.bf16 %v19623_v1, %v19621_v0  ;;  %v68_v4 = vld [vmem:[#allocation4 + $0x28] sm:$0xff]  ;;  %v19627_v5 = vld [vmem:[#allocation4 + $0x30] sm:$0xff]  ;;  %242 = vmatprep.mubr.f32.mxu0 %v23577_v25  ;;  %s19545_s16 = smov 23   ;;  %s19546_s17 = smov 21   ;;  %vm165_vm0 = vcmask 261120  }
  0x29   :  { %v19629_v6 = vld [vmem:[#allocation4 + $0x38] sm:$0xff]  ;;  %v17541_v7 = vpack.i.bf16 %v68_v4, %v63_v2  ;;  %v19633_v9 = vld [vmem:[#allocation4 + $0x60] sm:$0xff]  ;;  %v19643_v13 = vld [vmem:[#allocation4 + $0x88] sm:$0xff]  ;;  %v19659_v22 = vpack.i.bf16 %v19627_v5, %v19621_v0  ;;  %s19547_s18 = smov 1   ;;  %s19548_s19 = smov 127   ;;  %v16122_v32 = vpack.c.bf16 %v19627_v5, %v19621_v0  ;;  %vm140_vm1 = vcmask 179200  }
  0x2a   :  { %v19631_v8 = vld [vmem:[#allocation4 + $0x58] sm:$0xff]  ;;  %17532 = vrot.lane.b32.xlu0 %v17531_v3, %s19543_s1  ;;  %v17536_v10 = vpack.i.bf16 %v19629_v6, %v19627_v5  ;;  %v19641_v12 = vld [vmem:[#allocation4 + $0x80] sm:$0xff]  ;;  %v73_v14 = vld [vmem:[#allocation4 + $0x50] sm:$0xff]  ;;  %v16120_v31 = vpack.c.bf16 %v19629_v6, %v19623_v1  ;;  %s19549_s20 = smov 107   ;;  %s19550_s21 = smov 106   ;;  %vm384_vm2 = vcmask 187392  }
  0x2b   :  { %17542 = vrot.lane.b32.xlu1 %v17541_v7, %s19543_s1  ;;  %v17546_v11 = vpack.i.bf16 %v19633_v9, %v19631_v8  ;;  %v78_v15 = vld [vmem:[#allocation4 + $0x78] sm:$0xff]  ;;  %v17551_v16 = vpack.i.bf16 %v19643_v13, %v19641_v12  ;;  %v19651_v19 = vld [vmem:[#allocation4 + $0x40] sm:$0xff]  ;;  %v19653_v20 = vld [vmem:[#allocation4 + $0x68] sm:$0xff]  ;;  %v17696_v33 = vpack.i.bf16 %v19641_v12, %v19631_v8  ;;  %s19551_s22 = smov 105   ;;  %vm632_vm3 = vcmask 171008   ;;  %s19554_s7 = smov 46  }
  0x2c   :  { %v17556_v17 = vpack.i.bf16 %v78_v15, %v73_v14  ;;  %v19649_v18 = vld [vmem:[#allocation4 + $0x18] sm:$0xff]  ;;  %v19655_v21 = vld [vmem:[#allocation4 + $0x90] sm:$0xff]  ;;  %v19677_v26 = vld [vmem:[#allocation7] sm:$0xff]  ;;  %v17671_v28 = vpack.i.bf16 %v19651_v19, %v19629_v6  ;;  %v17686_v29 = vpack.i.bf16 %v19653_v20, %v19633_v9  ;;  %vm892_vm4 = vcmask 7168   ;;  %s19555_s8 = smov 42   ;;  %s19556_s9 = smov 2  }
  0x2d   :  { %v17561_v23 = vpack.i.bf16 %v19651_v19, %v19649_v18  ;;  %v17566_v24 = vpack.i.bf16 %v19655_v21, %v19653_v20  ;;  %15322 = vmatprep.mubr.msk.f32.mxu1 %vm165_vm0, %v19677_v26  ;;  %v17666_v27 = vpack.i.bf16 %v19649_v18, %v19623_v1  ;;  %v17691_v30 = vpack.i.bf16 %v19655_v21, %v19643_v13  ;;  %v67_v34 = vld [vmem:[#allocation4 + $0x20] sm:$0xff]  ;;  %v72_v35 = vld [vmem:[#allocation4 + $0x48] sm:$0xff]  ;;  %v77_v37 = vld [vmem:[#allocation4 + $0x70] sm:$0xff]  ;;  %s19557_s10 = smov 126   ;;  %s19558_s11 = smov 86  }
  0x2e   :  { %17537 = vrot.lane.b32.xlu0 %v17536_v10, %s19543_s1  ;;  %v17751_v36 = vpack.i.bf16 %v72_v35, %v67_v34  ;;  %v82_v38 = vld [vmem:[#allocation4 + $0x98] sm:$0xff]  ;;  %vm1359_vm5 = vcmask 1039360   ;;  %vm1619_vm6 = vcmask 875520   ;;  %vm1879_vm7 = vcmask 867328   ;;  %s19559_s12 = smov 84   ;;  %s19560_s0 = smov 82  }
  0x2f   :  { %17547 = vrot.lane.b32.xlu1 %v17546_v11, %s19543_s1  ;;  %v17771_v39 = vpack.i.bf16 %v82_v38, %v77_v37  ;;  %vm2139_vm8 = vcmask 859136   ;;  %s19564_s23 = smov 3   ;;  %s19565_s24 = smov 125  }
  0x30   :  { %s19566_s25 = smov 65   ;;  %s19567_s14 = smov 62  }
  0x31   :  { %s19568_s15 = smov 59  }
  0x32   :  { %17552 = vrot.lane.b32.xlu0 %v17551_v16, %s19543_s1 }
  0x33   :  { %17557 = vrot.lane.b32.xlu1 %v17556_v17, %s19543_s1 }
  0x36   :  { %17562 = vrot.lane.b32.xlu0 %v17561_v23, %s19543_s1 }
  0x37   :  { %17567 = vrot.lane.b32.xlu1 %v17566_v24, %s19543_s1 }
  0x3a   :  { %17572 = vrot.lane.b32.xlu0 %v17531_v3, %s19545_s16 }
  0x3b   :  { %17577 = vrot.lane.b32.xlu1 %v17536_v10, %s19545_s16 }
  0x3e   :  { %17582 = vrot.lane.b32.xlu0 %v17541_v7, %s19545_s16 }
  0x3f   :  { %17587 = vrot.lane.b32.xlu1 %v17546_v11, %s19545_s16 }
  0x42   :  { %17592 = vrot.lane.b32.xlu0 %v17551_v16, %s19545_s16 }
  0x43   :  { %17597 = vrot.lane.b32.xlu1 %v17556_v17, %s19545_s16 }
  0x46   :  { %17602 = vrot.lane.b32.xlu0 %v17531_v3, %s19546_s17 }
  0x47   :  { %17607 = vrot.lane.b32.xlu1 %v17536_v10, %s19546_s17 }
  0x4a   :  { %17612 = vrot.lane.b32.xlu0 %v17541_v7, %s19546_s17 }
  0x4b   :  { %17617 = vrot.lane.b32.xlu1 %v17546_v11, %s19546_s17 }
  0x4e   :  { %17622 = vrot.lane.b32.xlu0 %v17551_v16, %s19546_s17 }
  0x4f   :  { %17627 = vrot.lane.b32.xlu1 %v17556_v17, %s19546_s17 }
  0x52   :  { %17632 = vrot.lane.b32.xlu0 %v17531_v3, %s19547_s18 }
  0x53   :  { %17637 = vrot.lane.b32.xlu1 %v17536_v10, %s19547_s18 }
  0x56   :  { %17642 = vrot.lane.b32.xlu0 %v17541_v7, %s19547_s18 }
  0x57   :  { %17647 = vrot.lane.b32.xlu1 %v17546_v11, %s19547_s18 }
  0x5a   :  { %17652 = vrot.lane.b32.xlu0 %v17551_v16, %s19547_s18 }
  0x5b   :  { %17657 = vrot.lane.b32.xlu1 %v17556_v17, %s19547_s18 }
  0x5e   :  { %17662 = vrot.lane.b32.xlu0 %v17561_v23, %s19545_s16 }
  0x5f   :  { %17667 = vrot.lane.b32.xlu1 %v17666_v27, %s19548_s19 }
  0x62   :  { %17672 = vrot.lane.b32.xlu0 %v17671_v28, %s19548_s19 }
  0x63   :  { %17677 = vrot.lane.b32.xlu1 %v19659_v22, %s19548_s19 }
  0x66   :  { %17682 = vrot.lane.b32.xlu0 %v17566_v24, %s19545_s16 }
  0x67   :  { %17687 = vrot.lane.b32.xlu1 %v17686_v29, %s19548_s19 }
  0x6a   :  { %17692 = vrot.lane.b32.xlu0 %v17691_v30, %s19548_s19 }
  0x6b   :  { %17697 = vrot.lane.b32.xlu1 %v17696_v33, %s19548_s19 }
  0x6e   :  { %17702 = vrot.lane.b32.xlu0 %v17561_v23, %s19546_s17 }
  0x6f   :  { %17707 = vrot.lane.b32.xlu1 %v17566_v24, %s19546_s17 }
  0x72   :  { %17712 = vrot.lane.b32.xlu0 %v17561_v23, %s19547_s18 }
  0x73   :  { %17717 = vrot.lane.b32.xlu1 %v17666_v27, %s19549_s20 }
  0x76   :  { %17722 = vrot.lane.b32.xlu0 %v17671_v28, %s19549_s20 }
  0x77   :  { %17727 = vrot.lane.b32.xlu1 %v19659_v22, %s19549_s20 }
  0x7a   :  { %17732 = vrot.lane.b32.xlu0 %v17566_v24, %s19547_s18  ;;  %v88_v24 = vld [vmem:[#allocation7 + $0x20] sm:$0xff] }
  0x7b   :  { %17737 = vrot.lane.b32.xlu1 %v17686_v29, %s19549_s20 }
  0x7e   :  { %17742 = vrot.lane.b32.xlu0 %v17691_v30, %s19549_s20 }
  0x7f   :  { %17747 = vrot.lane.b32.xlu1 %v17696_v33, %s19549_s20 }
  0x82   :  { %17752 = vrot.lane.b32.xlu0 %v17751_v36, %s19548_s19 }
  0x83   :  { %17757 = vrot.lane.b32.xlu1 %v17666_v27, %s19550_s21 }
  0x86   :  { %17762 = vrot.lane.b32.xlu0 %v17671_v28, %s19550_s21 }
  0x87   :  { %17767 = vrot.lane.b32.xlu1 %v19659_v22, %s19550_s21 }
  0x8a   :  { %17772 = vrot.lane.b32.xlu0 %v17771_v39, %s19548_s19 }
  0x8b   :  { %17777 = vrot.lane.b32.xlu1 %v17686_v29, %s19550_s21 }
  0x8e   :  { %17782 = vrot.lane.b32.xlu0 %v17691_v30, %s19550_s21 }
  0x8f   :  { %17787 = vrot.lane.b32.xlu1 %v17696_v33, %s19550_s21 }
  0x92   :  { %17792 = vrot.lane.b32.xlu0 %v17751_v36, %s19549_s20 }
  0x93   :  { %17797 = vrot.lane.b32.xlu1 %v17771_v39, %s19549_s20 }
  0x96   :  { %17802 = vrot.lane.b32.xlu0 %v17751_v36, %s19550_s21 }
  0x97   :  { %17807 = vrot.lane.b32.xlu1 %v17666_v27, %s19551_s22 }
  0x9a   :  { %17812 = vrot.lane.b32.xlu0 %v17671_v28, %s19551_s22 }
  0x9b   :  { %17817 = vrot.lane.b32.xlu1 %v19659_v22, %s19551_s22 }
  0x9c   :  { %v17533_v40 = vpop.permute.xlu0 %17532 }
  0x9d   :  { %v17543_v41 = vpop.permute.xlu1 %17542  ;;  %v17535_v42 = vunpack.i.h.bf16 %v17533_v40  ;;  %v17534_v43 = vunpack.i.l.bf16 %v17533_v40 }
  0x9e   :  { %v17544_v44 = vunpack.i.l.bf16 %v17543_v41  ;;  %17822 = vrot.lane.b32.xlu0 %v17771_v39, %s19550_s21  ;;  %v17545_v46 = vunpack.i.h.bf16 %v17543_v41  ;;  %v89_v41 = vld [vmem:[#allocation7 + $0x28] sm:$0xff] }
  0x9f   :  { %17827 = vrot.lane.b32.xlu1 %v17686_v29, %s19551_s22  ;;  %v142_v50 = vsel %vm140_vm1, %v17534_v43, %v17535_v42 }
  0xa0   :  { %v17538_v45 = vpop.permute.xlu0 %17537  ;;  %v141_v51 = vsel %vm140_vm1, %v17544_v44, %v17534_v43 }
  0xa1   :  { %v17540_v47 = vunpack.i.h.bf16 %v17538_v45  ;;  %v17539_v48 = vunpack.i.l.bf16 %v17538_v45  ;;  %v17548_v49 = vpop.permute.xlu1 %17547 }
  0xa2   :  { %17832 = vrot.lane.b32.xlu0 %v17691_v30, %s19551_s22  ;;  %v17550_v52 = vunpack.i.h.bf16 %v17548_v49  ;;  %v17549_v53 = vunpack.i.l.bf16 %v17548_v49 }
  0xa3   :  { %v145_v54 = vsel %vm140_vm1, %v17539_v48, %v17540_v47  ;;  %17837 = vrot.lane.b32.xlu1 %v17696_v33, %s19551_s22  ;;  %v144_v55 = vsel %vm140_vm1, %v17545_v46, %v17539_v48 }
  0xa4   :  { %v17553_v56 = vpop.permute.xlu0 %17552  ;;  %v16056_v57 = vpack.c.bf16 %v145_v54, %v142_v50  ;;  %v16058_v58 = vpack.c.bf16 %v144_v55, %v141_v51  ;;  %v148_v2 = vsel %vm140_vm1, %v17549_v53, %v17550_v52 }
  0xa5   :  { %v17555_v59 = vunpack.i.h.bf16 %v17553_v56  ;;  %v17554_v60 = vunpack.i.l.bf16 %v17553_v56  ;;  %v17558_v61 = vpop.permute.xlu1 %17557  ;;  %v91_v56 = vld [vmem:[#allocation7 + $0x38] sm:$0xff] }
  0xa6   :  { %v17560_v62 = vunpack.i.h.bf16 %v17558_v61  ;;  %v17559_v63 = vunpack.i.l.bf16 %v17558_v61  ;;  %16057 = vmatprep.subr.bf16.mxu0 %v16056_v57  ;;  %17842 = vrot.lane.b32.xlu0 %v17751_v36, %s19551_s22 }
  0xa7   :  { %16059 = vmatpush1.bf16.msra.mxu0 %v16058_v58  ;;  %17847 = vrot.lane.b32.xlu1 %v17771_v39, %s19551_s22  ;;  %v151_v3 = vsel %vm140_vm1, %v17554_v60, %v17555_v59 }
  0xa8   :  { %v17563_v4 = vpop.permute.xlu0 %17562  ;;  %v16060_v7 = vpack.c.bf16 %v151_v3, %v148_v2  ;;  %v147_v10 = vsel %vm140_vm1, %v17559_v63, %v17549_v53  ;;  %v150_v11 = vsel %vm140_vm1, %v17560_v62, %v17554_v60 }
  0xa9   :  { %v17565_v14 = vunpack.i.h.bf16 %v17563_v4  ;;  %v17564_v15 = vunpack.i.l.bf16 %v17563_v4  ;;  %v17568_v16 = vpop.permute.xlu1 %17567  ;;  %v16062_v17 = vpack.c.bf16 %v150_v11, %v147_v10 }
  0xaa   :  { %v17570_v22 = vunpack.i.h.bf16 %v17568_v16  ;;  %v17569_v23 = vunpack.i.l.bf16 %v17568_v16  ;;  %16061 = vmatprep.subr.bf16.mxu0 %v16060_v7 }
  0xab   :  { %16063 = vmatpush1.bf16.msra.mxu0 %v16062_v17  ;;  %v143_v27 = vsel %vm140_vm1, %v17535_v42, %v17564_v15  ;;  %v146_v28 = vsel %vm140_vm1, %v17540_v47, %v17565_v14  ;;  %v90_v47 = vld [vmem:[#allocation7 + $0x30] sm:$0xff] }
  0xac   :  { %v19758_v29 = vpop.permute.xlu0 %17572  ;;  %v16064_v30 = vpack.c.bf16 %v146_v28, %v143_v27  ;;  %v149_v33 = vsel %vm140_vm1, %v17550_v52, %v17569_v23  ;;  %v152_v34 = vsel %vm140_vm1, %v17555_v59, %v17570_v22 }
  0xad   :  { %v17575_v35 = vunpack.i.h.bf16 %v19758_v29  ;;  %v17574_v36 = vunpack.i.l.bf16 %v19758_v29  ;;  %v19764_v37 = vpop.permute.xlu1 %17577  ;;  %v16068_v40 = vpack.c.bf16 %v152_v34, %v149_v33  ;;  %v19914_v29 = vld [vmem:[#allocation7 + $0x48] sm:$0xff] }
  0xae   :  { %v17580_v38 = vunpack.i.h.bf16 %v19764_v37  ;;  %v17579_v39 = vunpack.i.l.bf16 %v19764_v37  ;;  %14420 = vmatmul.mubr.msk.f32.vlgmr.msra.gmra.mrb[0].mxu0 %vm165_vm0, %v88_v24  ;;  %16065 = vmatprep.subr.bf16.mxu0 %v16064_v30 }
  0xaf   :  { %16067 = vmatpush3.bf16.msra.mxu0 %v16064_v30  ;;  %248 = vmatprep.mubr.f32.mxu0 %v23577_v25  ;;  %v386_v42 = vsel %vm384_vm2, %v17574_v36, %v17575_v35 }
  0xb0   :  { %v17583_v43 = vpop.permute.xlu0 %17582  ;;  %16069 = vmatprep.subr.bf16.mxu0 %v16068_v40  ;;  %v389_v44 = vsel %vm384_vm2, %v17579_v39, %v17580_v38 }
  0xb1   :  { %v19776_v45 = vpop.permute.xlu1 %17587  ;;  %v16072_v46 = vpack.c.bf16 %v389_v44, %v386_v42  ;;  %v17585_v48 = vunpack.i.h.bf16 %v17583_v43  ;;  %v17584_v49 = vunpack.i.l.bf16 %v17583_v43 }
  0xb2   :  { %14421 = vmatmul.mubr.msk.f32.gmra.mrb[2].mxu0 %vm165_vm0, %v89_v41  ;;  %v17590_v51 = vunpack.i.h.bf16 %v19776_v45  ;;  %v17589_v52 = vunpack.i.l.bf16 %v19776_v45  ;;  %v19940_v45 = vld [vmem:[#allocation7 + $0x58] sm:$0xff] }
  0xb3   :  { %16071 = vmatpush3.bf16.msra.mxu0 %v16068_v40  ;;  %254 = vmatprep.mubr.f32.mxu0 %v23577_v25  ;;  %v385_v57 = vsel %vm384_vm2, %v17584_v49, %v17574_v36  ;;  %v388_v58 = vsel %vm384_vm2, %v17585_v48, %v17579_v39  ;;  %v2363_v49 = vld [vmem:[%s23566_s2 + $0x8] sm:$0xff] }
  0xb4   :  { %v19780_v50 = vpop.permute.xlu0 %17592  ;;  %16073 = vmatprep.subr.bf16.mxu0 %v16072_v46  ;;  %v392_v63 = vsel %vm384_vm2, %v17589_v52, %v17590_v51  ;;  %v16074_v14 = vpack.c.bf16 %v388_v58, %v385_v57 }
  0xb5   :  { %v17595_v53 = vunpack.i.h.bf16 %v19780_v50  ;;  %v17594_v54 = vunpack.i.l.bf16 %v19780_v50  ;;  %v17598_v55 = vpop.permute.xlu1 %17597 }
  0xb6   :  { %14422 = vmatmul.mubr.msk.f32.gmra.mrb[4].mxu0 %vm165_vm0, %v90_v47  ;;  %v17600_v3 = vunpack.i.h.bf16 %v17598_v55  ;;  %v17599_v4 = vunpack.i.l.bf16 %v17598_v55  ;;  %v2362_v55 = vld [vmem:[%s23566_s2] sm:$0xff] }
  0xb7   :  { %260 = vmatprep.mubr.f32.mxu0 %v23577_v25  ;;  %v395_v2 = vsel %vm384_vm2, %v17594_v54, %v17595_v53 }
  0xb8   :  { %v19790_v59 = vpop.permute.xlu0 %17602  ;;  %v16076_v15 = vpack.c.bf16 %v395_v2, %v392_v63  ;;  %v394_v28 = vsel %vm384_vm2, %v17600_v3, %v17594_v54  ;;  %v391_v30 = vsel %vm384_vm2, %v17599_v4, %v17589_v52  ;;  %v19552_v63 = vmov 0  }
  0xb9   :  { %v17605_v60 = vunpack.i.h.bf16 %v19790_v59  ;;  %v17604_v61 = vunpack.i.l.bf16 %v19790_v59  ;;  %v19794_v62 = vpop.permute.xlu1 %17607  ;;  %v16078_v46 = vpack.c.bf16 %v394_v28, %v391_v30  ;;  %17852 = vset.pattern.permute.xlu1 %v19552_v63  ;;  %17851 = vset.pattern.permute.xlu0 %v19552_v63 }
  0xba   :  { %v17610_v7 = vunpack.i.h.bf16 %v19794_v62  ;;  %v17609_v10 = vunpack.i.l.bf16 %v19794_v62  ;;  %14423 = vmatmul.mubr.msk.f32.gmra.mrb[6].mxu0 %vm165_vm0, %v91_v56  ;;  %2373 = vperm.xlu1 %17852, %v2363_v49  }
  0xbb   :  { %15308 = vmatprep.mubr.msk.f32.mxu0 %vm165_vm0, %v88_v24  ;;  %v634_v23 = vsel %vm632_vm3, %v17604_v61, %v17605_v60  ;;  %2368 = vperm.xlu0 %17851, %v2362_v55  }
  0xbc   :  { %v17613_v11 = vpop.permute.xlu0 %17612  ;;  %v637_v27 = vsel %vm632_vm3, %v17609_v10, %v17610_v7 }
  0xbd   :  { %v17615_v16 = vunpack.i.h.bf16 %v17613_v11  ;;  %v17614_v17 = vunpack.i.l.bf16 %v17613_v11  ;;  %v19806_v22 = vpop.permute.xlu1 %17617  ;;  %v16088_v40 = vpack.c.bf16 %v637_v27, %v634_v23  ;;  %v2365_v23 = vld [vmem:[%s23566_s2 + $0x18] sm:$0xff] }
  0xbe   :  { %v17620_v24 = vunpack.i.h.bf16 %v19806_v22  ;;  %v17619_v33 = vunpack.i.l.bf16 %v19806_v22  ;;  %15309 = vmatmul.mubr.msk.f32.vlgmr.msra.gmra.mrb[8].mxu0 %vm165_vm0, %v89_v41 }
  0xbf   :  { %16075 = vmatpush1.bf16.msra.mxu0 %v16074_v14  ;;  %15311 = vmatprep.mubr.msk.f32.mxu0 %vm165_vm0, %v90_v47  ;;  %v633_v34 = vsel %vm632_vm3, %v17614_v17, %v17604_v61  ;;  %v636_v36 = vsel %vm632_vm3, %v17615_v16, %v17609_v10  ;;  %v2364_v14 = vld [vmem:[%s23566_s2 + $0x10] sm:$0xff] }
  0xc0   :  { %16077 = vmatprep.subr.bf16.mxu0 %v16076_v15  ;;  %v19822_v39 = vpop.permute.xlu0 %17622  ;;  %v640_v41 = vsel %vm632_vm3, %v17619_v33, %v17620_v24  ;;  %v16090_v52 = vpack.c.bf16 %v636_v36, %v633_v34  ;;  %v19856_v15 = vld [vmem:[#allocation7 + $0x8] sm:$0xff]  ;;  %2378 = vperm.xlu1 %17852, %v2364_v14  }
  0xc1   :  { %v17625_v42 = vunpack.i.h.bf16 %v19822_v39  ;;  %v17624_v43 = vunpack.i.l.bf16 %v19822_v39  ;;  %v17628_v44 = vpop.permute.xlu1 %17627  ;;  %2383 = vperm.xlu0 %17851, %v2365_v23  }
  0xc2   :  { %v17630_v48 = vunpack.i.h.bf16 %v17628_v44  ;;  %v17629_v47 = vunpack.i.l.bf16 %v17628_v44  ;;  %15312 = vmatmul.mubr.msk.f32.gmra.mrb[10].mxu0 %vm165_vm0, %v91_v56 }
  0xc3   :  { %16079 = vmatpush1.bf16.msra.mxu0 %v16078_v46  ;;  %485 = vmatprep.mubr.f32.mxu0 %v23577_v25  ;;  %v643_v54 = vsel %vm632_vm3, %v17624_v43, %v17625_v42 }
  0xc4   :  { %v642_v57 = vsel %vm632_vm3, %v17630_v48, %v17624_v43  ;;  %v639_v56 = vsel %vm632_vm3, %v17629_v47, %v17619_v33  ;;  %16089 = vmatprep.subr.bf16.mxu0 %v16088_v40  ;;  %v19842_v58 = vpop.permute.xlu0 %17632  ;;  %v16092_v61 = vpack.c.bf16 %v643_v54, %v640_v41  ;;  %v19872_v33 = vld [vmem:[#allocation7 + $0x10] sm:$0xff]  ;;  %v19883_v47 = vld [vmem:[#allocation7 + $0x18] sm:$0xff] }
  0xc5   :  { %v17635_v2 = vunpack.i.h.bf16 %v19842_v58  ;;  %v17634_v3 = vunpack.i.l.bf16 %v19842_v58  ;;  %v19846_v4 = vpop.permute.xlu1 %17637  ;;  %v16094_v16 = vpack.c.bf16 %v642_v57, %v639_v56 }
  0xc6   :  { %v17640_v10 = vunpack.i.h.bf16 %v19846_v4  ;;  %v17639_v11 = vunpack.i.l.bf16 %v19846_v4  ;;  %14428 = vmatmul.mubr.msk.f32.vlgmr.msra.gmra.mrb[0].mxu0 %vm165_vm0, %v19677_v26 }
  0xc7   :  { %16091 = vmatpush1.bf16.msra.mxu0 %v16090_v52  ;;  %491 = vmatprep.mubr.f32.mxu0 %v23577_v25  ;;  %v894_v17 = vsel %vm892_vm4, %v17634_v3, %v17635_v2 }
  0xc8   :  { %v17643_v26 = vpop.permute.xlu0 %17642  ;;  %16093 = vmatprep.subr.bf16.mxu0 %v16092_v61  ;;  %v897_v27 = vsel %vm892_vm4, %v17639_v11, %v17640_v10 }
  0xc9   :  { %v19867_v28 = vpop.permute.xlu1 %17647  ;;  %v16104_v30 = vpack.c.bf16 %v897_v27, %v894_v17  ;;  %v17645_v34 = vunpack.i.h.bf16 %v17643_v26  ;;  %v17644_v36 = vunpack.i.l.bf16 %v17643_v26  ;;  %v19904_v17 = vld [vmem:[#allocation7 + $0x40] sm:$0xff] }
  0xca   :  { %14429 = vmatmul.mubr.msk.f32.gmra.mrb[2].mxu0 %vm165_vm0, %v19856_v15  ;;  %v17650_v43 = vunpack.i.h.bf16 %v19867_v28  ;;  %v17649_v44 = vunpack.i.l.bf16 %v19867_v28 }
  0xcb   :  { %16095 = vmatpush1.bf16.msra.mxu0 %v16094_v16  ;;  %497 = vmatprep.mubr.f32.mxu0 %v23577_v25  ;;  %v893_v49 = vsel %vm892_vm4, %v17644_v36, %v17634_v3  ;;  %v896_v52 = vsel %vm892_vm4, %v17645_v34, %v17639_v11 }
  0xcc   :  { %v19874_v40 = vpop.permute.xlu0 %17652  ;;  %16105 = vmatprep.subr.bf16.mxu0 %v16104_v30  ;;  %v900_v14 = vsel %vm892_vm4, %v17649_v44, %v17650_v43  ;;  %v16106_v23 = vpack.c.bf16 %v896_v52, %v893_v49 }
  0xcd   :  { %v17655_v46 = vunpack.i.h.bf16 %v19874_v40  ;;  %v17654_v41 = vunpack.i.l.bf16 %v19874_v40  ;;  %v17658_v48 = vpop.permute.xlu1 %17657 }
  0xce   :  { %14430 = vmatmul.mubr.msk.f32.gmra.mrb[4].mxu0 %vm165_vm0, %v19872_v33  ;;  %v17660_v54 = vunpack.i.h.bf16 %v17658_v48  ;;  %v17659_v55 = vunpack.i.l.bf16 %v17658_v48 }
  0xcf   :  { %503 = vmatprep.mubr.f32.mxu0 %v23577_v25  ;;  %v903_v16 = vsel %vm892_vm4, %v17654_v41, %v17655_v46 }
  0xd0   :  { %v17663_v57 = vpop.permute.xlu0 %17662  ;;  %v902_v26 = vsel %vm892_vm4, %v17660_v54, %v17654_v41  ;;  %v899_v27 = vsel %vm892_vm4, %v17659_v55, %v17649_v44  ;;  %v16108_v36 = vpack.c.bf16 %v903_v16, %v900_v14  ;;  %v19928_v54 = vld [vmem:[#allocation7 + $0x50] sm:$0xff] }
  0xd1   :  { %v17665_v56 = vunpack.i.h.bf16 %v17663_v57  ;;  %v17664_v61 = vunpack.i.l.bf16 %v17663_v57  ;;  %v19887_v63 = vpop.permute.xlu1 %17667 }
  0xd2   :  { %14431 = vmatmul.mubr.msk.f32.gmra.mrb[6].mxu0 %vm165_vm0, %v19883_v47  ;;  %v17670_v50 = vunpack.i.h.bf16 %v19887_v63 }
  0xd3   :  { %733 = vmatprep.mubr.f32.mxu0 %v23577_v25  ;;  %v387_v3 = vsel %vm384_vm2, %v17575_v35, %v17664_v61  ;;  %v390_v11 = vsel %vm384_vm2, %v17580_v38, %v17665_v56  ;;  %v16110_v35 = vpack.c.bf16 %v902_v26, %v899_v27  ;;  %v19957_v26 = vld [vmem:[#allocation7 + $0x60] sm:$0xff] }
  0xd4   :  { %v19908_v30 = vpop.permute.xlu0 %17672  ;;  %v16080_v34 = vpack.c.bf16 %v390_v11, %v387_v3 }
  0xd5   :  { %v19910_v48 = vpop.permute.xlu1 %17677  ;;  %v17675_v61 = vunpack.i.h.bf16 %v19908_v30  ;;  %v17674_v1 = vunpack.i.l.bf16 %v19908_v30 }
  0xd6   :  { %16081 = vmatprep.subr.bf16.mxu1 %v16080_v34  ;;  %14436 = vmatmul.mubr.msk.f32.vlgmr.msra.gmra.mrb[0].mxu0 %vm165_vm0, %v19904_v17 }
  0xd7   :  { %16107 = vmatpush1.bf16.msra.mxu0 %v16106_v23  ;;  %16083 = vmatpush3.bf16.msra.mxu1 %v16080_v34  ;;  %v1364_v22 = vsel %vm1359_vm5, %v17674_v1, %v17675_v61 }
  0xd8   :  { %v17683_v37 = vpop.permute.xlu0 %17682  ;;  %739 = vmatprep.mubr.f32.mxu0 %v23577_v25  ;;  %16109 = vmatprep.subr.bf16.mxu0 %v16108_v36 }
  0xd9   :  { %v17685_v38 = vunpack.i.h.bf16 %v17683_v37  ;;  %v17684_v44 = vunpack.i.l.bf16 %v17683_v37  ;;  %v19917_v41 = vpop.permute.xlu1 %17687 }
  0xda   :  { %14437 = vmatmul.mubr.msk.f32.gmra.mrb[2].mxu0 %vm165_vm0, %v19914_v29  ;;  %v17689_v58 = vunpack.i.l.bf16 %v19917_v41 }
  0xdb   :  { %16111 = vmatpush1.bf16.msra.mxu0 %v16110_v35  ;;  %745 = vmatprep.mubr.f32.mxu0 %v23577_v25  ;;  %v393_v49 = vsel %vm384_vm2, %v17590_v51, %v17684_v44  ;;  %v396_v52 = vsel %vm384_vm2, %v17595_v53, %v17685_v38  ;;  %v17669_v51 = vunpack.i.l.bf16 %v19887_v63  ;;  %v17679_v44 = vunpack.i.l.bf16 %v19910_v48 }
  0xdc   :  { %v19930_v55 = vpop.permute.xlu0 %17692  ;;  %v16084_v57 = vpack.c.bf16 %v396_v52, %v393_v49  ;;  %16121 = vmatprep.subr.bf16.mxu0 %v16120_v31  ;;  %v859_v49 = vld [vmem:[#allocation7 + $0x78] sm:$0xff] }
  0xdd   :  { %v19935_v56 = vpop.permute.xlu1 %17697  ;;  %v17695_v4 = vunpack.i.h.bf16 %v19930_v55 }
  0xde   :  { %16085 = vmatprep.subr.bf16.mxu1 %v16084_v57  ;;  %14438 = vmatmul.mubr.msk.f32.gmra.mrb[4].mxu0 %vm165_vm0, %v19928_v54 }
  0xdf   :  { %16087 = vmatpush3.bf16.msra.mxu1 %v16084_v57  ;;  %751 = vmatprep.mubr.f32.mxu0 %v23577_v25 }
  0xe0   :  { %v17703_v53 = vpop.permute.xlu0 %17702 }
  0xe1   :  { %v17705_v6 = vunpack.i.h.bf16 %v17703_v53  ;;  %v17704_v31 = vunpack.i.l.bf16 %v17703_v53  ;;  %v17708_v14 = vpop.permute.xlu1 %17707 }
  0xe2   :  { %v17710_v16 = vunpack.i.h.bf16 %v17708_v14  ;;  %v17709_v3 = vunpack.i.l.bf16 %v17708_v14  ;;  %14439 = vmatmul.mubr.msk.f32.gmra.mrb[6].mxu0 %vm165_vm0, %v19940_v45  ;;  %15323 = vmatmul.mubr.msk.f32.vlgmr.msra.gmra.mrb[0].mxu1 %vm165_vm0, %v19856_v15 }
  0xe3   :  { %993 = vmatprep.mubr.f32.mxu0 %v23577_v25  ;;  %v635_v11 = vsel %vm632_vm3, %v17605_v60, %v17704_v31  ;;  %v638_v23 = vsel %vm632_vm3, %v17610_v7, %v17705_v6  ;;  %15325 = vmatprep.mubr.msk.f32.mxu1 %vm165_vm0, %v19872_v33  ;;  %v16124_v60 = vpack.c.bf16 %v19643_v13, %v19633_v9  ;;  %v19986_v13 = vld [vmem:[#allocation7 + $0x68] sm:$0xff] }
  0xe4   :  { %v17713_v27 = vpop.permute.xlu0 %17712  ;;  %v16096_v34 = vpack.c.bf16 %v638_v23, %v635_v11  ;;  %v641_v15 = vsel %vm632_vm3, %v17620_v24, %v17709_v3  ;;  %v644_v59 = vsel %vm632_vm3, %v17625_v42, %v17710_v16  ;;  %v1361_v33 = vsel %vm1359_vm5, %v17669_v51, %v17670_v50 }
  0xe5   :  { %v17715_v62 = vunpack.i.h.bf16 %v17713_v27  ;;  %v17714_v7 = vunpack.i.l.bf16 %v17713_v27  ;;  %v19969_v36 = vpop.permute.xlu1 %17717  ;;  %v16100_v9 = vpack.c.bf16 %v644_v59, %v641_v15  ;;  %v16126_v24 = vpack.c.bf16 %v19641_v12, %v19631_v8  ;;  %v20007_v12 = vld [vmem:[#allocation7 + $0x70] sm:$0xff] }
  0xe6   :  { %16097 = vmatprep.subr.bf16.mxu1 %v16096_v34  ;;  %14444 = vmatmul.mubr.msk.f32.vlgmr.msra.gmra.mrb[0].mxu0 %vm165_vm0, %v19957_v26  ;;  %v16136_v0 = vpack.c.bf16 %v1364_v22, %v1361_v33  ;;  %v17719_v31 = vunpack.i.l.bf16 %v19969_v36  ;;  %v16132_v15 = vpack.c.bf16 %v19655_v21, %v19653_v20 }
  0xe7   :  { %16123 = vmatpush1.bf16.msra.mxu0 %v16122_v32  ;;  %16099 = vmatpush3.bf16.msra.mxu1 %v16096_v34  ;;  %v895_v39 = vsel %vm892_vm4, %v17635_v2, %v17714_v7  ;;  %v898_v42 = vsel %vm892_vm4, %v17640_v10, %v17715_v62  ;;  %v17690_v32 = vunpack.i.h.bf16 %v19917_v41  ;;  %v17694_v10 = vunpack.i.l.bf16 %v19930_v55 }
  0xe8   :  { %v19996_v35 = vpop.permute.xlu0 %17722  ;;  %16101 = vmatprep.subr.bf16.mxu1 %v16100_v9  ;;  %999 = vmatprep.mubr.f32.mxu0 %v23577_v25  ;;  %v16112_v8 = vpack.c.bf16 %v898_v42, %v895_v39 }
  0xe9   :  { %v19999_v5 = vpop.permute.xlu1 %17727  ;;  %16125 = vmatprep.subr.bf16.mxu0 %v16124_v60  ;;  %15326 = vmatmul.mubr.msk.f32.gmra.mrb[2].mxu1 %vm165_vm0, %v19883_v47  ;;  %v1367_v28 = vsel %vm1359_vm5, %v17689_v58, %v17690_v32  ;;  %v1370_v40 = vsel %vm1359_vm5, %v17694_v10, %v17695_v4  ;;  %v17725_v14 = vunpack.i.h.bf16 %v19996_v35  ;;  %v17724_v16 = vunpack.i.l.bf16 %v19996_v35 }
  0xea   :  { %14445 = vmatmul.mubr.msk.f32.gmra.mrb[2].mxu0 %vm165_vm0, %v19986_v13  ;;  %15336 = vmatprep.mubr.msk.f32.mxu1 %vm165_vm0, %v19904_v17  ;;  %v17680_v17 = vunpack.i.h.bf16 %v19910_v48  ;;  %v17730_v30 = vunpack.i.h.bf16 %v19999_v5 }
  0xeb   :  { %16127 = vmatpush1.bf16.msra.mxu0 %v16126_v24  ;;  %16103 = vmatpush3.bf16.msra.mxu1 %v16100_v9  ;;  %v1624_v60 = vsel %vm1619_vm6, %v17724_v16, %v17725_v14 }
  0xec   :  { %16137 = vmatprep.subr.bf16.mxu0 %v16136_v0  ;;  %v17733_v2 = vpop.permute.xlu0 %17732  ;;  %16113 = vmatprep.subr.bf16.mxu1 %v16112_v8  ;;  %v1623_v41 = vsel %vm1619_vm6, %v17730_v30, %v17724_v16  ;;  %v1320_v16 = vld [vmem:[#allocation7 + $0xa8] sm:$0xff] }
  0xed   :  { %v17735_v47 = vunpack.i.h.bf16 %v17733_v2  ;;  %v17734_v37 = vunpack.i.l.bf16 %v17733_v2  ;;  %v20013_v38 = vpop.permute.xlu1 %17737  ;;  %1005 = vmatprep.mubr.f32.mxu0 %v23577_v25 }
  0xee   :  { %14446 = vmatmul.mubr.msk.f32.gmra.mrb[4].mxu0 %vm165_vm0, %v20007_v12  ;;  %15337 = vmatmul.mubr.msk.f32.vlgmr.msra.gmra.mrb[0].mxu1 %vm165_vm0, %v19914_v29  ;;  %v16128_v29 = vpack.c.bf16 %v19651_v19, %v19649_v18  ;;  %v17699_v18 = vunpack.i.l.bf16 %v19935_v56  ;;  %v17720_v19 = vunpack.i.h.bf16 %v19969_v36  ;;  %v17740_v9 = vunpack.i.h.bf16 %v20013_v38 }
  0xef   :  { %16115 = vmatpush3.bf16.msra.mxu1 %v16112_v8  ;;  %1011 = vmatprep.mubr.f32.mxu0 %v23577_v25  ;;  %v901_v52 = vsel %vm892_vm4, %v17650_v43, %v17734_v37  ;;  %v904_v57 = vsel %vm892_vm4, %v17655_v46, %v17735_v47  ;;  %v1363_v43 = vsel %vm1359_vm5, %v17680_v17, %v17674_v1 }
  0xf0   :  { %v20029_v53 = vpop.permute.xlu0 %17742  ;;  %15339 = vmatprep.mubr.msk.f32.mxu1 %vm165_vm0, %v19928_v54  ;;  %v16116_v48 = vpack.c.bf16 %v904_v57, %v901_v52  ;;  %v1360_v46 = vsel %vm1359_vm5, %v17679_v44, %v17669_v51  ;;  %v17700_v54 = vunpack.i.h.bf16 %v19935_v56  ;;  %v1116_v51 = vld [vmem:[#allocation7 + $0x80] sm:$0xff]  ;;  %v16140_v1 = vpack.c.bf16 %v1370_v40, %v1367_v28 }
  0xf1   :  { %v20033_v6 = vpop.permute.xlu1 %17747  ;;  %v16138_v27 = vpack.c.bf16 %v1363_v43, %v1360_v46  ;;  %v1621_v59 = vsel %vm1619_vm6, %v17719_v31, %v17720_v19  ;;  %v17745_v39 = vunpack.i.h.bf16 %v20029_v53  ;;  %v17744_v42 = vunpack.i.l.bf16 %v20029_v53 }
  0xf2   :  { %14447 = vmatmul.mubr.msk.f32.gmra.mrb[6].mxu0 %vm165_vm0, %v859_v49  ;;  %16117 = vmatprep.subr.bf16.mxu1 %v16116_v48  ;;  %v1369_v34 = vsel %vm1359_vm5, %v17700_v54, %v17694_v10  ;;  %v16152_v22 = vpack.c.bf16 %v1624_v60, %v1621_v59  ;;  %v17750_v10 = vunpack.i.h.bf16 %v20033_v6  ;;  %v17749_v47 = vunpack.i.l.bf16 %v20033_v6  ;;  %v1319_v6 = vld [vmem:[#allocation7 + $0xa0] sm:$0xff] }
  0xf3   :  { %15340 = vmatmul.mubr.msk.f32.gmra.mrb[2].mxu1 %vm165_vm0, %v19940_v45  ;;  %1196 = vmatprep.mubr.f32.mxu0 %v23577_v25  ;;  %v1366_v45 = vsel %vm1359_vm5, %v17699_v18, %v17689_v58  ;;  %v1630_v44 = vsel %vm1619_vm6, %v17744_v42, %v17745_v39 }
  0xf4   :  { %16119 = vmatpush3.bf16.msra.mxu1 %v16116_v48  ;;  %v17753_v56 = vpop.permute.xlu0 %17752  ;;  %15350 = vmatprep.mubr.msk.f32.mxu1 %vm165_vm0, %v19957_v26  ;;  %v1117_v26 = vld [vmem:[#allocation7 + $0x88] sm:$0xff]  ;;  %v16142_v33 = vpack.c.bf16 %v1369_v34, %v1366_v45 }
  0xf5   :  { %v17755_v3 = vunpack.i.h.bf16 %v17753_v56  ;;  %v17754_v11 = vunpack.i.l.bf16 %v17753_v56  ;;  %v20061_v23 = vpop.permute.xlu1 %17757  ;;  %16129 = vmatprep.subr.bf16.mxu1 %v16128_v29 }
  0xf6   :  { %14452 = vmatmul.mubr.msk.f32.vlgmr.msra.gmra.mrb[0].mxu0 %vm165_vm0, %v1116_v51  ;;  %v17759_v52 = vunpack.i.l.bf16 %v20061_v23 }
  0xf7   :  { %16139 = vmatpush1.bf16.msra.mxu0 %v16138_v27  ;;  %15351 = vmatmul.mubr.msk.f32.vlgmr.msra.gmra.mrb[0].mxu1 %vm165_vm0, %v19986_v13  ;;  %v1362_v21 = vsel %vm1359_vm5, %v17670_v50, %v17754_v11  ;;  %v1365_v62 = vsel %vm1359_vm5, %v17675_v61, %v17755_v3  ;;  %v1118_v50 = vld [vmem:[#allocation7 + $0x90] sm:$0xff]  ;;  %v17729_v61 = vunpack.i.l.bf16 %v19999_v5  ;;  %v17739_v13 = vunpack.i.l.bf16 %v20013_v38  ;;  %v1119_v5 = vld [vmem:[#allocation7 + $0x98] sm:$0xff] }
  0xf8   :  { %16131 = vmatpush3.bf16.msra.mxu1 %v16128_v29  ;;  %16141 = vmatprep.subr.bf16.mxu0 %v16140_v1  ;;  %v20080_v20 = vpop.permute.xlu0 %17762  ;;  %v16144_v63 = vpack.c.bf16 %v1365_v62, %v1362_v21  ;;  %v1629_v29 = vsel %vm1619_vm6, %v17750_v10, %v17744_v42  ;;  %v1321_v1 = vld [vmem:[#allocation7 + $0xb0] sm:$0xff]  ;;  %v1322_v62 = vld [vmem:[#allocation7 + $0xb8] sm:$0xff]  ;;  %v1584_v42 = vld [vmem:[#allocation7 + $0xc8] sm:$0xff] }
  0xf9   :  { %v20088_v7 = vpop.permute.xlu1 %17767  ;;  %1202 = vmatprep.mubr.f32.mxu0 %v23577_v25  ;;  %15353 = vmatprep.mubr.msk.f32.mxu1 %vm165_vm0, %v20007_v12  ;;  %v1620_v55 = vsel %vm1619_vm6, %v17729_v61, %v17719_v31  ;;  %v17765_v57 = vunpack.i.h.bf16 %v20080_v20  ;;  %v17764_v48 = vunpack.i.l.bf16 %v20080_v20  ;;  %v1626_v28 = vsel %vm1619_vm6, %v17749_v47, %v17739_v13 }
  0xfa   :  { %14453 = vmatmul.mubr.msk.f32.gmra.mrb[2].mxu0 %vm165_vm0, %v1117_v26  ;;  %16133 = vmatprep.subr.bf16.mxu1 %v16132_v15  ;;  %v16154_v31 = vpack.c.bf16 %v1623_v41, %v1620_v55  ;;  %v16158_v27 = vpack.c.bf16 %v1629_v29, %v1626_v28 }
  0xfb   :  { %16143 = vmatpush1.bf16.msra.mxu0 %v16142_v33  ;;  %15354 = vmatmul.mubr.msk.f32.gmra.mrb[2].mxu1 %vm165_vm0, %v859_v49  ;;  %v17760_v49 = vunpack.i.h.bf16 %v20061_v23  ;;  %v1884_v11 = vsel %vm1879_vm7, %v17764_v48, %v17765_v57 }
  0xfc   :  { %16135 = vmatpush3.bf16.msra.mxu1 %v16132_v15  ;;  %v17773_v24 = vpop.permute.xlu0 %17772  ;;  %1208 = vmatprep.mubr.f32.mxu0 %v23577_v25 }
  0xfd   :  { %v17775_v0 = vunpack.i.h.bf16 %v17773_v24  ;;  %v17774_v8 = vunpack.i.l.bf16 %v17773_v24  ;;  %v20102_v12 = vpop.permute.xlu1 %17777  ;;  %16145 = vmatprep.subr.bf16.mxu1 %v16144_v63  ;;  %15364 = vmatprep.mubr.msk.f32.mxu1 %vm165_vm0, %v1116_v51  ;;  %v1881_v3 = vsel %vm1879_vm7, %v17759_v52, %v17760_v49  ;;  %v17770_v24 = vunpack.i.h.bf16 %v20088_v7 }
  0xfe   :  { %14454 = vmatmul.mubr.msk.f32.gmra.mrb[4].mxu0 %vm165_vm0, %v1118_v50  ;;  %16153 = vmatprep.subr.bf16.mxu0 %v16152_v22  ;;  %v17780_v38 = vunpack.i.h.bf16 %v20102_v12  ;;  %v1583_v22 = vld [vmem:[#allocation7 + $0xc0] sm:$0xff] }
  0xff   :  { %15365 = vmatmul.mubr.msk.f32.vlgmr.msra.gmra.mrb[0].mxu1 %vm165_vm0, %v1117_v26  ;;  %1214 = vmatprep.mubr.f32.mxu0 %v23577_v25  ;;  %v1368_v58 = vsel %vm1359_vm5, %v17690_v32, %v17774_v8  ;;  %v1371_v2 = vsel %vm1359_vm5, %v17695_v4, %v17775_v0  ;;  %v1627_v4 = vsel %vm1619_vm6, %v17739_v13, %v17740_v9 }
 0x100   :  { %16147 = vmatpush3.bf16.msra.mxu1 %v16144_v63  ;;  %v20116_v37 = vpop.permute.xlu0 %17782  ;;  %v16148_v17 = vpack.c.bf16 %v1371_v2, %v1368_v58  ;;  %15367 = vmatprep.mubr.msk.f32.mxu1 %vm165_vm0, %v1118_v50  ;;  %v16156_v43 = vpack.c.bf16 %v1630_v44, %v1627_v4  ;;  %v17779_v63 = vunpack.i.l.bf16 %v20102_v12  ;;  %v1883_v41 = vsel %vm1879_vm7, %v17770_v24, %v17764_v48 }
 0x101   :  { %v20125_v32 = vpop.permute.xlu1 %17787  ;;  %v17785_v50 = vunpack.i.h.bf16 %v20116_v37  ;;  %v17784_v30 = vunpack.i.l.bf16 %v20116_v37 }
 0x102   :  { %14455 = vmatmul.mubr.msk.f32.gmra.mrb[6].mxu0 %vm165_vm0, %v1119_v5  ;;  %16149 = vmatprep.subr.bf16.mxu1 %v16148_v17  ;;  %v17790_v0 = vunpack.i.h.bf16 %v20125_v32  ;;  %v17789_v8 = vunpack.i.l.bf16 %v20125_v32 }
 0x103   :  { %1460 = vmatprep.mubr.f32.mxu0 %v23577_v25  ;;  %15368 = vmatmul.mubr.msk.f32.gmra.mrb[2].mxu1 %vm165_vm0, %v1119_v5  ;;  %v1887_v5 = vsel %vm1879_vm7, %v17779_v63, %v17780_v38  ;;  %v1890_v58 = vsel %vm1879_vm7, %v17784_v30, %v17785_v50 }
 0x104   :  { %16151 = vmatpush3.bf16.msra.mxu1 %v16148_v17  ;;  %v17793_v40 = vpop.permute.xlu0 %17792  ;;  %15378 = vmatprep.mubr.msk.f32.mxu1 %vm165_vm0, %v1319_v6  ;;  %v1585_v17 = vld [vmem:[#allocation7 + $0xd0] sm:$0xff]  ;;  %v1889_v23 = vsel %vm1879_vm7, %v17790_v0, %v17784_v30  ;;  %v16172_v48 = vpack.c.bf16 %v1890_v58, %v1887_v5 }
 0x105   :  { %v17795_v46 = vunpack.i.h.bf16 %v17793_v40  ;;  %v17794_v54 = vunpack.i.l.bf16 %v17793_v40  ;;  %v17798_v18 = vpop.permute.xlu1 %17797  ;;  %v2105_v0 = vld [vmem:[#allocation7 + $0x110] sm:$0xff] }
 0x106   :  { %v17800_v51 = vunpack.i.h.bf16 %v17798_v18  ;;  %v17799_v56 = vunpack.i.l.bf16 %v17798_v18  ;;  %14460 = vmatmul.mubr.msk.f32.vlgmr.msra.gmra.mrb[0].mxu0 %vm165_vm0, %v1319_v6 }
 0x107   :  { %16155 = vmatpush1.bf16.msra.mxu0 %v16154_v31  ;;  %1466 = vmatprep.mubr.f32.mxu0 %v23577_v25  ;;  %v1622_v34 = vsel %vm1619_vm6, %v17720_v19, %v17794_v54  ;;  %v1625_v45 = vsel %vm1619_vm6, %v17725_v14, %v17795_v46  ;;  %v16168_v14 = vpack.c.bf16 %v1884_v11, %v1881_v3  ;;  %v1843_v54 = vld [vmem:[#allocation7 + $0xe0] sm:$0xff] }
 0x108   :  { %16157 = vmatprep.subr.bf16.mxu0 %v16156_v43  ;;  %v17803_v15 = vpop.permute.xlu0 %17802  ;;  %v16160_v26 = vpack.c.bf16 %v1625_v45, %v1622_v34  ;;  %15379 = vmatmul.mubr.msk.f32.vlgmr.msra.gmra.mrb[0].mxu1 %vm165_vm0, %v1320_v16  ;;  %v1628_v59 = vsel %vm1619_vm6, %v17740_v9, %v17799_v56  ;;  %v1631_v60 = vsel %vm1619_vm6, %v17745_v39, %v17800_v51  ;;  %v17769_v39 = vunpack.i.l.bf16 %v20088_v7  ;;  %v1586_v43 = vld [vmem:[#allocation7 + $0xd8] sm:$0xff]  ;;  %v1844_v34 = vld [vmem:[#allocation7 + $0xe8] sm:$0xff] }
 0x109   :  { %v17805_v36 = vunpack.i.h.bf16 %v17803_v15  ;;  %v17804_v21 = vunpack.i.l.bf16 %v17803_v15  ;;  %v20164_v19 = vpop.permute.xlu1 %17807  ;;  %v16164_v35 = vpack.c.bf16 %v1631_v60, %v1628_v59  ;;  %15381 = vmatprep.mubr.msk.f32.mxu1 %vm165_vm0, %v1321_v1 }
 0x10a   :  { %14461 = vmatmul.mubr.msk.f32.gmra.mrb[2].mxu0 %vm165_vm0, %v1320_v16  ;;  %16161 = vmatprep.subr.bf16.mxu1 %v16160_v26  ;;  %v17809_v2 = vunpack.i.l.bf16 %v20164_v19  ;;  %v1880_v55 = vsel %vm1879_vm7, %v17769_v39, %v17759_v52  ;;  %v17810_v4 = vunpack.i.h.bf16 %v20164_v19 }
 0x10b   :  { %16159 = vmatpush1.bf16.msra.mxu0 %v16158_v27  ;;  %16163 = vmatpush3.bf16.msra.mxu1 %v16160_v26  ;;  %v1882_v53 = vsel %vm1879_vm7, %v17760_v49, %v17804_v21  ;;  %v1885_v33 = vsel %vm1879_vm7, %v17765_v57, %v17805_v36  ;;  %v1886_v49 = vsel %vm1879_vm7, %v17789_v8, %v17779_v63  ;;  %v2106_v8 = vld [vmem:[#allocation7 + $0x118] sm:$0xff] }
 0x10c   :  { %v20174_v61 = vpop.permute.xlu0 %17812  ;;  %16165 = vmatprep.subr.bf16.mxu1 %v16164_v35  ;;  %1472 = vmatprep.mubr.f32.mxu0 %v23577_v25  ;;  %v16176_v9 = vpack.c.bf16 %v1885_v33, %v1882_v53  ;;  %v16170_v6 = vpack.c.bf16 %v1883_v41, %v1880_v55  ;;  %v2141_v28 = vsel %vm2139_vm8, %v17809_v2, %v17810_v4  ;;  %v1846_v53 = vld [vmem:[#allocation7 + $0xf8] sm:$0xff]  ;;  %v2103_v33 = vld [vmem:[#allocation7 + $0x100] sm:$0xff] }
 0x10d   :  { %15382 = vmatmul.mubr.msk.f32.gmra.mrb[2].mxu1 %vm165_vm0, %v1322_v62  ;;  %16169 = vmatprep.subr.bf16.mxu0 %v16168_v14  ;;  %v20178_v13 = vpop.permute.xlu1 %17817  ;;  %v17814_v7 = vunpack.i.l.bf16 %v20174_v61  ;;  %v17815_v32 = vunpack.i.h.bf16 %v20174_v61  ;;  %v16174_v46 = vpack.c.bf16 %v1889_v23, %v1886_v49  ;;  %v2104_v61 = vld [vmem:[#allocation7 + $0x108] sm:$0xff] }
 0x10e   :  { %14462 = vmatmul.mubr.msk.f32.gmra.mrb[4].mxu0 %vm165_vm0, %v1321_v1  ;;  %15392 = vmatprep.mubr.msk.f32.mxu1 %vm165_vm0, %v1583_v22  ;;  %v17820_v45 = vunpack.i.h.bf16 %v20178_v13  ;;  %v17819_v59 = vunpack.i.l.bf16 %v20178_v13 }
 0x10f   :  { %16167 = vmatpush3.bf16.msra.mxu1 %v16164_v35  ;;  %1478 = vmatprep.mubr.f32.mxu0 %v23577_v25  ;;  %v2144_v40 = vsel %vm2139_vm8, %v17814_v7, %v17815_v32 }
 0x110   :  { %v17823_v12 = vpop.permute.xlu0 %17822  ;;  %16177 = vmatprep.subr.bf16.mxu1 %v16176_v9  ;;  %v16184_v51 = vpack.c.bf16 %v2144_v40, %v2141_v28  ;;  %v2140_v63 = vsel %vm2139_vm8, %v17819_v59, %v17809_v2 }
 0x111   :  { %v17825_v10 = vunpack.i.h.bf16 %v17823_v12  ;;  %v17824_v47 = vunpack.i.l.bf16 %v17823_v12  ;;  %v20191_v37 = vpop.permute.xlu1 %17827 }
 0x112   :  { %14463 = vmatmul.mubr.msk.f32.gmra.mrb[6].mxu0 %vm165_vm0, %v1322_v62  ;;  %15393 = vmatmul.mubr.msk.f32.vlgmr.msra.gmra.mrb[0].mxu1 %vm165_vm0, %v1584_v42  ;;  %v17830_v31 = vunpack.i.h.bf16 %v20191_v37  ;;  %v17829_v14 = vunpack.i.l.bf16 %v20191_v37  ;;  %v1845_v62 = vld [vmem:[#allocation7 + $0xf0] sm:$0xff] }
 0x113   :  { %16179 = vmatpush3.bf16.msra.mxu1 %v16176_v9  ;;  %1720 = vmatprep.mubr.f32.mxu0 %v23577_v25  ;;  %v1888_v20 = vsel %vm1879_vm7, %v17780_v38, %v17824_v47  ;;  %v1891_v44 = vsel %vm1879_vm7, %v17785_v50, %v17825_v10  ;;  %v2435_v10 = vlaneseq }
 0x114   :  { %v20208_v52 = vpop.permute.xlu0 %17832  ;;  %v16180_v57 = vpack.c.bf16 %v1891_v44, %v1888_v20  ;;  %15395 = vmatprep.mubr.msk.f32.mxu1 %vm165_vm0, %v1585_v17  ;;  %v2147_v9 = vsel %vm2139_vm8, %v17829_v14, %v17830_v31  ;;  %v46_v20 = vld [vmem:[%s23567_s3] sm:$0x7]  ;;  %s19553_s3 = smov 44  }
 0x115   :  { %v20211_v29 = vpop.permute.xlu1 %17837  ;;  %v17835_v18 = vunpack.i.h.bf16 %v20208_v52  ;;  %v17834_v35 = vunpack.i.l.bf16 %v20208_v52  ;;  %v2436_v47 = vshrl.u32 %v2435_v10, 7 }
 0x116   :  { %14468 = vmatmul.mubr.msk.f32.vlgmr.msra.gmra.mrb[0].mxu0 %vm165_vm0, %v1583_v22  ;;  %16181 = vmatprep.subr.bf16.mxu1 %v16180_v57  ;;  %v2143_v22 = vsel %vm2139_vm8, %v17820_v45, %v17814_v7  ;;  %v17840_v50 = vunpack.i.h.bf16 %v20211_v29  ;;  %v17839_v30 = vunpack.i.l.bf16 %v20211_v29 }
 0x117   :  { %16171 = vmatpush1.bf16.msra.mxu0 %v16170_v6  ;;  %16183 = vmatpush3.bf16.msra.mxu1 %v16180_v57  ;;  %v2150_v13 = vsel %vm2139_vm8, %v17834_v35, %v17835_v18  ;;  %v16186_v19 = vpack.c.bf16 %v2143_v22, %v2140_v63  ;;  %v2445_v55 = vsub.s32 2, %v2436_v47 }
 0x118   :  { %16173 = vmatprep.subr.bf16.mxu0 %v16172_v48  ;;  %v17843_v16 = vpop.permute.xlu0 %17842  ;;  %1726 = vmatprep.mubr.f32.mxu0 %v23577_v25  ;;  %v2149_v24 = vsel %vm2139_vm8, %v17840_v50, %v17834_v35  ;;  %v2146_v39 = vsel %vm2139_vm8, %v17839_v30, %v17829_v14 }
 0x119   :  { %v17845_v56 = vunpack.i.h.bf16 %v17843_v16  ;;  %v17844_v1 = vunpack.i.l.bf16 %v17843_v16  ;;  %15396 = vmatmul.mubr.msk.f32.gmra.mrb[2].mxu1 %vm165_vm0, %v1586_v43  ;;  %v17848_v3 = vpop.permute.xlu1 %17847  ;;  %v16190_v12 = vpack.c.bf16 %v2149_v24, %v2146_v39  ;;  %v20277_v52 = vrot.slane %v46_v20, %v2445_v55 }
 0x11a   :  { %14469 = vmatmul.mubr.msk.f32.gmra.mrb[2].mxu0 %vm165_vm0, %v1584_v42  ;;  %v17850_v11 = vunpack.i.h.bf16 %v17848_v3  ;;  %v17849_v27 = vunpack.i.l.bf16 %v17848_v3  ;;  %15406 = vmatprep.mubr.msk.f32.mxu1 %vm165_vm0, %v1843_v54  ;;  %v16188_v42 = vpack.c.bf16 %v2150_v13, %v2147_v9 }
 0x11b   :  { %16175 = vmatpush1.bf16.msra.mxu0 %v16174_v46  ;;  %1732 = vmatprep.mubr.f32.mxu0 %v23577_v25  ;;  %v2142_v15 = vsel %vm2139_vm8, %v17810_v4, %v17844_v1  ;;  %v2145_v26 = vsel %vm2139_vm8, %v17815_v32, %v17845_v56  ;;  %23616 = vst [vmem:[#allocation13_spill] sm:$0xff] %v20277_v52 }
 0x11c   :  { %v16192_v60 = vpack.c.bf16 %v2145_v26, %v2142_v15  ;;  %v2148_v36 = vsel %vm2139_vm8, %v17830_v31, %v17849_v27  ;;  %v2151_v21 = vsel %vm2139_vm8, %v17835_v18, %v17850_v11  ;;  %16185 = vmatprep.subr.bf16.mxu0 %v16184_v51  ;;  %v2441_v26 = vsub.s32 1, %v2436_v47 }
 0x11d   :  { %15407 = vmatmul.mubr.msk.f32.vlgmr.msra.gmra.mrb[0].mxu1 %vm165_vm0, %v1844_v34  ;;  %v16196_v38 = vpack.c.bf16 %v2151_v21, %v2148_v36  ;;  %v2437_v36 = vsub.s32 0, %v2436_v47 }
 0x11e   :  { %14470 = vmatmul.mubr.msk.f32.gmra.mrb[4].mxu0 %vm165_vm0, %v1585_v17  ;;  %16193 = vmatprep.subr.bf16.mxu1 %v16192_v60 }
 0x11f   :  { %16195 = vmatpush3.bf16.msra.mxu1 %v16192_v60  ;;  %1738 = vmatprep.mubr.f32.mxu0 %v23577_v25 }
 0x120   :  { %15409 = vmatprep.mubr.msk.f32.mxu1 %vm165_vm0, %v1845_v62  ;;  %16197 = vmatprep.subr.bf16.mxu1 %v16196_v38 }
 0x121   :  { %15410 = vmatmul.mubr.msk.f32.gmra.mrb[2].mxu1 %vm165_vm0, %v1846_v53 }
 0x122   :  { %14471 = vmatmul.mubr.msk.f32.gmra.mrb[6].mxu0 %vm165_vm0, %v1586_v43  ;;  %15420 = vmatprep.mubr.msk.f32.mxu1 %vm165_vm0, %v2103_v33 }
 0x123   :  { %16199 = vmatpush3.bf16.msra.mxu1 %v16196_v38  ;;  %1980 = vmatprep.mubr.f32.mxu0 %v23577_v25  ;;  %v20293_v38 = vrot.slane %v46_v20, %v2441_v26 }
 0x125   :  { %23617 = vst [vmem:[#allocation14_spill] sm:$0xff] %v20293_v38 }
 0x126   :  { %14476 = vmatmul.mubr.msk.f32.vlgmr.msra.gmra.mrb[0].mxu0 %vm165_vm0, %v1843_v54  ;;  %15421 = vmatmul.mubr.msk.f32.vlgmr.msra.gmra.mrb[0].mxu1 %vm165_vm0, %v2104_v61 }
 0x127   :  { %16187 = vmatpush1.bf16.msra.mxu0 %v16186_v19  ;;  %1986 = vmatprep.mubr.f32.mxu0 %v23577_v25 }
 0x128   :  { %15423 = vmatprep.mubr.msk.f32.mxu1 %vm165_vm0, %v2105_v0  ;;  %16189 = vmatprep.subr.bf16.mxu0 %v16188_v42 }
 0x12a   :  { %14477 = vmatmul.mubr.msk.f32.gmra.mrb[2].mxu0 %vm165_vm0, %v1844_v34  ;;  %15424 = vmatmul.mubr.msk.f32.gmra.mrb[2].mxu1 %vm165_vm0, %v2106_v8 }
 0x12b   :  { %16191 = vmatpush1.bf16.msra.mxu0 %v16190_v12  ;;  %1992 = vmatprep.mubr.f32.mxu0 %v23577_v25 }
 0x12e   :  { %14478 = vmatmul.mubr.msk.f32.gmra.mrb[4].mxu0 %vm165_vm0, %v1845_v62 }
 0x12f   :  { %1998 = vmatprep.mubr.f32.mxu0 %v23577_v25 }
 0x132   :  { %14479 = vmatmul.mubr.msk.f32.gmra.mrb[6].mxu0 %vm165_vm0, %v1846_v53  ;;  %v20295_v53 = vrot.slane %v46_v20, %v2437_v36 }
 0x133   :  { %2240 = vmatprep.mubr.f32.mxu0 %v23577_v25 }
 0x134   :  { %23618 = vst [vmem:[#allocation15_spill] sm:$0xff] %v20295_v53 }
 0x136   :  { %14484 = vmatmul.mubr.msk.f32.vlgmr.msra.gmra.mrb[0].mxu0 %vm165_vm0, %v2103_v33 }
 0x137   :  { %2246 = vmatprep.mubr.f32.mxu0 %v23577_v25 }
 0x139   :  { %v2374_v17 = vpop.permute.xlu1 %2373 }
 0x13a   :  { %14485 = vmatmul.mubr.msk.f32.gmra.mrb[2].mxu0 %vm165_vm0, %v2104_v61  ;;  %v2369_v37 = vpop.permute.xlu0 %2368 }
 0x13b   :  { %2252 = vmatprep.mubr.f32.mxu0 %v23577_v25 }
 0x13e   :  { %14486 = vmatmul.mubr.msk.f32.gmra.mrb[4].mxu0 %vm165_vm0, %v2105_v0 }
 0x13f   :  { %2258 = vmatprep.mubr.f32.mxu0 %v23577_v25  ;;  %v2379_v40 = vpop.permute.xlu1 %2378 }
 0x140   :  { %v20279_v48 = vpop.permute.xlu0 %2383 }
 0x142   :  { %14487 = vmatmul.mubr.msk.f32.gmra.mrb[6].mxu0 %vm165_vm0, %v2106_v8 }
 0x143   :  { %2653 = vmatprep.mubr.f32.mxu0 %v23577_v25 }
 0x191   :  { %v15310_v5 = vpop.f32.mrb[8].mxu0 }
 0x192   :  { %v333_v58 = vpop.f32.mrb[9].mxu0 }
 0x195   :  { %v15313_v7 = vpop.f32.mrb[10].mxu0 }
 0x196   :  { %v343_v2 = vpop.f32.mrb[11].mxu0 }
 0x1f9   :  { %v15422_v41 = vpop.f32.mrb[0].mxu1 }
 0x1fa   :  { %v16920_v32 = vadd.f32 %v15422_v41, %v15310_v5  ;;  %v2331_v4 = vpop.f32.mrb[1].mxu1 }
 0x1fb   :  { %v16921_v44 = vadd.f32 %v2331_v4, %v333_v58 }
 0x1fc   :  { %v2391_v23 = vadd.f32 %v16920_v32, %v2374_v17 }
 0x1fd   :  { %v2388_v49 = vadd.f32 %v16921_v44, %v2369_v37  ;;  %v15425_v57 = vpop.f32.mrb[2].mxu1 }
 0x1fe   :  { %vm2403_vm9 = vcmp.ge.f32.partialorder %v2391_v23, 0.0  ;;  %v2415_v6 = vmul.f32 0.01, %v2391_v23  ;;  %v16922_v29 = vadd.f32 %v15425_v57, %v15313_v7  ;;  %v2341_v28 = vpop.f32.mrb[3].mxu1 }
 0x1ff   :  { %vm2400_vm10 = vcmp.ge.f32.partialorder %v2388_v49, 0.0  ;;  %v2412_v43 = vmul.f32 0.01, %v2388_v49  ;;  %v16923_v46 = vadd.f32 %v2341_v28, %v343_v2 }
 0x200   :  { %v2427_v54 = vsel %vm2403_vm9, %v2391_v23, %v2415_v6  ;;  %v2397_v18 = vadd.f32 %v16922_v29, %v20279_v48 }
 0x201   :  { %v2424_v31 = vsel %vm2400_vm10, %v2388_v49, %v2412_v43  ;;  %v2455_v16 = vmul.f32 %v20277_v52, %v2427_v54  ;;  %v2394_v51 = vadd.f32 %v16923_v46, %v2379_v40  ;;  %v20337_v54 = vld [vmem:[#allocation7 + $0x140] sm:$0xff] }
 0x202   :  { %v2452_v56 = vmul.f32 %v20277_v52, %v2424_v31  ;;  %vm2409_vm11 = vcmp.ge.f32.partialorder %v2397_v18, 0.0  ;;  %v2421_v1 = vmul.f32 0.01, %v2397_v18  ;;  %15434 = vmatprep.mubr.msk.f32.mxu1 %vm165_vm0, %v20337_v54 }
 0x203   :  { %vm2406_vm12 = vcmp.ge.f32.partialorder %v2394_v51, 0.0  ;;  %v2418_v3 = vmul.f32 0.01, %v2394_v51 }
 0x204   :  { %v2433_v11 = vsel %vm2409_vm11, %v2397_v18, %v2421_v1  ;;  %v20284_v27 = vpack.c.bf16 %v2455_v16, %v2452_v56 }
 0x205   :  { %v20287_v34 = vmul.f32 %v20277_v52, %v2433_v11  ;;  %v2430_v45 = vsel %vm2406_vm12, %v2394_v51, %v2418_v3 }
 0x206   :  { %v2458_v15 = vmul.f32 %v20277_v52, %v2430_v45 }
 0x208   :  { %v20291_v59 = vpack.c.bf16 %v20287_v34, %v2458_v15 }
 0x209   :  { %v2242_v60 = vpop.f32.mrb[0].mxu0 }
 0x20a   :  { %v2386_v21 = vadd.f32 %v2369_v37, %v2242_v60  ;;  %v2244_v35 = vpop.f32.mrb[1].mxu0 }
 0x20b   :  { %v2387_v14 = vadd.f32 %v2369_v37, %v2244_v35 }
 0x20c   :  { %vm2398_vm13 = vcmp.ge.f32.partialorder %v2386_v21, 0.0  ;;  %v2410_v62 = vmul.f32 0.01, %v2386_v21 }
 0x20d   :  { %vm2399_vm14 = vcmp.ge.f32.partialorder %v2387_v14, 0.0  ;;  %v2411_v33 = vmul.f32 0.01, %v2387_v14  ;;  %v2248_v22 = vpop.f32.mrb[2].mxu0 }
 0x20e   :  { %v2422_v63 = vsel %vm2398_vm13, %v2386_v21, %v2410_v62  ;;  %v2389_v50 = vadd.f32 %v2374_v17, %v2248_v22  ;;  %v2250_v30 = vpop.f32.mrb[3].mxu0  ;;  %v20498_v22 = vld [vmem:[#allocation4 + $0xb0] sm:$0xff] }
 0x20f   :  { %v2423_v9 = vsel %vm2399_vm14, %v2387_v14, %v2411_v33  ;;  %v2390_v13 = vadd.f32 %v2374_v17, %v2250_v30  ;;  %v20301_v24 = vmul.f32 %v20295_v53, %v2422_v63  ;;  %vm2552_vm14 = vcmask 359424   ;;  %v20496_v33 = vld [vmem:[#allocation4 + $0xa8] sm:$0xff] }
 0x210   :  { %v20298_v19 = vmul.f32 %v20293_v38, %v2423_v9  ;;  %vm2401_vm15 = vcmp.ge.f32.partialorder %v2389_v50, 0.0  ;;  %v2413_v61 = vmul.f32 0.01, %v2389_v50 }
 0x211   :  { %vm2402_vm9 = vcmp.ge.f32.partialorder %v2390_v13, 0.0  ;;  %v2414_v39 = vmul.f32 0.01, %v2390_v13  ;;  %v2254_v42 = vpop.f32.mrb[4].mxu0 }
 0x212   :  { %v2425_v0 = vsel %vm2401_vm15, %v2389_v50, %v2413_v61  ;;  %v2392_v8 = vadd.f32 %v2379_v40, %v2254_v42  ;;  %v2256_v12 = vpop.f32.mrb[5].mxu0  ;;  %v20304_v5 = vpack.i.bf16 %v2452_v56, %v20298_v19  ;;  %v20512_v61 = vld [vmem:[#allocation4 + $0xd0] sm:$0xff]  ;;  %vm2795_vm15 = vcmask 375808   ;;  %v20664_v56 = vld [vmem:[#allocation7 + $0x138] sm:$0xff] }
 0x213   :  { %v20307_v58 = vmul.f32 %v20295_v53, %v2425_v0  ;;  %v2426_v7 = vsel %vm2402_vm9, %v2390_v13, %v2414_v39  ;;  %v2393_v2 = vadd.f32 %v2379_v40, %v2256_v12  ;;  %v20510_v13 = vpack.i.bf16 %v20498_v22, %v20496_v33  ;;  %v20524_v12 = vld [vmem:[#allocation4 + $0xd8] sm:$0xff]  ;;  %23630 = vst [vmem:[#allocation27_spill] sm:$0xff] %v20664_v56 }
 0x214   :  { %v20310_v10 = vmul.f32 %v20293_v38, %v2426_v7  ;;  %vm2404_vm10 = vcmp.ge.f32.partialorder %v2392_v8, 0.0  ;;  %v2416_v47 = vmul.f32 0.01, %v2392_v8  ;;  %17854 = vrot.lane.b32.xlu1 %v20304_v5, %s19553_s3  ;;  %v7272_v7 = vld [vmem:[#allocation4 + $0xc8] sm:$0xff]  ;;  %vm3043_vm9 = vcmask 343040  }
 0x215   :  { %vm2405_vm11 = vcmp.ge.f32.partialorder %v2393_v2, 0.0  ;;  %v2417_v37 = vmul.f32 0.01, %v2393_v2  ;;  %v2260_v17 = vpop.f32.mrb[6].mxu0  ;;  %v20316_v41 = vpack.i.bf16 %v20307_v58, %v20301_v24 }
 0x216   :  { %v2428_v55 = vsel %vm2404_vm10, %v2392_v8, %v2416_v47  ;;  %v2395_v32 = vadd.f32 %v20279_v48, %v2260_v17  ;;  %v2262_v4 = vpop.f32.mrb[7].mxu0  ;;  %v20320_v20 = vpack.i.bf16 %v2455_v16, %v20310_v10  ;;  %vm3303_vm10 = vcmask 15360  }
 0x217   :  { %v20323_v44 = vmul.f32 %v20295_v53, %v2428_v55  ;;  %v2429_v23 = vsel %vm2405_vm11, %v2393_v2, %v2417_v37  ;;  %v2396_v49 = vadd.f32 %v20279_v48, %v2262_v4  ;;  %v20534_v55 = vld [vmem:[#allocation7 + $0x148] sm:$0xff]  ;;  %vm3770_vm11 = vcmask 1031168  }
 0x218   :  { %v20327_v57 = vmul.f32 %v20293_v38, %v2429_v23  ;;  %vm2407_vm12 = vcmp.ge.f32.partialorder %v2395_v32, 0.0  ;;  %v2419_v6 = vmul.f32 0.01, %v2395_v32  ;;  %17859 = vrot.lane.b32.xlu0 %v20320_v20, %s19553_s3 }
 0x219   :  { %vm2408_vm13 = vcmp.ge.f32.partialorder %v2396_v49, 0.0  ;;  %v2420_v29 = vmul.f32 0.01, %v2396_v49 }
 0x21a   :  { %v2431_v28 = vsel %vm2407_vm12, %v2395_v32, %v2419_v6  ;;  %v20332_v40 = vpack.i.bf16 %v2458_v15, %v20327_v57  ;;  %v20538_v32 = vpack.i.bf16 %v20524_v12, %v20512_v61  ;;  %vm23612_vm12 = vcmask 703488  }
 0x21b   :  { %v20335_v43 = vmul.f32 %v20295_v53, %v2431_v28  ;;  %v2432_v46 = vsel %vm2408_vm13, %v2396_v49, %v2420_v29  ;;  %v20554_v28 = vld [vmem:[#allocation4 + $0x100] sm:$0xff]  ;;  %vm4290_vm13 = vcmask 687104  }
 0x21c   :  { %v20340_v48 = vmul.f32 %v20293_v38, %v2432_v46  ;;  %17864 = vrot.lane.b32.xlu1 %v20332_v40, %s19553_s3  ;;  %v20558_v46 = vld [vmem:[#allocation4 + $0x128] sm:$0xff] }
 0x21d   :  { %v20346_v18 = vpack.i.bf16 %v20335_v43, %v20323_v44 }
 0x21e   :  { %v20352_v31 = vpack.i.bf16 %v20287_v34, %v20340_v48 }
 0x220   :  { %17874 = vrot.lane.b32.xlu0 %v20352_v31, %s19553_s3  ;;  %17869 = vrot.lane.b32.xlu1 %v20304_v5, %s19554_s7 }
 0x224   :  { %17879 = vrot.lane.b32.xlu0 %v20320_v20, %s19554_s7  ;;  %17884 = vrot.lane.b32.xlu1 %v20332_v40, %s19554_s7 }
 0x228   :  { %17894 = vrot.lane.b32.xlu0 %v20352_v31, %s19554_s7  ;;  %17889 = vrot.lane.b32.xlu1 %v20304_v5, %s19555_s8 }
 0x22c   :  { %17899 = vrot.lane.b32.xlu0 %v20320_v20, %s19555_s8  ;;  %17904 = vrot.lane.b32.xlu1 %v20332_v40, %s19555_s8 }
 0x230   :  { %17914 = vrot.lane.b32.xlu0 %v20352_v31, %s19555_s8  ;;  %17909 = vrot.lane.b32.xlu1 %v20304_v5, %s19556_s9 }
 0x234   :  { %17919 = vrot.lane.b32.xlu0 %v20320_v20, %s19556_s9  ;;  %17924 = vrot.lane.b32.xlu1 %v20332_v40, %s19556_s9 }
 0x238   :  { %17929 = vrot.lane.b32.xlu0 %v20352_v31, %s19556_s9  ;;  %17934 = vrot.lane.b32.xlu1 %v20304_v5, %s19557_s10 }
 0x23c   :  { %17939 = vrot.lane.b32.xlu0 %v20320_v20, %s19557_s10  ;;  %17944 = vrot.lane.b32.xlu1 %v20316_v41, %s19557_s10 }
 0x240   :  { %17949 = vrot.lane.b32.xlu0 %v20332_v40, %s19557_s10  ;;  %17959 = vrot.lane.b32.xlu1 %v23577_v25, %s19557_s10 }
 0x244   :  { %17954 = vrot.lane.b32.xlu0 %v20346_v18, %s19557_s10  ;;  %17969 = vrot.lane.b32.xlu1 %v20352_v31, %s19557_s10 }
 0x248   :  { %17964 = vrot.lane.b32.xlu0 %v23577_v25, %s19557_s10  ;;  %17974 = vrot.lane.b32.xlu1 %v20316_v41, %s19553_s3 }
 0x24c   :  { %17979 = vrot.lane.b32.xlu0 %v20304_v5, %s19558_s11  ;;  %17984 = vrot.lane.b32.xlu1 %v20320_v20, %s19558_s11 }
 0x250   :  { %17989 = vrot.lane.b32.xlu0 %v23577_v25, %s19553_s3  ;;  %17994 = vrot.lane.b32.xlu1 %v20316_v41, %s19558_s11 }
 0x254   :  { %17999 = vrot.lane.b32.xlu0 %v20346_v18, %s19553_s3  ;;  %18004 = vrot.lane.b32.xlu1 %v20332_v40, %s19558_s11 }
 0x258   :  { %18014 = vrot.lane.b32.xlu0 %v20346_v18, %s19558_s11  ;;  %18009 = vrot.lane.b32.xlu1 %v23577_v25, %s19553_s3 }
 0x25c   :  { %18024 = vrot.lane.b32.xlu0 %v23577_v25, %s19558_s11  ;;  %18019 = vrot.lane.b32.xlu1 %v20316_v41, %s19554_s7 }
 0x260   :  { %18034 = vrot.lane.b32.xlu0 %v20352_v31, %s19558_s11  ;;  %18029 = vrot.lane.b32.xlu1 %v23577_v25, %s19554_s7 }
 0x264   :  { %18039 = vrot.lane.b32.xlu0 %v20346_v18, %s19554_s7  ;;  %18044 = vrot.lane.b32.xlu1 %v23577_v25, %s19558_s11 }
 0x268   :  { %18049 = vrot.lane.b32.xlu0 %v23577_v25, %s19554_s7  ;;  %18054 = vrot.lane.b32.xlu1 %v20304_v5, %s19559_s12 }
 0x26c   :  { %18059 = vrot.lane.b32.xlu0 %v20320_v20, %s19559_s12  ;;  %18064 = vrot.lane.b32.xlu1 %v20316_v41, %s19559_s12 }
 0x270   :  { %18069 = vrot.lane.b32.xlu0 %v20332_v40, %s19559_s12  ;;  %18079 = vrot.lane.b32.xlu1 %v20316_v41, %s19555_s8 }
 0x274   :  { %18074 = vrot.lane.b32.xlu0 %v20346_v18, %s19559_s12  ;;  %18089 = vrot.lane.b32.xlu1 %v20352_v31, %s19559_s12 }
 0x278   :  { %18084 = vrot.lane.b32.xlu0 %v23577_v25, %s19555_s8  ;;  %18094 = vrot.lane.b32.xlu1 %v20346_v18, %s19555_s8 }
 0x27c   :  { %18099 = vrot.lane.b32.xlu0 %v23577_v25, %s19555_s8  ;;  %18104 = vrot.lane.b32.xlu1 %v23577_v25, %s19559_s12 }
 0x280   :  { %18109 = vrot.lane.b32.xlu0 %v23577_v25, %s19559_s12  ;;  %18114 = vrot.lane.b32.xlu1 %v20316_v41, %s19556_s9 }
 0x284   :  { %18119 = vrot.lane.b32.xlu0 %v20304_v5, %s19560_s0  ;;  %18124 = vrot.lane.b32.xlu1 %v20320_v20, %s19560_s0  ;;  %v7267_v5 = vld [vmem:[#allocation4 + $0xa0] sm:$0xff]  ;;  %v20542_v20 = vld [vmem:[#allocation4 + $0xf8] sm:$0xff] }
 0x285   :  { %v20540_v4 = vpack.i.bf16 %v7272_v7, %v7267_v5  ;;  %v7277_v7 = vld [vmem:[#allocation4 + $0xf0] sm:$0xff] }
 0x286   :  { %v20466_v3 = vpop.permute.xlu1 %17854 }
 0x287   :  { %v17857_v11 = vunpack.i.h.bf16 %v20466_v3  ;;  %v23576_v34 = vunpack.i.l.bf16 %v20466_v3 }
 0x288   :  { %18129 = vrot.lane.b32.xlu0 %v23577_v25, %s19556_s9  ;;  %18134 = vrot.lane.b32.xlu1 %v20316_v41, %s19560_s0 }
 0x289   :  { %v2555_v60 = vsel %vm2552_vm14, %v23576_v34, %v17857_v11  ;;  %v20632_v34 = vld [vmem:[#allocation7 + $0x128] sm:$0xff] }
 0x28a   :  { %v20474_v45 = vpop.permute.xlu0 %17859  ;;  %23626 = vst [vmem:[#allocation23_spill] sm:$0xff] %v20632_v34 }
 0x28b   :  { %v17862_v15 = vunpack.i.h.bf16 %v20474_v45  ;;  %v23575_v26 = vunpack.i.l.bf16 %v20474_v45 }
 0x28c   :  { %18139 = vrot.lane.b32.xlu0 %v20346_v18, %s19556_s9  ;;  %18144 = vrot.lane.b32.xlu1 %v20332_v40, %s19560_s0  ;;  %v20556_v40 = vld [vmem:[#allocation4 + $0x120] sm:$0xff] }
 0x28d   :  { %v2558_v36 = vsel %vm2552_vm14, %v23575_v26, %v17862_v15 }
 0x28e   :  { %v20488_v21 = vpop.permute.xlu1 %17864  ;;  %v16208_v35 = vpack.c.bf16 %v2558_v36, %v2555_v60  ;;  %v20566_v36 = vld [vmem:[#allocation7 + $0x150] sm:$0xff] }
 0x28f   :  { %v17867_v14 = vunpack.i.h.bf16 %v20488_v21  ;;  %v23574_v62 = vunpack.i.l.bf16 %v20488_v21 }
 0x290   :  { %16209 = vmatprep.subr.bf16.mxu1 %v16208_v35  ;;  %18154 = vrot.lane.b32.xlu0 %v20352_v31, %s19560_s0 }
 0x291   :  { %18149 = vrot.lane.b32.xlu1 %v23577_v25, %s19556_s9  ;;  %16211 = vmatpush3.bf16.msra.mxu1 %v16208_v35  ;;  %v2561_v0 = vsel %vm2552_vm14, %v23574_v62, %v17867_v14  ;;  %v20572_v35 = vpack.i.bf16 %v20554_v28, %v20542_v20  ;;  %v20576_v14 = vpack.i.bf16 %v20558_v46, %v20556_v40 }
 0x292   :  { %v20500_v63 = vpop.permute.xlu0 %17874  ;;  %v20502_v50 = vpop.permute.xlu1 %17869 }
 0x293   :  { %v17877_v30 = vunpack.i.h.bf16 %v20500_v63  ;;  %v23573_v9 = vunpack.i.l.bf16 %v20500_v63  ;;  %v17872_v39 = vunpack.i.h.bf16 %v20502_v50  ;;  %v23571_v42 = vunpack.i.l.bf16 %v20502_v50 }
 0x294   :  { %18159 = vrot.lane.b32.xlu0 %v20346_v18, %s19560_s0 }
 0x295   :  { %18164 = vrot.lane.b32.xlu1 %v23577_v25, %s19560_s0  ;;  %v2564_v8 = vsel %vm2552_vm14, %v23573_v9, %v17877_v30  ;;  %v2798_v6 = vsel %vm2795_vm15, %v23571_v42, %v17872_v39  ;;  %v20602_v42 = vld [vmem:[#allocation4 + $0xb8] sm:$0xff] }
 0x296   :  { %v20526_v2 = vpop.permute.xlu0 %17879  ;;  %v20528_v47 = vpop.permute.xlu1 %17884  ;;  %v16212_v37 = vpack.c.bf16 %v2564_v8, %v2561_v0  ;;  %v20584_v0 = vld [vmem:[#allocation7 + $0x158] sm:$0xff] }
 0x297   :  { %v17882_v17 = vunpack.i.h.bf16 %v20526_v2  ;;  %v23569_v41 = vunpack.i.l.bf16 %v20526_v2  ;;  %v17887_v23 = vunpack.i.h.bf16 %v20528_v47  ;;  %v23570_v49 = vunpack.i.l.bf16 %v20528_v47  ;;  %23620 = vst [vmem:[#allocation17_spill] sm:$0xff] %v20584_v0 }
 0x298   :  { %16213 = vmatprep.subr.bf16.mxu1 %v16212_v37  ;;  %18169 = vrot.lane.b32.xlu0 %v23577_v25, %s19560_s0 }
 0x299   :  { %18174 = vrot.lane.b32.xlu1 %v20510_v13, %s19543_s1  ;;  %16215 = vmatpush3.bf16.msra.mxu1 %v16212_v37  ;;  %v2801_v29 = vsel %vm2795_vm15, %v23569_v41, %v17882_v17  ;;  %v2804_v8 = vsel %vm2795_vm15, %v23570_v49, %v17887_v23  ;;  %v7282_v37 = vld [vmem:[#allocation4 + $0x118] sm:$0xff]  ;;  %v20600_v49 = vld [vmem:[#allocation7 + $0x120] sm:$0xff] }
 0x29a   :  { %v20560_v18 = vpop.permute.xlu0 %17894  ;;  %v20562_v31 = vpop.permute.xlu1 %17889  ;;  %v16224_v11 = vpack.c.bf16 %v2801_v29, %v2798_v6  ;;  %23623 = vst [vmem:[#allocation20_spill] sm:$0xff] %v20600_v49 }
 0x29b   :  { %23619 = vst [vmem:[#allocation16_spill] sm:$0xff] %v20562_v31  ;;  %v17897_v15 = vunpack.i.h.bf16 %v20560_v18  ;;  %v23572_v60 = vunpack.i.l.bf16 %v20560_v18  ;;  %v17892_v30 = vunpack.i.h.bf16 %v20562_v31  ;;  %v23580_v39 = vunpack.i.l.bf16 %v20562_v31 }
 0x29c   :  { %15435 = vmatmul.mubr.msk.f32.vlgmr.msra.gmra.mrb[4].mxu1 %vm165_vm0, %v20534_v55  ;;  %16225 = vmatprep.subr.bf16.mxu1 %v16224_v11 }
 0x29d   :  { %18179 = vrot.lane.b32.xlu0 %v20538_v32, %s19543_s1  ;;  %18184 = vrot.lane.b32.xlu1 %v20540_v4, %s19543_s1  ;;  %v2807_v5 = vsel %vm2795_vm15, %v23572_v60, %v17897_v15  ;;  %v20604_v15 = vld [vmem:[#allocation4 + $0xe0] sm:$0xff] }
 0x29e   :  { %16227 = vmatpush3.bf16.msra.mxu1 %v16224_v11  ;;  %v20592_v17 = vpop.permute.xlu0 %17899  ;;  %v20594_v6 = vpop.permute.xlu1 %17904  ;;  %15437 = vmatprep.mubr.msk.f32.mxu1 %vm165_vm0, %v20566_v36  ;;  %v16228_v29 = vpack.c.bf16 %v2807_v5, %v2804_v8  ;;  %v20608_v11 = vpack.i.bf16 %v7282_v37, %v7277_v7  ;;  %v3046_v5 = vsel %vm3043_vm9, %v23580_v39, %v17892_v30  ;;  %v20622_v7 = vld [vmem:[#allocation4 + $0x108] sm:$0xff]  ;;  %v20624_v37 = vld [vmem:[#allocation4 + $0x130] sm:$0xff] }
 0x29f   :  { %23621 = vst [vmem:[#allocation18_spill] sm:$0xff] %v20592_v17  ;;  %23622 = vst [vmem:[#allocation19_spill] sm:$0xff] %v20594_v6  ;;  %v17902_v41 = vunpack.i.h.bf16 %v20592_v17  ;;  %v23579_v23 = vunpack.i.l.bf16 %v20592_v17  ;;  %v17907_v60 = vunpack.i.h.bf16 %v20594_v6  ;;  %v23586_v8 = vunpack.i.l.bf16 %v20594_v6 }
 0x2a0   :  { %15438 = vmatmul.mubr.msk.f32.gmra.mrb[6].mxu1 %vm165_vm0, %v20584_v0  ;;  %16229 = vmatprep.subr.bf16.mxu1 %v16228_v29  ;;  %v20636_v30 = vpack.i.bf16 %v20604_v15, %v20602_v42  ;;  %v20644_v39 = vpack.i.bf16 %v20624_v37, %v20622_v7 }
 0x2a1   :  { %18189 = vrot.lane.b32.xlu0 %v20572_v35, %s19543_s1  ;;  %18194 = vrot.lane.b32.xlu1 %v20576_v14, %s19543_s1  ;;  %v3049_v9 = vsel %vm3043_vm9, %v23579_v23, %v17902_v41 }
 0x2a2   :  { %16231 = vmatpush3.bf16.msra.mxu1 %v16228_v29  ;;  %v20626_v62 = vpop.permute.xlu0 %17914  ;;  %v20628_v26 = vpop.permute.xlu1 %17909  ;;  %15448 = vmatprep.mubr.msk.f32.mxu1 %vm165_vm0, %v20600_v49  ;;  %v16240_v25 = vpack.c.bf16 %v3049_v9, %v3046_v5  ;;  %v20640_v29 = vld [vmem:[#allocation7 + $0x130] sm:$0xff]  ;;  %v3052_v9 = vsel %vm3043_vm9, %v23586_v8, %v17907_v60  ;;  %v23652_v49 = vunpack.i.l.bf16 %v20500_v63 }
 0x2a3   :  { %23624 = vst [vmem:[#allocation21_spill] sm:$0xff] %v20626_v62  ;;  %23625 = vst [vmem:[#allocation22_spill] sm:$0xff] %v20628_v26  ;;  %v17917_v41 = vunpack.i.h.bf16 %v20626_v62  ;;  %v23585_v23 = vunpack.i.l.bf16 %v20626_v62  ;;  %v17912_v1 = vunpack.i.h.bf16 %v20628_v26 }
 0x2a4   :  { %16241 = vmatprep.subr.bf16.mxu1 %v16240_v25  ;;  %23627 = vst [vmem:[#allocation24_spill] sm:$0xff] %v20640_v29 }
 0x2a5   :  { %15449 = vmatmul.mubr.msk.f32.vlgmr.msra.gmra.mrb[4].mxu1 %vm165_vm0, %v20632_v34  ;;  %18199 = vrot.lane.b32.xlu0 %v20608_v11, %s19543_s1  ;;  %v3055_v5 = vsel %vm3043_vm9, %v23585_v23, %v17917_v41  ;;  %v20670_v41 = vld [vmem:[#allocation7 + $0x160] sm:$0xff] }
 0x2a6   :  { %18204 = vrot.lane.b32.xlu1 %v20636_v30, %s19543_s1  ;;  %16243 = vmatpush3.bf16.msra.mxu1 %v16240_v25  ;;  %v20660_v51 = vpop.permute.xlu0 %17919  ;;  %v20662_v16 = vpop.permute.xlu1 %17924  ;;  %v16244_v52 = vpack.c.bf16 %v3055_v5, %v3052_v9  ;;  %23631 = vst [vmem:[#allocation28_spill] sm:$0xff] %v20670_v41  ;;  %v23632_v9 = vunpack.i.l.bf16 %v20628_v26 }
 0x2a7   :  { %23628 = vst [vmem:[#allocation25_spill] sm:$0xff] %v20660_v51  ;;  %23629 = vst [vmem:[#allocation26_spill] sm:$0xff] %v20662_v16  ;;  %v17922_v38 = vunpack.i.h.bf16 %v20660_v51  ;;  %v23593_v60 = vunpack.i.l.bf16 %v20660_v51  ;;  %15451 = vmatprep.mubr.msk.f32.mxu1 %vm165_vm0, %v20640_v29  ;;  %v17927_v25 = vunpack.i.h.bf16 %v20662_v16 }
 0x2a8   :  { %16245 = vmatprep.subr.bf16.mxu1 %v16244_v52  ;;  %v3306_v5 = vsel %vm3303_vm10, %v23632_v9, %v17912_v1 }
 0x2a9   :  { %15452 = vmatmul.mubr.msk.f32.gmra.mrb[6].mxu1 %vm165_vm0, %v20664_v56  ;;  %18209 = vrot.lane.b32.xlu0 %v20644_v39, %s19543_s1  ;;  %v3309_v8 = vsel %vm3303_vm10, %v23593_v60, %v17922_v38  ;;  %v20690_v56 = vld [vmem:[#allocation7 + $0x168] sm:$0xff]  ;;  %v20696_v38 = vld [vmem:[#allocation7 + $0x170] sm:$0xff]  ;;  %v20714_v60 = vld [vmem:[#allocation7 + $0x178] sm:$0xff] }
 0x2aa   :  { %18214 = vrot.lane.b32.xlu1 %v20510_v13, %s19545_s16  ;;  %16247 = vmatpush3.bf16.msra.mxu1 %v16244_v52  ;;  %v20686_v53 = vpop.permute.xlu0 %17929  ;;  %v20688_v23 = vpop.permute.xlu1 %17934  ;;  %23634 = vst [vmem:[#allocation30_spill] sm:$0xff] %v20690_v56  ;;  %v16256_v29 = vpack.c.bf16 %v3309_v8, %v3306_v5  ;;  %23635 = vst [vmem:[#allocation31_spill] sm:$0xff] %v20696_v38  ;;  %v23636_v52 = vunpack.i.l.bf16 %v20662_v16 }
 0x2ab   :  { %23633 = vst [vmem:[#allocation29_spill] sm:$0xff] %v20686_v53  ;;  %v17932_v34 = vunpack.i.h.bf16 %v20686_v53  ;;  %v23595_v26 = vunpack.i.l.bf16 %v20686_v53  ;;  %15462 = vmatprep.mubr.msk.f32.mxu1 %vm165_vm0, %v20670_v41  ;;  %23637 = vst [vmem:[#allocation32_spill] sm:$0xff] %v20714_v60  ;;  %v20795_v53 = vld [vmem:[#allocation7 + $0x1a8] sm:$0xff] }
 0x2ac   :  { %16257 = vmatprep.subr.bf16.mxu1 %v16256_v29  ;;  %v3312_v1 = vsel %vm3303_vm10, %v23636_v52, %v17927_v25  ;;  %v20718_v25 = vld [vmem:[#allocation7 + $0x180] sm:$0xff]  ;;  %v20730_v52 = vld [vmem:[#allocation7 + $0x188] sm:$0xff] }
 0x2ad   :  { %15463 = vmatmul.mubr.msk.f32.vlgmr.msra.gmra.mrb[4].mxu1 %vm165_vm0, %v20690_v56  ;;  %18219 = vrot.lane.b32.xlu0 %v20538_v32, %s19545_s16  ;;  %v3315_v8 = vsel %vm3303_vm10, %v23595_v26, %v17932_v34  ;;  %23638 = vst [vmem:[#allocation33_spill] sm:$0xff] %v20718_v25  ;;  %23639 = vst [vmem:[#allocation34_spill] sm:$0xff] %v20730_v52  ;;  %v23644_v26 = vpack.c.bf16 %v20340_v48, %v20327_v57 }
 0x2ae   :  { %18224 = vrot.lane.b32.xlu1 %v20540_v4, %s19545_s16  ;;  %16259 = vmatpush3.bf16.msra.mxu1 %v16256_v29  ;;  %v20710_v9 = vpop.permute.xlu0 %17939  ;;  %v20712_v5 = vpop.permute.xlu1 %17944  ;;  %v16260_v56 = vpack.c.bf16 %v3315_v8, %v3312_v1  ;;  %v23640_v1 = vpack.c.bf16 %v20310_v10, %v20298_v19  ;;  %v20737_v8 = vld [vmem:[#allocation7 + $0x190] sm:$0xff]  ;;  %v23645_v57 = vpack.c.bf16 %v20335_v43, %v20323_v44  ;;  %v23647_v44 = vunpack.i.l.bf16 %v20466_v3 }
 0x2af   :  { %15465 = vmatprep.mubr.msk.f32.mxu1 %vm165_vm0, %v20696_v38  ;;  %23641 = vst [vmem:[#allocation35_spill] sm:$0xff] %v20737_v8  ;;  %v23649_v3 = vunpack.i.h.bf16 %v20710_v9  ;;  %v17946_v41 = vunpack.i.l.bf16 %v20712_v5  ;;  %v23655_v0 = vunpack.i.h.bf16 %v20710_v9 }
 0x2b0   :  { %16261 = vmatprep.subr.bf16.mxu1 %v16260_v56 }
 0x2b1   :  { %15466 = vmatmul.mubr.msk.f32.gmra.mrb[6].mxu1 %vm165_vm0, %v20714_v60  ;;  %18229 = vrot.lane.b32.xlu0 %v20572_v35, %s19545_s16 }
 0x2b2   :  { %18234 = vrot.lane.b32.xlu1 %v20576_v14, %s19545_s16  ;;  %16263 = vmatpush3.bf16.msra.mxu1 %v16260_v56  ;;  %v20726_v34 = vpop.permute.xlu0 %17949  ;;  %v20728_v29 = vpop.permute.xlu1 %17959  ;;  %v23642_v56 = vpack.c.bf16 %v20307_v58, %v20301_v24  ;;  %v17941_v58 = vunpack.i.l.bf16 %v20710_v9 }
 0x2b3   :  { %16265 = vmatprep.subr.bf16.mxu1 %v23640_v1  ;;  %15476 = vmatprep.mubr.msk.f32.mxu1 %vm165_vm0, %v20718_v25  ;;  %v20752_v1 = vld [vmem:[#allocation7 + $0x198] sm:$0xff]  ;;  %v17936_v25 = vunpack.i.l.bf16 %v20688_v23  ;;  %v17962_v62 = vunpack.i.h.bf16 %v20728_v29  ;;  %v17961_v6 = vunpack.i.l.bf16 %v20728_v29 }
 0x2b4   :  { %23643 = vst [vmem:[#allocation36_spill] sm:$0xff] %v20752_v1 }
 0x2b5   :  { %15477 = vmatmul.mubr.msk.f32.vlgmr.msra.gmra.mrb[4].mxu1 %vm165_vm0, %v20730_v52  ;;  %18239 = vrot.lane.b32.xlu0 %v20608_v11, %s19545_s16  ;;  %v23646_v52 = vmov 0.0  }
 0x2b6   :  { %18244 = vrot.lane.b32.xlu1 %v20636_v30, %s19545_s16  ;;  %16267 = vmatpush1.bf16.msra.mxu1 %v23642_v56  ;;  %v20748_v19 = vpop.permute.xlu0 %17954  ;;  %v20750_v10 = vpop.permute.xlu1 %17969  ;;  %v20772_v56 = vld [vmem:[#allocation7 + $0x1a0] sm:$0xff] }
 0x2b7   :  { %16269 = vmatprep.subr.bf16.mxu1 %v23644_v26  ;;  %15479 = vmatprep.mubr.msk.f32.mxu1 %vm165_vm0, %v20737_v8  ;;  %v17957_v17 = vunpack.i.h.bf16 %v20748_v19 }
 0x2b9   :  { %15480 = vmatmul.mubr.msk.f32.gmra.mrb[6].mxu1 %vm165_vm0, %v20752_v1  ;;  %18249 = vrot.lane.b32.xlu0 %v20644_v39, %s19545_s16 }
 0x2ba   :  { %18254 = vrot.lane.b32.xlu1 %v20510_v13, %s19546_s17  ;;  %16271 = vmatpush1.bf16.msra.mxu1 %v23645_v57  ;;  %v20770_v48 = vpop.permute.xlu0 %17964  ;;  %v17975_v26 = vpop.permute.xlu1 %17974  ;;  %v23648_v57 = vunpack.i.l.bf16 %v20474_v45  ;;  %v23650_v45 = vunpack.i.h.bf16 %v20688_v23 }
 0x2bb   :  { %v17977_v1 = vunpack.i.h.bf16 %v17975_v26  ;;  %v17976_v8 = vunpack.i.l.bf16 %v17975_v26  ;;  %16273 = vmatprep.subr.bf16.mxu1 %v20284_v27  ;;  %3607 = vmatprep.mubr.f32.mxu1 %v23646_v52 }
 0x2bd   :  { %18259 = vrot.lane.b32.xlu0 %v20538_v32, %s19546_s17  ;;  %14524 = vmatmul.mubr.msk.f32.vlgmr.msra.gmra.mrb[8].mxu1 %vm165_vm0, %v20772_v56  ;;  %v2554_v43 = vsel %vm2552_vm14, %v17976_v8, %v23647_v44  ;;  %v2557_v26 = vsel %vm2552_vm14, %v17977_v1, %v23648_v57  ;;  %v3775_v44 = vsel %vm3770_vm11, %v17941_v58, %v23649_v3  ;;  %v17947_v57 = vunpack.i.h.bf16 %v20712_v5 }
 0x2be   :  { %18264 = vrot.lane.b32.xlu1 %v20540_v4, %s19546_s17  ;;  %16275 = vmatpush3.bf16.msra.mxu1 %v20284_v27  ;;  %v20791_v24 = vpop.permute.xlu0 %17979  ;;  %v20793_v60 = vpop.permute.xlu1 %17984  ;;  %v16200_v38 = vpack.c.bf16 %v2557_v26, %v2554_v43  ;;  %v3772_v27 = vsel %vm3770_vm11, %v17936_v25, %v23650_v45  ;;  %v3529_v45 = vld [vmem:[#allocation7 + $0x1b0] sm:$0xff] }
 0x2bf   :  { %16277 = vmatprep.subr.bf16.mxu1 %v20291_v59  ;;  %3613 = vmatprep.mubr.f32.mxu1 %v23646_v52  ;;  %v16280_v43 = vpack.c.bf16 %v3775_v44, %v3772_v27 }
 0x2c0   :  { %16201 = vmatprep.subr.bf16.mxu0 %v16200_v38 }
 0x2c1   :  { %18269 = vrot.lane.b32.xlu0 %v20572_v35, %s19546_s17  ;;  %14525 = vmatmul.mubr.msk.f32.gmra.mrb[10].mxu1 %vm165_vm0, %v20795_v53 }
 0x2c2   :  { %18274 = vrot.lane.b32.xlu1 %v20576_v14, %s19546_s17  ;;  %16279 = vmatpush3.bf16.msra.mxu1 %v20291_v59  ;;  %v17990_v26 = vpop.permute.xlu0 %17989  ;;  %v20813_v38 = vpop.permute.xlu1 %17994  ;;  %v3774_v59 = vsel %vm3770_vm11, %v17947_v57, %v17941_v58  ;;  %v17952_v58 = vunpack.i.h.bf16 %v20726_v34  ;;  %v17951_v57 = vunpack.i.l.bf16 %v20726_v34 }
 0x2c3   :  { %v17992_v3 = vunpack.i.h.bf16 %v17990_v26  ;;  %v17991_v16 = vunpack.i.l.bf16 %v17990_v26  ;;  %16281 = vmatprep.subr.bf16.mxu1 %v16280_v43  ;;  %3619 = vmatprep.mubr.f32.mxu1 %v23646_v52 }
 0x2c5   :  { %v2553_v44 = vsel %vm2552_vm14, %v17991_v16, %v17976_v8  ;;  %v2556_v27 = vsel %vm2552_vm14, %v17992_v3, %v17977_v1  ;;  %18279 = vrot.lane.b32.xlu0 %v20608_v11, %s19546_s17  ;;  %14526 = vmatmul.mubr.msk.f32.gmra.mrb[12].mxu1 %vm165_vm0, %v3529_v45  ;;  %v17971_v16 = vunpack.i.l.bf16 %v20750_v10  ;;  %v3530_v3 = vld [vmem:[#allocation7 + $0x1b8] sm:$0xff] }
 0x2c6   :  { %18284 = vrot.lane.b32.xlu1 %v20636_v30, %s19546_s17  ;;  %v18000_v43 = vpop.permute.xlu0 %17999  ;;  %v20825_v26 = vpop.permute.xlu1 %18004  ;;  %v16202_v51 = vpack.c.bf16 %v2556_v27, %v2553_v44  ;;  %3625 = vmatprep.mubr.f32.mxu1 %v23646_v52  ;;  %v3771_v44 = vsel %vm3770_vm11, %v17946_v41, %v17936_v25  ;;  %v17956_v27 = vunpack.i.l.bf16 %v20748_v19  ;;  %v3778_v19 = vsel %vm3770_vm11, %v17951_v57, %v17952_v58 }
 0x2c7   :  { %v18002_v8 = vunpack.i.h.bf16 %v18000_v43  ;;  %v18001_v1 = vunpack.i.l.bf16 %v18000_v43  ;;  %v23651_v43 = vunpack.i.l.bf16 %v20488_v21  ;;  %v23653_v21 = vunpack.i.h.bf16 %v20750_v10 }
 0x2c8   :  { %16203 = vmatpush1.bf16.msra.mxu0 %v16202_v51 }
 0x2c9   :  { %18289 = vrot.lane.b32.xlu0 %v20644_v39, %s19546_s17  ;;  %v2560_v5 = vsel %vm2552_vm14, %v18001_v1, %v23651_v43  ;;  %v2563_v34 = vsel %vm2552_vm14, %v18002_v8, %v23652_v49  ;;  %14527 = vmatmul.mubr.msk.f32.gmra.mrb[14].mxu1 %vm165_vm0, %v3530_v3  ;;  %v3781_v63 = vsel %vm3770_vm11, %v17971_v16, %v23653_v21 }
 0x2ca   :  { %18294 = vrot.lane.b32.xlu1 %v20510_v13, %s19547_s18  ;;  %v20848_v51 = vpop.permute.xlu0 %18014  ;;  %v18010_v41 = vpop.permute.xlu1 %18009  ;;  %v16204_v25 = vpack.c.bf16 %v2563_v34, %v2560_v5  ;;  %15490 = vmatprep.mubr.msk.f32.mxu1 %vm165_vm0, %v20772_v56  ;;  %v16282_v49 = vpack.c.bf16 %v3774_v59, %v3771_v44  ;;  %v23654_v13 = vunpack.i.h.bf16 %v20688_v23  ;;  %v3776_v5 = vsel %vm3770_vm11, %v23655_v0, %v17962_v62 }
 0x2cb   :  { %v18012_v29 = vunpack.i.h.bf16 %v18010_v41  ;;  %v18011_v31 = vunpack.i.l.bf16 %v18010_v41  ;;  %v3777_v34 = vsel %vm3770_vm11, %v17956_v27, %v17951_v57  ;;  %v17966_v56 = vunpack.i.l.bf16 %v20770_v48 }
 0x2cc   :  { %16205 = vmatprep.subr.bf16.mxu0 %v16204_v25  ;;  %v3773_v43 = vsel %vm3770_vm11, %v23654_v13, %v17961_v6  ;;  %v3780_v59 = vsel %vm3770_vm11, %v17957_v17, %v17971_v16  ;;  %v17967_v23 = vunpack.i.h.bf16 %v20770_v48  ;;  %v16284_v62 = vpack.c.bf16 %v3781_v63, %v3778_v19 }
 0x2cd   :  { %v2562_v41 = vsel %vm2552_vm14, %v18012_v29, %v18002_v8  ;;  %v2559_v21 = vsel %vm2552_vm14, %v18011_v31, %v18001_v1  ;;  %18299 = vrot.lane.b32.xlu0 %v20538_v32, %s19547_s18  ;;  %15491 = vmatmul.mubr.msk.f32.vlgmr.msra.gmra.mrb[4].mxu1 %vm165_vm0, %v20795_v53  ;;  %v16288_v32 = vpack.c.bf16 %v3776_v5, %v3773_v43  ;;  %v23656_v17 = vunpack.i.l.bf16 %v20502_v50 }
 0x2ce   :  { %18304 = vrot.lane.b32.xlu1 %v20540_v4, %s19547_s18  ;;  %v20874_v0 = vpop.permute.xlu0 %18024  ;;  %v18020_v6 = vpop.permute.xlu1 %18019  ;;  %v16206_v9 = vpack.c.bf16 %v2562_v41, %v2559_v21  ;;  %16283 = vmatpush1.bf16.msra.mxu1 %v16282_v49  ;;  %v16286_v4 = vpack.c.bf16 %v3780_v59, %v3777_v34  ;;  %v23657_v48 = vunpack.i.l.bf16 %v20526_v2  ;;  %v3779_v1 = vsel %vm3770_vm11, %v17952_v58, %v17966_v56 }
 0x2cf   :  { %v18022_v31 = vunpack.i.h.bf16 %v18020_v6  ;;  %v18021_v8 = vunpack.i.l.bf16 %v18020_v6  ;;  %15493 = vmatprep.mubr.msk.f32.mxu1 %vm165_vm0, %v3529_v45  ;;  %16285 = vmatprep.subr.bf16.mxu1 %v16284_v62  ;;  %v17982_v57 = vunpack.i.h.bf16 %v20791_v24  ;;  %v17981_v45 = vunpack.i.l.bf16 %v20791_v24 }
 0x2d0   :  { %16207 = vmatpush1.bf16.msra.mxu0 %v16206_v9  ;;  %v23658_v27 = vunpack.i.h.bf16 %v20750_v10  ;;  %v17987_v25 = vunpack.i.h.bf16 %v20793_v60  ;;  %v17986_v58 = vunpack.i.l.bf16 %v20793_v60  ;;  %v20915_v43 = vpack.i.bf16 %v20602_v42, %v20498_v22 }
 0x2d1   :  { %18309 = vrot.lane.b32.xlu0 %v20572_v35, %s19547_s18  ;;  %v2797_v53 = vsel %vm2795_vm15, %v18021_v8, %v23656_v17  ;;  %v2800_v16 = vsel %vm2795_vm15, %v18022_v31, %v23657_v48  ;;  %15494 = vmatmul.mubr.msk.f32.gmra.mrb[6].mxu1 %vm165_vm0, %v3530_v3  ;;  %v20934_v42 = vpack.i.bf16 %v20604_v15, %v20524_v12  ;;  %v23659_v56 = vunpack.i.l.bf16 %v20528_v47  ;;  %v7276_v48 = vld [vmem:[#allocation4 + $0xe8] sm:$0xff] }
 0x2d2   :  { %18314 = vrot.lane.b32.xlu1 %v20576_v14, %s19547_s18  ;;  %v20891_v35 = vpop.permute.xlu0 %18034  ;;  %v18030_v50 = vpop.permute.xlu1 %18029  ;;  %v16216_v44 = vpack.c.bf16 %v2800_v16, %v2797_v53  ;;  %v3782_v2 = vsel %vm3770_vm11, %v23658_v27, %v17967_v23  ;;  %16287 = vmatpush1.bf16.msra.mxu1 %v16286_v4  ;;  %v20899_v14 = vld [vmem:[#allocation7 + $0x1c0] sm:$0xff]  ;;  %v4035_v22 = vsel %vm23612_vm12, %v17986_v58, %v17987_v25  ;;  %v23660_v21 = vunpack.i.l.bf16 %v20560_v18 }
 0x2d3   :  { %v18032_v29 = vunpack.i.h.bf16 %v18030_v50  ;;  %v18031_v63 = vunpack.i.l.bf16 %v18030_v50  ;;  %3871 = vmatprep.mubr.f32.mxu1 %v23646_v52  ;;  %16289 = vmatprep.subr.bf16.mxu1 %v16288_v32  ;;  %v16292_v49 = vpack.c.bf16 %v3782_v2, %v3779_v1  ;;  %v20951_v47 = vpack.i.bf16 %v20512_v61, %v20496_v33  ;;  %v3733_v50 = vld [vmem:[#allocation7 + $0x1d8] sm:$0xff] }
 0x2d4   :  { %16217 = vmatprep.subr.bf16.mxu0 %v16216_v44  ;;  %14492 = vmatmul.mubr.msk.f32.vlgmr.msra.gmra.mrb[12].mxu0 %vm165_vm0, %v20337_v54  ;;  %v20918_v54 = vld [vmem:[#allocation7 + $0x1c8] sm:$0xff]  ;;  %v17997_v18 = vunpack.i.h.bf16 %v20813_v38  ;;  %v17996_v62 = vunpack.i.l.bf16 %v20813_v38  ;;  %v20966_v33 = vpack.i.bf16 %v20622_v7, %v20554_v28  ;;  %v20978_v17 = vpack.i.bf16 %v20624_v37, %v20558_v46  ;;  %v7281_v46 = vld [vmem:[#allocation4 + $0x110] sm:$0xff]  ;;  %v7286_v37 = vld [vmem:[#allocation4 + $0x138] sm:$0xff] }
 0x2d5   :  { %v2796_v3 = vsel %vm2795_vm15, %v18031_v63, %v18021_v8  ;;  %v2799_v10 = vsel %vm2795_vm15, %v18032_v29, %v18022_v31  ;;  %18319 = vrot.lane.b32.xlu0 %v20608_v11, %s19547_s18  ;;  %14532 = vmatmul.mubr.msk.f32.vlgmr.msra.gmra.mrb[8].mxu1 %vm165_vm0, %v20899_v14  ;;  %v20956_v31 = vld [vmem:[#allocation7 + $0x1d0] sm:$0xff]  ;;  %v18037_v16 = vunpack.i.h.bf16 %v20891_v35  ;;  %v18036_v1 = vunpack.i.l.bf16 %v20891_v35 }
 0x2d6   :  { %18324 = vrot.lane.b32.xlu1 %v20636_v30, %s19547_s18  ;;  %v18040_v19 = vpop.permute.xlu0 %18039  ;;  %v20911_v13 = vpop.permute.xlu1 %18044  ;;  %v16218_v5 = vpack.c.bf16 %v2799_v10, %v2796_v3  ;;  %16291 = vmatpush3.bf16.msra.mxu1 %v16288_v32  ;;  %v4032_v30 = vsel %vm23612_vm12, %v17981_v45, %v17982_v57  ;;  %v4031_v28 = vsel %vm23612_vm12, %v17996_v62, %v17981_v45  ;;  %v18007_v44 = vunpack.i.h.bf16 %v20825_v26 }
 0x2d7   :  { %v18042_v11 = vunpack.i.h.bf16 %v18040_v19  ;;  %v18041_v34 = vunpack.i.l.bf16 %v18040_v19  ;;  %3877 = vmatprep.mubr.f32.mxu1 %v23646_v52  ;;  %16293 = vmatprep.subr.bf16.mxu1 %v16292_v49  ;;  %v4034_v7 = vsel %vm23612_vm12, %v17997_v18, %v17986_v58  ;;  %v18006_v27 = vunpack.i.l.bf16 %v20825_v26 }
 0x2d8   :  { %16219 = vmatpush1.bf16.msra.mxu0 %v16218_v5  ;;  %2659 = vmatprep.mubr.f32.mxu0 %v23646_v52  ;;  %v18027_v45 = vunpack.i.h.bf16 %v20874_v0  ;;  %v18026_v2 = vunpack.i.l.bf16 %v20874_v0  ;;  %v21000_v35 = vpack.i.bf16 %v20556_v40, %v20542_v20  ;;  %v16298_v29 = vpack.c.bf16 %v4034_v7, %v4031_v28 }
 0x2d9   :  { %18329 = vrot.lane.b32.xlu0 %v20644_v39, %s19547_s18  ;;  %v2803_v41 = vsel %vm2795_vm15, %v18041_v34, %v23659_v56  ;;  %v2806_v59 = vsel %vm2795_vm15, %v18042_v11, %v23660_v21  ;;  %14533 = vmatmul.mubr.msk.f32.gmra.mrb[10].mxu1 %vm165_vm0, %v20918_v54  ;;  %v16296_v39 = vpack.c.bf16 %v4035_v22, %v4032_v30  ;;  %v18017_v3 = vunpack.i.h.bf16 %v20848_v51  ;;  %v23664_v22 = vld [vmem:[#allocation18_spill] sm:$0xff] }
 0x2da   :  { %18334 = vrot.lane.b32.xlu1 %v20915_v43, %s19548_s19  ;;  %v18050_v23 = vpop.permute.xlu0 %18049  ;;  %v20947_v12 = vpop.permute.xlu1 %18054  ;;  %v16220_v15 = vpack.c.bf16 %v2806_v59, %v2803_v41  ;;  %16295 = vmatpush3.bf16.msra.mxu1 %v16292_v49  ;;  %v21009_v63 = vpack.i.bf16 %v7286_v37, %v7281_v46  ;;  %v4041_v20 = vsel %vm23612_vm12, %v18036_v1, %v18037_v16  ;;  %v18016_v40 = vunpack.i.l.bf16 %v20848_v51 }
 0x2db   :  { %v18052_v6 = vunpack.i.h.bf16 %v18050_v23  ;;  %v18051_v9 = vunpack.i.l.bf16 %v18050_v23  ;;  %3883 = vmatprep.mubr.f32.mxu1 %v23646_v52  ;;  %16297 = vmatprep.subr.bf16.mxu1 %v16296_v39  ;;  %v4038_v49 = vsel %vm23612_vm12, %v18006_v27, %v18007_v44  ;;  %v4033_v19 = vsel %vm23612_vm12, %v17982_v57, %v18026_v2 }
 0x2dc   :  { %16221 = vmatprep.subr.bf16.mxu0 %v16220_v15  ;;  %14493 = vmatmul.mubr.msk.f32.gmra.mrb[14].mxu0 %vm165_vm0, %v20534_v55  ;;  %v7271_v55 = vld [vmem:[#allocation4 + $0xc0] sm:$0xff]  ;;  %v4036_v5 = vsel %vm23612_vm12, %v17987_v25, %v18027_v45  ;;  %v23665_v24 = vunpack.i.l.bf16 %v23664_v22  ;;  %v18047_v60 = vunpack.i.h.bf16 %v20911_v13  ;;  %v18046_v25 = vunpack.i.l.bf16 %v20911_v13 }
 0x2dd   :  { %v2802_v8 = vsel %vm2795_vm15, %v18051_v9, %v18041_v34  ;;  %v2805_v32 = vsel %vm2795_vm15, %v18052_v6, %v18042_v11  ;;  %18339 = vrot.lane.b32.xlu0 %v20934_v42, %s19548_s19  ;;  %14534 = vmatmul.mubr.msk.f32.gmra.mrb[12].mxu1 %vm165_vm0, %v20956_v31  ;;  %v21002_v58 = vpack.i.bf16 %v7276_v48, %v7271_v55  ;;  %v23662_v34 = vld [vmem:[#allocation16_spill] sm:$0xff]  ;;  %v21060_v48 = vld [vmem:[#allocation7 + $0x1e0] sm:$0xff]  ;;  %v18057_v28 = vunpack.i.h.bf16 %v20947_v12 }
 0x2de   :  { %18344 = vrot.lane.b32.xlu1 %v20951_v47, %s19548_s19  ;;  %v20972_v38 = vpop.permute.xlu0 %18059  ;;  %v20974_v4 = vpop.permute.xlu1 %18064  ;;  %v16222_v53 = vpack.c.bf16 %v2805_v32, %v2802_v8  ;;  %3889 = vmatprep.mubr.f32.mxu1 %v23646_v52  ;;  %v4040_v11 = vsel %vm23612_vm12, %v18017_v3, %v18036_v1  ;;  %v23663_v51 = vunpack.i.l.bf16 %v23662_v34  ;;  %v16300_v56 = vpack.c.bf16 %v4041_v20, %v4038_v49  ;;  %v23666_v55 = vld [vmem:[#allocation20_spill] sm:$0xff]  ;;  %v23671_v20 = vld [vmem:[#allocation23_spill] sm:$0xff] }
 0x2df   :  { %2665 = vmatprep.mubr.f32.mxu0 %v23646_v52  ;;  %v4037_v39 = vsel %vm23612_vm12, %v18016_v40, %v18006_v27  ;;  %v16304_v23 = vpack.c.bf16 %v4036_v5, %v4033_v19  ;;  %v18061_v15 = vunpack.i.l.bf16 %v20972_v38  ;;  %v4039_v6 = vsel %vm23612_vm12, %v18007_v44, %v18046_v25  ;;  %v21084_v40 = vld [vmem:[#allocation7 + $0x1e8] sm:$0xff] }
 0x2e0   :  { %16223 = vmatpush1.bf16.msra.mxu0 %v16222_v53  ;;  %v16302_v13 = vpack.c.bf16 %v4040_v11, %v4037_v39  ;;  %v4042_v9 = vsel %vm23612_vm12, %v18037_v16, %v18047_v60  ;;  %v18056_v7 = vunpack.i.l.bf16 %v20947_v12  ;;  %v18067_v60 = vunpack.i.h.bf16 %v20974_v4 }
 0x2e1   :  { %18349 = vrot.lane.b32.xlu0 %v20966_v33, %s19548_s19  ;;  %14494 = vmatmul.mubr.msk.f32.gmra.mrb[16].mxu0 %vm165_vm0, %v20566_v36  ;;  %v16308_v44 = vpack.c.bf16 %v4042_v9, %v4039_v6  ;;  %v18066_v25 = vunpack.i.l.bf16 %v20974_v4  ;;  %vm4550_vm12 = vcmask 670720  }
 0x2e2   :  { %18354 = vrot.lane.b32.xlu1 %v20978_v17, %s19548_s19  ;;  %14535 = vmatmul.mubr.msk.f32.gmra.mrb[14].mxu1 %vm165_vm0, %v3733_v50  ;;  %v21007_v26 = vpop.permute.xlu0 %18069  ;;  %v18080_v0 = vpop.permute.xlu1 %18079  ;;  %v4292_v11 = vsel %vm4290_vm13, %v18056_v7, %v18057_v28 }
 0x2e3   :  { %v18082_v36 = vunpack.i.h.bf16 %v18080_v0  ;;  %v18081_v10 = vunpack.i.l.bf16 %v18080_v0  ;;  %15504 = vmatprep.mubr.msk.f32.mxu1 %vm165_vm0, %v20899_v14  ;;  %2671 = vmatprep.mubr.f32.mxu0 %v23646_v52  ;;  %v23661_v14 = vld [vmem:[#allocation17_spill] sm:$0xff] }
 0x2e4   :  { %v23669_v0 = vld [vmem:[#allocation21_spill] sm:$0xff] }
 0x2e5   :  { %18359 = vrot.lane.b32.xlu0 %v21000_v35, %s19548_s19  ;;  %14495 = vmatmul.mubr.msk.f32.gmra.mrb[18].mxu0 %vm165_vm0, %v23661_v14  ;;  %v3045_v30 = vsel %vm3043_vm9, %v18081_v10, %v23663_v51  ;;  %v3048_v57 = vsel %vm3043_vm9, %v18082_v36, %v23665_v24 }
 0x2e6   :  { %18364 = vrot.lane.b32.xlu1 %v21002_v58, %s19548_s19  ;;  %15505 = vmatmul.mubr.msk.f32.vlgmr.msra.gmra.mrb[4].mxu1 %vm165_vm0, %v20918_v54  ;;  %v21041_v41 = vpop.permute.xlu0 %18074  ;;  %v21043_v21 = vpop.permute.xlu1 %18089  ;;  %v16232_v59 = vpack.c.bf16 %v3048_v57, %v3045_v30  ;;  %v18062_v54 = vunpack.i.h.bf16 %v20972_v38  ;;  %v3996_v57 = vld [vmem:[#allocation7 + $0x1f0] sm:$0xff]  ;;  %v21195_v38 = vld [vmem:[#allocation4 + $0xf8] sm:$0xff] }
 0x2e7   :  { %16299 = vmatpush1.bf16.msra.mxu1 %v16298_v29  ;;  %15507 = vmatprep.mubr.msk.f32.mxu1 %vm165_vm0, %v20956_v31  ;;  %v23670_v29 = vunpack.i.l.bf16 %v23669_v0 }
 0x2e8   :  { %16301 = vmatprep.subr.bf16.mxu1 %v16300_v56  ;;  %16233 = vmatprep.subr.bf16.mxu0 %v16232_v59  ;;  %v23672_v56 = vld [vmem:[#allocation24_spill] sm:$0xff]  ;;  %v23673_v59 = vld [vmem:[#allocation22_spill] sm:$0xff] }
 0x2e9   :  { %18369 = vrot.lane.b32.xlu0 %v21009_v63, %s19548_s19  ;;  %2896 = vmatprep.mubr.f32.mxu0 %v23646_v52  ;;  %v23674_v39 = vunpack.i.l.bf16 %v23673_v59 }
 0x2ea   :  { %18374 = vrot.lane.b32.xlu1 %v20915_v43, %s19549_s20  ;;  %15508 = vmatmul.mubr.msk.f32.gmra.mrb[6].mxu1 %vm165_vm0, %v3733_v50  ;;  %v18085_v18 = vpop.permute.xlu0 %18084  ;;  %v18095_v62 = vpop.permute.xlu1 %18094  ;;  %v23667_v50 = vld [vmem:[#allocation19_spill] sm:$0xff] }
 0x2eb   :  { %16303 = vmatpush1.bf16.msra.mxu1 %v16302_v13  ;;  %v18087_v31 = vunpack.i.h.bf16 %v18085_v18  ;;  %v18086_v8 = vunpack.i.l.bf16 %v18085_v18  ;;  %v18097_v32 = vunpack.i.h.bf16 %v18095_v62  ;;  %v18096_v53 = vunpack.i.l.bf16 %v18095_v62  ;;  %14500 = vmatmul.mubr.msk.f32.vlgmr.msra.gmra.mrb[12].mxu0 %vm165_vm0, %v23666_v55  ;;  %v23677_v55 = vld [vmem:[#allocation27_spill] sm:$0xff] }
 0x2ec   :  { %16305 = vmatprep.subr.bf16.mxu1 %v16304_v23  ;;  %4131 = vmatprep.mubr.f32.mxu1 %v23646_v52  ;;  %v23668_v46 = vunpack.i.l.bf16 %v23667_v50  ;;  %v18072_v50 = vunpack.i.h.bf16 %v21007_v26 }
 0x2ed   :  { %v3044_v1 = vsel %vm3043_vm9, %v18086_v8, %v18081_v10  ;;  %v3047_v16 = vsel %vm3043_vm9, %v18087_v31, %v18082_v36  ;;  %18379 = vrot.lane.b32.xlu0 %v20934_v42, %s19549_s20  ;;  %2902 = vmatprep.mubr.f32.mxu0 %v23646_v52  ;;  %v3054_v3 = vsel %vm3043_vm9, %v18097_v32, %v23670_v29  ;;  %v18092_v31 = vunpack.i.h.bf16 %v21043_v21  ;;  %v23678_v29 = vld [vmem:[#allocation28_spill] sm:$0xff] }
 0x2ee   :  { %v3051_v37 = vsel %vm3043_vm9, %v18096_v53, %v23668_v46  ;;  %18384 = vrot.lane.b32.xlu1 %v20951_v47, %s19549_s20  ;;  %14540 = vmatmul.mubr.msk.f32.vlgmr.msra.gmra.mrb[8].mxu1 %vm165_vm0, %v21060_v48  ;;  %v18100_v27 = vpop.permute.xlu0 %18099  ;;  %v21077_v45 = vpop.permute.xlu1 %18104  ;;  %v16234_v2 = vpack.c.bf16 %v3047_v16, %v3044_v1  ;;  %v4295_v47 = vsel %vm4290_vm13, %v18061_v15, %v18062_v54  ;;  %v18091_v8 = vunpack.i.l.bf16 %v21043_v21  ;;  %v21136_v1 = vld [vmem:[#allocation4 + $0xa8] sm:$0xff] }
 0x2ef   :  { %16307 = vmatpush3.bf16.msra.mxu1 %v16304_v23  ;;  %v18102_v36 = vunpack.i.h.bf16 %v18100_v27  ;;  %v18101_v10 = vunpack.i.l.bf16 %v18100_v27  ;;  %14501 = vmatmul.mubr.msk.f32.gmra.mrb[14].mxu0 %vm165_vm0, %v23671_v20  ;;  %v16236_v49 = vpack.c.bf16 %v3054_v3, %v3051_v37  ;;  %v16312_v14 = vpack.c.bf16 %v4295_v47, %v4292_v11  ;;  %v23675_v23 = vld [vmem:[#allocation25_spill] sm:$0xff] }
 0x2f0   :  { %16309 = vmatprep.subr.bf16.mxu1 %v16308_v44  ;;  %4137 = vmatprep.mubr.f32.mxu1 %v23646_v52  ;;  %v23676_v18 = vunpack.i.l.bf16 %v23675_v23  ;;  %v18423_v16 = vpack.i.bf16 %v20512_v61, %v21136_v1  ;;  %v18071_v46 = vunpack.i.l.bf16 %v21007_v26  ;;  %v18077_v37 = vunpack.i.h.bf16 %v21041_v41 }
 0x2f1   :  { %v3050_v19 = vsel %vm3043_vm9, %v18101_v10, %v18096_v53  ;;  %v3053_v5 = vsel %vm3043_vm9, %v18102_v36, %v18097_v32  ;;  %18389 = vrot.lane.b32.xlu0 %v20966_v33, %s19549_s20  ;;  %16235 = vmatpush1.bf16.msra.mxu0 %v16234_v2  ;;  %v4294_v32 = vsel %vm4290_vm13, %v18067_v60, %v18061_v15  ;;  %v18107_v26 = vunpack.i.h.bf16 %v21077_v45 }
 0x2f2   :  { %18394 = vrot.lane.b32.xlu1 %v20978_v17, %s19549_s20  ;;  %14541 = vmatmul.mubr.msk.f32.gmra.mrb[10].mxu1 %vm165_vm0, %v21084_v40  ;;  %v21103_v34 = vpop.permute.xlu0 %18109  ;;  %v18115_v51 = vpop.permute.xlu1 %18114  ;;  %v16238_v24 = vpack.c.bf16 %v3053_v5, %v3050_v19  ;;  %v4291_v53 = vsel %vm4290_vm13, %v18066_v25, %v18056_v7  ;;  %v18106_v2 = vunpack.i.l.bf16 %v21077_v45  ;;  %v4300_v10 = vsel %vm4290_vm13, %v18077_v37, %v18091_v8  ;;  %v21235_v37 = vld [vmem:[#allocation7 + $0x208] sm:$0xff] }
 0x2f3   :  { %16311 = vmatpush3.bf16.msra.mxu1 %v16308_v44  ;;  %16237 = vmatprep.subr.bf16.mxu0 %v16236_v49  ;;  %v18117_v30 = vunpack.i.h.bf16 %v18115_v51  ;;  %v18116_v22 = vunpack.i.l.bf16 %v18115_v51  ;;  %v18076_v44 = vunpack.i.l.bf16 %v21041_v41  ;;  %v16314_v3 = vpack.c.bf16 %v4294_v32, %v4291_v53  ;;  %v23679_v51 = vld [vmem:[#allocation30_spill] sm:$0xff]  ;;  %v21226_v53 = vld [vmem:[#allocation4 + $0xb8] sm:$0xff] }
 0x2f4   :  { %16313 = vmatprep.subr.bf16.mxu1 %v16312_v14  ;;  %2908 = vmatprep.mubr.f32.mxu0 %v23646_v52  ;;  %v18112_v11 = vunpack.i.h.bf16 %v21103_v34  ;;  %v4293_v14 = vsel %vm4290_vm13, %v18057_v28, %v18106_v2 }
 0x2f5   :  { %14502 = vmatmul.mubr.msk.f32.gmra.mrb[16].mxu0 %vm165_vm0, %v23672_v56  ;;  %4143 = vmatprep.mubr.f32.mxu1 %v23646_v52  ;;  %v3305_v13 = vsel %vm3303_vm10, %v18116_v22, %v23674_v39  ;;  %v3308_v62 = vsel %vm3303_vm10, %v18117_v30, %v23676_v18  ;;  %v4297_v36 = vsel %vm4290_vm13, %v18076_v44, %v18071_v46 }
 0x2f6   :  { %18399 = vrot.lane.b32.xlu0 %v21000_v35, %s19549_s20  ;;  %18404 = vrot.lane.b32.xlu1 %v21002_v58, %s19549_s20  ;;  %v21121_v4 = vpop.permute.xlu0 %18119  ;;  %v21123_v6 = vpop.permute.xlu1 %18124  ;;  %v16248_v9 = vpack.c.bf16 %v3308_v62, %v3305_v13  ;;  %v3997_v35 = vld [vmem:[#allocation7 + $0x1f8] sm:$0xff]  ;;  %v16318_v12 = vpack.c.bf16 %v4300_v10, %v4297_v36  ;;  %v4302_v13 = vsel %vm4290_vm13, %v18092_v31, %v18112_v11  ;;  %v23686_v10 = vld [vmem:[#allocation33_spill] sm:$0xff] }
 0x2f7   :  { %16239 = vmatpush1.bf16.msra.mxu0 %v16238_v24  ;;  %14542 = vmatmul.mubr.msk.f32.gmra.mrb[12].mxu1 %vm165_vm0, %v3996_v57  ;;  %v18122_v23 = vunpack.i.h.bf16 %v21121_v4  ;;  %v18121_v18 = vunpack.i.l.bf16 %v21121_v4  ;;  %v18127_v62 = vunpack.i.h.bf16 %v21123_v6 }
 0x2f8   :  { %2914 = vmatprep.mubr.f32.mxu0 %v23646_v52  ;;  %4149 = vmatprep.mubr.f32.mxu1 %v23646_v52 }
 0x2f9   :  { %14503 = vmatmul.mubr.msk.f32.gmra.mrb[18].mxu0 %vm165_vm0, %v23677_v55  ;;  %16249 = vmatprep.subr.bf16.mxu0 %v16248_v9  ;;  %v18126_v9 = vunpack.i.l.bf16 %v21123_v6  ;;  %v4552_v44 = vsel %vm4550_vm12, %v18121_v18, %v18122_v23 }
 0x2fa   :  { %18409 = vrot.lane.b32.xlu0 %v21009_v63, %s19549_s20  ;;  %18414 = vrot.lane.b32.xlu1 %v20915_v43, %s19550_s21  ;;  %v18130_v15 = vpop.permute.xlu0 %18129  ;;  %v21148_v7 = vpop.permute.xlu1 %18134  ;;  %v4301_v43 = vsel %vm4290_vm13, %v18091_v8, %v18092_v31  ;;  %v23684_v8 = vld [vmem:[#allocation31_spill] sm:$0xff]  ;;  %s19561_s20 = smov 66  }
 0x2fb   :  { %14543 = vmatmul.mubr.msk.f32.gmra.mrb[14].mxu1 %vm165_vm0, %v3997_v35  ;;  %v18132_v61 = vunpack.i.h.bf16 %v18130_v15  ;;  %v18131_v27 = vunpack.i.l.bf16 %v18130_v15  ;;  %3144 = vmatprep.mubr.f32.mxu0 %v23646_v52  ;;  %v21224_v31 = vld [vmem:[#allocation4 + $0xb0] sm:$0xff]  ;;  %v4555_v15 = vsel %vm4550_vm12, %v18126_v9, %v18127_v62  ;;  %v18136_v36 = vunpack.i.l.bf16 %v21148_v7 }
 0x2fc   :  { %15518 = vmatprep.mubr.msk.f32.mxu1 %vm165_vm0, %v21060_v48  ;;  %v4298_v48 = vsel %vm4290_vm13, %v18071_v46, %v18072_v50  ;;  %v18453_v55 = vpack.i.bf16 %v21226_v53, %v21224_v31  ;;  %v23685_v46 = vld [vmem:[#allocation32_spill] sm:$0xff] }
 0x2fd   :  { %v3304_v41 = vsel %vm3303_vm10, %v18131_v27, %v18116_v22  ;;  %v3307_v0 = vsel %vm3303_vm10, %v18132_v61, %v18117_v30  ;;  %14508 = vmatmul.mubr.msk.f32.vlgmr.msra.gmra.mrb[12].mxu0 %vm165_vm0, %v23678_v29  ;;  %v16316_v47 = vpack.c.bf16 %v4301_v43, %v4298_v48  ;;  %v23680_v30 = vld [vmem:[#allocation26_spill] sm:$0xff]  ;;  %v21249_v27 = vld [vmem:[#allocation4 + $0xd8] sm:$0xff]  ;;  %v16328_v43 = vpack.c.bf16 %v4555_v15, %v4552_v44  ;;  %v4256_v29 = vld [vmem:[#allocation7 + $0x210] sm:$0xff] }
 0x2fe   :  { %18419 = vrot.lane.b32.xlu0 %v20934_v42, %s19550_s21  ;;  %18424 = vrot.lane.b32.xlu1 %v18423_v16, %s19550_s21  ;;  %v18140_v45 = vpop.permute.xlu0 %18139  ;;  %v21169_v20 = vpop.permute.xlu1 %18144  ;;  %v16250_v5 = vpack.c.bf16 %v3307_v0, %v3304_v41  ;;  %v18111_v42 = vunpack.i.l.bf16 %v21103_v34  ;;  %v23681_v22 = vunpack.i.l.bf16 %v23680_v30  ;;  %v23682_v34 = vld [vmem:[#allocation29_spill] sm:$0xff]  ;;  %v21257_v41 = vld [vmem:[#allocation4 + $0xd0] sm:$0xff]  ;;  %v23689_v15 = vld [vmem:[#allocation36_spill] sm:$0xff] }
 0x2ff   :  { %15519 = vmatmul.mubr.msk.f32.vlgmr.msra.gmra.mrb[4].mxu1 %vm165_vm0, %v21084_v40  ;;  %v18142_v49 = vunpack.i.h.bf16 %v18140_v45  ;;  %v18141_v19 = vunpack.i.l.bf16 %v18140_v45  ;;  %3150 = vmatprep.mubr.f32.mxu0 %v23646_v52  ;;  %v4296_v40 = vsel %vm4290_vm13, %v18062_v54, %v18107_v26  ;;  %v23683_v60 = vunpack.i.l.bf16 %v23682_v34  ;;  %v21197_v54 = vld [vmem:[#allocation4 + $0x120] sm:$0xff]  ;;  %v21270_v45 = vld [vmem:[#allocation4 + $0x108] sm:$0xff] }
 0x300   :  { %16315 = vmatpush1.bf16.msra.mxu1 %v16314_v3  ;;  %15521 = vmatprep.mubr.msk.f32.mxu1 %vm165_vm0, %v3996_v57  ;;  %v21201_v28 = vpack.i.bf16 %v21197_v54, %v21195_v38  ;;  %v16320_v25 = vpack.c.bf16 %v4296_v40, %v4293_v14  ;;  %v21251_v26 = vld [vmem:[#allocation4 + $0xe0] sm:$0xff]  ;;  %v18463_v0 = vpack.i.bf16 %v21257_v41, %v21136_v1  ;;  %v18137_v3 = vunpack.i.h.bf16 %v21148_v7  ;;  %v21276_v7 = vld [vmem:[#allocation4 + $0x128] sm:$0xff]  ;;  %v4257_v14 = vld [vmem:[#allocation7 + $0x218] sm:$0xff] }
 0x301   :  { %16317 = vmatprep.subr.bf16.mxu1 %v16316_v47  ;;  %14509 = vmatmul.mubr.msk.f32.gmra.mrb[14].mxu0 %vm165_vm0, %v23679_v51  ;;  %v3311_v24 = vsel %vm3303_vm10, %v18141_v19, %v23681_v22  ;;  %v3314_v57 = vsel %vm3303_vm10, %v18142_v49, %v23683_v60  ;;  %v18458_v2 = vpack.i.bf16 %v21251_v26, %v21249_v27  ;;  %v21268_v48 = vld [vmem:[#allocation4 + $0x100] sm:$0xff]  ;;  %v18147_v22 = vunpack.i.h.bf16 %v21169_v20 }
 0x302   :  { %18429 = vrot.lane.b32.xlu0 %v20966_v33, %s19550_s21  ;;  %18434 = vrot.lane.b32.xlu1 %v20978_v17, %s19550_s21  ;;  %v16252_v59 = vpack.c.bf16 %v3314_v57, %v3311_v24  ;;  %v4299_v17 = vsel %vm4290_vm13, %v18072_v50, %v18111_v42  ;;  %v21243_v61 = vpop.permute.xlu0 %18154  ;;  %v18468_v47 = vpack.i.bf16 %v21270_v45, %v21268_v48  ;;  %v18146_v24 = vunpack.i.l.bf16 %v21169_v20  ;;  %v23687_v57 = vld [vmem:[#allocation34_spill] sm:$0xff]  ;;  %v14564_v20 = vld [vmem:[%s23566_s2 + $0x20] sm:$0xff] }
 0x303   :  { %16251 = vmatpush1.bf16.msra.mxu0 %v16250_v5  ;;  %15522 = vmatmul.mubr.msk.f32.gmra.mrb[6].mxu1 %vm165_vm0, %v3997_v35  ;;  %v18150_v56 = vpop.permute.xlu1 %18149  ;;  %v21215_v35 = vld [vmem:[#allocation7 + $0x200] sm:$0xff]  ;;  %v16324_v16 = vpack.c.bf16 %v4302_v13, %v4299_v17  ;;  %v18157_v11 = vunpack.i.h.bf16 %v21243_v61  ;;  %v18156_v42 = vunpack.i.l.bf16 %v21243_v61  ;;  %v4551_v40 = vsel %vm4550_vm12, %v18136_v36, %v18121_v18  ;;  %v23688_v13 = vld [vmem:[#allocation35_spill] sm:$0xff] }
 0x304   :  { %16319 = vmatpush1.bf16.msra.mxu1 %v16318_v12  ;;  %v18152_v33 = vunpack.i.h.bf16 %v18150_v56  ;;  %v18151_v39 = vunpack.i.l.bf16 %v18150_v56  ;;  %3156 = vmatprep.mubr.f32.mxu0 %v23646_v52  ;;  %v4554_v51 = vsel %vm4550_vm12, %v18137_v3, %v18126_v9  ;;  %v4558_v18 = vsel %vm4550_vm12, %v18146_v24, %v18147_v22  ;;  %v4514_v61 = vld [vmem:[#allocation7 + $0x220] sm:$0xff] }
 0x305   :  { %16321 = vmatprep.subr.bf16.mxu1 %v16320_v25  ;;  %14510 = vmatmul.mubr.msk.f32.gmra.mrb[16].mxu0 %vm165_vm0, %v23684_v8  ;;  %v4561_v56 = vsel %vm4550_vm12, %v18156_v42, %v18157_v11 }
 0x306   :  { %v3313_v32 = vsel %vm3303_vm10, %v18152_v33, %v18142_v49  ;;  %v3310_v21 = vsel %vm3303_vm10, %v18151_v39, %v18141_v19  ;;  %4391 = vmatprep.mubr.f32.mxu1 %v23646_v52  ;;  %18439 = vrot.lane.b32.xlu0 %v21201_v28, %s19550_s21  ;;  %v18160_v49 = vpop.permute.xlu0 %18159  ;;  %v21278_v19 = vld [vmem:[#allocation4 + $0x130] sm:$0xff]  ;;  %v16330_v33 = vpack.c.bf16 %v4554_v51, %v4551_v40 }
 0x307   :  { %18444 = vrot.lane.b32.xlu1 %v21002_v58, %s19550_s21  ;;  %16253 = vmatprep.subr.bf16.mxu0 %v16252_v59  ;;  %v16254_v50 = vpack.c.bf16 %v3313_v32, %v3310_v21  ;;  %v18473_v5 = vpack.i.bf16 %v21278_v19, %v21276_v7  ;;  %v18165_v30 = vpop.permute.xlu1 %18164  ;;  %v18162_v34 = vunpack.i.h.bf16 %v18160_v49  ;;  %v18161_v60 = vunpack.i.l.bf16 %v18160_v49 }
 0x308   :  { %14548 = vmatmul.mubr.msk.f32.vlgmr.msra.gmra.mrb[8].mxu1 %vm165_vm0, %v21215_v35  ;;  %3162 = vmatprep.mubr.f32.mxu0 %v23646_v52  ;;  %v18167_v12 = vunpack.i.h.bf16 %v18165_v30  ;;  %v16332_v9 = vpack.c.bf16 %v4561_v56, %v4558_v18 }
 0x309   :  { %16323 = vmatpush3.bf16.msra.mxu1 %v16320_v25  ;;  %14511 = vmatmul.mubr.msk.f32.gmra.mrb[18].mxu0 %vm165_vm0, %v23685_v46  ;;  %v18166_v25 = vunpack.i.l.bf16 %v18165_v30  ;;  %v4557_v39 = vsel %vm4550_vm12, %v18161_v60, %v18146_v24  ;;  %v4560_v17 = vsel %vm4550_vm12, %v18162_v34, %v18156_v42 }
 0x30a   :  { %16325 = vmatprep.subr.bf16.mxu1 %v16324_v16  ;;  %4397 = vmatprep.mubr.f32.mxu1 %v23646_v52  ;;  %v18170_v59 = vpop.permute.xlu0 %18169 }
 0x30b   :  { %18449 = vrot.lane.b32.xlu0 %v21009_v63, %s19550_s21  ;;  %18454 = vrot.lane.b32.xlu1 %v18453_v55, %s19551_s22  ;;  %v21311_v8 = vpop.permute.xlu1 %18174  ;;  %v18172_v32 = vunpack.i.h.bf16 %v18170_v59  ;;  %v18171_v21 = vunpack.i.l.bf16 %v18170_v59  ;;  %v4553_v55 = vsel %vm4550_vm12, %v18122_v23, %v18166_v25  ;;  %s19562_s21 = smov 69  }
 0x30c   :  { %16255 = vmatpush1.bf16.msra.mxu0 %v16254_v50  ;;  %14549 = vmatmul.mubr.msk.f32.gmra.mrb[10].mxu1 %vm165_vm0, %v21235_v37  ;;  %v16334_v50 = vpack.c.bf16 %v4560_v17, %v4557_v39  ;;  %v18176_v44 = vunpack.i.l.bf16 %v21311_v8 }
 0x30d   :  { %16327 = vmatpush3.bf16.msra.mxu1 %v16324_v16  ;;  %3404 = vmatprep.mubr.f32.mxu0 %v23646_v52  ;;  %v4556_v16 = vsel %vm4550_vm12, %v18127_v62, %v18167_v12  ;;  %v14567_v62 = vld [vmem:[%s23566_s2 + $0x38] sm:$0xff] }
 0x30e   :  { %16329 = vmatprep.subr.bf16.mxu1 %v16328_v43  ;;  %4403 = vmatprep.mubr.f32.mxu1 %v23646_v52  ;;  %v16336_v23 = vpack.c.bf16 %v4556_v16, %v4553_v55  ;;  %v4562_v43 = vsel %vm4550_vm12, %v18157_v11, %v18172_v32  ;;  %v4516_v11 = vld [vmem:[#allocation7 + $0x230] sm:$0xff] }
 0x30f   :  { %14516 = vmatmul.mubr.msk.f32.vlgmr.msra.gmra.mrb[12].mxu0 %vm165_vm0, %v23686_v10  ;;  %18459 = vrot.lane.b32.xlu0 %v18458_v2, %s19551_s22  ;;  %v21327_v46 = vpop.permute.xlu0 %18179  ;;  %v4559_v2 = vsel %vm4550_vm12, %v18147_v22, %v18171_v21 }
 0x310   :  { %18464 = vrot.lane.b32.xlu1 %v18463_v0, %s19551_s22  ;;  %14550 = vmatmul.mubr.msk.f32.gmra.mrb[12].mxu1 %vm165_vm0, %v4256_v29  ;;  %v18182_v4 = vunpack.i.h.bf16 %v21327_v46  ;;  %v18181_v6 = vunpack.i.l.bf16 %v21327_v46  ;;  %v18185_v0 = vpop.permute.xlu1 %18184  ;;  %v16340_v36 = vpack.c.bf16 %v4562_v43, %v4559_v2 }
 0x311   :  { %3410 = vmatprep.mubr.f32.mxu0 %v23646_v52  ;;  %4409 = vmatprep.mubr.f32.mxu1 %v23646_v52  ;;  %v18187_v42 = vunpack.i.h.bf16 %v18185_v0 }
 0x312   :  { %v7347_v3 = vsel %vm140_vm1, %v18181_v6, %v18182_v4 }
 0x313   :  { %14517 = vmatmul.mubr.msk.f32.gmra.mrb[14].mxu0 %vm165_vm0, %v23687_v57  ;;  %18469 = vrot.lane.b32.xlu0 %v18468_v47, %s19551_s22  ;;  %v18190_v10 = vpop.permute.xlu0 %18189  ;;  %v4515_v47 = vld [vmem:[#allocation7 + $0x228] sm:$0xff]  ;;  %v7346_v24 = vsel %vm140_vm1, %v18187_v42, %v18181_v6  ;;  %v7291_v6 = vld [vmem:[#allocation7 + $0x20] sm:$0xff] }
 0x314   :  { %18474 = vrot.lane.b32.xlu1 %v18473_v5, %s19551_s22  ;;  %14551 = vmatmul.mubr.msk.f32.gmra.mrb[14].mxu1 %vm165_vm0, %v4257_v14  ;;  %v18195_v5 = vpop.permute.xlu1 %18194  ;;  %v18191_v51 = vunpack.i.l.bf16 %v18190_v10 }
 0x315   :  { %3416 = vmatprep.mubr.f32.mxu0 %v23646_v52  ;;  %15532 = vmatprep.mubr.msk.f32.mxu1 %vm165_vm0, %v21215_v35  ;;  %v14565_v35 = vld [vmem:[%s23566_s2 + $0x28] sm:$0xff]  ;;  %v18197_v30 = vunpack.i.h.bf16 %v18195_v5  ;;  %v18196_v22 = vunpack.i.l.bf16 %v18195_v5 }
 0x317   :  { %14518 = vmatmul.mubr.msk.f32.gmra.mrb[16].mxu0 %vm165_vm0, %v23688_v13  ;;  %18479 = vrot.lane.b32.xlu0 %v21201_v28, %s19551_s22  ;;  %v14566_v28 = vld [vmem:[%s23566_s2 + $0x30] sm:$0xff]  ;;  %v18200_v40 = vpop.permute.xlu0 %18199  ;;  %v7353_v59 = vsel %vm140_vm1, %v18196_v22, %v18197_v30 }
 0x318   :  { %4780 = vperm.xlu1 %17852, %v14564_v20   ;;  %15533 = vmatmul.mubr.msk.f32.vlgmr.msra.gmra.mrb[4].mxu1 %vm165_vm0, %v21235_v37  ;;  %v18177_v37 = vunpack.i.h.bf16 %v21311_v8  ;;  %v18202_v60 = vunpack.i.h.bf16 %v18200_v40  ;;  %v18201_v57 = vunpack.i.l.bf16 %v18200_v40  ;;  %v18205_v12 = vpop.permute.xlu1 %18204  ;;  %v7294_v40 = vld [vmem:[#allocation7 + $0x38] sm:$0xff] }
 0x319   :  { %16331 = vmatpush1.bf16.msra.mxu1 %v16330_v33  ;;  %3422 = vmatprep.mubr.f32.mxu0 %v23646_v52  ;;  %v18207_v25 = vunpack.i.h.bf16 %v18205_v12  ;;  %v18206_v20 = vunpack.i.l.bf16 %v18205_v12 }
 0x31a   :  { %16333 = vmatprep.subr.bf16.mxu1 %v16332_v9  ;;  %15535 = vmatprep.mubr.msk.f32.mxu1 %vm165_vm0, %v4256_v29  ;;  %v7344_v29 = vsel %vm140_vm1, %v18176_v44, %v18177_v37  ;;  %v7349_v17 = vsel %vm140_vm1, %v18201_v57, %v18191_v51  ;;  %v7352_v13 = vsel %vm140_vm1, %v18202_v60, %v18196_v22 }
 0x31b   :  { %14519 = vmatmul.mubr.msk.f32.gmra.mrb[18].mxu0 %vm165_vm0, %v23689_v15  ;;  %4785 = vperm.xlu0 %17851, %v14565_v35   ;;  %v16488_v49 = vpack.c.bf16 %v7347_v3, %v7344_v29  ;;  %v18210_v33 = vpop.permute.xlu0 %18209  ;;  %v7345_v32 = vsel %vm140_vm1, %v18177_v37, %v18206_v20  ;;  %v7348_v21 = vsel %vm140_vm1, %v18182_v4, %v18207_v25 }
 0x31c   :  { %4790 = vperm.xlu1 %17852, %v14566_v28   ;;  %15536 = vmatmul.mubr.msk.f32.gmra.mrb[6].mxu1 %vm165_vm0, %v4257_v14  ;;  %v18186_v14 = vunpack.i.l.bf16 %v18185_v0  ;;  %v18212_v9 = vunpack.i.h.bf16 %v18210_v33  ;;  %v18211_v35 = vunpack.i.l.bf16 %v18210_v33  ;;  %v21373_v28 = vpop.permute.xlu1 %18214  ;;  %v16494_v55 = vpack.c.bf16 %v7352_v13, %v7349_v17  ;;  %v7292_v0 = vld [vmem:[#allocation7 + $0x28] sm:$0xff] }
 0x31d   :  { %16335 = vmatpush1.bf16.msra.mxu1 %v16334_v50  ;;  %4651 = vmatprep.mubr.f32.mxu1 %v23646_v52  ;;  %v18217_v16 = vunpack.i.h.bf16 %v21373_v28  ;;  %v18216_v50 = vunpack.i.l.bf16 %v21373_v28  ;;  %v16496_v8 = vpack.c.bf16 %v7348_v21, %v7345_v32 }
 0x31e   :  { %16337 = vmatprep.subr.bf16.mxu1 %v16336_v23  ;;  %5049 = vmatprep.mubr.f32.mxu0 %v23646_v52  ;;  %v7343_v34 = vsel %vm140_vm1, %v18186_v14, %v18176_v44  ;;  %v7354_v4 = vsel %vm140_vm1, %v18197_v30, %v18212_v9 }
 0x31f   :  { %4795 = vperm.xlu0 %17851, %v14567_v62   ;;  %v16490_v39 = vpack.c.bf16 %v7346_v24, %v7343_v34  ;;  %v18220_v44 = vpop.permute.xlu0 %18219 }
 0x320   :  { %14556 = vmatmul.mubr.msk.f32.vlgmr.msra.gmra.mrb[8].mxu1 %vm165_vm0, %v4514_v61  ;;  %18484 = vrot.lane.b32.xlu1 %v21002_v58, %s19551_s22  ;;  %v18192_v58 = vunpack.i.h.bf16 %v18190_v10  ;;  %v18222_v37 = vunpack.i.h.bf16 %v18220_v44  ;;  %v18221_v15 = vunpack.i.l.bf16 %v18220_v44 }
 0x321   :  { %16339 = vmatpush3.bf16.msra.mxu1 %v16336_v23  ;;  %4657 = vmatprep.mubr.f32.mxu1 %v23646_v52  ;;  %v18225_v23 = vpop.permute.xlu1 %18224 }
 0x322   :  { %16341 = vmatprep.subr.bf16.mxu1 %v16340_v36  ;;  %v7350_v56 = vsel %vm140_vm1, %v18191_v51, %v18192_v58  ;;  %v7351_v46 = vsel %vm140_vm1, %v18192_v58, %v18211_v35  ;;  %v7589_v2 = vsel %vm384_vm2, %v18221_v15, %v18222_v37  ;;  %v18227_v10 = vunpack.i.h.bf16 %v18225_v23 }
 0x323   :  { %18489 = vrot.lane.b32.xlu0 %v21009_v63, %s19551_s22  ;;  %v4517_v63 = vld [vmem:[#allocation7 + $0x238] sm:$0xff]  ;;  %v16492_v18 = vpack.c.bf16 %v7353_v59, %v7350_v56  ;;  %v16500_v62 = vpack.c.bf16 %v7354_v4, %v7351_v46  ;;  %v18230_v43 = vpop.permute.xlu0 %18229  ;;  %s19563_s22 = smov 63  }
 0x324   :  { %14557 = vmatmul.mubr.msk.f32.gmra.mrb[10].mxu1 %vm165_vm0, %v4515_v47  ;;  %v18232_v5 = vunpack.i.h.bf16 %v18230_v43  ;;  %v7588_v58 = vsel %vm384_vm2, %v18227_v10, %v18221_v15  ;;  %18494 = vrot.lane.b32.xlu1 %v23646_v52, %s19561_s20 }
 0x325   :  { %16343 = vmatpush3.bf16.msra.mxu1 %v16340_v36  ;;  %4663 = vmatprep.mubr.f32.mxu1 %v23646_v52  ;;  %v18235_v3 = vpop.permute.xlu1 %18234  ;;  %v7293_v36 = vld [vmem:[#allocation7 + $0x30] sm:$0xff] }
 0x326   :  { %16489 = vmatprep.subr.bf16.mxu1 %v16488_v49  ;;  %v18237_v42 = vunpack.i.h.bf16 %v18235_v3  ;;  %v18236_v14 = vunpack.i.l.bf16 %v18235_v3 }
 0x327   :  { %v18240_v49 = vpop.permute.xlu0 %18239 }
 0x328   :  { %14558 = vmatmul.mubr.msk.f32.gmra.mrb[12].mxu1 %vm165_vm0, %v4516_v11  ;;  %v18242_v30 = vunpack.i.h.bf16 %v18240_v49  ;;  %v18241_v22 = vunpack.i.l.bf16 %v18240_v49  ;;  %v7595_v57 = vsel %vm384_vm2, %v18236_v14, %v18237_v42  ;;  %v7290_v49 = vld [vmem:[#allocation7 + $0x18] sm:$0xff] }
 0x329   :  { %4669 = vmatprep.mubr.f32.mxu1 %v23646_v52 }
 0x32a   :  { %v7594_v56 = vsel %vm384_vm2, %v18242_v30, %v18236_v14 }
 0x32b   :  { %v18250_v12 = vpop.permute.xlu0 %18249 }
 0x32c   :  { %14559 = vmatmul.mubr.msk.f32.gmra.mrb[14].mxu1 %vm165_vm0, %v4517_v63  ;;  %v18252_v33 = vunpack.i.h.bf16 %v18250_v12 }
 0x32d   :  { %15546 = vmatprep.mubr.msk.f32.mxu1 %vm165_vm0, %v4514_v61  ;;  %v7586_v61 = vsel %vm384_vm2, %v18216_v50, %v18217_v16 }
 0x32e   :  { %v16504_v29 = vpack.c.bf16 %v7589_v2, %v7586_v61  ;;  %v7596_v44 = vsel %vm384_vm2, %v18237_v42, %v18252_v33  ;;  %v7289_v2 = vld [vmem:[#allocation7 + $0x10] sm:$0xff] }
 0x32f   :  { %v18260_v21 = vpop.permute.xlu0 %18259 }
 0x330   :  { %15547 = vmatmul.mubr.msk.f32.vlgmr.msra.gmra.mrb[4].mxu1 %vm165_vm0, %v4515_v47  ;;  %v18226_v47 = vunpack.i.l.bf16 %v18225_v23  ;;  %v7288_v23 = vld [vmem:[#allocation7 + $0x8] sm:$0xff] }
 0x331   :  { %16491 = vmatpush1.bf16.msra.mxu1 %v16490_v39  ;;  %15549 = vmatprep.mubr.msk.f32.mxu1 %vm165_vm0, %v4516_v11  ;;  %v18231_v11 = vunpack.i.l.bf16 %v18230_v43  ;;  %v18251_v39 = vunpack.i.l.bf16 %v18250_v12 }
 0x332   :  { %16493 = vmatprep.subr.bf16.mxu1 %v16492_v18  ;;  %v7585_v51 = vsel %vm384_vm2, %v18226_v47, %v18216_v50  ;;  %v18261_v50 = vunpack.i.l.bf16 %v18260_v21 }
 0x333   :  { %v7592_v60 = vsel %vm384_vm2, %v18231_v11, %v18232_v5  ;;  %v16506_v25 = vpack.c.bf16 %v7588_v58, %v7585_v51  ;;  %v7591_v20 = vsel %vm384_vm2, %v18241_v22, %v18231_v11 }
 0x334   :  { %15550 = vmatmul.mubr.msk.f32.gmra.mrb[6].mxu1 %vm165_vm0, %v4517_v63  ;;  %v18245_v63 = vpop.permute.xlu1 %18244  ;;  %v16508_v59 = vpack.c.bf16 %v7595_v57, %v7592_v60  ;;  %v16510_v9 = vpack.c.bf16 %v7594_v56, %v7591_v20 }
 0x335   :  { %16495 = vmatpush1.bf16.msra.mxu1 %v16494_v55  ;;  %7443 = vmatprep.mubr.f32.mxu1 %v23646_v52  ;;  %v18247_v24 = vunpack.i.h.bf16 %v18245_v63  ;;  %v18246_v34 = vunpack.i.l.bf16 %v18245_v63  ;;  %v18262_v55 = vunpack.i.h.bf16 %v18260_v21 }
 0x336   :  { %16497 = vmatprep.subr.bf16.mxu1 %v16496_v8 }
 0x337   :  { %v7587_v17 = vsel %vm384_vm2, %v18217_v16, %v18246_v34  ;;  %v7590_v13 = vsel %vm384_vm2, %v18222_v37, %v18247_v24  ;;  %v7593_v16 = vsel %vm384_vm2, %v18232_v5, %v18251_v39  ;;  %v7835_v4 = vsel %vm632_vm3, %v18261_v50, %v18262_v55 }
 0x338   :  { %14644 = vmatmul.mubr.msk.f32.vlgmr.msra.gmra.mrb[16].mxu1 %vm165_vm0, %v7291_v6  ;;  %v21401_v18 = vpop.permute.xlu1 %18254  ;;  %v16512_v28 = vpack.c.bf16 %v7590_v13, %v7587_v17  ;;  %v16516_v15 = vpack.c.bf16 %v7596_v44, %v7593_v16 }
 0x339   :  { %16499 = vmatpush3.bf16.msra.mxu1 %v16496_v8  ;;  %7449 = vmatprep.mubr.f32.mxu1 %v23646_v52  ;;  %v18257_v35 = vunpack.i.h.bf16 %v21401_v18  ;;  %v18256_v32 = vunpack.i.l.bf16 %v21401_v18  ;;  %v7287_v8 = vld [vmem:[#allocation7] sm:$0xff] }
 0x33a   :  { %16501 = vmatprep.subr.bf16.mxu1 %v16500_v62 }
 0x33b   :  { %v7832_v46 = vsel %vm632_vm3, %v18256_v32, %v18257_v35 }
 0x33c   :  { %14645 = vmatmul.mubr.msk.f32.gmra.mrb[18].mxu1 %vm165_vm0, %v7292_v0  ;;  %v18265_v37 = vpop.permute.xlu1 %18264 }
 0x33d   :  { %16503 = vmatpush3.bf16.msra.mxu1 %v16500_v62  ;;  %7455 = vmatprep.mubr.f32.mxu1 %v23646_v52  ;;  %v16520_v62 = vpack.c.bf16 %v7835_v4, %v7832_v46  ;;  %v18267_v43 = vunpack.i.h.bf16 %v18265_v37  ;;  %v7797_v4 = vld [vmem:[#allocation7 + $0x50] sm:$0xff] }
 0x33e   :  { %16505 = vmatprep.subr.bf16.mxu1 %v16504_v29 }
 0x33f   :  { %v7834_v5 = vsel %vm632_vm3, %v18267_v43, %v18261_v50 }
 0x340   :  { %14646 = vmatmul.mubr.msk.f32.gmra.mrb[20].mxu1 %vm165_vm0, %v7293_v36  ;;  %v18275_v61 = vpop.permute.xlu1 %18274 }
 0x341   :  { %7461 = vmatprep.mubr.f32.mxu1 %v23646_v52  ;;  %v18277_v10 = vunpack.i.h.bf16 %v18275_v61  ;;  %v18276_v47 = vunpack.i.l.bf16 %v18275_v61 }
 0x343   :  { %v7841_v22 = vsel %vm632_vm3, %v18276_v47, %v18277_v10 }
 0x344   :  { %14647 = vmatmul.mubr.msk.f32.gmra.mrb[22].mxu1 %vm165_vm0, %v7294_v40 }
 0x345   :  { %15686 = vmatprep.mubr.msk.f32.mxu1 %vm165_vm0, %v7291_v6  ;;  %v18270_v6 = vpop.permute.xlu0 %18269 }
 0x346   :  { %v18272_v3 = vunpack.i.h.bf16 %v18270_v6 }
 0x348   :  { %15687 = vmatmul.mubr.msk.f32.vlgmr.msra.gmra.mrb[24].mxu1 %vm165_vm0, %v7292_v0  ;;  %v18266_v0 = vunpack.i.l.bf16 %v18265_v37 }
 0x349   :  { %16507 = vmatpush1.bf16.msra.mxu1 %v16506_v25  ;;  %15689 = vmatprep.mubr.msk.f32.mxu1 %vm165_vm0, %v7293_v36  ;;  %v18280_v29 = vpop.permute.xlu0 %18279  ;;  %v18271_v36 = vunpack.i.l.bf16 %v18270_v6 }
 0x34a   :  { %16509 = vmatprep.subr.bf16.mxu1 %v16508_v59  ;;  %v7831_v11 = vsel %vm632_vm3, %v18266_v0, %v18256_v32  ;;  %v18282_v42 = vunpack.i.h.bf16 %v18280_v29  ;;  %v18281_v14 = vunpack.i.l.bf16 %v18280_v29  ;;  %v7798_v29 = vld [vmem:[#allocation7 + $0x58] sm:$0xff] }
 0x34b   :  { %v7838_v30 = vsel %vm632_vm3, %v18271_v36, %v18272_v3  ;;  %v16522_v24 = vpack.c.bf16 %v7834_v5, %v7831_v11 }
 0x34c   :  { %15690 = vmatmul.mubr.msk.f32.gmra.mrb[26].mxu1 %vm165_vm0, %v7294_v40  ;;  %v18285_v40 = vpop.permute.xlu1 %18284  ;;  %v7837_v34 = vsel %vm632_vm3, %v18281_v14, %v18271_v36  ;;  %v7840_v60 = vsel %vm632_vm3, %v18282_v42, %v18276_v47  ;;  %v16524_v57 = vpack.c.bf16 %v7841_v22, %v7838_v30 }
 0x34d   :  { %16511 = vmatpush1.bf16.msra.mxu1 %v16510_v9  ;;  %7685 = vmatprep.mubr.f32.mxu1 %v23646_v52  ;;  %v18287_v58 = vunpack.i.h.bf16 %v18285_v40  ;;  %v18286_v51 = vunpack.i.l.bf16 %v18285_v40  ;;  %v18290_v63 = vpop.permute.xlu0 %18289  ;;  %v16526_v33 = vpack.c.bf16 %v7840_v60, %v7837_v34 }
 0x34e   :  { %16513 = vmatprep.subr.bf16.mxu1 %v16512_v28  ;;  %v18292_v12 = vunpack.i.h.bf16 %v18290_v63  ;;  %v18291_v25 = vunpack.i.l.bf16 %v18290_v63 }
 0x34f   :  { %v7833_v20 = vsel %vm632_vm3, %v18257_v35, %v18286_v51  ;;  %v7836_v56 = vsel %vm632_vm3, %v18262_v55, %v18287_v58 }
 0x350   :  { %14652 = vmatmul.mubr.msk.f32.vlgmr.msra.gmra.mrb[16].mxu1 %vm165_vm0, %v7287_v8  ;;  %v21429_v59 = vpop.permute.xlu1 %18294  ;;  %v16528_v18 = vpack.c.bf16 %v7836_v56, %v7833_v20  ;;  %v7839_v35 = vsel %vm632_vm3, %v18272_v3, %v18291_v25  ;;  %v7842_v21 = vsel %vm632_vm3, %v18277_v10, %v18292_v12  ;;  %v8053_v56 = vld [vmem:[#allocation7 + $0x60] sm:$0xff] }
 0x351   :  { %16515 = vmatpush3.bf16.msra.mxu1 %v16512_v28  ;;  %7691 = vmatprep.mubr.f32.mxu1 %v23646_v52  ;;  %v18297_v39 = vunpack.i.h.bf16 %v21429_v59  ;;  %v18296_v17 = vunpack.i.l.bf16 %v21429_v59  ;;  %v18300_v13 = vpop.permute.xlu0 %18299  ;;  %v7795_v28 = vld [vmem:[#allocation7 + $0x40] sm:$0xff]  ;;  %v16532_v50 = vpack.c.bf16 %v7842_v21, %v7839_v35  ;;  %v16558_v21 = vpack.c.bf16 %v21197_v54, %v21195_v38 }
 0x352   :  { %16517 = vmatprep.subr.bf16.mxu1 %v16516_v15  ;;  %v18302_v9 = vunpack.i.h.bf16 %v18300_v13  ;;  %v18301_v32 = vunpack.i.l.bf16 %v18300_v13  ;;  %v8311_v38 = vld [vmem:[#allocation7 + $0x80] sm:$0xff]  ;;  %v16564_v54 = vpack.c.bf16 %v21278_v19, %v21270_v45 }
 0x353   :  { %v8090_v16 = vsel %vm892_vm4, %v18296_v17, %v18297_v39 }
 0x354   :  { %14653 = vmatmul.mubr.msk.f32.gmra.mrb[18].mxu1 %vm165_vm0, %v7288_v23  ;;  %v18305_v55 = vpop.permute.xlu1 %18304  ;;  %v8093_v44 = vsel %vm892_vm4, %v18301_v32, %v18302_v9 }
 0x355   :  { %16519 = vmatpush3.bf16.msra.mxu1 %v16516_v15  ;;  %7697 = vmatprep.mubr.f32.mxu1 %v23646_v52  ;;  %v18310_v37 = vpop.permute.xlu0 %18309  ;;  %v16536_v15 = vpack.c.bf16 %v8093_v44, %v8090_v16  ;;  %v18307_v6 = vunpack.i.h.bf16 %v18305_v55  ;;  %v8312_v44 = vld [vmem:[#allocation7 + $0x88] sm:$0xff] }
 0x356   :  { %16521 = vmatprep.subr.bf16.mxu1 %v16520_v62  ;;  %v18312_v62 = vunpack.i.h.bf16 %v18310_v37  ;;  %v18311_v61 = vunpack.i.l.bf16 %v18310_v37 }
 0x357   :  { %v8092_v3 = vsel %vm892_vm4, %v18307_v6, %v18301_v32  ;;  %v16556_v32 = vpack.c.bf16 %v21276_v7, %v21268_v48 }
 0x358   :  { %14654 = vmatmul.mubr.msk.f32.gmra.mrb[20].mxu1 %vm165_vm0, %v7289_v2  ;;  %v18315_v46 = vpop.permute.xlu1 %18314  ;;  %v8096_v42 = vsel %vm892_vm4, %v18311_v61, %v18312_v62 }
 0x359   :  { %7703 = vmatprep.mubr.f32.mxu1 %v23646_v52  ;;  %v18316_v43 = vunpack.i.l.bf16 %v18315_v46  ;;  %v18320_v0 = vpop.permute.xlu0 %18319 }
 0x35a   :  { %v18322_v10 = vunpack.i.h.bf16 %v18320_v0  ;;  %v18321_v47 = vunpack.i.l.bf16 %v18320_v0 }
 0x35c   :  { %14655 = vmatmul.mubr.msk.f32.gmra.mrb[22].mxu1 %vm165_vm0, %v7290_v49  ;;  %v8095_v58 = vsel %vm892_vm4, %v18321_v47, %v18311_v61  ;;  %v8098_v51 = vsel %vm892_vm4, %v18322_v10, %v18316_v43 }
 0x35d   :  { %15700 = vmatprep.mubr.msk.f32.mxu1 %vm165_vm0, %v7287_v8  ;;  %v7796_v8 = vld [vmem:[#allocation7 + $0x48] sm:$0xff]  ;;  %v18330_v30 = vpop.permute.xlu0 %18329 }
 0x35e   :  { %v18332_v63 = vunpack.i.h.bf16 %v18330_v30 }
 0x360   :  { %15701 = vmatmul.mubr.msk.f32.vlgmr.msra.gmra.mrb[24].mxu1 %vm165_vm0, %v7288_v23  ;;  %v18306_v23 = vunpack.i.l.bf16 %v18305_v55  ;;  %v16560_v55 = vpack.c.bf16 %v21251_v26, %v21226_v53 }
 0x361   :  { %16523 = vmatpush1.bf16.msra.mxu1 %v16522_v24  ;;  %15703 = vmatprep.mubr.msk.f32.mxu1 %vm165_vm0, %v7289_v2  ;;  %v18317_v2 = vunpack.i.h.bf16 %v18315_v46  ;;  %v18331_v24 = vunpack.i.l.bf16 %v18330_v30 }
 0x362   :  { %16525 = vmatprep.subr.bf16.mxu1 %v16524_v57  ;;  %v8089_v36 = vsel %vm892_vm4, %v18306_v23, %v18296_v17  ;;  %v16542_v57 = vpack.c.bf16 %v8098_v51, %v8095_v58  ;;  %v8055_v17 = vld [vmem:[#allocation7 + $0x70] sm:$0xff] }
 0x363   :  { %v8099_v14 = vsel %vm892_vm4, %v18316_v43, %v18317_v2  ;;  %v16538_v40 = vpack.c.bf16 %v8092_v3, %v8089_v36  ;;  %v8097_v25 = vsel %vm892_vm4, %v18312_v62, %v18331_v24  ;;  %v8100_v20 = vsel %vm892_vm4, %v18317_v2, %v18332_v63  ;;  %v8314_v2 = vld [vmem:[#allocation7 + $0x98] sm:$0xff] }
 0x364   :  { %15704 = vmatmul.mubr.msk.f32.gmra.mrb[26].mxu1 %vm165_vm0, %v7290_v49  ;;  %v18325_v49 = vpop.permute.xlu1 %18324  ;;  %v16540_v22 = vpack.c.bf16 %v8099_v14, %v8096_v42  ;;  %v16548_v59 = vpack.c.bf16 %v8100_v20, %v8097_v25 }
 0x365   :  { %16527 = vmatpush1.bf16.msra.mxu1 %v16526_v33  ;;  %7931 = vmatprep.mubr.f32.mxu1 %v23646_v52  ;;  %v18327_v5 = vunpack.i.h.bf16 %v18325_v49  ;;  %v18326_v11 = vunpack.i.l.bf16 %v18325_v49  ;;  %v8054_v33 = vld [vmem:[#allocation7 + $0x68] sm:$0xff] }
 0x366   :  { %16529 = vmatprep.subr.bf16.mxu1 %v16528_v18 }
 0x367   :  { %v8091_v34 = vsel %vm892_vm4, %v18297_v39, %v18326_v11  ;;  %v8094_v60 = vsel %vm892_vm4, %v18302_v9, %v18327_v5  ;;  %v16552_v39 = vpack.c.bf16 %v21249_v27, %v21224_v31  ;;  %v8056_v31 = vld [vmem:[#allocation7 + $0x78] sm:$0xff]  ;;  %v16554_v9 = vpack.c.bf16 %v21257_v41, %v21136_v1 }
 0x368   :  { %14660 = vmatmul.mubr.msk.f32.vlgmr.msra.gmra.mrb[16].mxu1 %vm165_vm0, %v7795_v28  ;;  %v16544_v12 = vpack.c.bf16 %v8094_v60, %v8091_v34  ;;  %v21469_v13 = vpop.permute.xlu1 %18334 }
 0x369   :  { %16531 = vmatpush3.bf16.msra.mxu1 %v16528_v18  ;;  %7937 = vmatprep.mubr.f32.mxu1 %v23646_v52  ;;  %v21474_v18 = vpop.permute.xlu0 %18339  ;;  %v18337_v1 = vunpack.i.h.bf16 %v21469_v13  ;;  %v18336_v41 = vunpack.i.l.bf16 %v21469_v13 }
 0x36a   :  { %16533 = vmatprep.subr.bf16.mxu1 %v16532_v50  ;;  %v18342_v48 = vunpack.i.h.bf16 %v21474_v18  ;;  %v18341_v7 = vunpack.i.l.bf16 %v21474_v18 }
 0x36b   :  { %v8554_v53 = vsel %vm1359_vm5, %v18336_v41, %v18337_v1 }
 0x36c   :  { %14661 = vmatmul.mubr.msk.f32.gmra.mrb[18].mxu1 %vm165_vm0, %v7796_v8  ;;  %v18345_v27 = vpop.permute.xlu1 %18344  ;;  %v8557_v26 = vsel %vm1359_vm5, %v18341_v7, %v18342_v48 }
 0x36d   :  { %16535 = vmatpush3.bf16.msra.mxu1 %v16532_v50  ;;  %7943 = vmatprep.mubr.f32.mxu1 %v23646_v52  ;;  %v21483_v35 = vpop.permute.xlu0 %18349  ;;  %v18347_v45 = vunpack.i.h.bf16 %v18345_v27  ;;  %v18346_v19 = vunpack.i.l.bf16 %v18345_v27  ;;  %v8514_v27 = vld [vmem:[#allocation7 + $0xa8] sm:$0xff] }
 0x36e   :  { %16537 = vmatprep.subr.bf16.mxu1 %v16536_v15  ;;  %v8313_v15 = vld [vmem:[#allocation7 + $0x90] sm:$0xff]  ;;  %v18351_v6 = vunpack.i.l.bf16 %v21483_v35 }
 0x36f   :  { %v8556_v43 = vsel %vm1359_vm5, %v18347_v45, %v18341_v7  ;;  %v8553_v0 = vsel %vm1359_vm5, %v18346_v19, %v18336_v41 }
 0x370   :  { %14662 = vmatmul.mubr.msk.f32.gmra.mrb[20].mxu1 %vm165_vm0, %v7797_v4  ;;  %v16570_v11 = vpack.c.bf16 %v8556_v43, %v8553_v0 }
 0x371   :  { %7949 = vmatprep.mubr.f32.mxu1 %v23646_v52  ;;  %v18360_v50 = vpop.permute.xlu0 %18359 }
 0x372   :  { %v18361_v3 = vunpack.i.l.bf16 %v18360_v50 }
 0x374   :  { %14663 = vmatmul.mubr.msk.f32.gmra.mrb[22].mxu1 %vm165_vm0, %v7798_v29  ;;  %v8559_v42 = vsel %vm1359_vm5, %v18361_v3, %v18351_v6 }
 0x375   :  { %15714 = vmatprep.mubr.msk.f32.mxu1 %vm165_vm0, %v7795_v28  ;;  %v21489_v28 = vpop.permute.xlu1 %18354  ;;  %v18370_v37 = vpop.permute.xlu0 %18369 }
 0x376   :  { %v18357_v23 = vunpack.i.h.bf16 %v21489_v28  ;;  %v18356_v62 = vunpack.i.l.bf16 %v21489_v28  ;;  %v18372_v58 = vunpack.i.h.bf16 %v18370_v37  ;;  %v18371_v51 = vunpack.i.l.bf16 %v18370_v37 }
 0x378   :  { %15715 = vmatmul.mubr.msk.f32.vlgmr.msra.gmra.mrb[24].mxu1 %vm165_vm0, %v7796_v8  ;;  %v16568_v8 = vpack.c.bf16 %v8557_v26, %v8554_v53  ;;  %v8563_v49 = vsel %vm1359_vm5, %v18356_v62, %v18357_v23 }
 0x379   :  { %16539 = vmatpush1.bf16.msra.mxu1 %v16538_v40  ;;  %15717 = vmatprep.mubr.msk.f32.mxu1 %vm165_vm0, %v7797_v4  ;;  %v18365_v16 = vpop.permute.xlu1 %18364  ;;  %v18352_v4 = vunpack.i.h.bf16 %v21483_v35  ;;  %v21514_v61 = vpop.permute.xlu0 %18379  ;;  %v8515_v35 = vld [vmem:[#allocation7 + $0xb0] sm:$0xff] }
 0x37a   :  { %16541 = vmatprep.subr.bf16.mxu1 %v16540_v22  ;;  %v18367_v36 = vunpack.i.h.bf16 %v18365_v16  ;;  %v18366_v10 = vunpack.i.l.bf16 %v18365_v16  ;;  %v18382_v25 = vunpack.i.h.bf16 %v21514_v61  ;;  %v18381_v20 = vunpack.i.l.bf16 %v21514_v61 }
 0x37b   :  { %v8560_v47 = vsel %vm1359_vm5, %v18351_v6, %v18352_v4 }
 0x37c   :  { %15718 = vmatmul.mubr.msk.f32.gmra.mrb[26].mxu1 %vm165_vm0, %v7798_v29  ;;  %v18362_v29 = vunpack.i.h.bf16 %v18360_v50  ;;  %v16572_v40 = vpack.c.bf16 %v8563_v49, %v8560_v47  ;;  %v8555_v22 = vsel %vm1359_vm5, %v18337_v1, %v18366_v10  ;;  %v8558_v63 = vsel %vm1359_vm5, %v18342_v48, %v18367_v36 }
 0x37d   :  { %16543 = vmatpush1.bf16.msra.mxu1 %v16542_v57  ;;  %8189 = vmatprep.mubr.f32.mxu1 %v23646_v52  ;;  %v21507_v46 = vpop.permute.xlu1 %18374  ;;  %v21525_v30 = vpop.permute.xlu0 %18389  ;;  %v8815_v18 = vsel %vm1619_vm6, %v18381_v20, %v18382_v25 }
 0x37e   :  { %16545 = vmatprep.subr.bf16.mxu1 %v16544_v12  ;;  %v8562_v14 = vsel %vm1359_vm5, %v18362_v29, %v18356_v62  ;;  %v18377_v34 = vunpack.i.h.bf16 %v21507_v46  ;;  %v18376_v60 = vunpack.i.l.bf16 %v21507_v46  ;;  %v18392_v1 = vunpack.i.h.bf16 %v21525_v30 }
 0x37f   :  { %v16574_v24 = vpack.c.bf16 %v8562_v14, %v8559_v42  ;;  %v18391_v41 = vunpack.i.l.bf16 %v21525_v30  ;;  %v8775_v14 = vld [vmem:[#allocation7 + $0xc0] sm:$0xff] }
 0x380   :  { %14668 = vmatmul.mubr.msk.f32.vlgmr.msra.gmra.mrb[16].mxu1 %vm165_vm0, %v8053_v56  ;;  %v8812_v13 = vsel %vm1619_vm6, %v18376_v60, %v18377_v34 }
 0x381   :  { %16547 = vmatpush3.bf16.msra.mxu1 %v16544_v12  ;;  %8195 = vmatprep.mubr.f32.mxu1 %v23646_v52  ;;  %v18385_v5 = vpop.permute.xlu1 %18384  ;;  %v16576_v12 = vpack.c.bf16 %v8558_v63, %v8555_v22  ;;  %v8818_v37 = vsel %vm1619_vm6, %v18391_v41, %v18392_v1  ;;  %v8776_v22 = vld [vmem:[#allocation7 + $0xc8] sm:$0xff] }
 0x382   :  { %16549 = vmatprep.subr.bf16.mxu1 %v16548_v59  ;;  %v18386_v28 = vunpack.i.l.bf16 %v18385_v5 }
 0x384   :  { %14669 = vmatmul.mubr.msk.f32.gmra.mrb[18].mxu1 %vm165_vm0, %v8054_v33  ;;  %v8811_v53 = vsel %vm1619_vm6, %v18386_v28, %v18376_v60 }
 0x385   :  { %16551 = vmatpush3.bf16.msra.mxu1 %v16548_v59  ;;  %8201 = vmatprep.mubr.f32.mxu1 %v23646_v52  ;;  %v21533_v57 = vpop.permute.xlu1 %18394  ;;  %v8564_v59 = vsel %vm1359_vm5, %v18357_v23, %v18372_v58 }
 0x386   :  { %16553 = vmatprep.subr.bf16.mxu1 %v16552_v39  ;;  %v8513_v39 = vld [vmem:[#allocation7 + $0xa0] sm:$0xff]  ;;  %v18397_v48 = vunpack.i.h.bf16 %v21533_v57  ;;  %v18396_v7 = vunpack.i.l.bf16 %v21533_v57  ;;  %v8777_v57 = vld [vmem:[#allocation7 + $0xd0] sm:$0xff] }
 0x388   :  { %14670 = vmatmul.mubr.msk.f32.gmra.mrb[20].mxu1 %vm165_vm0, %v8055_v17 }
 0x389   :  { %8207 = vmatprep.mubr.f32.mxu1 %v23646_v52 }
 0x38c   :  { %14671 = vmatmul.mubr.msk.f32.gmra.mrb[22].mxu1 %vm165_vm0, %v8056_v31 }
 0x38d   :  { %15728 = vmatprep.mubr.msk.f32.mxu1 %vm165_vm0, %v8053_v56  ;;  %v8561_v56 = vsel %vm1359_vm5, %v18352_v4, %v18371_v51 }
 0x390   :  { %15729 = vmatmul.mubr.msk.f32.vlgmr.msra.gmra.mrb[24].mxu1 %vm165_vm0, %v8054_v33  ;;  %v18400_v33 = vpop.permute.xlu0 %18399 }
 0x391   :  { %16555 = vmatpush1.bf16.msra.mxu1 %v16554_v9  ;;  %15731 = vmatprep.mubr.msk.f32.mxu1 %vm165_vm0, %v8055_v17  ;;  %v16580_v17 = vpack.c.bf16 %v8564_v59, %v8561_v56  ;;  %v16584_v9 = vpack.c.bf16 %v8815_v18, %v8812_v13  ;;  %v18402_v26 = vunpack.i.h.bf16 %v18400_v33  ;;  %v18401_v16 = vunpack.i.l.bf16 %v18400_v33 }
 0x392   :  { %16557 = vmatprep.subr.bf16.mxu1 %v16556_v32 }
 0x393   :  { %v8817_v46 = vsel %vm1619_vm6, %v18401_v16, %v18391_v41  ;;  %v8820_v4 = vsel %vm1619_vm6, %v18402_v26, %v18396_v7 }
 0x394   :  { %15732 = vmatmul.mubr.msk.f32.gmra.mrb[26].mxu1 %vm165_vm0, %v8056_v31  ;;  %v18405_v31 = vpop.permute.xlu1 %18404  ;;  %v18410_v32 = vpop.permute.xlu0 %18409  ;;  %v16590_v0 = vpack.c.bf16 %v8820_v4, %v8817_v46 }
 0x395   :  { %16559 = vmatpush1.bf16.msra.mxu1 %v16558_v21  ;;  %8391 = vmatprep.mubr.f32.mxu1 %v23646_v52  ;;  %v18387_v21 = vunpack.i.h.bf16 %v18385_v5  ;;  %v18412_v23 = vunpack.i.h.bf16 %v18410_v32  ;;  %v18411_v62 = vunpack.i.l.bf16 %v18410_v32 }
 0x396   :  { %16561 = vmatprep.subr.bf16.mxu1 %v16560_v55 }
 0x397   :  { %v8819_v5 = vsel %vm1619_vm6, %v18392_v1, %v18411_v62 }
 0x398   :  { %14676 = vmatmul.mubr.msk.f32.vlgmr.msra.gmra.mrb[16].mxu1 %vm165_vm0, %v8311_v38  ;;  %v21554_v50 = vpop.permute.xlu0 %18419 }
 0x399   :  { %8397 = vmatprep.mubr.f32.mxu1 %v23646_v52  ;;  %16563 = vmatpush3.bf16.msra.mxu1 %v16560_v55  ;;  %v21547_v55 = vpop.permute.xlu1 %18414  ;;  %v18422_v47 = vunpack.i.h.bf16 %v21554_v50  ;;  %v18421_v49 = vunpack.i.l.bf16 %v21554_v50 }
 0x39a   :  { %16565 = vmatprep.subr.bf16.mxu1 %v16564_v54  ;;  %v18417_v29 = vunpack.i.h.bf16 %v21547_v55  ;;  %v18416_v3 = vunpack.i.l.bf16 %v21547_v55  ;;  %v9033_v55 = vld [vmem:[#allocation7 + $0xe0] sm:$0xff] }
 0x39b   :  { %v9073_v51 = vsel %vm1879_vm7, %v18421_v49, %v18422_v47 }
 0x39c   :  { %14677 = vmatmul.mubr.msk.f32.gmra.mrb[18].mxu1 %vm165_vm0, %v8312_v44  ;;  %v21565_v61 = vpop.permute.xlu0 %18429  ;;  %v9070_v58 = vsel %vm1879_vm7, %v18416_v3, %v18417_v29 }
 0x39d   :  { %8403 = vmatprep.mubr.f32.mxu1 %v23646_v52  ;;  %16567 = vmatpush3.bf16.msra.mxu1 %v16564_v54  ;;  %v8814_v54 = vsel %vm1619_vm6, %v18387_v21, %v18381_v20  ;;  %v18425_v45 = vpop.permute.xlu1 %18424  ;;  %v16600_v63 = vpack.c.bf16 %v9073_v51, %v9070_v58  ;;  %v18431_v20 = vunpack.i.l.bf16 %v21565_v61 }
 0x39e   :  { %16569 = vmatprep.subr.bf16.mxu1 %v16568_v8  ;;  %v18406_v8 = vunpack.i.l.bf16 %v18405_v31  ;;  %v16586_v19 = vpack.c.bf16 %v8814_v54, %v8811_v53  ;;  %v18426_v60 = vunpack.i.l.bf16 %v18425_v45 }
 0x3a0   :  { %14678 = vmatmul.mubr.msk.f32.gmra.mrb[20].mxu1 %vm165_vm0, %v8313_v15  ;;  %v18440_v42 = vpop.permute.xlu0 %18439 }
 0x3a1   :  { %8409 = vmatprep.mubr.f32.mxu1 %v23646_v52  ;;  %v21573_v36 = vpop.permute.xlu1 %18434  ;;  %v18441_v13 = vunpack.i.l.bf16 %v18440_v42 }
 0x3a2   :  { %v18437_v56 = vunpack.i.h.bf16 %v21573_v36  ;;  %v18436_v59 = vunpack.i.l.bf16 %v21573_v36  ;;  %v9035_v36 = vld [vmem:[#allocation7 + $0xf0] sm:$0xff] }
 0x3a3   :  { %v9075_v21 = vsel %vm1879_vm7, %v18441_v13, %v18431_v20 }
 0x3a4   :  { %14679 = vmatmul.mubr.msk.f32.gmra.mrb[22].mxu1 %vm165_vm0, %v8314_v2 }
 0x3a5   :  { %15742 = vmatprep.mubr.msk.f32.mxu1 %vm165_vm0, %v8311_v38  ;;  %v8516_v38 = vld [vmem:[#allocation7 + $0xb8] sm:$0xff]  ;;  %v18445_v30 = vpop.permute.xlu1 %18444 }
 0x3a6   :  { %v18447_v1 = vunpack.i.h.bf16 %v18445_v30  ;;  %v18446_v41 = vunpack.i.l.bf16 %v18445_v30  ;;  %v9036_v30 = vld [vmem:[#allocation7 + $0xf8] sm:$0xff] }
 0x3a8   :  { %15743 = vmatmul.mubr.msk.f32.vlgmr.msra.gmra.mrb[24].mxu1 %vm165_vm0, %v8312_v44  ;;  %v18407_v44 = vunpack.i.h.bf16 %v18405_v31  ;;  %v8778_v31 = vld [vmem:[#allocation7 + $0xd8] sm:$0xff]  ;;  %v9071_v53 = vsel %vm1879_vm7, %v18417_v29, %v18446_v41  ;;  %v9074_v26 = vsel %vm1879_vm7, %v18422_v47, %v18447_v1 }
 0x3a9   :  { %16571 = vmatpush1.bf16.msra.mxu1 %v16570_v11  ;;  %15745 = vmatprep.mubr.msk.f32.mxu1 %vm165_vm0, %v8313_v15  ;;  %v8821_v15 = vsel %vm1619_vm6, %v18396_v7, %v18397_v48  ;;  %v8822_v11 = vsel %vm1619_vm6, %v18397_v48, %v18412_v23 }
 0x3aa   :  { %16573 = vmatprep.subr.bf16.mxu1 %v16572_v40  ;;  %v16588_v6 = vpack.c.bf16 %v8821_v15, %v8818_v37  ;;  %v8816_v43 = vsel %vm1619_vm6, %v18382_v25, %v18407_v44  ;;  %v16596_v40 = vpack.c.bf16 %v8822_v11, %v8819_v5  ;;  %v18432_v25 = vunpack.i.h.bf16 %v21565_v61 }
 0x3ac   :  { %15746 = vmatmul.mubr.msk.f32.gmra.mrb[26].mxu1 %vm165_vm0, %v8314_v2  ;;  %v8813_v2 = vsel %vm1619_vm6, %v18377_v34, %v18406_v8  ;;  %v18427_v34 = vunpack.i.h.bf16 %v18425_v45  ;;  %v16608_v45 = vpack.c.bf16 %v9074_v26, %v9071_v53  ;;  %v21681_v53 = vld [vmem:[#allocation7 + $0x100] sm:$0xff] }
 0x3ad   :  { %16575 = vmatpush1.bf16.msra.mxu1 %v16574_v24  ;;  %8653 = vmatprep.mubr.f32.mxu1 %v23646_v52  ;;  %v16592_v10 = vpack.c.bf16 %v8816_v43, %v8813_v2  ;;  %v18450_v24 = vpop.permute.xlu0 %18449  ;;  %v9034_v2 = vld [vmem:[#allocation7 + $0xe8] sm:$0xff] }
 0x3ae   :  { %16577 = vmatprep.subr.bf16.mxu1 %v16576_v12  ;;  %v9072_v33 = vsel %vm1879_vm7, %v18427_v34, %v18421_v49  ;;  %v18451_v54 = vunpack.i.l.bf16 %v18450_v24 }
 0x3b0   :  { %14684 = vmatmul.mubr.msk.f32.vlgmr.msra.gmra.mrb[16].mxu1 %vm165_vm0, %v8513_v39  ;;  %v9077_v46 = vsel %vm1879_vm7, %v18432_v25, %v18451_v54 }
 0x3b1   :  { %16579 = vmatpush3.bf16.msra.mxu1 %v16576_v12  ;;  %8659 = vmatprep.mubr.f32.mxu1 %v23646_v52  ;;  %v21589_v12 = vpop.permute.xlu1 %18454  ;;  %v21598_v18 = vpop.permute.xlu0 %18459 }
 0x3b2   :  { %16581 = vmatprep.subr.bf16.mxu1 %v16580_v17  ;;  %v18457_v44 = vunpack.i.h.bf16 %v21589_v12  ;;  %v18456_v8 = vunpack.i.l.bf16 %v21589_v12  ;;  %v18462_v37 = vunpack.i.h.bf16 %v21598_v18  ;;  %v18461_v15 = vunpack.i.l.bf16 %v21598_v18 }
 0x3b4   :  { %14685 = vmatmul.mubr.msk.f32.gmra.mrb[18].mxu1 %vm165_vm0, %v8514_v27  ;;  %v9331_v23 = vsel %vm2139_vm8, %v18461_v15, %v18462_v37 }
 0x3b5   :  { %16583 = vmatpush3.bf16.msra.mxu1 %v16580_v17  ;;  %8665 = vmatprep.mubr.f32.mxu1 %v23646_v52  ;;  %v18442_v17 = vunpack.i.h.bf16 %v18440_v42  ;;  %v21603_v32 = vpop.permute.xlu1 %18464  ;;  %v21609_v7 = vpop.permute.xlu0 %18469 }
 0x3b6   :  { %16585 = vmatprep.subr.bf16.mxu1 %v16584_v9  ;;  %v9079_v9 = vsel %vm1879_vm7, %v18436_v59, %v18437_v56  ;;  %v18467_v5 = vunpack.i.h.bf16 %v21603_v32  ;;  %v18466_v11 = vunpack.i.l.bf16 %v21603_v32  ;;  %v18472_v42 = vunpack.i.h.bf16 %v21609_v7 }
 0x3b7   :  { %v9078_v28 = vsel %vm1879_vm7, %v18442_v17, %v18436_v59 }
 0x3b8   :  { %14686 = vmatmul.mubr.msk.f32.gmra.mrb[20].mxu1 %vm165_vm0, %v8515_v35  ;;  %v16606_v50 = vpack.c.bf16 %v9078_v28, %v9075_v21  ;;  %v9330_v34 = vsel %vm2139_vm8, %v18467_v5, %v18461_v15 }
 0x3b9   :  { %8671 = vmatprep.mubr.f32.mxu1 %v23646_v52  ;;  %v21617_v16 = vpop.permute.xlu1 %18474 }
 0x3ba   :  { %v18476_v58 = vunpack.i.l.bf16 %v21617_v16 }
 0x3bc   :  { %14687 = vmatmul.mubr.msk.f32.gmra.mrb[22].mxu1 %vm165_vm0, %v8516_v38 }
 0x3bd   :  { %15756 = vmatprep.mubr.msk.f32.mxu1 %vm165_vm0, %v8513_v39  ;;  %v9069_v39 = vsel %vm1879_vm7, %v18426_v60, %v18416_v3  ;;  %v21633_v62 = vpop.permute.xlu1 %4780  ;;  %v9327_v60 = vsel %vm2139_vm8, %v18466_v11, %v18456_v8 }
 0x3c0   :  { %15757 = vmatmul.mubr.msk.f32.vlgmr.msra.gmra.mrb[24].mxu1 %vm165_vm0, %v8514_v27  ;;  %v9076_v27 = vsel %vm1879_vm7, %v18431_v20, %v18432_v25 }
 0x3c1   :  { %16587 = vmatpush1.bf16.msra.mxu1 %v16586_v19  ;;  %15759 = vmatprep.mubr.msk.f32.mxu1 %vm165_vm0, %v8515_v35  ;;  %v16602_v35 = vpack.c.bf16 %v9072_v33, %v9069_v39  ;;  %v16604_v48 = vpack.c.bf16 %v9079_v9, %v9076_v27  ;;  %v18480_v19 = vpop.permute.xlu0 %18479 }
 0x3c2   :  { %16589 = vmatprep.subr.bf16.mxu1 %v16588_v6  ;;  %v9328_v6 = vsel %vm2139_vm8, %v18456_v8, %v18457_v44  ;;  %v18481_v25 = vunpack.i.l.bf16 %v18480_v19 }
 0x3c4   :  { %15760 = vmatmul.mubr.msk.f32.gmra.mrb[26].mxu1 %vm165_vm0, %v8516_v38  ;;  %v18452_v38 = vunpack.i.h.bf16 %v18450_v24 }
 0x3c5   :  { %16591 = vmatpush1.bf16.msra.mxu1 %v16590_v0  ;;  %8911 = vmatprep.mubr.f32.mxu1 %v23646_v52  ;;  %v16616_v0 = vpack.c.bf16 %v9331_v23, %v9328_v6  ;;  %v21637_v29 = vpop.permute.xlu0 %4785  ;;  %v23690_v23 = vld [vmem:[#allocation15_spill] sm:$0xff] }
 0x3c6   :  { %16593 = vmatprep.subr.bf16.mxu1 %v16592_v10  ;;  %v9080_v4 = vsel %vm1879_vm7, %v18437_v56, %v18452_v38 }
 0x3c7   :  { %v16612_v61 = vpack.c.bf16 %v9080_v4, %v9077_v46  ;;  %v21691_v46 = vld [vmem:[#allocation7 + $0x108] sm:$0xff] }
 0x3c8   :  { %14692 = vmatmul.mubr.msk.f32.vlgmr.msra.gmra.mrb[16].mxu1 %vm165_vm0, %v8775_v14 }
 0x3c9   :  { %16595 = vmatpush3.bf16.msra.mxu1 %v16592_v10  ;;  %8917 = vmatprep.mubr.f32.mxu1 %v23646_v52  ;;  %v21641_v10 = vpop.permute.xlu1 %4790  ;;  %v21652_v51 = vpop.permute.xlu0 %4795 }
 0x3ca   :  { %16597 = vmatprep.subr.bf16.mxu1 %v16596_v40 }
 0x3cc   :  { %14693 = vmatmul.mubr.msk.f32.gmra.mrb[18].mxu1 %vm165_vm0, %v8776_v22 }
 0x3cd   :  { %16599 = vmatpush3.bf16.msra.mxu1 %v16596_v40  ;;  %8923 = vmatprep.mubr.f32.mxu1 %v23646_v52  ;;  %v18477_v40 = vunpack.i.h.bf16 %v21617_v16  ;;  %v18490_v39 = vpop.permute.xlu0 %18489 }
 0x3ce   :  { %16601 = vmatprep.subr.bf16.mxu1 %v16600_v63  ;;  %v18491_v21 = vunpack.i.l.bf16 %v18490_v39 }
 0x3cf   :  { %v9337_v33 = vsel %vm2139_vm8, %v18476_v58, %v18477_v40 }
 0x3d0   :  { %14694 = vmatmul.mubr.msk.f32.gmra.mrb[20].mxu1 %vm165_vm0, %v8777_v57  ;;  %v9335_v12 = vsel %vm2139_vm8, %v18472_v42, %v18491_v21 }
 0x3d1   :  { %8929 = vmatprep.mubr.f32.mxu1 %v23646_v52 }
 0x3d4   :  { %14695 = vmatmul.mubr.msk.f32.gmra.mrb[22].mxu1 %vm165_vm0, %v8778_v31 }
 0x3d5   :  { %15770 = vmatprep.mubr.msk.f32.mxu1 %vm165_vm0, %v8775_v14  ;;  %v18471_v14 = vunpack.i.l.bf16 %v21609_v7 }
 0x3d7   :  { %v9334_v59 = vsel %vm2139_vm8, %v18471_v14, %v18472_v42  ;;  %v9333_v27 = vsel %vm2139_vm8, %v18481_v25, %v18471_v14  ;;  %v9293_v14 = vld [vmem:[#allocation7 + $0x110] sm:$0xff] }
 0x3d8   :  { %15771 = vmatmul.mubr.msk.f32.vlgmr.msra.gmra.mrb[24].mxu1 %vm165_vm0, %v8776_v22  ;;  %v18485_v22 = vpop.permute.xlu1 %18484  ;;  %v16620_v32 = vpack.c.bf16 %v9337_v33, %v9334_v59  ;;  %v9294_v33 = vld [vmem:[#allocation7 + $0x118] sm:$0xff] }
 0x3d9   :  { %16603 = vmatpush1.bf16.msra.mxu1 %v16602_v35  ;;  %15773 = vmatprep.mubr.msk.f32.mxu1 %vm165_vm0, %v8777_v57  ;;  %v18482_v57 = vunpack.i.h.bf16 %v18480_v19  ;;  %v18487_v20 = vunpack.i.h.bf16 %v18485_v22  ;;  %v18486_v56 = vunpack.i.l.bf16 %v18485_v22  ;;  %v18492_v35 = vunpack.i.h.bf16 %v18490_v39 }
 0x3da   :  { %16605 = vmatprep.subr.bf16.mxu1 %v16604_v48 }
 0x3db   :  { %v9336_v9 = vsel %vm2139_vm8, %v18482_v57, %v18476_v58  ;;  %v9329_v28 = vsel %vm2139_vm8, %v18457_v44, %v18486_v56  ;;  %v9332_v1 = vsel %vm2139_vm8, %v18462_v37, %v18487_v20  ;;  %v9338_v18 = vsel %vm2139_vm8, %v18477_v40, %v18492_v35 }
 0x3dc   :  { %15774 = vmatmul.mubr.msk.f32.gmra.mrb[26].mxu1 %vm165_vm0, %v8778_v31  ;;  %v16618_v31 = vpack.c.bf16 %v9330_v34, %v9327_v60  ;;  %v16622_v48 = vpack.c.bf16 %v9336_v9, %v9333_v27  ;;  %v16624_v38 = vpack.c.bf16 %v9332_v1, %v9329_v28 }
 0x3dd   :  { %16607 = vmatpush1.bf16.msra.mxu1 %v16606_v50  ;;  %9169 = vmatprep.mubr.f32.mxu1 %v23646_v52 }
 0x3de   :  { %16609 = vmatprep.subr.bf16.mxu1 %v16608_v45 }
 0x3e0   :  { %14700 = vmatmul.mubr.msk.f32.vlgmr.msra.gmra.mrb[16].mxu1 %vm165_vm0, %v9033_v55 }
 0x3e1   :  { %16611 = vmatpush3.bf16.msra.mxu1 %v16608_v45  ;;  %9175 = vmatprep.mubr.f32.mxu1 %v23646_v52  ;;  %v16628_v45 = vpack.c.bf16 %v9338_v18, %v9335_v12 }
 0x3e2   :  { %16613 = vmatprep.subr.bf16.mxu1 %v16612_v61  ;;  %v3406_v43 = vpop.f32.mrb[12].mxu0 }
 0x3e3   :  { %v3408_v3 = vpop.f32.mrb[13].mxu0 }
 0x3e4   :  { %14701 = vmatmul.mubr.msk.f32.gmra.mrb[18].mxu1 %vm165_vm0, %v9034_v2 }
 0x3e5   :  { %16615 = vmatpush3.bf16.msra.mxu1 %v16612_v61  ;;  %9181 = vmatprep.mubr.f32.mxu1 %v23646_v52 }
 0x3e6   :  { %v3412_v47 = vpop.f32.mrb[14].mxu0  ;;  %16617 = vmatprep.subr.bf16.mxu1 %v16616_v0 }
 0x3e7   :  { %v21643_v49 = vpop.f32.mrb[15].mxu0 }
 0x3e8   :  { %14702 = vmatmul.mubr.msk.f32.gmra.mrb[20].mxu1 %vm165_vm0, %v9035_v36 }
 0x3e9   :  { %9187 = vmatprep.mubr.f32.mxu1 %v23646_v52 }
 0x3ea   :  { %v21655_v63 = vpop.f32.mrb[16].mxu0 }
 0x3eb   :  { %v21657_v24 = vpop.f32.mrb[17].mxu0 }
 0x3ec   :  { %14703 = vmatmul.mubr.msk.f32.gmra.mrb[22].mxu1 %vm165_vm0, %v9036_v30 }
 0x3ed   :  { %15784 = vmatprep.mubr.msk.f32.mxu1 %vm165_vm0, %v9033_v55 }
 0x3ee   :  { %v21665_v17 = vpop.f32.mrb[18].mxu0 }
 0x3ef   :  { %v21667_v13 = vpop.f32.mrb[19].mxu0 }
 0x3f0   :  { %15785 = vmatmul.mubr.msk.f32.vlgmr.msra.gmra.mrb[24].mxu1 %vm165_vm0, %v9034_v2 }
 0x3f1   :  { %16619 = vmatpush1.bf16.msra.mxu1 %v16618_v31  ;;  %15787 = vmatprep.mubr.msk.f32.mxu1 %vm165_vm0, %v9035_v36 }
 0x3f2   :  { %16621 = vmatprep.subr.bf16.mxu1 %v16620_v32 }
 0x3f3   :  { %v4653_v41 = vpop.f32.mrb[8].mxu1 }
 0x3f4   :  { %v16924_v7 = vadd.f32 %v4653_v41, %v3406_v43  ;;  %v4655_v50 = vpop.f32.mrb[9].mxu1  ;;  %15788 = vmatmul.mubr.msk.f32.gmra.mrb[26].mxu1 %vm165_vm0, %v9036_v30 }
 0x3f5   :  { %v16925_v54 = vadd.f32 %v4655_v50, %v3408_v3  ;;  %16623 = vmatpush1.bf16.msra.mxu1 %v16622_v48  ;;  %9427 = vmatprep.mubr.f32.mxu1 %v23646_v52  ;;  %v23691_v3 = vld [vmem:[#allocation14_spill] sm:$0xff] }
 0x3f6   :  { %v4798_v26 = vadd.f32 %v16924_v7, %v21633_v62  ;;  %16625 = vmatprep.subr.bf16.mxu1 %v16624_v38 }
 0x3f7   :  { %v4799_v16 = vadd.f32 %v16925_v54, %v21633_v62  ;;  %v4659_v44 = vpop.f32.mrb[10].mxu1 }
 0x3f8   :  { %vm4810_vm1 = vcmp.ge.f32.partialorder %v4798_v26, 0.0  ;;  %v4822_v8 = vmul.f32 0.01, %v4798_v26  ;;  %v16926_v37 = vadd.f32 %v4659_v44, %v3412_v47  ;;  %v4661_v15 = vpop.f32.mrb[11].mxu1  ;;  %14708 = vmatmul.mubr.msk.f32.vlgmr.msra.gmra.mrb[16].mxu1 %vm165_vm0, %v21681_v53  ;;  %v23692_v44 = vld [vmem:[#allocation13_spill] sm:$0xff] }
 0x3f9   :  { %vm4811_vm2 = vcmp.ge.f32.partialorder %v4799_v16, 0.0  ;;  %v4823_v19 = vmul.f32 0.01, %v4799_v16  ;;  %v16927_v55 = vadd.f32 %v4661_v15, %v21643_v49  ;;  %16627 = vmatpush3.bf16.msra.mxu1 %v16624_v38  ;;  %9433 = vmatprep.mubr.f32.mxu1 %v23646_v52 }
 0x3fa   :  { %v4834_v4 = vsel %vm4810_vm1, %v4798_v26, %v4822_v8  ;;  %v4801_v6 = vadd.f32 %v16926_v37, %v21637_v29  ;;  %16629 = vmatprep.subr.bf16.mxu1 %v16628_v45 }
 0x3fb   :  { %v21695_v61 = vmul.f32 %v4834_v4, %v23690_v23  ;;  %v4835_v2 = vsel %vm4811_vm2, %v4799_v16, %v4823_v19  ;;  %v4802_v43 = vadd.f32 %v16927_v55, %v21637_v29  ;;  %v4665_v0 = vpop.f32.mrb[12].mxu1 }
 0x3fc   :  { %v21699_v36 = vmul.f32 %v4835_v2, %v23691_v3  ;;  %vm4813_vm3 = vcmp.ge.f32.partialorder %v4801_v6, 0.0  ;;  %v4825_v47 = vmul.f32 0.01, %v4801_v6  ;;  %v16928_v49 = vadd.f32 %v4665_v0, %v21655_v63  ;;  %v4667_v5 = vpop.f32.mrb[13].mxu1  ;;  %14709 = vmatmul.mubr.msk.f32.gmra.mrb[18].mxu1 %vm165_vm0, %v21691_v46 }
 0x3fd   :  { %vm4814_vm4 = vcmp.ge.f32.partialorder %v4802_v43, 0.0  ;;  %v4826_v11 = vmul.f32 0.01, %v4802_v43  ;;  %v16929_v42 = vadd.f32 %v4667_v5, %v21657_v24  ;;  %16631 = vmatpush3.bf16.msra.mxu1 %v16628_v45  ;;  %9439 = vmatprep.mubr.f32.mxu1 %v23646_v52 }
 0x3fe   :  { %v4837_v40 = vsel %vm4813_vm3, %v4801_v6, %v4825_v47  ;;  %v4804_v58 = vadd.f32 %v16928_v49, %v21641_v10  ;;  %v21709_v30 = vpack.i.bf16 %v21699_v36, %v21695_v61 }
 0x3ff   :  { %v21712_v22 = vmul.f32 %v4837_v40, %v23690_v23  ;;  %v4838_v63 = vsel %vm4814_vm4, %v4802_v43, %v4826_v11  ;;  %v4805_v34 = vadd.f32 %v16929_v42, %v21641_v10  ;;  %v4671_v60 = vpop.f32.mrb[14].mxu1 }
 0x400   :  { %v21716_v24 = vmul.f32 %v4838_v63, %v23691_v3  ;;  %vm4816_vm5 = vcmp.ge.f32.partialorder %v4804_v58, 0.0  ;;  %v4828_v57 = vmul.f32 0.01, %v4804_v58  ;;  %v16930_v25 = vadd.f32 %v4671_v60, %v21665_v17  ;;  %14710 = vmatmul.mubr.msk.f32.gmra.mrb[20].mxu1 %vm165_vm0, %v9293_v14  ;;  %18499 = vrot.lane.b32.xlu1 %v21709_v30, %s19561_s20  ;;  %v4673_v20 = vpop.f32.mrb[15].mxu1 }
 0x401   :  { %vm4817_vm6 = vcmp.ge.f32.partialorder %v4805_v34, 0.0  ;;  %v4829_v56 = vmul.f32 0.01, %v4805_v34  ;;  %v16931_v59 = vadd.f32 %v4673_v20, %v21667_v13  ;;  %9445 = vmatprep.mubr.f32.mxu1 %v23646_v52  ;;  %v21779_v47 = vpack.i.bf16 %v21712_v22, %v21695_v61  ;;  %v9552_v20 = vld [vmem:[%s23566_s2 + $0x18] sm:$0xff] }
 0x402   :  { %v4840_v39 = vsel %vm4816_vm5, %v4804_v58, %v4828_v57  ;;  %v4807_v31 = vadd.f32 %v16930_v25, %v21652_v51  ;;  %v21727_v27 = vpack.i.bf16 %v21716_v24, %v21712_v22  ;;  %v16410_v40 = vpack.c.bf16 %v21712_v22, %v21695_v61  ;;  %v9550_v57 = vld [vmem:[%s23566_s2 + $0x8] sm:$0xff]  ;;  %v9551_v25 = vld [vmem:[%s23566_s2 + $0x10] sm:$0xff] }
 0x403   :  { %v21730_v17 = vmul.f32 %v4840_v39, %v23690_v23  ;;  %v4841_v9 = vsel %vm4817_vm6, %v4805_v34, %v4829_v56  ;;  %v4808_v32 = vadd.f32 %v16931_v59, %v21652_v51  ;;  %v15548_v35 = vpop.f32.mrb[4].mxu1  ;;  %v18495_v56 = vpop.permute.xlu1 %18494  ;;  %vm4948_vm5 = vcmask 539648  }
 0x404   :  { %v21734_v21 = vmul.f32 %v4841_v9, %v23691_v3  ;;  %vm4819_vm7 = vcmp.ge.f32.partialorder %v4807_v31, 0.0  ;;  %v4831_v13 = vmul.f32 0.01, %v4807_v31  ;;  %v4803_v28 = vadd.f32 %v15548_v35, %v21637_v29  ;;  %14711 = vmatmul.mubr.msk.f32.gmra.mrb[22].mxu1 %vm165_vm0, %v9294_v33  ;;  %18504 = vrot.lane.b32.xlu0 %v21727_v27, %s19561_s20  ;;  %v4742_v1 = vpop.f32.mrb[5].mxu1 }
 0x405   :  { %vm4820_vm8 = vcmp.ge.f32.partialorder %v4808_v32, 0.0  ;;  %v4832_v41 = vmul.f32 0.01, %v4808_v32  ;;  %v4800_v48 = vadd.f32 %v21633_v62, %v4742_v1  ;;  %15798 = vmatprep.mubr.msk.f32.mxu1 %vm165_vm0, %v21681_v53  ;;  %v18496_v39 = vunpack.i.l.bf16 %v18495_v56 }
 0x406   :  { %v4843_v7 = vsel %vm4819_vm7, %v4807_v31, %v4831_v13  ;;  %vm4815_vm1 = vcmp.ge.f32.partialorder %v4803_v28, 0.0  ;;  %v4827_v50 = vmul.f32 0.01, %v4803_v28  ;;  %v21745_v38 = vpack.i.bf16 %v21734_v21, %v21730_v17 }
 0x407   :  { %v21748_v29 = vmul.f32 %v4843_v7, %v23690_v23  ;;  %v4844_v54 = vsel %vm4820_vm8, %v4808_v32, %v4832_v41  ;;  %vm4812_vm2 = vcmp.ge.f32.partialorder %v4800_v48, 0.0  ;;  %v4824_v12 = vmul.f32 0.01, %v4800_v48  ;;  %v15551_v18 = vpop.f32.mrb[6].mxu1 }
 0x408   :  { %v21751_v26 = vmul.f32 %v4844_v54, %v23691_v3  ;;  %v4839_v62 = vsel %vm4815_vm1, %v4803_v28, %v4827_v50  ;;  %v4809_v53 = vadd.f32 %v15551_v18, %v21652_v51  ;;  %15799 = vmatmul.mubr.msk.f32.vlgmr.msra.gmra.mrb[24].mxu1 %vm165_vm0, %v21691_v46  ;;  %18509 = vrot.lane.b32.xlu0 %v21745_v38, %s19561_s20  ;;  %v4752_v16 = vpop.f32.mrb[7].mxu1  ;;  %vm5191_vm6 = vcmask 564224  }
 0x409   :  { %v4851_v8 = vmul.f32 %v4839_v62, %v23692_v44  ;;  %v4836_v37 = vsel %vm4812_vm2, %v4800_v48, %v4824_v12  ;;  %v4806_v15 = vadd.f32 %v21641_v10, %v4752_v16  ;;  %15801 = vmatprep.mubr.msk.f32.mxu1 %vm165_vm0, %v9293_v14  ;;  %v21790_v42 = vpack.i.bf16 %v21748_v29, %v21730_v17 }
 0x40a   :  { %v4848_v45 = vmul.f32 %v4836_v37, %v23692_v44  ;;  %vm4821_vm3 = vcmp.ge.f32.partialorder %v4809_v53, 0.0  ;;  %v4833_v19 = vmul.f32 0.01, %v4809_v53  ;;  %v18513_v51 = vpack.i.bf16 %v21751_v26, %v21748_v29 }
 0x40b   :  { %vm4818_vm4 = vcmp.ge.f32.partialorder %v4806_v15, 0.0  ;;  %v4830_v55 = vmul.f32 0.01, %v4806_v15  ;;  %v21775_v0 = vpack.i.bf16 %v4851_v8, %v21716_v24  ;;  %v16408_v14 = vpack.c.bf16 %v21716_v24, %v21699_v36 }
 0x40c   :  { %v4845_v46 = vsel %vm4821_vm3, %v4809_v53, %v4833_v19  ;;  %15802 = vmatmul.mubr.msk.f32.gmra.mrb[26].mxu1 %vm165_vm0, %v9294_v33  ;;  %18519 = vrot.lane.b32.xlu0 %v23646_v52, %s19561_s20  ;;  %v18523_v4 = vpack.i.bf16 %v4851_v8, %v4848_v45  ;;  %v21772_v43 = vpack.i.bf16 %v4848_v45, %v21699_v36  ;;  %v18497_v33 = vunpack.i.h.bf16 %v18495_v56 }
 0x40d   :  { %v4857_v10 = vmul.f32 %v4845_v46, %v23692_v44  ;;  %v4842_v6 = vsel %vm4818_vm4, %v4806_v15, %v4830_v55  ;;  %18514 = vrot.lane.b32.xlu1 %v18513_v51, %s19561_s20  ;;  %12199 = vmatprep.mubr.f32.mxu1 %v23646_v52  ;;  %v16412_v58 = vpack.c.bf16 %v21751_v26, %v21734_v21  ;;  %vm5439_vm7 = vcmask 515072  }
 0x40e   :  { %v4854_v2 = vmul.f32 %v4842_v6, %v23692_v44  ;;  %v16414_v63 = vpack.c.bf16 %v21748_v29, %v21730_v17  ;;  %v21805_v34 = vpack.c.bf16 %v4851_v8, %v4848_v45  ;;  %vm23613_vm8 = vcmask 23552  }
 0x40f   :  { %v21782_v49 = vpack.i.bf16 %v4857_v10, %v21751_v26 }
 0x410   :  { %v18533_v5 = vpack.i.bf16 %v4857_v10, %v4854_v2  ;;  %v21786_v11 = vpack.i.bf16 %v4854_v2, %v21734_v21  ;;  %v21807_v60 = vpack.c.bf16 %v4857_v10, %v4854_v2  ;;  %v22139_v21 = vld [vmem:[#allocation7 + $0x2c0] sm:$0xff] }
 0x411   :  { %18524 = vrot.lane.b32.xlu1 %v18523_v4, %s19561_s20 }
 0x412   :  { %18534 = vrot.lane.b32.xlu0 %v18533_v5, %s19561_s20 }
 0x415   :  { %18529 = vrot.lane.b32.xlu1 %v21709_v30, %s19562_s21 }
 0x416   :  { %18539 = vrot.lane.b32.xlu0 %v21727_v27, %s19562_s21 }
 0x419   :  { %18544 = vrot.lane.b32.xlu1 %v23646_v52, %s19562_s21 }
 0x41a   :  { %18549 = vrot.lane.b32.xlu0 %v21745_v38, %s19562_s21 }
 0x41d   :  { %18554 = vrot.lane.b32.xlu1 %v18513_v51, %s19562_s21 }
 0x41e   :  { %18559 = vrot.lane.b32.xlu0 %v23646_v52, %s19562_s21 }
 0x421   :  { %18564 = vrot.lane.b32.xlu1 %v18523_v4, %s19562_s21 }
 0x422   :  { %18574 = vrot.lane.b32.xlu0 %v18533_v5, %s19562_s21 }
 0x425   :  { %18569 = vrot.lane.b32.xlu1 %v21709_v30, %s19563_s22 }
 0x426   :  { %18579 = vrot.lane.b32.xlu0 %v21727_v27, %s19563_s22 }
 0x429   :  { %18584 = vrot.lane.b32.xlu1 %v23646_v52, %s19563_s22 }
 0x42a   :  { %18589 = vrot.lane.b32.xlu0 %v21745_v38, %s19563_s22 }
 0x42d   :  { %18594 = vrot.lane.b32.xlu1 %v18513_v51, %s19563_s22 }
 0x42e   :  { %18599 = vrot.lane.b32.xlu0 %v23646_v52, %s19563_s22 }
 0x431   :  { %18604 = vrot.lane.b32.xlu1 %v18523_v4, %s19563_s22 }
 0x432   :  { %18614 = vrot.lane.b32.xlu0 %v18533_v5, %s19563_s22 }
 0x435   :  { %18609 = vrot.lane.b32.xlu1 %v21709_v30, %s19564_s23  ;;  %v9549_v30 = vld [vmem:[%s23566_s2] sm:$0xff] }
 0x436   :  { %18619 = vrot.lane.b32.xlu0 %v21727_v27, %s19564_s23 }
 0x439   :  { %18624 = vrot.lane.b32.xlu1 %v23646_v52, %s19564_s23 }
 0x43a   :  { %18629 = vrot.lane.b32.xlu0 %v21745_v38, %s19564_s23 }
 0x43d   :  { %18634 = vrot.lane.b32.xlu1 %v18513_v51, %s19564_s23 }
 0x43e   :  { %18639 = vrot.lane.b32.xlu0 %v23646_v52, %s19564_s23 }
 0x441   :  { %18644 = vrot.lane.b32.xlu1 %v18523_v4, %s19564_s23 }
 0x442   :  { %18649 = vrot.lane.b32.xlu0 %v18533_v5, %s19564_s23 }
 0x445   :  { %18654 = vrot.lane.b32.xlu1 %v21772_v43, %s19565_s24 }
 0x446   :  { %18659 = vrot.lane.b32.xlu0 %v21775_v0, %s19565_s24 }
 0x449   :  { %18664 = vrot.lane.b32.xlu1 %v21779_v47, %s19565_s24 }
 0x44a   :  { %18674 = vrot.lane.b32.xlu0 %v21786_v11, %s19565_s24 }
 0x44d   :  { %18669 = vrot.lane.b32.xlu1 %v21782_v49, %s19565_s24 }
 0x44e   :  { %18679 = vrot.lane.b32.xlu0 %v21790_v42, %s19565_s24 }
 0x451   :  { %18684 = vrot.lane.b32.xlu1 %v23646_v52, %s19565_s24 }
 0x452   :  { %18689 = vrot.lane.b32.xlu0 %v23646_v52, %s19565_s24 }
 0x455   :  { %18694 = vrot.lane.b32.xlu1 %v21772_v43, %s19566_s25 }
 0x456   :  { %18699 = vrot.lane.b32.xlu0 %v21775_v0, %s19566_s25 }
 0x459   :  { %9555 = vperm.xlu1 %17852, %v9549_v30  }
 0x45a   :  { %9560 = vperm.xlu0 %17851, %v9550_v57  }
 0x45d   :  { %18704 = vrot.lane.b32.xlu1 %v21779_v47, %s19566_s25 }
 0x45e   :  { %9565 = vperm.xlu0 %17851, %v9551_v25  }
 0x461   :  { %18709 = vrot.lane.b32.xlu1 %v21782_v49, %s19566_s25 }
 0x462   :  { %18714 = vrot.lane.b32.xlu0 %v21786_v11, %s19566_s25 }
 0x465   :  { %9570 = vperm.xlu1 %17852, %v9552_v20  }
 0x466   :  { %18719 = vrot.lane.b32.xlu0 %v21790_v42, %s19566_s25 }
 0x469   :  { %18724 = vrot.lane.b32.xlu1 %v23646_v52, %s19566_s25 }
 0x46a   :  { %18729 = vrot.lane.b32.xlu0 %v23646_v52, %s19566_s25 }
 0x46d   :  { %18734 = vrot.lane.b32.xlu1 %v21772_v43, %s19567_s14 }
 0x46e   :  { %18739 = vrot.lane.b32.xlu0 %v21775_v0, %s19567_s14 }
 0x471   :  { %18744 = vrot.lane.b32.xlu1 %v21779_v47, %s19567_s14 }
 0x472   :  { %v18500_v59 = vpop.permute.xlu1 %18499  ;;  %18754 = vrot.lane.b32.xlu0 %v21786_v11, %s19567_s14 }
 0x473   :  { %v18502_v31 = vunpack.i.h.bf16 %v18500_v59  ;;  %v18501_v27 = vunpack.i.l.bf16 %v18500_v59 }
 0x475   :  { %18749 = vrot.lane.b32.xlu1 %v21782_v49, %s19567_s14  ;;  %v4949_v13 = vsel %vm4948_vm5, %v18496_v39, %v18501_v27  ;;  %v4950_v1 = vsel %vm4948_vm5, %v18501_v27, %v18502_v31  ;;  %v4897_v39 = vld [vmem:[#allocation7 + $0x268] sm:$0xff] }
 0x476   :  { %v18505_v9 = vpop.permute.xlu0 %18504  ;;  %18759 = vrot.lane.b32.xlu0 %v21790_v42, %s19567_s14 }
 0x477   :  { %v18507_v32 = vunpack.i.h.bf16 %v18505_v9  ;;  %v18506_v35 = vunpack.i.l.bf16 %v18505_v9 }
 0x479   :  { %v4952_v28 = vsel %vm4948_vm5, %v18497_v33, %v18506_v35  ;;  %18764 = vrot.lane.b32.xlu1 %v23646_v52, %s19567_s14  ;;  %v4953_v41 = vsel %vm4948_vm5, %v18506_v35, %v18507_v32 }
 0x47a   :  { %v18510_v48 = vpop.permute.xlu0 %18509  ;;  %18769 = vrot.lane.b32.xlu0 %v23646_v52, %s19567_s14  ;;  %v16344_v7 = vpack.c.bf16 %v4953_v41, %v4950_v1  ;;  %v16346_v50 = vpack.c.bf16 %v4952_v28, %v4949_v13  ;;  %v4898_v13 = vld [vmem:[#allocation7 + $0x270] sm:$0xff] }
 0x47b   :  { %v18512_v38 = vunpack.i.h.bf16 %v18510_v48  ;;  %v18511_v54 = vunpack.i.l.bf16 %v18510_v48 }
 0x47c   :  { %16345 = vmatprep.subr.bf16.mxu0 %v16344_v7 }
 0x47d   :  { %18774 = vrot.lane.b32.xlu1 %v21772_v43, %s19568_s15  ;;  %16347 = vmatpush1.bf16.msra.mxu0 %v16346_v50  ;;  %v4956_v45 = vsel %vm4948_vm5, %v18511_v54, %v18512_v38 }
 0x47e   :  { %v18520_v12 = vpop.permute.xlu0 %18519  ;;  %18779 = vrot.lane.b32.xlu0 %v21775_v0, %s19568_s15  ;;  %v4896_v0 = vld [vmem:[#allocation7 + $0x260] sm:$0xff] }
 0x47f   :  { %v18522_v18 = vunpack.i.h.bf16 %v18520_v12  ;;  %v18521_v62 = vunpack.i.l.bf16 %v18520_v12  ;;  %v18515_v53 = vpop.permute.xlu1 %18514 }
 0x480   :  { %v18517_v16 = vunpack.i.h.bf16 %v18515_v53  ;;  %v18516_v8 = vunpack.i.l.bf16 %v18515_v53 }
 0x481   :  { %v4955_v37 = vsel %vm4948_vm5, %v18521_v62, %v18511_v54  ;;  %18784 = vrot.lane.b32.xlu1 %v21779_v47, %s19568_s15 }
 0x482   :  { %v4958_v15 = vsel %vm4948_vm5, %v18522_v18, %v18516_v8  ;;  %18794 = vrot.lane.b32.xlu0 %v21786_v11, %s19568_s15  ;;  %v4959_v19 = vsel %vm4948_vm5, %v18516_v8, %v18517_v16 }
 0x483   :  { %v18525_v51 = vpop.permute.xlu1 %18524  ;;  %v16348_v55 = vpack.c.bf16 %v4959_v19, %v4956_v45  ;;  %v16350_v46 = vpack.c.bf16 %v4958_v15, %v4955_v37 }
 0x484   :  { %v18527_v4 = vunpack.i.h.bf16 %v18525_v51  ;;  %v18526_v10 = vunpack.i.l.bf16 %v18525_v51  ;;  %v18535_v6 = vpop.permute.xlu0 %18534 }
 0x485   :  { %16349 = vmatprep.subr.bf16.mxu0 %v16348_v55  ;;  %18789 = vrot.lane.b32.xlu1 %v21782_v49, %s19568_s15  ;;  %v18537_v2 = vunpack.i.h.bf16 %v18535_v6  ;;  %v18536_v43 = vunpack.i.l.bf16 %v18535_v6 }
 0x486   :  { %16351 = vmatpush1.bf16.msra.mxu0 %v16350_v46  ;;  %18799 = vrot.lane.b32.xlu0 %v21790_v42, %s19568_s15  ;;  %v4951_v47 = vsel %vm4948_vm5, %v18502_v31, %v18526_v10  ;;  %v4954_v5 = vsel %vm4948_vm5, %v18507_v32, %v18527_v4 }
 0x487   :  { %v21926_v11 = vpop.permute.xlu1 %18529  ;;  %v16352_v30 = vpack.c.bf16 %v4954_v5, %v4951_v47  ;;  %v4957_v57 = vsel %vm4948_vm5, %v18512_v38, %v18536_v43  ;;  %v4960_v25 = vsel %vm4948_vm5, %v18517_v16, %v18537_v2  ;;  %v4899_v38 = vld [vmem:[#allocation7 + $0x278] sm:$0xff] }
 0x488   :  { %v18532_v49 = vunpack.i.h.bf16 %v21926_v11  ;;  %v18531_v20 = vunpack.i.l.bf16 %v21926_v11  ;;  %v18540_v56 = vpop.permute.xlu0 %18539  ;;  %v16356_v59 = vpack.c.bf16 %v4960_v25, %v4957_v57 }
 0x489   :  { %14568 = vmatmul.mubr.msk.f32.vlgmr.msra.gmra.mrb[20].mxu0 %vm165_vm0, %v4896_v0  ;;  %16353 = vmatprep.subr.bf16.mxu0 %v16352_v30  ;;  %v18542_v42 = vunpack.i.h.bf16 %v18540_v56  ;;  %v18541_v33 = vunpack.i.l.bf16 %v18540_v56 }
 0x48a   :  { %16355 = vmatpush3.bf16.msra.mxu0 %v16352_v30  ;;  %5055 = vmatprep.mubr.f32.mxu0 %v23646_v52  ;;  %v5193_v27 = vsel %vm5191_vm6, %v18531_v20, %v18532_v49 }
 0x48b   :  { %v18545_v31 = vpop.permute.xlu1 %18544  ;;  %16357 = vmatprep.subr.bf16.mxu0 %v16356_v59  ;;  %v5196_v9 = vsel %vm5191_vm6, %v18541_v33, %v18542_v42  ;;  %18804 = vrot.lane.b32.xlu1 %v23646_v52, %s19568_s15 }
 0x48c   :  { %v18550_v32 = vpop.permute.xlu0 %18549  ;;  %v16360_v35 = vpack.c.bf16 %v5196_v9, %v5193_v27  ;;  %18809 = vrot.lane.b32.xlu0 %v23646_v52, %s19568_s15  ;;  %v18547_v41 = vunpack.i.h.bf16 %v18545_v31  ;;  %v18546_v48 = vunpack.i.l.bf16 %v18545_v31 }
 0x48d   :  { %14569 = vmatmul.mubr.msk.f32.gmra.mrb[22].mxu0 %vm165_vm0, %v4897_v39  ;;  %v18552_v12 = vunpack.i.h.bf16 %v18550_v32  ;;  %v18551_v18 = vunpack.i.l.bf16 %v18550_v32  ;;  %v4892_v32 = vld [vmem:[#allocation7 + $0x248] sm:$0xff] }
 0x48e   :  { %16359 = vmatpush3.bf16.msra.mxu0 %v16356_v59  ;;  %5061 = vmatprep.mubr.f32.mxu0 %v23646_v52  ;;  %v5192_v53 = vsel %vm5191_vm6, %v18546_v48, %v18531_v20  ;;  %v5195_v16 = vsel %vm5191_vm6, %v18547_v41, %v18541_v33  ;;  %v4891_v59 = vld [vmem:[#allocation7 + $0x240] sm:$0xff]  ;;  %v4893_v48 = vld [vmem:[#allocation7 + $0x250] sm:$0xff] }
 0x48f   :  { %v18555_v28 = vpop.permute.xlu1 %18554  ;;  %16361 = vmatprep.subr.bf16.mxu0 %v16360_v35  ;;  %18814 = vrot.lane.b32.xlu1 %v23646_v52, %s19553_s3  ;;  %v16362_v46 = vpack.c.bf16 %v5195_v16, %v5192_v53  ;;  %v5199_v4 = vsel %vm5191_vm6, %v18551_v18, %v18552_v12 }
 0x490   :  { %v18560_v1 = vpop.permute.xlu0 %18559  ;;  %v18557_v7 = vunpack.i.h.bf16 %v18555_v28  ;;  %v18556_v50 = vunpack.i.l.bf16 %v18555_v28 }
 0x491   :  { %14570 = vmatmul.mubr.msk.f32.gmra.mrb[24].mxu0 %vm165_vm0, %v4898_v13  ;;  %v18562_v8 = vunpack.i.h.bf16 %v18560_v1  ;;  %v18561_v37 = vunpack.i.l.bf16 %v18560_v1 }
 0x492   :  { %5067 = vmatprep.mubr.f32.mxu0 %v23646_v52  ;;  %v5202_v19 = vsel %vm5191_vm6, %v18556_v50, %v18557_v7 }
 0x493   :  { %v18565_v54 = vpop.permute.xlu1 %18564  ;;  %v5201_v10 = vsel %vm5191_vm6, %v18562_v8, %v18556_v50  ;;  %v5198_v6 = vsel %vm5191_vm6, %v18561_v37, %v18551_v18  ;;  %v16364_v2 = vpack.c.bf16 %v5202_v19, %v5199_v4 }
 0x494   :  { %v18575_v62 = vpop.permute.xlu0 %18574  ;;  %v18567_v15 = vunpack.i.h.bf16 %v18565_v54  ;;  %v18566_v45 = vunpack.i.l.bf16 %v18565_v54  ;;  %v16366_v57 = vpack.c.bf16 %v5201_v10, %v5198_v6 }
 0x495   :  { %14571 = vmatmul.mubr.msk.f32.gmra.mrb[26].mxu0 %vm165_vm0, %v4899_v38  ;;  %v18577_v43 = vunpack.i.h.bf16 %v18575_v62  ;;  %v18576_v47 = vunpack.i.l.bf16 %v18575_v62  ;;  %v4894_v62 = vld [vmem:[#allocation7 + $0x258] sm:$0xff] }
 0x496   :  { %15560 = vmatprep.mubr.msk.f32.mxu0 %vm165_vm0, %v4896_v0  ;;  %v5194_v0 = vsel %vm5191_vm6, %v18532_v49, %v18566_v45  ;;  %v5197_v5 = vsel %vm5191_vm6, %v18542_v42, %v18567_v15 }
 0x497   :  { %v21951_v51 = vpop.permute.xlu1 %18569  ;;  %v16368_v25 = vpack.c.bf16 %v5197_v5, %v5194_v0  ;;  %v5200_v49 = vsel %vm5191_vm6, %v18552_v12, %v18576_v47  ;;  %v5203_v42 = vsel %vm5191_vm6, %v18557_v7, %v18577_v43 }
 0x498   :  { %v21953_v55 = vpop.permute.xlu0 %18579  ;;  %v18571_v31 = vunpack.i.l.bf16 %v21951_v51  ;;  %v16372_v9 = vpack.c.bf16 %v5203_v42, %v5200_v49 }
 0x499   :  { %15561 = vmatmul.mubr.msk.f32.vlgmr.msra.gmra.mrb[28].mxu0 %vm165_vm0, %v4897_v39  ;;  %v18582_v20 = vunpack.i.h.bf16 %v21953_v55  ;;  %v18581_v56 = vunpack.i.l.bf16 %v21953_v55  ;;  %v18572_v39 = vunpack.i.h.bf16 %v21951_v51 }
 0x49a   :  { %16363 = vmatpush1.bf16.msra.mxu0 %v16362_v46  ;;  %15563 = vmatprep.mubr.msk.f32.mxu0 %vm165_vm0, %v4898_v13 }
 0x49b   :  { %16365 = vmatprep.subr.bf16.mxu0 %v16364_v2  ;;  %v18585_v11 = vpop.permute.xlu1 %18584  ;;  %v5444_v35 = vsel %vm5439_vm7, %v18581_v56, %v18582_v20  ;;  %v5441_v1 = vsel %vm5439_vm7, %v18571_v31, %v18572_v39 }
 0x49c   :  { %v21962_v30 = vpop.permute.xlu0 %18589  ;;  %v16376_v41 = vpack.c.bf16 %v5444_v35, %v5441_v1  ;;  %v18586_v54 = vunpack.i.l.bf16 %v18585_v11 }
 0x49d   :  { %15564 = vmatmul.mubr.msk.f32.gmra.mrb[30].mxu0 %vm165_vm0, %v4899_v38  ;;  %v18587_v38 = vunpack.i.h.bf16 %v18585_v11  ;;  %v18592_v16 = vunpack.i.h.bf16 %v21962_v30  ;;  %v18591_v8 = vunpack.i.l.bf16 %v21962_v30 }
 0x49e   :  { %16367 = vmatpush1.bf16.msra.mxu0 %v16366_v57  ;;  %5292 = vmatprep.mubr.f32.mxu0 %v23646_v52  ;;  %v5440_v15 = vsel %vm5439_vm7, %v18586_v54, %v18571_v31 }
 0x49f   :  { %16369 = vmatprep.subr.bf16.mxu0 %v16368_v25  ;;  %v21970_v33 = vpop.permute.xlu1 %18594  ;;  %v5443_v45 = vsel %vm5439_vm7, %v18587_v38, %v18581_v56  ;;  %v5447_v43 = vsel %vm5439_vm7, %v18591_v8, %v18592_v16  ;;  %v5405_v38 = vld [vmem:[#allocation7 + $0x290] sm:$0xff] }
 0x4a0   :  { %v18600_v27 = vpop.permute.xlu0 %18599  ;;  %v18597_v12 = vunpack.i.h.bf16 %v21970_v33  ;;  %v18596_v18 = vunpack.i.l.bf16 %v21970_v33  ;;  %v16378_v2 = vpack.c.bf16 %v5443_v45, %v5440_v15 }
 0x4a1   :  { %14576 = vmatmul.mubr.msk.f32.vlgmr.msra.gmra.mrb[20].mxu0 %vm165_vm0, %v4891_v59  ;;  %v18602_v19 = vunpack.i.h.bf16 %v18600_v27  ;;  %v18601_v51 = vunpack.i.l.bf16 %v18600_v27  ;;  %v5403_v27 = vld [vmem:[#allocation7 + $0x280] sm:$0xff] }
 0x4a2   :  { %16371 = vmatpush3.bf16.msra.mxu0 %v16368_v25  ;;  %5298 = vmatprep.mubr.f32.mxu0 %v23646_v52  ;;  %v5450_v10 = vsel %vm5439_vm7, %v18596_v18, %v18597_v12 }
 0x4a3   :  { %16373 = vmatprep.subr.bf16.mxu0 %v16372_v9  ;;  %v18605_v13 = vpop.permute.xlu1 %18604  ;;  %v5449_v47 = vsel %vm5439_vm7, %v18602_v19, %v18596_v18  ;;  %v5446_v0 = vsel %vm5439_vm7, %v18601_v51, %v18591_v8  ;;  %v16380_v11 = vpack.c.bf16 %v5450_v10, %v5447_v43  ;;  %v5406_v8 = vld [vmem:[#allocation7 + $0x298] sm:$0xff] }
 0x4a4   :  { %v18615_v28 = vpop.permute.xlu0 %18614  ;;  %v18607_v46 = vunpack.i.h.bf16 %v18605_v13  ;;  %v18606_v4 = vunpack.i.l.bf16 %v18605_v13  ;;  %v5404_v13 = vld [vmem:[#allocation7 + $0x288] sm:$0xff] }
 0x4a5   :  { %14577 = vmatmul.mubr.msk.f32.gmra.mrb[22].mxu0 %vm165_vm0, %v4892_v32  ;;  %v18617_v30 = vunpack.i.h.bf16 %v18615_v28  ;;  %v18616_v57 = vunpack.i.l.bf16 %v18615_v28 }
 0x4a6   :  { %16375 = vmatpush3.bf16.msra.mxu0 %v16372_v9  ;;  %5304 = vmatprep.mubr.f32.mxu0 %v23646_v52  ;;  %v5442_v25 = vsel %vm5439_vm7, %v18572_v39, %v18606_v4  ;;  %v5445_v56 = vsel %vm5439_vm7, %v18582_v20, %v18607_v46 }
 0x4a7   :  { %16377 = vmatprep.subr.bf16.mxu0 %v16376_v41  ;;  %v21982_v7 = vpop.permute.xlu1 %18609  ;;  %v16384_v49 = vpack.c.bf16 %v5445_v56, %v5442_v25  ;;  %v5448_v39 = vsel %vm5439_vm7, %v18592_v16, %v18616_v57  ;;  %v5451_v55 = vsel %vm5439_vm7, %v18597_v12, %v18617_v30 }
 0x4a8   :  { %v21984_v50 = vpop.permute.xlu0 %18619  ;;  %v18612_v20 = vunpack.i.h.bf16 %v21982_v7  ;;  %v16388_v35 = vpack.c.bf16 %v5451_v55, %v5448_v39  ;;  %v5663_v55 = vld [vmem:[#allocation7 + $0x2a0] sm:$0xff] }
 0x4a9   :  { %14578 = vmatmul.mubr.msk.f32.gmra.mrb[24].mxu0 %vm165_vm0, %v4893_v48  ;;  %v18622_v42 = vunpack.i.h.bf16 %v21984_v50  ;;  %v18621_v33 = vunpack.i.l.bf16 %v21984_v50 }
 0x4aa   :  { %5310 = vmatprep.mubr.f32.mxu0 %v23646_v52 }
 0x4ab   :  { %v21990_v53 = vpop.permute.xlu1 %18624  ;;  %v5704_v28 = vsel %vm23613_vm8, %v18621_v33, %v18622_v42 }
 0x4ac   :  { %v21994_v37 = vpop.permute.xlu0 %18629  ;;  %v18627_v54 = vunpack.i.h.bf16 %v21990_v53  ;;  %v18626_v12 = vunpack.i.l.bf16 %v21990_v53 }
 0x4ad   :  { %14579 = vmatmul.mubr.msk.f32.gmra.mrb[26].mxu0 %vm165_vm0, %v4894_v62  ;;  %v18632_v45 = vunpack.i.h.bf16 %v21994_v37  ;;  %v18631_v19 = vunpack.i.l.bf16 %v21994_v37 }
 0x4ae   :  { %15574 = vmatprep.mubr.msk.f32.mxu0 %vm165_vm0, %v4891_v59  ;;  %v16382_v59 = vpack.c.bf16 %v5449_v47, %v5446_v0  ;;  %v5703_v53 = vsel %vm23613_vm8, %v18627_v54, %v18621_v33  ;;  %v5665_v54 = vld [vmem:[#allocation7 + $0x2b0] sm:$0xff] }
 0x4af   :  { %v22001_v6 = vpop.permute.xlu1 %18634  ;;  %v5707_v37 = vsel %vm23613_vm8, %v18631_v19, %v18632_v45 }
 0x4b0   :  { %v22006_v5 = vpop.permute.xlu0 %18639  ;;  %v18637_v18 = vunpack.i.h.bf16 %v22001_v6 }
 0x4b1   :  { %15575 = vmatmul.mubr.msk.f32.vlgmr.msra.gmra.mrb[28].mxu0 %vm165_vm0, %v4892_v32  ;;  %v18611_v32 = vunpack.i.l.bf16 %v21982_v7  ;;  %v18642_v46 = vunpack.i.h.bf16 %v22006_v5  ;;  %v18641_v4 = vunpack.i.l.bf16 %v22006_v5 }
 0x4b2   :  { %16379 = vmatpush1.bf16.msra.mxu0 %v16378_v2  ;;  %15577 = vmatprep.mubr.msk.f32.mxu0 %vm165_vm0, %v4893_v48 }
 0x4b3   :  { %16381 = vmatprep.subr.bf16.mxu0 %v16380_v11  ;;  %v18645_v31 = vpop.permute.xlu1 %18644  ;;  %v5701_v41 = vsel %vm23613_vm8, %v18611_v32, %v18612_v20  ;;  %v5700_v51 = vsel %vm23613_vm8, %v18626_v12, %v18611_v32  ;;  %v5706_v11 = vsel %vm23613_vm8, %v18641_v4, %v18631_v19 }
 0x4b4   :  { %v22020_v9 = vpop.permute.xlu0 %18649  ;;  %v16392_v7 = vpack.c.bf16 %v5704_v28, %v5701_v41  ;;  %v18647_v10 = vunpack.i.h.bf16 %v18645_v31  ;;  %v16394_v47 = vpack.c.bf16 %v5703_v53, %v5700_v51 }
 0x4b5   :  { %15578 = vmatmul.mubr.msk.f32.gmra.mrb[30].mxu0 %vm165_vm0, %v4894_v62  ;;  %v18636_v62 = vunpack.i.l.bf16 %v22001_v6  ;;  %v18646_v6 = vunpack.i.l.bf16 %v18645_v31  ;;  %v18652_v57 = vunpack.i.h.bf16 %v22020_v9  ;;  %v18651_v25 = vunpack.i.l.bf16 %v22020_v9 }
 0x4b6   :  { %16383 = vmatpush1.bf16.msra.mxu0 %v16382_v59  ;;  %5540 = vmatprep.mubr.f32.mxu0 %v23646_v52  ;;  %v5705_v59 = vsel %vm23613_vm8, %v18622_v42, %v18647_v10 }
 0x4b7   :  { %16385 = vmatprep.subr.bf16.mxu0 %v16384_v49  ;;  %v22029_v1 = vpop.permute.xlu1 %18654  ;;  %v5710_v2 = vsel %vm23613_vm8, %v18636_v62, %v18637_v18  ;;  %v5709_v0 = vsel %vm23613_vm8, %v18642_v46, %v18636_v62  ;;  %v5702_v56 = vsel %vm23613_vm8, %v18612_v20, %v18646_v6  ;;  %v5708_v9 = vsel %vm23613_vm8, %v18632_v45, %v18651_v25  ;;  %v5666_v46 = vld [vmem:[#allocation7 + $0x2b8] sm:$0xff] }
 0x4b8   :  { %v22032_v48 = vpop.permute.xlu0 %18659  ;;  %v16396_v5 = vpack.c.bf16 %v5710_v2, %v5707_v37  ;;  %v16398_v33 = vpack.c.bf16 %v5709_v0, %v5706_v11  ;;  %v5711_v20 = vsel %vm23613_vm8, %v18637_v18, %v18652_v57  ;;  %v18657_v57 = vunpack.i.h.bf16 %v22029_v1 }
 0x4b9   :  { %14584 = vmatmul.mubr.msk.f32.vlgmr.msra.gmra.mrb[20].mxu0 %vm165_vm0, %v5403_v27  ;;  %v18656_v25 = vunpack.i.l.bf16 %v22029_v1 }
 0x4ba   :  { %16387 = vmatpush3.bf16.msra.mxu0 %v16384_v49  ;;  %5546 = vmatprep.mubr.f32.mxu0 %v23646_v52 }
 0x4bb   :  { %16389 = vmatprep.subr.bf16.mxu0 %v16388_v35  ;;  %v22041_v16 = vpop.permute.xlu1 %18664 }
 0x4bc   :  { %v22044_v15 = vpop.permute.xlu0 %18674 }
 0x4bd   :  { %14585 = vmatmul.mubr.msk.f32.gmra.mrb[22].mxu0 %vm165_vm0, %v5404_v13 }
 0x4be   :  { %16391 = vmatpush3.bf16.msra.mxu0 %v16388_v35  ;;  %5552 = vmatprep.mubr.f32.mxu0 %v23646_v52  ;;  %v16404_v35 = vpack.c.bf16 %v5711_v20, %v5708_v9 }
 0x4bf   :  { %16393 = vmatprep.subr.bf16.mxu0 %v16392_v7  ;;  %v22055_v43 = vpop.permute.xlu1 %18669 }
 0x4c0   :  { %v22060_v30 = vpop.permute.xlu0 %18679 }
 0x4c1   :  { %14586 = vmatmul.mubr.msk.f32.gmra.mrb[24].mxu0 %vm165_vm0, %v5405_v38 }
 0x4c2   :  { %5558 = vmatprep.mubr.f32.mxu0 %v23646_v52 }
 0x4c3   :  { %v22071_v39 = vpop.permute.xlu1 %18684 }
 0x4c4   :  { %v22076_v50 = vpop.permute.xlu0 %18689 }
 0x4c5   :  { %14587 = vmatmul.mubr.msk.f32.gmra.mrb[26].mxu0 %vm165_vm0, %v5406_v8 }
 0x4c6   :  { %15588 = vmatprep.mubr.msk.f32.mxu0 %vm165_vm0, %v5403_v27  ;;  %v16400_v27 = vpack.c.bf16 %v5705_v59, %v5702_v56  ;;  %v18662_v56 = vunpack.i.h.bf16 %v22032_v48 }
 0x4c7   :  { %v22080_v41 = vpop.permute.xlu1 %18694 }
 0x4c9   :  { %15589 = vmatmul.mubr.msk.f32.vlgmr.msra.gmra.mrb[28].mxu0 %vm165_vm0, %v5404_v13  ;;  %v5664_v13 = vld [vmem:[#allocation7 + $0x2a8] sm:$0xff] }
 0x4ca   :  { %16395 = vmatpush1.bf16.msra.mxu0 %v16394_v47  ;;  %15591 = vmatprep.mubr.msk.f32.mxu0 %vm165_vm0, %v5405_v38  ;;  %v22082_v38 = vpop.permute.xlu0 %18699 }
 0x4cb   :  { %16397 = vmatprep.subr.bf16.mxu0 %v16396_v5  ;;  %v9429_v49 = vpop.f32.mrb[16].mxu1 }
 0x4cc   :  { %v9431_v31 = vpop.f32.mrb[17].mxu1 }
 0x4cd   :  { %15592 = vmatmul.mubr.msk.f32.gmra.mrb[30].mxu0 %vm165_vm0, %v5406_v8 }
 0x4ce   :  { %16399 = vmatpush1.bf16.msra.mxu0 %v16398_v33  ;;  %5800 = vmatprep.mubr.f32.mxu0 %v23646_v52 }
 0x4cf   :  { %16401 = vmatprep.subr.bf16.mxu0 %v16400_v27  ;;  %v9435_v42 = vpop.f32.mrb[18].mxu1 }
 0x4d0   :  { %v9437_v32 = vpop.f32.mrb[19].mxu1 }
 0x4d1   :  { %14592 = vmatmul.mubr.msk.f32.vlgmr.msra.gmra.mrb[20].mxu0 %vm165_vm0, %v5663_v55 }
 0x4d2   :  { %16403 = vmatpush3.bf16.msra.mxu0 %v16400_v27  ;;  %5806 = vmatprep.mubr.f32.mxu0 %v23646_v52 }
 0x4d3   :  { %16405 = vmatprep.subr.bf16.mxu0 %v16404_v35  ;;  %v9441_v28 = vpop.f32.mrb[20].mxu1 }
 0x4d4   :  { %v9443_v7 = vpop.f32.mrb[21].mxu1 }
 0x4d5   :  { %14593 = vmatmul.mubr.msk.f32.gmra.mrb[22].mxu0 %vm165_vm0, %v5664_v13 }
 0x4d6   :  { %16407 = vmatpush3.bf16.msra.mxu0 %v16404_v35  ;;  %5812 = vmatprep.mubr.f32.mxu0 %v23646_v52 }
 0x4d7   :  { %16409 = vmatprep.subr.bf16.mxu0 %v16408_v14  ;;  %v22089_v12 = vpop.f32.mrb[22].mxu1 }
 0x4d8   :  { %v9556_v18 = vpop.permute.xlu1 %9555  ;;  %v22091_v62 = vpop.f32.mrb[23].mxu1 }
 0x4d9   :  { %v9573_v8 = vadd.f32 %v9556_v18, %v9429_v49  ;;  %v9574_v45 = vadd.f32 %v9556_v18, %v9431_v31  ;;  %14594 = vmatmul.mubr.msk.f32.gmra.mrb[24].mxu0 %vm165_vm0, %v5665_v54  ;;  %v9561_v19 = vpop.permute.xlu0 %9560 }
 0x4da   :  { %v9576_v51 = vadd.f32 %v9561_v19, %v9435_v42  ;;  %v9577_v53 = vadd.f32 %v9561_v19, %v9437_v32  ;;  %5818 = vmatprep.mubr.f32.mxu0 %v23646_v52  ;;  %v18661_v42 = vunpack.i.l.bf16 %v22032_v48 }
 0x4db   :  { %vm9585_vm1 = vcmp.ge.f32.partialorder %v9573_v8, 0.0  ;;  %vm9586_vm2 = vcmp.ge.f32.partialorder %v9574_v45, 0.0  ;;  %v9597_v4 = vmul.f32 0.01, %v9573_v8  ;;  %v9598_v36 = vmul.f32 0.01, %v9574_v45 }
 0x4dc   :  { %v22095_v24 = vpop.permute.xlu1 %18704  ;;  %v9600_v6 = vmul.f32 0.01, %v9576_v51  ;;  %v9601_v2 = vmul.f32 0.01, %v9577_v53  ;;  %v15800_v47 = vpop.f32.mrb[24].mxu1  ;;  %vm9588_vm3 = vcmp.ge.f32.partialorder %v9576_v51, 0.0 }
 0x4dd   :  { %v9609_v14 = vsel %vm9585_vm1, %v9573_v8, %v9597_v4  ;;  %v9610_v10 = vsel %vm9586_vm2, %v9574_v45, %v9598_v36  ;;  %14595 = vmatmul.mubr.msk.f32.gmra.mrb[26].mxu0 %vm165_vm0, %v5666_v46  ;;  %v9566_v37 = vpop.permute.xlu0 %9565  ;;  %vm9589_vm4 = vcmp.ge.f32.partialorder %v9577_v53, 0.0  ;;  %v9518_v5 = vpop.f32.mrb[25].mxu1  ;;  %vm6166_vm1 = vcmask 1022976  }
 0x4de   :  { %v22099_v0 = vmul.f32 %v9609_v14, %v23690_v23  ;;  %v22102_v11 = vmul.f32 %v9610_v10, %v23691_v3  ;;  %15602 = vmatprep.mubr.msk.f32.mxu0 %vm165_vm0, %v5663_v55  ;;  %v9578_v49 = vadd.f32 %v15800_v47, %v9561_v19  ;;  %v9575_v33 = vadd.f32 %v9556_v18, %v9518_v5 }
 0x4df   :  { %v15803_v59 = vpop.f32.mrb[26].mxu1  ;;  %v9579_v31 = vadd.f32 %v9566_v37, %v9441_v28  ;;  %v9580_v27 = vadd.f32 %v9566_v37, %v9443_v7  ;;  %v9612_v32 = vsel %vm9588_vm3, %v9576_v51, %v9600_v6  ;;  %v9613_v55 = vsel %vm9589_vm4, %v9577_v53, %v9601_v2  ;;  %v5924_v2 = vld [vmem:[#allocation7 + $0x2c8] sm:$0xff] }
 0x4e0   :  { %v22108_v9 = vpop.permute.xlu1 %18709  ;;  %v9528_v20 = vpop.f32.mrb[27].mxu1  ;;  %v22116_v35 = vpack.i.bf16 %v22102_v11, %v22099_v0  ;;  %vm9590_vm2 = vcmp.ge.f32.partialorder %v9578_v49, 0.0  ;;  %v9602_v8 = vmul.f32 0.01, %v9578_v49  ;;  %v9599_v18 = vmul.f32 0.01, %v9575_v33 }
 0x4e1   :  { %15603 = vmatmul.mubr.msk.f32.vlgmr.msra.gmra.mrb[28].mxu0 %vm165_vm0, %v5664_v13  ;;  %v9581_v28 = vadd.f32 %v9566_v37, %v9528_v20  ;;  %vm9591_vm8 = vcmp.ge.f32.partialorder %v9579_v31, 0.0  ;;  %vm9592_vm3 = vcmp.ge.f32.partialorder %v9580_v27, 0.0  ;;  %v9603_v7 = vmul.f32 0.01, %v9579_v31 }
 0x4e2   :  { %16411 = vmatpush1.bf16.msra.mxu0 %v16410_v40  ;;  %15605 = vmatprep.mubr.msk.f32.mxu0 %vm165_vm0, %v5665_v54  ;;  %v9604_v45 = vmul.f32 0.01, %v9580_v27  ;;  %v22128_v13 = vmul.f32 %v9612_v32, %v23690_v23  ;;  %v22131_v61 = vmul.f32 %v9613_v55, %v23691_v3  ;;  %vm9587_vm4 = vcmp.ge.f32.partialorder %v9575_v33, 0.0  ;;  %v5925_v55 = vld [vmem:[#allocation7 + $0x2d0] sm:$0xff] }
 0x4e3   :  { %18819 = vrot.lane.b32.xlu1 %v22116_v35, %s19553_s3  ;;  %16413 = vmatprep.subr.bf16.mxu0 %v16412_v58  ;;  %v9615_v40 = vsel %vm9591_vm8, %v9579_v31, %v9603_v7  ;;  %v9614_v19 = vsel %vm9590_vm2, %v9578_v49, %v9602_v8  ;;  %v9605_v51 = vmul.f32 0.01, %v9581_v28  ;;  %v6168_v26 = vsel %vm6166_vm1, %v18656_v25, %v18657_v57 }
 0x4e4   :  { %v9571_v22 = vpop.permute.xlu1 %9570  ;;  %v9616_v54 = vsel %vm9592_vm3, %v9580_v27, %v9604_v45  ;;  %v6171_v58 = vsel %vm6166_vm1, %v18661_v42, %v18662_v56  ;;  %v9611_v53 = vsel %vm9587_vm4, %v9575_v33, %v9599_v18  ;;  %vm9593_vm8 = vcmp.ge.f32.partialorder %v9581_v28, 0.0 }
 0x4e5   :  { %15606 = vmatmul.mubr.msk.f32.gmra.mrb[30].mxu0 %vm165_vm0, %v5666_v46  ;;  %v9582_v17 = vadd.f32 %v9571_v22, %v22089_v12  ;;  %v9583_v29 = vadd.f32 %v9571_v22, %v22091_v62  ;;  %v22158_v46 = vmul.f32 %v9616_v54, %v23691_v3  ;;  %v9584_v4 = vadd.f32 %v15803_v59, %v9571_v22  ;;  %v5926_v22 = vld [vmem:[#allocation7 + $0x2d8] sm:$0xff] }
 0x4e6   :  { %16415 = vmatpush1.bf16.msra.mxu0 %v16414_v63  ;;  %6003 = vmatprep.mubr.f32.mxu0 %v23646_v52  ;;  %v22155_v63 = vmul.f32 %v9615_v40, %v23690_v23  ;;  %v22162_v36 = vpack.i.bf16 %v22131_v61, %v22128_v13  ;;  %v22167_v12 = vmul.f32 %v9614_v19, %v23692_v44  ;;  %v18672_v7 = vunpack.i.h.bf16 %v22055_v43 }
 0x4e7   :  { %16417 = vmatprep.subr.bf16.mxu0 %v21805_v34  ;;  %vm9594_vm2 = vcmp.ge.f32.partialorder %v9582_v17, 0.0  ;;  %vm9595_vm3 = vcmp.ge.f32.partialorder %v9583_v29, 0.0  ;;  %v9606_v14 = vmul.f32 0.01, %v9582_v17  ;;  %v9607_v10 = vmul.f32 0.01, %v9583_v29 }
 0x4e8   :  { %v9617_v62 = vsel %vm9593_vm8, %v9581_v28, %v9605_v51  ;;  %vm9596_vm4 = vcmp.ge.f32.partialorder %v9584_v4, 0.0  ;;  %v9608_v6 = vmul.f32 0.01, %v9584_v4  ;;  %18824 = vrot.lane.b32.xlu0 %v22162_v36, %s19553_s3  ;;  %v22173_v47 = vmul.f32 %v9611_v53, %v23692_v44 }
 0x4e9   :  { %14600 = vmatmul.mubr.msk.f32.vlgmr.msra.gmra.mrb[20].mxu0 %vm165_vm0, %v22139_v21  ;;  %v9618_v37 = vsel %vm9594_vm2, %v9582_v17, %v9606_v14  ;;  %v9619_v5 = vsel %vm9595_vm3, %v9583_v29, %v9607_v10  ;;  %v22188_v31 = vmul.f32 %v9617_v62, %v23692_v44  ;;  %v16424_v20 = vpack.c.bf16 %v6171_v58, %v6168_v26 }
 0x4ea   :  { %16419 = vmatpush3.bf16.msra.mxu0 %v21805_v34  ;;  %6009 = vmatprep.mubr.f32.mxu0 %v23646_v52  ;;  %v9620_v59 = vsel %vm9596_vm4, %v9584_v4, %v9608_v6  ;;  %v22178_v49 = vmul.f32 %v9618_v37, %v23690_v23  ;;  %v22181_v33 = vmul.f32 %v9619_v5, %v23691_v3  ;;  %v18666_v28 = vunpack.i.l.bf16 %v22041_v16 }
 0x4eb   :  { %16421 = vmatprep.subr.bf16.mxu0 %v21807_v60  ;;  %v22185_v34 = vpack.i.bf16 %v22158_v46, %v22155_v63  ;;  %v22191_v27 = vmul.f32 %v9620_v59, %v23692_v44  ;;  %v22208_v18 = vpack.i.bf16 %v22167_v12, %v22173_v47  ;;  %v18671_v45 = vunpack.i.l.bf16 %v22055_v43 }
 0x4ec   :  { %v22199_v32 = vpack.i.bf16 %v22181_v33, %v22178_v49  ;;  %v18677_v40 = vunpack.i.h.bf16 %v22044_v15  ;;  %v18676_v54 = vunpack.i.l.bf16 %v22044_v15  ;;  %v18682_v19 = vunpack.i.h.bf16 %v22060_v30 }
 0x4ed   :  { %14601 = vmatmul.mubr.msk.f32.gmra.mrb[22].mxu0 %vm165_vm0, %v5924_v2  ;;  %18829 = vrot.lane.b32.xlu0 %v22185_v34, %s19553_s3  ;;  %v22203_v8 = vpack.i.bf16 %v22191_v27, %v22188_v31  ;;  %v18681_v51 = vunpack.i.l.bf16 %v22060_v30  ;;  %v18687_v26 = vunpack.i.h.bf16 %v22071_v39  ;;  %v18686_v15 = vunpack.i.l.bf16 %v22071_v39 }
 0x4ee   :  { %16423 = vmatpush3.bf16.msra.mxu0 %v21807_v60  ;;  %6015 = vmatprep.mubr.f32.mxu0 %v23646_v52  ;;  %v18667_v60 = vunpack.i.h.bf16 %v22041_v16  ;;  %v6167_v16 = vsel %vm6166_vm1, %v18666_v28, %v18656_v25  ;;  %v6177_v25 = vsel %vm6166_vm1, %v18671_v45, %v18672_v7  ;;  %v6176_v58 = vsel %vm6166_vm1, %v18682_v19, %v18671_v45 }
 0x4ef   :  { %16425 = vmatprep.subr.bf16.mxu0 %v16424_v20  ;;  %18834 = vrot.lane.b32.xlu1 %v22199_v32, %s19553_s3  ;;  %v6173_v53 = vsel %vm6166_vm1, %v18681_v51, %v18676_v54  ;;  %v18691_v39 = vunpack.i.l.bf16 %v22076_v50  ;;  %v18692_v29 = vunpack.i.h.bf16 %v22076_v50  ;;  %v6172_v4 = vsel %vm6166_vm1, %v18662_v56, %v18687_v26 }
 0x4f0   :  { %v6170_v43 = vsel %vm6166_vm1, %v18667_v60, %v18661_v42  ;;  %v6174_v42 = vsel %vm6166_vm1, %v18676_v54, %v18677_v40  ;;  %v16430_v14 = vpack.c.bf16 %v6176_v58, %v6173_v53  ;;  %v22261_v50 = vpack.i.bf16 %v22167_v12, %v22131_v61  ;;  %v22295_v60 = vpop.permute.xlu0 %18714  ;;  %v6128_v54 = vld [vmem:[#allocation7 + $0x2f0] sm:$0xff] }
 0x4f1   :  { %14602 = vmatmul.mubr.msk.f32.gmra.mrb[24].mxu0 %vm165_vm0, %v5925_v55  ;;  %18839 = vrot.lane.b32.xlu0 %v23646_v52, %s19553_s3  ;;  %v16426_v30 = vpack.c.bf16 %v6170_v43, %v6167_v16  ;;  %v16428_v17 = vpack.c.bf16 %v6177_v25, %v6174_v42  ;;  %v22265_v1 = vpack.i.bf16 %v22173_v47, %v22102_v11  ;;  %v18702_v62 = vunpack.i.h.bf16 %v22082_v38  ;;  %v6129_v25 = vld [vmem:[#allocation7 + $0x2f8] sm:$0xff] }
 0x4f2   :  { %6021 = vmatprep.mubr.f32.mxu0 %v23646_v52  ;;  %v22269_v48 = vpack.i.bf16 %v22188_v31, %v22158_v46  ;;  %v6175_v56 = vsel %vm6166_vm1, %v18677_v40, %v18691_v39  ;;  %v22275_v10 = vpack.i.bf16 %v22128_v13, %v22099_v0  ;;  %v18701_v6 = vunpack.i.l.bf16 %v22082_v38  ;;  %v6390_v38 = vld [vmem:[#allocation7 + $0x300] sm:$0xff] }
 0x4f3   :  { %18844 = vrot.lane.b32.xlu1 %v22208_v18, %s19553_s3  ;;  %v6178_v37 = vsel %vm6166_vm1, %v18672_v7, %v18692_v29  ;;  %v22284_v5 = vpack.i.bf16 %v22178_v49, %v22155_v63  ;;  %v22289_v59 = vpack.i.bf16 %v22191_v27, %v22181_v33  ;;  %v18697_v20 = vunpack.i.h.bf16 %v22080_v41  ;;  %v6127_v7 = vld [vmem:[#allocation7 + $0x2e8] sm:$0xff] }
 0x4f4   :  { %vm6426_vm8 = vcmask 531456   ;;  %v16436_v28 = vpack.c.bf16 %v6178_v37, %v6175_v56  ;;  %v18706_v19 = vunpack.i.l.bf16 %v22095_v24  ;;  %v18720_v16 = vpop.permute.xlu0 %18719  ;;  %v18707_v43 = vunpack.i.h.bf16 %v22095_v24 }
 0x4f5   :  { %14603 = vmatmul.mubr.msk.f32.gmra.mrb[26].mxu0 %vm165_vm0, %v5926_v22  ;;  %18854 = vrot.lane.b32.xlu0 %v22203_v8, %s19553_s3  ;;  %v6431_v45 = vsel %vm6426_vm8, %v18701_v6, %v18702_v62  ;;  %v18717_v51 = vunpack.i.h.bf16 %v22295_v60  ;;  %v18716_v26 = vunpack.i.l.bf16 %v22295_v60  ;;  %v18711_v42 = vunpack.i.l.bf16 %v22108_v9 }
 0x4f6   :  { %15616 = vmatprep.mubr.msk.f32.mxu0 %vm165_vm0, %v22139_v21  ;;  %v6169_v21 = vsel %vm6166_vm1, %v18657_v57, %v18686_v15  ;;  %v18725_v15 = vpop.permute.xlu1 %18724  ;;  %v6430_v24 = vsel %vm6426_vm8, %v18707_v43, %v18701_v6  ;;  %v18722_v53 = vunpack.i.h.bf16 %v18720_v16  ;;  %v18721_v39 = vunpack.i.l.bf16 %v18720_v16 }
 0x4f7   :  { %18849 = vrot.lane.b32.xlu1 %v22116_v35, %s19554_s7  ;;  %v16432_v57 = vpack.c.bf16 %v6172_v4, %v6169_v21  ;;  %v18726_v21 = vunpack.i.l.bf16 %v18725_v15  ;;  %v6434_v4 = vsel %vm6426_vm8, %v18716_v26, %v18717_v51  ;;  %v16700_v56 = vpack.c.bf16 %v22181_v33, %v22158_v46  ;;  %v10690_v33 = vld [vmem:[#allocation7 + $0x1a8] sm:$0xff] }
 0x4f8   :  { %v18730_v29 = vpop.permute.xlu0 %18729  ;;  %v22347_v37 = vpack.c.bf16 %v22167_v12, %v22173_v47  ;;  %v6436_v60 = vsel %vm6426_vm8, %v18722_v53, %v18711_v42  ;;  %vm6686_vm2 = vcmask 506880   ;;  %vm6946_vm3 = vcmask 482304  }
 0x4f9   :  { %15617 = vmatmul.mubr.msk.f32.vlgmr.msra.gmra.mrb[28].mxu0 %vm165_vm0, %v5924_v2  ;;  %18859 = vrot.lane.b32.xlu0 %v22162_v36, %s19554_s7  ;;  %v6126_v2 = vld [vmem:[#allocation7 + $0x2e0] sm:$0xff]  ;;  %v6429_v12 = vsel %vm6426_vm8, %v18697_v20, %v18726_v21 }
 0x4fa   :  { %16427 = vmatpush1.bf16.msra.mxu0 %v16426_v30  ;;  %15619 = vmatprep.mubr.msk.f32.mxu0 %vm165_vm0, %v5925_v55  ;;  %v18696_v55 = vunpack.i.l.bf16 %v22080_v41  ;;  %v18712_v30 = vunpack.i.h.bf16 %v22108_v9  ;;  %v16696_v9 = vpack.c.bf16 %v22131_v61, %v22102_v11 }
 0x4fb   :  { %16429 = vmatprep.subr.bf16.mxu0 %v16428_v17  ;;  %18864 = vrot.lane.b32.xlu1 %v23646_v52, %s19554_s7  ;;  %v18727_v17 = vunpack.i.h.bf16 %v18725_v15 }
 0x4fc   :  { %v6427_v58 = vsel %vm6426_vm8, %v18706_v19, %v18696_v55  ;;  %v6437_v6 = vsel %vm6426_vm8, %v18711_v42, %v18712_v30  ;;  %v18731_v19 = vunpack.i.l.bf16 %v18730_v29 }
 0x4fd   :  { %15620 = vmatmul.mubr.msk.f32.gmra.mrb[30].mxu0 %vm165_vm0, %v5926_v22  ;;  %18869 = vrot.lane.b32.xlu0 %v22185_v34, %s19554_s7  ;;  %v6428_v22 = vsel %vm6426_vm8, %v18696_v55, %v18697_v20  ;;  %v22351_v55 = vpack.c.bf16 %v22191_v27, %v22188_v31  ;;  %v6432_v47 = vsel %vm6426_vm8, %v18702_v62, %v18727_v17  ;;  %v22366_v31 = vpop.permute.xlu0 %18739 }
 0x4fe   :  { %16431 = vmatpush1.bf16.msra.mxu0 %v16430_v14  ;;  %6267 = vmatprep.mubr.f32.mxu0 %v23646_v52  ;;  %v16440_v40 = vpack.c.bf16 %v6431_v45, %v6428_v22  ;;  %v16442_v14 = vpack.c.bf16 %v6430_v24, %v6427_v58  ;;  %v22355_v45 = vpop.permute.xlu1 %18734  ;;  %v16444_v22 = vpack.c.bf16 %v6437_v6, %v6434_v4  ;;  %v18742_v41 = vunpack.i.h.bf16 %v22366_v31 }
 0x4ff   :  { %16433 = vmatprep.subr.bf16.mxu0 %v16432_v57  ;;  %18874 = vrot.lane.b32.xlu1 %v22199_v32, %s19554_s7  ;;  %v18741_v20 = vunpack.i.l.bf16 %v22366_v31  ;;  %v6435_v62 = vsel %vm6426_vm8, %v18717_v51, %v18731_v19  ;;  %v18737_v43 = vunpack.i.h.bf16 %v22355_v45  ;;  %v6391_v51 = vld [vmem:[#allocation7 + $0x308] sm:$0xff]  ;;  %v6650_v31 = vld [vmem:[#allocation7 + $0x320] sm:$0xff] }
 0x501   :  { %14608 = vmatmul.mubr.msk.f32.vlgmr.msra.gmra.mrb[20].mxu0 %vm165_vm0, %v6126_v2  ;;  %18879 = vrot.lane.b32.xlu0 %v23646_v52, %s19554_s7  ;;  %v22383_v15 = vpop.permute.xlu0 %18754  ;;  %v6691_v58 = vsel %vm6686_vm2, %v18741_v20, %v18742_v41 }
 0x502   :  { %16435 = vmatpush3.bf16.msra.mxu0 %v16432_v57  ;;  %6273 = vmatprep.mubr.f32.mxu0 %v23646_v52  ;;  %v16698_v57 = vpack.c.bf16 %v22128_v13, %v22099_v0  ;;  %v18745_v16 = vpop.permute.xlu1 %18744  ;;  %v18757_v4 = vunpack.i.h.bf16 %v22383_v15  ;;  %v10689_v0 = vld [vmem:[#allocation7 + $0x1a0] sm:$0xff] }
 0x503   :  { %16437 = vmatprep.subr.bf16.mxu0 %v16436_v28  ;;  %18884 = vrot.lane.b32.xlu1 %v22208_v18, %s19554_s7  ;;  %v18747_v53 = vunpack.i.h.bf16 %v18745_v16 }
 0x505   :  { %14609 = vmatmul.mubr.msk.f32.gmra.mrb[22].mxu0 %vm165_vm0, %v6127_v7  ;;  %18894 = vrot.lane.b32.xlu0 %v22203_v8, %s19554_s7  ;;  %v18760_v42 = vpop.permute.xlu0 %18759  ;;  %v6690_v6 = vsel %vm6686_vm2, %v18747_v53, %v18741_v20 }
 0x506   :  { %16439 = vmatpush3.bf16.msra.mxu0 %v16436_v28  ;;  %6279 = vmatprep.mubr.f32.mxu0 %v23646_v52  ;;  %v6433_v28 = vsel %vm6426_vm8, %v18721_v39, %v18716_v26  ;;  %v18736_v26 = vunpack.i.l.bf16 %v22355_v45  ;;  %v18750_v24 = vpop.permute.xlu1 %18749  ;;  %v18746_v39 = vunpack.i.l.bf16 %v18745_v16 }
 0x507   :  { %16441 = vmatprep.subr.bf16.mxu0 %v16440_v40  ;;  %18889 = vrot.lane.b32.xlu1 %v22116_v35, %s19555_s8  ;;  %v18732_v40 = vunpack.i.h.bf16 %v18730_v29  ;;  %v16446_v27 = vpack.c.bf16 %v6436_v60, %v6433_v28  ;;  %v18752_v17 = vunpack.i.h.bf16 %v18750_v24  ;;  %v18751_v29 = vunpack.i.l.bf16 %v18750_v24 }
 0x508   :  { %v18762_v60 = vunpack.i.h.bf16 %v18760_v42  ;;  %v18761_v28 = vunpack.i.l.bf16 %v18760_v42 }
 0x509   :  { %14610 = vmatmul.mubr.msk.f32.gmra.mrb[24].mxu0 %vm165_vm0, %v6128_v54  ;;  %18899 = vrot.lane.b32.xlu0 %v22162_v36, %s19555_s8  ;;  %v18770_v45 = vpop.permute.xlu0 %18769  ;;  %v6697_v19 = vsel %vm6686_vm2, %v18751_v29, %v18752_v17 }
 0x50a   :  { %6285 = vmatprep.mubr.f32.mxu0 %v23646_v52  ;;  %v18765_v21 = vpop.permute.xlu1 %18764 }
 0x50b   :  { %18904 = vrot.lane.b32.xlu1 %v23646_v52, %s19555_s8 }
 0x50d   :  { %14611 = vmatmul.mubr.msk.f32.gmra.mrb[26].mxu0 %vm165_vm0, %v6129_v25  ;;  %18909 = vrot.lane.b32.xlu0 %v22185_v34, %s19555_s8  ;;  %v22430_v16 = vpop.permute.xlu0 %18779 }
 0x50e   :  { %15630 = vmatprep.mubr.msk.f32.mxu0 %vm165_vm0, %v6126_v2  ;;  %v16702_v2 = vpack.c.bf16 %v22178_v49, %v22155_v63 }
 0x50f   :  { %18914 = vrot.lane.b32.xlu1 %v22199_v32, %s19555_s8 }
 0x511   :  { %15631 = vmatmul.mubr.msk.f32.vlgmr.msra.gmra.mrb[28].mxu0 %vm165_vm0, %v6127_v7  ;;  %18919 = vrot.lane.b32.xlu0 %v23646_v52, %s19555_s8  ;;  %v16448_v7 = vpack.c.bf16 %v6432_v47, %v6429_v12  ;;  %v6696_v47 = vsel %vm6686_vm2, %v18762_v60, %v18751_v29  ;;  %v18795_v53 = vpop.permute.xlu0 %18794  ;;  %v6653_v60 = vld [vmem:[#allocation7 + $0x338] sm:$0xff] }
 0x512   :  { %16443 = vmatpush1.bf16.msra.mxu0 %v16442_v14  ;;  %15633 = vmatprep.mubr.msk.f32.mxu0 %vm165_vm0, %v6128_v54  ;;  %v6438_v54 = vsel %vm6426_vm8, %v18712_v30, %v18732_v40  ;;  %v18756_v14 = vunpack.i.l.bf16 %v22383_v15  ;;  %v18766_v40 = vunpack.i.l.bf16 %v18765_v21 }
 0x513   :  { %16445 = vmatprep.subr.bf16.mxu0 %v16444_v22  ;;  %18924 = vrot.lane.b32.xlu1 %v22208_v18, %s19555_s8  ;;  %v18767_v22 = vunpack.i.h.bf16 %v18765_v21 }
 0x514   :  { %v6694_v12 = vsel %vm6686_vm2, %v18756_v14, %v18757_v4 }
 0x515   :  { %15634 = vmatmul.mubr.msk.f32.gmra.mrb[30].mxu0 %vm165_vm0, %v6129_v25  ;;  %18934 = vrot.lane.b32.xlu0 %v22203_v8, %s19555_s8  ;;  %v16452_v25 = vpack.c.bf16 %v6438_v54, %v6435_v62  ;;  %v16460_v20 = vpack.c.bf16 %v6697_v19, %v6694_v12  ;;  %v18771_v62 = vunpack.i.l.bf16 %v18770_v45  ;;  %v6692_v54 = vsel %vm6686_vm2, %v18742_v41, %v18767_v22 }
 0x516   :  { %16447 = vmatpush1.bf16.msra.mxu0 %v16446_v27  ;;  %6527 = vmatprep.mubr.f32.mxu0 %v23646_v52  ;;  %v6693_v27 = vsel %vm6686_vm2, %v18761_v28, %v18756_v14  ;;  %v18800_v14 = vpop.permute.xlu0 %18799  ;;  %v18796_v22 = vunpack.i.l.bf16 %v18795_v53 }
 0x517   :  { %16449 = vmatprep.subr.bf16.mxu0 %v16448_v7  ;;  %18929 = vrot.lane.b32.xlu1 %v22116_v35, %s19556_s9  ;;  %v6688_v35 = vsel %vm6686_vm2, %v18736_v26, %v18737_v43  ;;  %v6695_v41 = vsel %vm6686_vm2, %v18757_v4, %v18771_v62  ;;  %v18801_v12 = vunpack.i.l.bf16 %v18800_v14 }
 0x518   :  { %v16456_v30 = vpack.c.bf16 %v6691_v58, %v6688_v35 }
 0x519   :  { %14616 = vmatmul.mubr.msk.f32.vlgmr.msra.gmra.mrb[20].mxu0 %vm165_vm0, %v6390_v38  ;;  %18939 = vrot.lane.b32.xlu0 %v22162_v36, %s19556_s9  ;;  %v6392_v36 = vld [vmem:[#allocation7 + $0x310] sm:$0xff] }
 0x51a   :  { %16451 = vmatpush3.bf16.msra.mxu0 %v16448_v7  ;;  %6533 = vmatprep.mubr.f32.mxu0 %v23646_v52  ;;  %v22421_v7 = vpop.permute.xlu1 %18774 }
 0x51b   :  { %16453 = vmatprep.subr.bf16.mxu0 %v16452_v25  ;;  %18944 = vrot.lane.b32.xlu1 %v23646_v52, %s19556_s9  ;;  %v18777_v35 = vunpack.i.h.bf16 %v22421_v7  ;;  %v18776_v24 = vunpack.i.l.bf16 %v22421_v7 }
 0x51d   :  { %14617 = vmatmul.mubr.msk.f32.gmra.mrb[22].mxu0 %vm165_vm0, %v6391_v51  ;;  %18949 = vrot.lane.b32.xlu0 %v22185_v34, %s19556_s9  ;;  %v6393_v34 = vld [vmem:[#allocation7 + $0x318] sm:$0xff] }
 0x51e   :  { %16455 = vmatpush3.bf16.msra.mxu0 %v16452_v25  ;;  %6539 = vmatprep.mubr.f32.mxu0 %v23646_v52  ;;  %v18782_v25 = vunpack.i.h.bf16 %v22430_v16  ;;  %v18785_v58 = vpop.permute.xlu1 %18784 }
 0x51f   :  { %16457 = vmatprep.subr.bf16.mxu0 %v16456_v30  ;;  %18954 = vrot.lane.b32.xlu1 %v22199_v32, %s19556_s9  ;;  %v6687_v32 = vsel %vm6686_vm2, %v18746_v39, %v18736_v26  ;;  %v16462_v26 = vpack.c.bf16 %v6696_v47, %v6693_v27  ;;  %v6948_v39 = vsel %vm6946_vm3, %v18776_v24, %v18777_v35  ;;  %v18787_v21 = vunpack.i.h.bf16 %v18785_v58 }
 0x520   :  { %v18786_v4 = vunpack.i.l.bf16 %v18785_v58 }
 0x521   :  { %14618 = vmatmul.mubr.msk.f32.gmra.mrb[24].mxu0 %vm165_vm0, %v6392_v36  ;;  %18959 = vrot.lane.b32.xlu0 %v23646_v52, %s19556_s9 }
 0x522   :  { %6545 = vmatprep.mubr.f32.mxu0 %v23646_v52 }
 0x523   :  { %18964 = vrot.lane.b32.xlu1 %v22208_v18, %s19556_s9  ;;  %v16458_v18 = vpack.c.bf16 %v6690_v6, %v6687_v32 }
 0x525   :  { %14619 = vmatmul.mubr.msk.f32.gmra.mrb[26].mxu0 %vm165_vm0, %v6393_v34  ;;  %18969 = vrot.lane.b32.xlu0 %v22203_v8, %s19556_s9  ;;  %v18772_v8 = vunpack.i.h.bf16 %v18770_v45  ;;  %v18797_v45 = vunpack.i.h.bf16 %v18795_v53  ;;  %v6913_v53 = vld [vmem:[#allocation7 + $0x358] sm:$0xff] }
 0x526   :  { %15644 = vmatprep.mubr.msk.f32.mxu0 %vm165_vm0, %v6390_v38  ;;  %v6689_v38 = vsel %vm6686_vm2, %v18737_v43, %v18766_v40  ;;  %v18781_v43 = vunpack.i.l.bf16 %v22430_v16  ;;  %v6947_v40 = vsel %vm6946_vm3, %v18786_v4, %v18776_v24  ;;  %v6910_v24 = vld [vmem:[#allocation7 + $0x340] sm:$0xff] }
 0x527   :  { %18974 = vrot.lane.b32.xlu1 %v22265_v1, %s19557_s10  ;;  %v16464_v15 = vpack.c.bf16 %v6692_v54, %v6689_v38  ;;  %v6954_v62 = vsel %vm6946_vm3, %v18796_v22, %v18797_v45  ;;  %v6953_v54 = vsel %vm6946_vm3, %v18801_v12, %v18796_v22 }
 0x528   :  { %v6951_v42 = vsel %vm6946_vm3, %v18781_v43, %v18782_v25  ;;  %v6950_v19 = vsel %vm6946_vm3, %v18787_v21, %v18781_v43 }
 0x529   :  { %15645 = vmatmul.mubr.msk.f32.vlgmr.msra.gmra.mrb[28].mxu0 %vm165_vm0, %v6391_v51  ;;  %18979 = vrot.lane.b32.xlu0 %v22261_v50, %s19557_s10  ;;  %v6698_v51 = vsel %vm6686_vm2, %v18752_v17, %v18772_v8  ;;  %v18790_v17 = vpop.permute.xlu1 %18789  ;;  %v16472_v29 = vpack.c.bf16 %v6951_v42, %v6948_v39  ;;  %v16474_v8 = vpack.c.bf16 %v6950_v19, %v6947_v40 }
 0x52a   :  { %16459 = vmatpush1.bf16.msra.mxu0 %v16458_v18  ;;  %15647 = vmatprep.mubr.msk.f32.mxu0 %vm165_vm0, %v6392_v36  ;;  %v16468_v30 = vpack.c.bf16 %v6698_v51, %v6695_v41  ;;  %v6651_v36 = vld [vmem:[#allocation7 + $0x328] sm:$0xff]  ;;  %v18792_v32 = vunpack.i.h.bf16 %v18790_v17  ;;  %v18791_v6 = vunpack.i.l.bf16 %v18790_v17  ;;  %v18802_v18 = vunpack.i.h.bf16 %v18800_v14 }
 0x52b   :  { %16461 = vmatprep.subr.bf16.mxu0 %v16460_v20  ;;  %18984 = vrot.lane.b32.xlu1 %v22275_v10, %s19557_s10  ;;  %v18810_v20 = vpop.permute.xlu0 %18809 }
 0x52c   :  { %v6957_v7 = vsel %vm6946_vm3, %v18791_v6, %v18792_v32  ;;  %v6956_v38 = vsel %vm6946_vm3, %v18802_v18, %v18791_v6  ;;  %v18811_v43 = vunpack.i.l.bf16 %v18810_v20 }
 0x52d   :  { %15648 = vmatmul.mubr.msk.f32.gmra.mrb[30].mxu0 %vm165_vm0, %v6393_v34  ;;  %18994 = vrot.lane.b32.xlu0 %v22269_v48, %s19557_s10  ;;  %v6652_v34 = vld [vmem:[#allocation7 + $0x330] sm:$0xff]  ;;  %v18805_v28 = vpop.permute.xlu1 %18804  ;;  %v16478_v51 = vpack.c.bf16 %v6956_v38, %v6953_v54 }
 0x52e   :  { %16463 = vmatpush1.bf16.msra.mxu0 %v16462_v26  ;;  %6787 = vmatprep.mubr.f32.mxu0 %v23646_v52  ;;  %v18807_v47 = vunpack.i.h.bf16 %v18805_v28  ;;  %v18806_v27 = vunpack.i.l.bf16 %v18805_v28  ;;  %v16476_v26 = vpack.c.bf16 %v6957_v7, %v6954_v62 }
 0x52f   :  { %16465 = vmatprep.subr.bf16.mxu0 %v16464_v15  ;;  %18989 = vrot.lane.b32.xlu1 %v22289_v59, %s19557_s10 }
 0x530   :  { %v6952_v41 = vsel %vm6946_vm3, %v18782_v25, %v18807_v47 }
 0x531   :  { %14624 = vmatmul.mubr.msk.f32.vlgmr.msra.gmra.mrb[20].mxu0 %vm165_vm0, %v6650_v31  ;;  %18999 = vrot.lane.b32.xlu0 %v22284_v5, %s19557_s10  ;;  %v18815_v42 = vpop.permute.xlu1 %18814 }
 0x532   :  { %16467 = vmatpush3.bf16.msra.mxu0 %v16464_v15  ;;  %6793 = vmatprep.mubr.f32.mxu0 %v23646_v52  ;;  %v18812_v15 = vunpack.i.h.bf16 %v18810_v20  ;;  %v18817_v17 = vunpack.i.h.bf16 %v18815_v42 }
 0x533   :  { %16469 = vmatprep.subr.bf16.mxu0 %v16468_v30  ;;  %19004 = vrot.lane.b32.xlu1 %v23646_v52, %s19557_s10 }
 0x534   :  { %v6958_v16 = vsel %vm6946_vm3, %v18792_v32, %v18812_v15  ;;  %v14789_v15 = vld [vmem:[%s23566_s2 + $0x28] sm:$0xff] }
 0x535   :  { %14625 = vmatmul.mubr.msk.f32.gmra.mrb[22].mxu0 %vm165_vm0, %v6651_v36  ;;  %19009 = vrot.lane.b32.xlu0 %v23646_v52, %s19557_s10 }
 0x536   :  { %16471 = vmatpush3.bf16.msra.mxu0 %v16468_v30  ;;  %6799 = vmatprep.mubr.f32.mxu0 %v23646_v52  ;;  %v6911_v30 = vld [vmem:[#allocation7 + $0x348] sm:$0xff] }
 0x537   :  { %16473 = vmatprep.subr.bf16.mxu0 %v16472_v29  ;;  %19014 = vrot.lane.b32.xlu1 %v22265_v1, %s19558_s11  ;;  %v18816_v29 = vunpack.i.l.bf16 %v18815_v42 }
 0x539   :  { %14626 = vmatmul.mubr.msk.f32.gmra.mrb[24].mxu0 %vm165_vm0, %v6652_v34  ;;  %19019 = vrot.lane.b32.xlu0 %v22261_v50, %s19558_s11 }
 0x53a   :  { %6805 = vmatprep.mubr.f32.mxu0 %v23646_v52 }
 0x53b   :  { %19024 = vrot.lane.b32.xlu1 %v22275_v10, %s19558_s11 }
 0x53d   :  { %14627 = vmatmul.mubr.msk.f32.gmra.mrb[26].mxu0 %vm165_vm0, %v6653_v60  ;;  %19034 = vrot.lane.b32.xlu0 %v22269_v48, %s19558_s11 }
 0x53e   :  { %15658 = vmatprep.mubr.msk.f32.mxu0 %vm165_vm0, %v6650_v31  ;;  %v6949_v31 = vsel %vm6946_vm3, %v18777_v35, %v18806_v27  ;;  %v6955_v35 = vsel %vm6946_vm3, %v18797_v45, %v18811_v43 }
 0x53f   :  { %19029 = vrot.lane.b32.xlu1 %v22289_v59, %s19558_s11  ;;  %v16480_v58 = vpack.c.bf16 %v6952_v41, %v6949_v31  ;;  %v16484_v25 = vpack.c.bf16 %v6958_v16, %v6955_v35 }
 0x541   :  { %15659 = vmatmul.mubr.msk.f32.vlgmr.msra.gmra.mrb[28].mxu0 %vm165_vm0, %v6651_v36  ;;  %19039 = vrot.lane.b32.xlu0 %v22284_v5, %s19558_s11  ;;  %v6912_v36 = vld [vmem:[#allocation7 + $0x350] sm:$0xff] }
 0x542   :  { %16475 = vmatpush1.bf16.msra.mxu0 %v16474_v8  ;;  %15661 = vmatprep.mubr.msk.f32.mxu0 %vm165_vm0, %v6652_v34 }
 0x543   :  { %16477 = vmatprep.subr.bf16.mxu0 %v16476_v26  ;;  %19044 = vrot.lane.b32.xlu1 %v23646_v52, %s19558_s11 }
 0x545   :  { %15662 = vmatmul.mubr.msk.f32.gmra.mrb[30].mxu0 %vm165_vm0, %v6653_v60  ;;  %19049 = vrot.lane.b32.xlu0 %v23646_v52, %s19558_s11 }
 0x546   :  { %16479 = vmatpush1.bf16.msra.mxu0 %v16478_v51  ;;  %7047 = vmatprep.mubr.f32.mxu0 %v23646_v52 }
 0x547   :  { %16481 = vmatprep.subr.bf16.mxu0 %v16480_v58  ;;  %19054 = vrot.lane.b32.xlu1 %v22265_v1, %s19559_s12 }
 0x549   :  { %14632 = vmatmul.mubr.msk.f32.vlgmr.msra.gmra.mrb[20].mxu0 %vm165_vm0, %v6910_v24  ;;  %19059 = vrot.lane.b32.xlu0 %v22261_v50, %s19559_s12 }
 0x54a   :  { %16483 = vmatpush3.bf16.msra.mxu0 %v16480_v58  ;;  %7053 = vmatprep.mubr.f32.mxu0 %v23646_v52  ;;  %v14790_v58 = vld [vmem:[%s23566_s2 + $0x30] sm:$0xff] }
 0x54b   :  { %16485 = vmatprep.subr.bf16.mxu0 %v16484_v25  ;;  %19064 = vrot.lane.b32.xlu1 %v22275_v10, %s19559_s12 }
 0x54d   :  { %14633 = vmatmul.mubr.msk.f32.gmra.mrb[22].mxu0 %vm165_vm0, %v6911_v30  ;;  %19074 = vrot.lane.b32.xlu0 %v22269_v48, %s19559_s12 }
 0x54e   :  { %16487 = vmatpush3.bf16.msra.mxu0 %v16484_v25  ;;  %7059 = vmatprep.mubr.f32.mxu0 %v23646_v52  ;;  %v9669_v25 = vld [vmem:[#allocation7 + $0x140] sm:$0xff] }
 0x54f   :  { %19069 = vrot.lane.b32.xlu1 %v22289_v59, %s19559_s12 }
 0x551   :  { %14634 = vmatmul.mubr.msk.f32.gmra.mrb[24].mxu0 %vm165_vm0, %v6912_v36  ;;  %19079 = vrot.lane.b32.xlu0 %v22284_v5, %s19559_s12 }
 0x552   :  { %7065 = vmatprep.mubr.f32.mxu0 %v23646_v52 }
 0x553   :  { %19084 = vrot.lane.b32.xlu1 %v23646_v52, %s19559_s12 }
 0x555   :  { %14635 = vmatmul.mubr.msk.f32.gmra.mrb[26].mxu0 %vm165_vm0, %v6913_v53  ;;  %19089 = vrot.lane.b32.xlu0 %v23646_v52, %s19559_s12  ;;  %v18820_v39 = vpop.permute.xlu1 %18819 }
 0x556   :  { %15672 = vmatprep.mubr.msk.f32.mxu0 %vm165_vm0, %v6910_v24  ;;  %v18822_v34 = vunpack.i.h.bf16 %v18820_v39  ;;  %v18821_v21 = vunpack.i.l.bf16 %v18820_v39 }
 0x557   :  { %19094 = vrot.lane.b32.xlu1 %v22265_v1, %s19560_s0 }
 0x558   :  { %v9722_v6 = vsel %vm2552_vm14, %v18821_v21, %v18822_v34 }
 0x559   :  { %15673 = vmatmul.mubr.msk.f32.vlgmr.msra.gmra.mrb[28].mxu0 %vm165_vm0, %v6911_v30  ;;  %19099 = vrot.lane.b32.xlu0 %v22261_v50, %s19560_s0  ;;  %v9721_v50 = vsel %vm2552_vm14, %v18816_v29, %v18821_v21 }
 0x55a   :  { %15675 = vmatprep.mubr.msk.f32.mxu0 %vm165_vm0, %v6912_v36  ;;  %v18825_v4 = vpop.permute.xlu0 %18824 }
 0x55b   :  { %19104 = vrot.lane.b32.xlu1 %v22275_v10, %s19560_s0  ;;  %v18827_v14 = vunpack.i.h.bf16 %v18825_v4  ;;  %v18826_v32 = vunpack.i.l.bf16 %v18825_v4 }
 0x55d   :  { %15676 = vmatmul.mubr.msk.f32.gmra.mrb[30].mxu0 %vm165_vm0, %v6913_v53  ;;  %19114 = vrot.lane.b32.xlu0 %v22269_v48, %s19560_s0  ;;  %v9724_v1 = vsel %vm2552_vm14, %v18817_v17, %v18826_v32  ;;  %v9725_v60 = vsel %vm2552_vm14, %v18826_v32, %v18827_v14  ;;  %v14791_v53 = vld [vmem:[%s23566_s2 + $0x38] sm:$0xff]  ;;  %v9670_v32 = vld [vmem:[#allocation7 + $0x148] sm:$0xff] }
 0x55e   :  { %9821 = vmatprep.mubr.f32.mxu0 %v23646_v52  ;;  %v16632_v45 = vpack.c.bf16 %v9725_v60, %v9722_v6  ;;  %v16634_v10 = vpack.c.bf16 %v9724_v1, %v9721_v50 }
 0x55f   :  { %v18830_v28 = vpop.permute.xlu0 %18829  ;;  %19109 = vrot.lane.b32.xlu1 %v22289_v59, %s19560_s0  ;;  %v14788_v59 = vld [vmem:[%s23566_s2 + $0x20] sm:$0xff] }
 0x560   :  { %v18832_v22 = vunpack.i.h.bf16 %v18830_v28  ;;  %v18831_v40 = vunpack.i.l.bf16 %v18830_v28  ;;  %16633 = vmatprep.subr.bf16.mxu0 %v16632_v45  ;;  %v9671_v45 = vld [vmem:[#allocation7 + $0x150] sm:$0xff] }
 0x561   :  { %19119 = vrot.lane.b32.xlu0 %v22284_v5, %s19560_s0  ;;  %v18835_v48 = vpop.permute.xlu1 %18834  ;;  %16635 = vmatpush1.bf16.msra.mxu0 %v16634_v10 }
 0x562   :  { %v18837_v19 = vunpack.i.h.bf16 %v18835_v48  ;;  %v18836_v18 = vunpack.i.l.bf16 %v18835_v48  ;;  %v9728_v7 = vsel %vm2552_vm14, %v18831_v40, %v18832_v22 }
 0x563   :  { %v18840_v12 = vpop.permute.xlu0 %18839  ;;  %19124 = vrot.lane.b32.xlu1 %v23646_v52, %s19560_s0 }
 0x564   :  { %v18842_v47 = vunpack.i.h.bf16 %v18840_v12  ;;  %v18841_v27 = vunpack.i.l.bf16 %v18840_v12  ;;  %v9731_v20 = vsel %vm2552_vm14, %v18836_v18, %v18837_v19 }
 0x565   :  { %19129 = vrot.lane.b32.xlu0 %v23646_v52, %s19560_s0  ;;  %v18845_v5 = vpop.permute.xlu1 %18844  ;;  %v16636_v8 = vpack.c.bf16 %v9731_v20, %v9728_v7 }
 0x566   :  { %v9727_v62 = vsel %vm2552_vm14, %v18841_v27, %v18831_v40  ;;  %v9730_v38 = vsel %vm2552_vm14, %v18842_v47, %v18836_v18  ;;  %v18847_v54 = vunpack.i.h.bf16 %v18845_v5  ;;  %v18846_v26 = vunpack.i.l.bf16 %v18845_v5  ;;  %v9672_v18 = vld [vmem:[#allocation7 + $0x158] sm:$0xff] }
 0x567   :  { %v18855_v43 = vpop.permute.xlu0 %18854  ;;  %11933 = vperm.xlu1 %17852, %v14788_v59   ;;  %16637 = vmatprep.subr.bf16.mxu0 %v16636_v8  ;;  %v16638_v31 = vpack.c.bf16 %v9730_v38, %v9727_v62 }
 0x568   :  { %v18857_v41 = vunpack.i.h.bf16 %v18855_v43  ;;  %v18856_v51 = vunpack.i.l.bf16 %v18855_v43  ;;  %v9723_v24 = vsel %vm2552_vm14, %v18822_v34, %v18846_v26  ;;  %v9726_v35 = vsel %vm2552_vm14, %v18827_v14, %v18847_v54 }
 0x569   :  { %11938 = vperm.xlu0 %17851, %v14789_v15   ;;  %16639 = vmatpush1.bf16.msra.mxu0 %v16638_v31  ;;  %v22560_v16 = vpop.permute.xlu1 %18849  ;;  %v16640_v30 = vpack.c.bf16 %v9726_v35, %v9723_v24 }
 0x56a   :  { %v18852_v36 = vunpack.i.h.bf16 %v22560_v16  ;;  %v18851_v42 = vunpack.i.l.bf16 %v22560_v16  ;;  %v9729_v39 = vsel %vm2552_vm14, %v18832_v22, %v18856_v51  ;;  %v9732_v17 = vsel %vm2552_vm14, %v18837_v19, %v18857_v41 }
 0x56b   :  { %v18860_v29 = vpop.permute.xlu0 %18859  ;;  %11943 = vperm.xlu1 %17852, %v14790_v58   ;;  %16641 = vmatprep.subr.bf16.mxu0 %v16640_v30  ;;  %v16644_v4 = vpack.c.bf16 %v9732_v17, %v9729_v39  ;;  %v9665_v17 = vld [vmem:[#allocation7 + $0x120] sm:$0xff]  ;;  %vm23693_vm14 = vcmask 703488  }
 0x56c   :  { %v18862_v34 = vunpack.i.h.bf16 %v18860_v29  ;;  %v18861_v21 = vunpack.i.l.bf16 %v18860_v29  ;;  %14716 = vmatmul.mubr.msk.f32.vlgmr.msra.gmra.mrb[32].mxu0 %vm165_vm0, %v9669_v25  ;;  %v9964_v50 = vsel %vm2795_vm15, %v18851_v42, %v18852_v36 }
 0x56d   :  { %11948 = vperm.xlu0 %17851, %v14791_v53   ;;  %16643 = vmatpush3.bf16.msra.mxu0 %v16640_v30  ;;  %v18865_v14 = vpop.permute.xlu1 %18864 }
 0x56e   :  { %16645 = vmatprep.subr.bf16.mxu0 %v16644_v4  ;;  %9827 = vmatprep.mubr.f32.mxu0 %v23646_v52  ;;  %v9967_v6 = vsel %vm2795_vm15, %v18861_v21, %v18862_v34  ;;  %v18867_v10 = vunpack.i.h.bf16 %v18865_v14  ;;  %v18866_v22 = vunpack.i.l.bf16 %v18865_v14 }
 0x56f   :  { %v18870_v1 = vpop.permute.xlu0 %18869  ;;  %v16648_v60 = vpack.c.bf16 %v9967_v6, %v9964_v50  ;;  %19134 = vrot.lane.b32.xlu1 %v23646_v52, %s19561_s20 }
 0x570   :  { %14717 = vmatmul.mubr.msk.f32.gmra.mrb[34].mxu0 %vm165_vm0, %v9670_v32  ;;  %v18872_v47 = vunpack.i.h.bf16 %v18870_v1  ;;  %v18871_v27 = vunpack.i.l.bf16 %v18870_v1  ;;  %v9963_v59 = vsel %vm2795_vm15, %v18866_v22, %v18851_v42  ;;  %v9966_v7 = vsel %vm2795_vm15, %v18867_v10, %v18861_v21 }
 0x571   :  { %16647 = vmatpush3.bf16.msra.mxu0 %v16644_v4  ;;  %v18875_v28 = vpop.permute.xlu1 %18874  ;;  %9833 = vmatprep.mubr.f32.mxu0 %v23646_v52  ;;  %v16650_v26 = vpack.c.bf16 %v9966_v7, %v9963_v59 }
 0x572   :  { %16649 = vmatprep.subr.bf16.mxu0 %v16648_v60  ;;  %v18877_v48 = vunpack.i.h.bf16 %v18875_v28  ;;  %v18876_v19 = vunpack.i.l.bf16 %v18875_v28  ;;  %v9970_v15 = vsel %vm2795_vm15, %v18871_v27, %v18872_v47 }
 0x573   :  { %v18880_v40 = vpop.permute.xlu0 %18879 }
 0x574   :  { %14718 = vmatmul.mubr.msk.f32.gmra.mrb[36].mxu0 %vm165_vm0, %v9671_v45  ;;  %v18882_v20 = vunpack.i.h.bf16 %v18880_v40  ;;  %v9973_v62 = vsel %vm2795_vm15, %v18876_v19, %v18877_v48  ;;  %v18881_v38 = vunpack.i.l.bf16 %v18880_v40 }
 0x575   :  { %9839 = vmatprep.mubr.f32.mxu0 %v23646_v52  ;;  %v18885_v12 = vpop.permute.xlu1 %18884  ;;  %v16652_v41 = vpack.c.bf16 %v9973_v62, %v9970_v15 }
 0x576   :  { %v18887_v5 = vunpack.i.h.bf16 %v18885_v12  ;;  %v18886_v8 = vunpack.i.l.bf16 %v18885_v12  ;;  %v9972_v43 = vsel %vm2795_vm15, %v18882_v20, %v18876_v19  ;;  %v9969_v16 = vsel %vm2795_vm15, %v18881_v38, %v18871_v27 }
 0x577   :  { %v18895_v54 = vpop.permute.xlu0 %18894 }
 0x578   :  { %14719 = vmatmul.mubr.msk.f32.gmra.mrb[38].mxu0 %vm165_vm0, %v9672_v18  ;;  %v18897_v51 = vunpack.i.h.bf16 %v18895_v54  ;;  %v18896_v58 = vunpack.i.l.bf16 %v18895_v54  ;;  %v9965_v24 = vsel %vm2795_vm15, %v18852_v36, %v18886_v8  ;;  %v9968_v35 = vsel %vm2795_vm15, %v18862_v34, %v18887_v5 }
 0x579   :  { %15812 = vmatprep.mubr.msk.f32.mxu0 %vm165_vm0, %v9669_v25  ;;  %v22584_v31 = vpop.permute.xlu1 %18889  ;;  %v16654_v25 = vpack.c.bf16 %v9972_v43, %v9969_v16  ;;  %v16656_v42 = vpack.c.bf16 %v9968_v35, %v9965_v24 }
 0x57a   :  { %v18892_v53 = vunpack.i.h.bf16 %v22584_v31  ;;  %v18891_v39 = vunpack.i.l.bf16 %v22584_v31  ;;  %v9971_v36 = vsel %vm2795_vm15, %v18872_v47, %v18896_v58  ;;  %v9974_v29 = vsel %vm2795_vm15, %v18877_v48, %v18897_v51  ;;  %vm23694_vm15 = vmmov %vm23693_vm14 }
 0x57b   :  { %v22591_v30 = vpop.permute.xlu0 %18899  ;;  %v16660_v14 = vpack.c.bf16 %v9974_v29, %v9971_v36  ;;  %v10173_v36 = vld [vmem:[#allocation7 + $0x160] sm:$0xff] }
 0x57c   :  { %15813 = vmatmul.mubr.msk.f32.vlgmr.msra.gmra.mrb[40].mxu0 %vm165_vm0, %v9670_v32  ;;  %v18902_v21 = vunpack.i.h.bf16 %v22591_v30  ;;  %v18901_v4 = vunpack.i.l.bf16 %v22591_v30  ;;  %v9666_v32 = vld [vmem:[#allocation7 + $0x128] sm:$0xff]  ;;  %v10210_v50 = vsel %vm3043_vm9, %v18891_v39, %v18892_v53 }
 0x57d   :  { %16651 = vmatpush1.bf16.msra.mxu0 %v16650_v26  ;;  %15815 = vmatprep.mubr.msk.f32.mxu0 %vm165_vm0, %v9671_v45  ;;  %v18905_v34 = vpop.permute.xlu1 %18904  ;;  %v9667_v45 = vld [vmem:[#allocation7 + $0x130] sm:$0xff] }
 0x57e   :  { %16653 = vmatprep.subr.bf16.mxu0 %v16652_v41  ;;  %v10213_v6 = vsel %vm3043_vm9, %v18901_v4, %v18902_v21  ;;  %v18907_v10 = vunpack.i.h.bf16 %v18905_v34  ;;  %v18906_v22 = vunpack.i.l.bf16 %v18905_v34 }
 0x57f   :  { %v18910_v1 = vpop.permute.xlu0 %18909  ;;  %v16664_v28 = vpack.c.bf16 %v10213_v6, %v10210_v50 }
 0x580   :  { %15816 = vmatmul.mubr.msk.f32.gmra.mrb[42].mxu0 %vm165_vm0, %v9672_v18  ;;  %v9668_v18 = vld [vmem:[#allocation7 + $0x138] sm:$0xff]  ;;  %v18912_v47 = vunpack.i.h.bf16 %v18910_v1  ;;  %v18911_v27 = vunpack.i.l.bf16 %v18910_v1  ;;  %v10209_v59 = vsel %vm3043_vm9, %v18906_v22, %v18891_v39  ;;  %v10212_v7 = vsel %vm3043_vm9, %v18907_v10, %v18901_v4 }
 0x581   :  { %16655 = vmatpush1.bf16.msra.mxu0 %v16654_v25  ;;  %10063 = vmatprep.mubr.f32.mxu0 %v23646_v52  ;;  %v18915_v60 = vpop.permute.xlu1 %18914  ;;  %v16666_v26 = vpack.c.bf16 %v10212_v7, %v10209_v59 }
 0x582   :  { %16657 = vmatprep.subr.bf16.mxu0 %v16656_v42  ;;  %v18917_v48 = vunpack.i.h.bf16 %v18915_v60  ;;  %v18916_v19 = vunpack.i.l.bf16 %v18915_v60  ;;  %v10216_v15 = vsel %vm3043_vm9, %v18911_v27, %v18912_v47 }
 0x583   :  { %v18920_v40 = vpop.permute.xlu0 %18919 }
 0x584   :  { %14724 = vmatmul.mubr.msk.f32.vlgmr.msra.gmra.mrb[32].mxu0 %vm165_vm0, %v9665_v17  ;;  %v18922_v20 = vunpack.i.h.bf16 %v18920_v40  ;;  %v10219_v62 = vsel %vm3043_vm9, %v18916_v19, %v18917_v48  ;;  %v18921_v38 = vunpack.i.l.bf16 %v18920_v40 }
 0x585   :  { %16659 = vmatpush3.bf16.msra.mxu0 %v16656_v42  ;;  %10069 = vmatprep.mubr.f32.mxu0 %v23646_v52  ;;  %v18925_v12 = vpop.permute.xlu1 %18924  ;;  %v16668_v41 = vpack.c.bf16 %v10219_v62, %v10216_v15 }
 0x586   :  { %16661 = vmatprep.subr.bf16.mxu0 %v16660_v14  ;;  %v18927_v5 = vunpack.i.h.bf16 %v18925_v12  ;;  %v18926_v8 = vunpack.i.l.bf16 %v18925_v12  ;;  %v10218_v43 = vsel %vm3043_vm9, %v18922_v20, %v18916_v19  ;;  %v10215_v16 = vsel %vm3043_vm9, %v18921_v38, %v18911_v27 }
 0x587   :  { %v18935_v54 = vpop.permute.xlu0 %18934  ;;  %v16670_v25 = vpack.c.bf16 %v10218_v43, %v10215_v16 }
 0x588   :  { %14725 = vmatmul.mubr.msk.f32.gmra.mrb[34].mxu0 %vm165_vm0, %v9666_v32  ;;  %v18937_v51 = vunpack.i.h.bf16 %v18935_v54  ;;  %v18936_v58 = vunpack.i.l.bf16 %v18935_v54  ;;  %v10211_v24 = vsel %vm3043_vm9, %v18892_v53, %v18926_v8  ;;  %v10214_v35 = vsel %vm3043_vm9, %v18902_v21, %v18927_v5 }
 0x589   :  { %16663 = vmatpush3.bf16.msra.mxu0 %v16660_v14  ;;  %10075 = vmatprep.mubr.f32.mxu0 %v23646_v52  ;;  %v22616_v31 = vpop.permute.xlu1 %18929  ;;  %v16672_v42 = vpack.c.bf16 %v10214_v35, %v10211_v24 }
 0x58a   :  { %16665 = vmatprep.subr.bf16.mxu0 %v16664_v28  ;;  %v18932_v39 = vunpack.i.h.bf16 %v22616_v31  ;;  %v10217_v53 = vsel %vm3043_vm9, %v18912_v47, %v18936_v58  ;;  %v10220_v29 = vsel %vm3043_vm9, %v18917_v48, %v18937_v51  ;;  %vm23695_vm9 = vmmov %vm23693_vm14 }
 0x58b   :  { %v22623_v30 = vpop.permute.xlu0 %18939  ;;  %v16676_v14 = vpack.c.bf16 %v10220_v29, %v10217_v53  ;;  %v10433_v53 = vld [vmem:[#allocation7 + $0x190] sm:$0xff]  ;;  %v10434_v29 = vld [vmem:[#allocation7 + $0x198] sm:$0xff]  ;;  %vm23698_vm4 = vmmov %vm23695_vm9 }
 0x58c   :  { %14726 = vmatmul.mubr.msk.f32.gmra.mrb[36].mxu0 %vm165_vm0, %v9667_v45  ;;  %v18942_v21 = vunpack.i.h.bf16 %v22623_v30  ;;  %v18941_v4 = vunpack.i.l.bf16 %v22623_v30  ;;  %v10431_v30 = vld [vmem:[#allocation7 + $0x180] sm:$0xff] }
 0x58d   :  { %10081 = vmatprep.mubr.f32.mxu0 %v23646_v52  ;;  %v18945_v34 = vpop.permute.xlu1 %18944 }
 0x58e   :  { %v10471_v6 = vsel %vm3303_vm10, %v18941_v4, %v18942_v21  ;;  %v18947_v10 = vunpack.i.h.bf16 %v18945_v34  ;;  %v18946_v22 = vunpack.i.l.bf16 %v18945_v34 }
 0x58f   :  { %v18950_v1 = vpop.permute.xlu0 %18949 }
 0x590   :  { %14727 = vmatmul.mubr.msk.f32.gmra.mrb[38].mxu0 %vm165_vm0, %v9668_v18  ;;  %v18952_v47 = vunpack.i.h.bf16 %v18950_v1  ;;  %v18951_v27 = vunpack.i.l.bf16 %v18950_v1  ;;  %v10470_v7 = vsel %vm3303_vm10, %v18947_v10, %v18941_v4  ;;  %v10691_v4 = vld [vmem:[#allocation7 + $0x1b0] sm:$0xff] }
 0x591   :  { %15826 = vmatprep.mubr.msk.f32.mxu0 %vm165_vm0, %v9665_v17  ;;  %v18931_v17 = vunpack.i.l.bf16 %v22616_v31  ;;  %v18955_v60 = vpop.permute.xlu1 %18954 }
 0x592   :  { %v18957_v48 = vunpack.i.h.bf16 %v18955_v60  ;;  %v18956_v19 = vunpack.i.l.bf16 %v18955_v60  ;;  %v10474_v15 = vsel %vm3303_vm10, %v18951_v27, %v18952_v47 }
 0x593   :  { %v10468_v50 = vsel %vm3303_vm10, %v18931_v17, %v18932_v39  ;;  %v18960_v40 = vpop.permute.xlu0 %18959  ;;  %v10467_v59 = vsel %vm3303_vm10, %v18946_v22, %v18931_v17 }
 0x594   :  { %15827 = vmatmul.mubr.msk.f32.vlgmr.msra.gmra.mrb[40].mxu0 %vm165_vm0, %v9666_v32  ;;  %v10174_v32 = vld [vmem:[#allocation7 + $0x168] sm:$0xff]  ;;  %v16680_v28 = vpack.c.bf16 %v10471_v6, %v10468_v50  ;;  %v18962_v20 = vunpack.i.h.bf16 %v18960_v40  ;;  %v10477_v62 = vsel %vm3303_vm10, %v18956_v19, %v18957_v48  ;;  %v18961_v38 = vunpack.i.l.bf16 %v18960_v40  ;;  %v10692_v6 = vld [vmem:[#allocation7 + $0x1b8] sm:$0xff] }
 0x595   :  { %16667 = vmatpush1.bf16.msra.mxu0 %v16666_v26  ;;  %15829 = vmatprep.mubr.msk.f32.mxu0 %vm165_vm0, %v9667_v45  ;;  %v10175_v45 = vld [vmem:[#allocation7 + $0x170] sm:$0xff]  ;;  %v18965_v12 = vpop.permute.xlu1 %18964  ;;  %v16682_v26 = vpack.c.bf16 %v10470_v7, %v10467_v59  ;;  %v16684_v31 = vpack.c.bf16 %v10477_v62, %v10474_v15 }
 0x596   :  { %16669 = vmatprep.subr.bf16.mxu0 %v16668_v41  ;;  %v18967_v5 = vunpack.i.h.bf16 %v18965_v12  ;;  %v18966_v8 = vunpack.i.l.bf16 %v18965_v12  ;;  %v10476_v43 = vsel %vm3303_vm10, %v18962_v20, %v18956_v19  ;;  %v10473_v35 = vsel %vm3303_vm10, %v18961_v38, %v18951_v27 }
 0x597   :  { %v18970_v54 = vpop.permute.xlu0 %18969  ;;  %v16686_v16 = vpack.c.bf16 %v10476_v43, %v10473_v35 }
 0x598   :  { %15830 = vmatmul.mubr.msk.f32.gmra.mrb[42].mxu0 %vm165_vm0, %v9668_v18  ;;  %v10176_v18 = vld [vmem:[#allocation7 + $0x178] sm:$0xff]  ;;  %v18972_v41 = vunpack.i.h.bf16 %v18970_v54  ;;  %v18971_v51 = vunpack.i.l.bf16 %v18970_v54  ;;  %v10469_v58 = vsel %vm3303_vm10, %v18932_v39, %v18966_v8  ;;  %v10472_v24 = vsel %vm3303_vm10, %v18942_v21, %v18967_v5 }
 0x599   :  { %16671 = vmatpush1.bf16.msra.mxu0 %v16670_v25  ;;  %10309 = vmatprep.mubr.f32.mxu0 %v23646_v52  ;;  %v16688_v25 = vpack.c.bf16 %v10472_v24, %v10469_v58  ;;  %v22668_v34 = vpop.permute.xlu1 %18974 }
 0x59a   :  { %16673 = vmatprep.subr.bf16.mxu0 %v16672_v42  ;;  %v10478_v17 = vsel %vm3303_vm10, %v18957_v48, %v18972_v41  ;;  %v18977_v61 = vunpack.i.h.bf16 %v22668_v34 }
 0x59b   :  { %v18980_v11 = vpop.permute.xlu0 %18979 }
 0x59c   :  { %14732 = vmatmul.mubr.msk.f32.vlgmr.msra.gmra.mrb[32].mxu0 %vm165_vm0, %v10173_v36  ;;  %v18981_v46 = vunpack.i.l.bf16 %v18980_v11 }
 0x59d   :  { %16675 = vmatpush3.bf16.msra.mxu0 %v16672_v42  ;;  %10315 = vmatprep.mubr.f32.mxu0 %v23646_v52  ;;  %v10475_v42 = vsel %vm3303_vm10, %v18952_v47, %v18971_v51  ;;  %v18985_v13 = vpop.permute.xlu1 %18984  ;;  %v10891_v51 = vld [vmem:[#allocation7 + $0x1c0] sm:$0xff]  ;;  %vm23696_vm10 = vmmov %vm23695_vm9 }
 0x59e   :  { %16677 = vmatprep.subr.bf16.mxu0 %v16676_v14  ;;  %v16692_v39 = vpack.c.bf16 %v10478_v17, %v10475_v42  ;;  %v10892_v42 = vld [vmem:[#allocation7 + $0x1c8] sm:$0xff] }
 0x59f   :  { %v18995_v21 = vpop.permute.xlu0 %18994 }
 0x5a0   :  { %14733 = vmatmul.mubr.msk.f32.gmra.mrb[34].mxu0 %vm165_vm0, %v10174_v32 }
 0x5a1   :  { %16679 = vmatpush3.bf16.msra.mxu0 %v16676_v14  ;;  %10321 = vmatprep.mubr.f32.mxu0 %v23646_v52  ;;  %v18990_v49 = vpop.permute.xlu1 %18989  ;;  %v18986_v14 = vunpack.i.l.bf16 %v18985_v13 }
 0x5a2   :  { %16681 = vmatprep.subr.bf16.mxu0 %v16680_v28  ;;  %v18992_v50 = vunpack.i.h.bf16 %v18990_v49  ;;  %v18991_v1 = vunpack.i.l.bf16 %v18990_v49  ;;  %v18997_v28 = vunpack.i.h.bf16 %v18995_v21 }
 0x5a4   :  { %14734 = vmatmul.mubr.msk.f32.gmra.mrb[36].mxu0 %vm165_vm0, %v10175_v45  ;;  %v10941_v48 = vsel %vm3770_vm11, %v18991_v1, %v18992_v50 }
 0x5a5   :  { %10327 = vmatprep.mubr.f32.mxu0 %v23646_v52  ;;  %v19005_v60 = vpop.permute.xlu1 %19004 }
 0x5a6   :  { %v19007_v22 = vunpack.i.h.bf16 %v19005_v60  ;;  %v19006_v40 = vunpack.i.l.bf16 %v19005_v60 }
 0x5a8   :  { %14735 = vmatmul.mubr.msk.f32.gmra.mrb[38].mxu0 %vm165_vm0, %v10176_v18  ;;  %v10933_v62 = vsel %vm3770_vm11, %v18977_v61, %v19006_v40 }
 0x5a9   :  { %15840 = vmatprep.mubr.msk.f32.mxu0 %vm165_vm0, %v10173_v36  ;;  %v10432_v36 = vld [vmem:[#allocation7 + $0x188] sm:$0xff]  ;;  %v22704_v7 = vpop.permute.xlu1 %19014 }
 0x5aa   :  { %v19016_v41 = vunpack.i.l.bf16 %v22704_v7 }
 0x5ac   :  { %15841 = vmatmul.mubr.msk.f32.vlgmr.msra.gmra.mrb[40].mxu0 %vm165_vm0, %v10174_v32  ;;  %v19000_v32 = vpop.permute.xlu0 %18999 }
 0x5ad   :  { %16683 = vmatpush1.bf16.msra.mxu0 %v16682_v26  ;;  %15843 = vmatprep.mubr.msk.f32.mxu0 %vm165_vm0, %v10175_v45  ;;  %v18996_v45 = vunpack.i.l.bf16 %v18995_v21  ;;  %v19002_v19 = vunpack.i.h.bf16 %v19000_v32  ;;  %v19025_v35 = vpop.permute.xlu1 %19024 }
 0x5ae   :  { %16685 = vmatprep.subr.bf16.mxu0 %v16684_v31  ;;  %v19017_v31 = vunpack.i.h.bf16 %v22704_v7 }
 0x5af   :  { %v10938_v27 = vsel %vm3770_vm11, %v18996_v45, %v18997_v28  ;;  %v10940_v59 = vsel %vm3770_vm11, %v19002_v19, %v18991_v1 }
 0x5b0   :  { %15844 = vmatmul.mubr.msk.f32.gmra.mrb[42].mxu0 %vm165_vm0, %v10176_v18  ;;  %v19001_v18 = vunpack.i.l.bf16 %v19000_v32  ;;  %v19010_v12 = vpop.permute.xlu0 %19009  ;;  %v16716_v20 = vpack.c.bf16 %v10941_v48, %v10938_v27  ;;  %v11190_v17 = vsel %vm23693_vm14, %v19016_v41, %v19017_v31  ;;  %vm23699_vm14 = vmmov %vm23698_vm4  ;;  %v11153_v27 = vld [vmem:[#allocation7 + $0x1e0] sm:$0xff] }
 0x5b1   :  { %16687 = vmatpush1.bf16.msra.mxu0 %v16686_v16  ;;  %10567 = vmatprep.mubr.f32.mxu0 %v23646_v52  ;;  %v19012_v5 = vunpack.i.h.bf16 %v19010_v12  ;;  %v19011_v8 = vunpack.i.l.bf16 %v19010_v12 }
 0x5b2   :  { %16689 = vmatprep.subr.bf16.mxu0 %v16688_v25  ;;  %v10937_v54 = vsel %vm3770_vm11, %v19001_v18, %v18996_v45 }
 0x5b3   :  { %v16718_v26 = vpack.c.bf16 %v10940_v59, %v10937_v54  ;;  %v10939_v58 = vsel %vm3770_vm11, %v18997_v28, %v19011_v8  ;;  %v10942_v24 = vsel %vm3770_vm11, %v18992_v50, %v19012_v5 }
 0x5b4   :  { %14740 = vmatmul.mubr.msk.f32.vlgmr.msra.gmra.mrb[32].mxu0 %vm165_vm0, %v10431_v30  ;;  %v22711_v15 = vpop.permute.xlu0 %19019 }
 0x5b5   :  { %16691 = vmatpush3.bf16.msra.mxu0 %v16688_v25  ;;  %10573 = vmatprep.mubr.f32.mxu0 %v23646_v52  ;;  %v19022_v16 = vunpack.i.h.bf16 %v22711_v15  ;;  %v19021_v25 = vunpack.i.l.bf16 %v22711_v15 }
 0x5b6   :  { %16693 = vmatprep.subr.bf16.mxu0 %v16692_v39 }
 0x5b8   :  { %14741 = vmatmul.mubr.msk.f32.gmra.mrb[34].mxu0 %vm165_vm0, %v10432_v36 }
 0x5b9   :  { %16695 = vmatpush3.bf16.msra.mxu0 %v16692_v39  ;;  %10579 = vmatprep.mubr.f32.mxu0 %v23646_v52  ;;  %v19035_v39 = vpop.permute.xlu0 %19034 }
 0x5ba   :  { %16697 = vmatprep.subr.bf16.mxu0 %v16696_v9  ;;  %v18976_v9 = vunpack.i.l.bf16 %v22668_v34  ;;  %v10893_v34 = vld [vmem:[#allocation7 + $0x1d0] sm:$0xff] }
 0x5bc   :  { %14742 = vmatmul.mubr.msk.f32.gmra.mrb[36].mxu0 %vm165_vm0, %v10433_v53  ;;  %v10931_v10 = vsel %vm3770_vm11, %v18986_v14, %v18976_v9 }
 0x5bd   :  { %10585 = vmatprep.mubr.f32.mxu0 %v23646_v52 }
 0x5c0   :  { %14743 = vmatmul.mubr.msk.f32.gmra.mrb[38].mxu0 %vm165_vm0, %v10434_v29 }
 0x5c1   :  { %15854 = vmatprep.mubr.msk.f32.mxu0 %vm165_vm0, %v10431_v30  ;;  %v16724_v30 = vpack.c.bf16 %v10942_v24, %v10939_v58 }
 0x5c4   :  { %15855 = vmatmul.mubr.msk.f32.vlgmr.msra.gmra.mrb[40].mxu0 %vm165_vm0, %v10432_v36  ;;  %v11193_v36 = vsel %vm23694_vm15, %v19021_v25, %v19022_v16  ;;  %vm23700_vm15 = vmmov %vm23698_vm4 }
 0x5c5   :  { %16699 = vmatpush1.bf16.msra.mxu0 %v16698_v57  ;;  %15857 = vmatprep.mubr.msk.f32.mxu0 %vm165_vm0, %v10433_v53  ;;  %v18982_v57 = vunpack.i.h.bf16 %v18980_v11  ;;  %v19030_v53 = vpop.permute.xlu1 %19029  ;;  %v19027_v11 = vunpack.i.h.bf16 %v19025_v35 }
 0x5c6   :  { %16701 = vmatprep.subr.bf16.mxu0 %v16700_v56  ;;  %v10932_v56 = vsel %vm3770_vm11, %v18976_v9, %v18977_v61  ;;  %v19026_v61 = vunpack.i.l.bf16 %v19025_v35  ;;  %v19040_v9 = vpop.permute.xlu0 %19039 }
 0x5c7   :  { %v10935_v63 = vsel %vm3770_vm11, %v18981_v46, %v18982_v57  ;;  %v10936_v38 = vsel %vm3770_vm11, %v18982_v57, %v19007_v22  ;;  %v10894_v57 = vld [vmem:[#allocation7 + $0x1d8] sm:$0xff]  ;;  %v19041_v14 = vunpack.i.l.bf16 %v19040_v9 }
 0x5c8   :  { %15858 = vmatmul.mubr.msk.f32.gmra.mrb[42].mxu0 %vm165_vm0, %v10434_v29  ;;  %v16720_v43 = vpack.c.bf16 %v10936_v38, %v10933_v62  ;;  %v16728_v29 = vpack.c.bf16 %v11193_v36, %v11190_v17  ;;  %v11189_v21 = vsel %vm23695_vm9, %v19026_v61, %v19016_v41  ;;  %v11154_v38 = vld [vmem:[#allocation7 + $0x1e8] sm:$0xff]  ;;  %v11155_v41 = vld [vmem:[#allocation7 + $0x1f0] sm:$0xff] }
 0x5c9   :  { %16703 = vmatpush1.bf16.msra.mxu0 %v16702_v2  ;;  %10769 = vmatprep.mubr.f32.mxu0 %v23646_v52  ;;  %v16712_v2 = vpack.c.bf16 %v10935_v63, %v10932_v56  ;;  %v19036_v56 = vunpack.i.l.bf16 %v19035_v39  ;;  %v11192_v63 = vsel %vm23696_vm10, %v19027_v11, %v19021_v25  ;;  %vm23702_vm10 = vmmov %vm23698_vm4  ;;  %v11156_v25 = vld [vmem:[#allocation7 + $0x1f8] sm:$0xff] }
 0x5ca   :  { %16705 = vmatprep.subr.bf16.mxu0 %v22347_v37  ;;  %v19050_v32 = vpop.permute.xlu0 %19049  ;;  %v16730_v50 = vpack.c.bf16 %v11192_v63, %v11189_v21 }
 0x5cb   :  { %v19052_v45 = vunpack.i.h.bf16 %v19050_v32  ;;  %v11195_v40 = vsel %vm23702_vm10, %v19041_v14, %v19036_v56 }
 0x5cc   :  { %14748 = vmatmul.mubr.msk.f32.vlgmr.msra.gmra.mrb[32].mxu0 %vm165_vm0, %v10689_v0 }
 0x5cd   :  { %16707 = vmatpush3.bf16.msra.mxu0 %v22347_v37  ;;  %10775 = vmatprep.mubr.f32.mxu0 %v23646_v52  ;;  %v18987_v37 = vunpack.i.h.bf16 %v18985_v13  ;;  %v19031_v13 = vunpack.i.l.bf16 %v19030_v53 }
 0x5ce   :  { %16709 = vmatprep.subr.bf16.mxu0 %v22351_v55  ;;  %v22743_v19 = vpop.permute.xlu0 %19059 }
 0x5cf   :  { %v19062_v5 = vunpack.i.h.bf16 %v22743_v19  ;;  %v19061_v8 = vunpack.i.l.bf16 %v22743_v19 }
 0x5d0   :  { %14749 = vmatmul.mubr.msk.f32.gmra.mrb[34].mxu0 %vm165_vm0, %v10690_v33 }
 0x5d1   :  { %16711 = vmatpush3.bf16.msra.mxu0 %v22351_v55  ;;  %10781 = vmatprep.mubr.f32.mxu0 %v23646_v52  ;;  %v10934_v55 = vsel %vm3770_vm11, %v18987_v37, %v18981_v46  ;;  %v19045_v46 = vpop.permute.xlu1 %19044  ;;  %vm23697_vm11 = vmmov %vm23695_vm9  ;;  %v19042_v37 = vunpack.i.h.bf16 %v19040_v9  ;;  %v11451_v15 = vsel %vm4290_vm13, %v19061_v8, %v19062_v5 }
 0x5d2   :  { %16713 = vmatprep.subr.bf16.mxu0 %v16712_v2  ;;  %v16714_v47 = vpack.c.bf16 %v10934_v55, %v10931_v10  ;;  %v19047_v49 = vunpack.i.h.bf16 %v19045_v46  ;;  %v19046_v2 = vunpack.i.l.bf16 %v19045_v46  ;;  %v19051_v10 = vunpack.i.l.bf16 %v19050_v32  ;;  %vm23701_vm9 = vmmov %vm23698_vm4 }
 0x5d4   :  { %14750 = vmatmul.mubr.msk.f32.gmra.mrb[36].mxu0 %vm165_vm0, %v10691_v4  ;;  %v11191_v55 = vsel %vm23700_vm15, %v19017_v31, %v19046_v2  ;;  %v11194_v22 = vsel %vm23701_vm9, %v19022_v16, %v19047_v49 }
 0x5d5   :  { %10787 = vmatprep.mubr.f32.mxu0 %v23646_v52  ;;  %v22736_v60 = vpop.permute.xlu1 %19054  ;;  %v16736_v18 = vpack.c.bf16 %v11194_v22, %v11191_v55  ;;  %v11412_v22 = vld [vmem:[#allocation7 + $0x208] sm:$0xff] }
 0x5d6   :  { %v19057_v12 = vunpack.i.h.bf16 %v22736_v60 }
 0x5d8   :  { %14751 = vmatmul.mubr.msk.f32.gmra.mrb[38].mxu0 %vm165_vm0, %v10692_v6 }
 0x5d9   :  { %15868 = vmatprep.mubr.msk.f32.mxu0 %vm165_vm0, %v10689_v0  ;;  %v19032_v0 = vunpack.i.h.bf16 %v19030_v53 }
 0x5db   :  { %v11200_v7 = vsel %vm23698_vm4, %v19032_v0, %v19052_v45 }
 0x5dc   :  { %15869 = vmatmul.mubr.msk.f32.vlgmr.msra.gmra.mrb[40].mxu0 %vm165_vm0, %v10690_v33  ;;  %v19037_v33 = vunpack.i.h.bf16 %v19035_v39 }
 0x5dd   :  { %16715 = vmatpush1.bf16.msra.mxu0 %v16714_v47  ;;  %15871 = vmatprep.mubr.msk.f32.mxu0 %vm165_vm0, %v10691_v4  ;;  %v11199_v4 = vsel %vm23697_vm11, %v19031_v13, %v19032_v0  ;;  %v19056_v47 = vunpack.i.l.bf16 %v22736_v60  ;;  %vm23703_vm11 = vmmov %vm23698_vm4 }
 0x5de   :  { %16717 = vmatprep.subr.bf16.mxu0 %v16716_v20  ;;  %v11196_v1 = vsel %vm23698_vm4, %v19036_v56, %v19037_v33  ;;  %v11197_v59 = vsel %vm23703_vm11, %v19037_v33, %v19051_v10  ;;  %v19065_v20 = vpop.permute.xlu1 %19064 }
 0x5df   :  { %v16732_v28 = vpack.c.bf16 %v11199_v4, %v11196_v1  ;;  %v16740_v62 = vpack.c.bf16 %v11200_v7, %v11197_v59  ;;  %v11448_v54 = vsel %vm4290_vm13, %v19056_v47, %v19057_v12  ;;  %v19066_v58 = vunpack.i.l.bf16 %v19065_v20  ;;  %v11411_v1 = vld [vmem:[#allocation7 + $0x200] sm:$0xff] }
 0x5e0   :  { %15872 = vmatmul.mubr.msk.f32.gmra.mrb[42].mxu0 %vm165_vm0, %v10692_v6  ;;  %v11198_v6 = vsel %vm23699_vm14, %v19042_v37, %v19031_v13  ;;  %v16744_v31 = vpack.c.bf16 %v11451_v15, %v11448_v54 }
 0x5e1   :  { %16719 = vmatpush1.bf16.msra.mxu0 %v16718_v26  ;;  %11031 = vmatprep.mubr.f32.mxu0 %v23646_v52  ;;  %v16734_v48 = vpack.c.bf16 %v11198_v6, %v11195_v40  ;;  %v19075_v26 = vpop.permute.xlu0 %19074  ;;  %v11447_v39 = vsel %vm4290_vm13, %v19066_v58, %v19056_v47  ;;  %v11413_v47 = vld [vmem:[#allocation7 + $0x210] sm:$0xff] }
 0x5e2   :  { %16721 = vmatprep.subr.bf16.mxu0 %v16720_v43  ;;  %v19076_v17 = vunpack.i.l.bf16 %v19075_v26 }
 0x5e4   :  { %14756 = vmatmul.mubr.msk.f32.vlgmr.msra.gmra.mrb[32].mxu0 %vm165_vm0, %v10891_v51 }
 0x5e5   :  { %16723 = vmatpush3.bf16.msra.mxu0 %v16720_v43  ;;  %11037 = vmatprep.mubr.f32.mxu0 %v23646_v52  ;;  %v19070_v43 = vpop.permute.xlu1 %19069  ;;  %v19080_v24 = vpop.permute.xlu0 %19079 }
 0x5e6   :  { %16725 = vmatprep.subr.bf16.mxu0 %v16724_v30  ;;  %v19072_v35 = vunpack.i.h.bf16 %v19070_v43  ;;  %v19071_v16 = vunpack.i.l.bf16 %v19070_v43  ;;  %v19082_v11 = vunpack.i.h.bf16 %v19080_v24  ;;  %v19081_v61 = vunpack.i.l.bf16 %v19080_v24 }
 0x5e8   :  { %14757 = vmatmul.mubr.msk.f32.gmra.mrb[34].mxu0 %vm165_vm0, %v10892_v42  ;;  %v11453_v2 = vsel %vm4290_vm13, %v19081_v61, %v19076_v17 }
 0x5e9   :  { %16727 = vmatpush3.bf16.msra.mxu0 %v16724_v30  ;;  %11043 = vmatprep.mubr.f32.mxu0 %v23646_v52  ;;  %v19085_v30 = vpop.permute.xlu1 %19084  ;;  %v19090_v9 = vpop.permute.xlu0 %19089 }
 0x5ea   :  { %16729 = vmatprep.subr.bf16.mxu0 %v16728_v29  ;;  %v19087_v53 = vunpack.i.h.bf16 %v19085_v30  ;;  %v19086_v29 = vunpack.i.l.bf16 %v19085_v30  ;;  %v19092_v56 = vunpack.i.h.bf16 %v19090_v9  ;;  %v19091_v21 = vunpack.i.l.bf16 %v19090_v9 }
 0x5ec   :  { %14758 = vmatmul.mubr.msk.f32.gmra.mrb[36].mxu0 %vm165_vm0, %v10893_v34  ;;  %v11449_v63 = vsel %vm4290_vm13, %v19057_v12, %v19086_v29  ;;  %v11452_v49 = vsel %vm4290_vm13, %v19062_v5, %v19087_v53  ;;  %v11458_v60 = vsel %vm4290_vm13, %v19072_v35, %v19092_v56 }
 0x5ed   :  { %11049 = vmatprep.mubr.f32.mxu0 %v23646_v52  ;;  %v22768_v46 = vpop.permute.xlu1 %19094  ;;  %v22775_v37 = vpop.permute.xlu0 %19099  ;;  %v16752_v14 = vpack.c.bf16 %v11452_v49, %v11449_v63 }
 0x5ee   :  { %v19097_v32 = vunpack.i.h.bf16 %v22768_v46  ;;  %v19102_v45 = vunpack.i.h.bf16 %v22775_v37  ;;  %v19101_v10 = vunpack.i.l.bf16 %v22775_v37  ;;  %v11670_v37 = vld [vmem:[#allocation7 + $0x228] sm:$0xff] }
 0x5f0   :  { %14759 = vmatmul.mubr.msk.f32.gmra.mrb[38].mxu0 %vm165_vm0, %v10894_v57  ;;  %v11709_v19 = vsel %vm4550_vm12, %v19101_v10, %v19102_v45 }
 0x5f1   :  { %15882 = vmatprep.mubr.msk.f32.mxu0 %vm165_vm0, %v10891_v51  ;;  %v19067_v51 = vunpack.i.h.bf16 %v19065_v20 }
 0x5f3   :  { %v11450_v36 = vsel %vm4290_vm13, %v19067_v51, %v19061_v8 }
 0x5f4   :  { %15883 = vmatmul.mubr.msk.f32.vlgmr.msra.gmra.mrb[40].mxu0 %vm165_vm0, %v10892_v42  ;;  %v19077_v42 = vunpack.i.h.bf16 %v19075_v26  ;;  %v16746_v0 = vpack.c.bf16 %v11450_v36, %v11447_v39 }
 0x5f5   :  { %16731 = vmatpush1.bf16.msra.mxu0 %v16730_v50  ;;  %15885 = vmatprep.mubr.msk.f32.mxu0 %vm165_vm0, %v10893_v34  ;;  %v11457_v34 = vsel %vm4290_vm13, %v19071_v16, %v19072_v35  ;;  %v19096_v50 = vunpack.i.l.bf16 %v22768_v46 }
 0x5f6   :  { %16733 = vmatprep.subr.bf16.mxu0 %v16732_v28  ;;  %v11454_v13 = vsel %vm4290_vm13, %v19076_v17, %v19077_v42  ;;  %v11455_v6 = vsel %vm4290_vm13, %v19077_v42, %v19091_v21  ;;  %v19105_v28 = vpop.permute.xlu1 %19104  ;;  %v11669_v21 = vld [vmem:[#allocation7 + $0x220] sm:$0xff] }
 0x5f7   :  { %v16748_v33 = vpack.c.bf16 %v11457_v34, %v11454_v13  ;;  %v16756_v55 = vpack.c.bf16 %v11458_v60, %v11455_v6  ;;  %v11706_v40 = vsel %vm4550_vm12, %v19096_v50, %v19097_v32  ;;  %v19107_v59 = vunpack.i.h.bf16 %v19105_v28 }
 0x5f8   :  { %15886 = vmatmul.mubr.msk.f32.gmra.mrb[42].mxu0 %vm165_vm0, %v10894_v57  ;;  %v11456_v57 = vsel %vm4290_vm13, %v19082_v11, %v19071_v16  ;;  %v16760_v12 = vpack.c.bf16 %v11709_v19, %v11706_v40  ;;  %v19106_v7 = vunpack.i.l.bf16 %v19105_v28 }
 0x5f9   :  { %16735 = vmatpush1.bf16.msra.mxu0 %v16734_v48  ;;  %11289 = vmatprep.mubr.f32.mxu0 %v23646_v52  ;;  %v16750_v4 = vpack.c.bf16 %v11456_v57, %v11453_v2  ;;  %v19115_v48 = vpop.permute.xlu0 %19114 }
 0x5fa   :  { %16737 = vmatprep.subr.bf16.mxu0 %v16736_v18  ;;  %v19117_v26 = vunpack.i.h.bf16 %v19115_v48  ;;  %v19116_v15 = vunpack.i.l.bf16 %v19115_v48 }
 0x5fc   :  { %14764 = vmatmul.mubr.msk.f32.vlgmr.msra.gmra.mrb[32].mxu0 %vm165_vm0, %v11153_v27  ;;  %v11712_v17 = vsel %vm4550_vm12, %v19116_v15, %v19117_v26 }
 0x5fd   :  { %16739 = vmatpush3.bf16.msra.mxu0 %v16736_v18  ;;  %11295 = vmatprep.mubr.f32.mxu0 %v23646_v52  ;;  %v19110_v18 = vpop.permute.xlu1 %19109  ;;  %v19120_v20 = vpop.permute.xlu0 %19119 }
 0x5fe   :  { %16741 = vmatprep.subr.bf16.mxu0 %v16740_v62  ;;  %v19112_v8 = vunpack.i.h.bf16 %v19110_v18  ;;  %v19122_v16 = vunpack.i.h.bf16 %v19120_v20 }
 0x600   :  { %14765 = vmatmul.mubr.msk.f32.gmra.mrb[34].mxu0 %vm165_vm0, %v11154_v38 }
 0x601   :  { %16743 = vmatpush3.bf16.msra.mxu0 %v16740_v62  ;;  %11301 = vmatprep.mubr.f32.mxu0 %v23646_v52  ;;  %v19111_v62 = vunpack.i.l.bf16 %v19110_v18  ;;  %v19125_v54 = vpop.permute.xlu1 %19124  ;;  %v19130_v30 = vpop.permute.xlu0 %19129 }
 0x602   :  { %16745 = vmatprep.subr.bf16.mxu0 %v16744_v31  ;;  %v11705_v31 = vsel %vm4550_vm12, %v19106_v7, %v19096_v50  ;;  %v19127_v58 = vunpack.i.h.bf16 %v19125_v54  ;;  %v19126_v24 = vunpack.i.l.bf16 %v19125_v54  ;;  %v19132_v34 = vunpack.i.h.bf16 %v19130_v30  ;;  %v11671_v50 = vld [vmem:[#allocation7 + $0x230] sm:$0xff] }
 0x603   :  { %v11715_v35 = vsel %vm4550_vm12, %v19111_v62, %v19112_v8  ;;  %v11714_v36 = vsel %vm4550_vm12, %v19122_v16, %v19111_v62  ;;  %v19131_v11 = vunpack.i.l.bf16 %v19130_v30 }
 0x604   :  { %14766 = vmatmul.mubr.msk.f32.gmra.mrb[36].mxu0 %vm165_vm0, %v11155_v41  ;;  %v16764_v53 = vpack.c.bf16 %v11715_v35, %v11712_v17  ;;  %v11707_v61 = vsel %vm4550_vm12, %v19097_v32, %v19126_v24  ;;  %v11710_v9 = vsel %vm4550_vm12, %v19102_v45, %v19127_v58  ;;  %v11716_v63 = vsel %vm4550_vm12, %v19112_v8, %v19132_v34 }
 0x605   :  { %11307 = vmatprep.mubr.f32.mxu0 %v23646_v52  ;;  %v11713_v46 = vsel %vm4550_vm12, %v19117_v26, %v19131_v11  ;;  %v11934_v6 = vpop.permute.xlu1 %11933 }
 0x606   :  { %v16772_v2 = vpack.c.bf16 %v11716_v63, %v11713_v46 }
 0x608   :  { %14767 = vmatmul.mubr.msk.f32.gmra.mrb[38].mxu0 %vm165_vm0, %v11156_v25 }
 0x609   :  { %15896 = vmatprep.mubr.msk.f32.mxu0 %vm165_vm0, %v11153_v27  ;;  %v11944_v62 = vpop.permute.xlu1 %11943 }
 0x60c   :  { %15897 = vmatmul.mubr.msk.f32.vlgmr.msra.gmra.mrb[40].mxu0 %vm165_vm0, %v11154_v38  ;;  %v11414_v38 = vld [vmem:[#allocation7 + $0x218] sm:$0xff] }
 0x60d   :  { %16747 = vmatpush1.bf16.msra.mxu0 %v16746_v0  ;;  %15899 = vmatprep.mubr.msk.f32.mxu0 %vm165_vm0, %v11155_v41  ;;  %v11708_v41 = vsel %vm4550_vm12, %v19107_v59, %v19101_v10 }
 0x60e   :  { %16749 = vmatprep.subr.bf16.mxu0 %v16748_v33  ;;  %v16762_v42 = vpack.c.bf16 %v11708_v41, %v11705_v31  ;;  %v16768_v33 = vpack.c.bf16 %v11710_v9, %v11707_v61 }
 0x610   :  { %15900 = vmatmul.mubr.msk.f32.gmra.mrb[42].mxu0 %vm165_vm0, %v11156_v25  ;;  %v19121_v25 = vunpack.i.l.bf16 %v19120_v20 }
 0x611   :  { %16751 = vmatpush1.bf16.msra.mxu0 %v16750_v4  ;;  %11547 = vmatprep.mubr.f32.mxu0 %v23646_v52 }
 0x612   :  { %16753 = vmatprep.subr.bf16.mxu0 %v16752_v14  ;;  %v11711_v0 = vsel %vm4550_vm12, %v19121_v25, %v19116_v15 }
 0x613   :  { %v16766_v13 = vpack.c.bf16 %v11714_v36, %v11711_v0 }
 0x614   :  { %14772 = vmatmul.mubr.msk.f32.vlgmr.msra.gmra.mrb[32].mxu0 %vm165_vm0, %v11411_v1 }
 0x615   :  { %16755 = vmatpush3.bf16.msra.mxu0 %v16752_v14  ;;  %11553 = vmatprep.mubr.f32.mxu0 %v23646_v52 }
 0x616   :  { %16757 = vmatprep.subr.bf16.mxu0 %v16756_v55 }
 0x618   :  { %14773 = vmatmul.mubr.msk.f32.gmra.mrb[34].mxu0 %vm165_vm0, %v11412_v22 }
 0x619   :  { %16759 = vmatpush3.bf16.msra.mxu0 %v16756_v55  ;;  %11559 = vmatprep.mubr.f32.mxu0 %v23646_v52 }
 0x61a   :  { %16761 = vmatprep.subr.bf16.mxu0 %v16760_v12 }
 0x61c   :  { %v22793_v27 = vpop.f32.mrb[20].mxu0  ;;  %14774 = vmatmul.mubr.msk.f32.gmra.mrb[36].mxu0 %vm165_vm0, %v11413_v47 }
 0x61d   :  { %v22796_v5 = vpop.f32.mrb[21].mxu0  ;;  %11565 = vmatprep.mubr.f32.mxu0 %v23646_v52 }
 0x620   :  { %v22799_v43 = vpop.f32.mrb[22].mxu0  ;;  %14775 = vmatmul.mubr.msk.f32.gmra.mrb[38].mxu0 %vm165_vm0, %v11414_v38 }
 0x621   :  { %v22804_v51 = vpop.f32.mrb[23].mxu0  ;;  %15910 = vmatprep.mubr.msk.f32.mxu0 %vm165_vm0, %v11411_v1  ;;  %v11672_v1 = vld [vmem:[#allocation7 + $0x238] sm:$0xff] }
 0x624   :  { %v22809_v39 = vpop.f32.mrb[24].mxu0  ;;  %15911 = vmatmul.mubr.msk.f32.vlgmr.msra.gmra.mrb[40].mxu0 %vm165_vm0, %v11412_v22  ;;  %v11939_v22 = vpop.permute.xlu0 %11938 }
 0x625   :  { %v22813_v29 = vpop.f32.mrb[25].mxu0  ;;  %16763 = vmatpush1.bf16.msra.mxu0 %v16762_v42  ;;  %15913 = vmatprep.mubr.msk.f32.mxu0 %vm165_vm0, %v11413_v47 }
 0x626   :  { %16765 = vmatprep.subr.bf16.mxu0 %v16764_v53 }
 0x628   :  { %v22821_v57 = vpop.f32.mrb[26].mxu0  ;;  %15914 = vmatmul.mubr.msk.f32.gmra.mrb[42].mxu0 %vm165_vm0, %v11414_v38  ;;  %v11949_v30 = vpop.permute.xlu0 %11948 }
 0x629   :  { %v22824_v56 = vpop.f32.mrb[27].mxu0  ;;  %16767 = vmatpush1.bf16.msra.mxu0 %v16766_v13  ;;  %11805 = vmatprep.mubr.f32.mxu0 %v23646_v52 }
 0x62a   :  { %16769 = vmatprep.subr.bf16.mxu0 %v16768_v33 }
 0x62c   :  { %v22829_v49 = vpop.f32.mrb[28].mxu0  ;;  %14780 = vmatmul.mubr.msk.f32.vlgmr.msra.gmra.mrb[32].mxu0 %vm165_vm0, %v11669_v21 }
 0x62d   :  { %v22832_v4 = vpop.f32.mrb[29].mxu0  ;;  %16771 = vmatpush3.bf16.msra.mxu0 %v16768_v33  ;;  %11811 = vmatprep.mubr.f32.mxu0 %v23646_v52 }
 0x62e   :  { %16773 = vmatprep.subr.bf16.mxu0 %v16772_v2 }
 0x630   :  { %v22835_v14 = vpop.f32.mrb[30].mxu0  ;;  %14781 = vmatmul.mubr.msk.f32.gmra.mrb[34].mxu0 %vm165_vm0, %v11670_v37 }
 0x631   :  { %v22838_v32 = vpop.f32.mrb[31].mxu0  ;;  %16775 = vmatpush3.bf16.msra.mxu0 %v16772_v2  ;;  %11817 = vmatprep.mubr.f32.mxu0 %v23646_v52 }
 0x634   :  { %14782 = vmatmul.mubr.msk.f32.gmra.mrb[36].mxu0 %vm165_vm0, %v11671_v50 }
 0x635   :  { %11823 = vmatprep.mubr.f32.mxu0 %v23646_v52 }
 0x638   :  { %14783 = vmatmul.mubr.msk.f32.gmra.mrb[38].mxu0 %vm165_vm0, %v11672_v1 }
 0x639   :  { %15924 = vmatprep.mubr.msk.f32.mxu0 %vm165_vm0, %v11669_v21 }
 0x63c   :  { %15925 = vmatmul.mubr.msk.f32.vlgmr.msra.gmra.mrb[40].mxu0 %vm165_vm0, %v11670_v37 }
 0x63d   :  { %15927 = vmatprep.mubr.msk.f32.mxu0 %vm165_vm0, %v11671_v50 }
 0x640   :  { %15928 = vmatmul.mubr.msk.f32.gmra.mrb[42].mxu0 %vm165_vm0, %v11672_v1 }
 0x6ff   :  { %v11807_v60 = vpop.f32.mrb[32].mxu0 }
 0x700   :  { %v11951_v28 = vadd.f32 %v11934_v6, %v11807_v60  ;;  %v11809_v45 = vpop.f32.mrb[33].mxu0 }
 0x701   :  { %v11952_v10 = vadd.f32 %v11934_v6, %v11809_v45 }
 0x702   :  { %vm11963_vm12 = vcmp.ge.f32.partialorder %v11951_v28, 0.0  ;;  %v11975_v55 = vmul.f32 0.01, %v11951_v28 }
 0x703   :  { %vm11964_vm13 = vcmp.ge.f32.partialorder %v11952_v10, 0.0  ;;  %v11976_v40 = vmul.f32 0.01, %v11952_v10  ;;  %v11813_v48 = vpop.f32.mrb[34].mxu0 }
 0x704   :  { %v11987_v19 = vsel %vm11963_vm12, %v11951_v28, %v11975_v55  ;;  %v11954_v18 = vadd.f32 %v11939_v22, %v11813_v48  ;;  %v11815_v12 = vpop.f32.mrb[35].mxu0 }
 0x705   :  { %v22851_v47 = vmul.f32 %v11987_v19, %v23690_v23  ;;  %v11988_v59 = vsel %vm11964_vm13, %v11952_v10, %v11976_v40  ;;  %v11955_v7 = vadd.f32 %v11939_v22, %v11815_v12 }
 0x706   :  { %v22854_v20 = vmul.f32 %v11988_v59, %v23691_v3  ;;  %vm11966_vm14 = vcmp.ge.f32.partialorder %v11954_v18, 0.0  ;;  %v11978_v8 = vmul.f32 0.01, %v11954_v18 }
 0x707   :  { %vm11967_vm15 = vcmp.ge.f32.partialorder %v11955_v7, 0.0  ;;  %v11979_v38 = vmul.f32 0.01, %v11955_v7  ;;  %v11819_v54 = vpop.f32.mrb[36].mxu0 }
 0x708   :  { %v11990_v26 = vsel %vm11966_vm14, %v11954_v18, %v11978_v8  ;;  %v11957_v15 = vadd.f32 %v11944_v62, %v11819_v54  ;;  %v11821_v31 = vpop.f32.mrb[37].mxu0  ;;  %v22858_v41 = vpack.i.bf16 %v22854_v20, %v22851_v47 }
 0x709   :  { %v22861_v58 = vmul.f32 %v11990_v26, %v23690_v23  ;;  %v11991_v24 = vsel %vm11967_vm15, %v11955_v7, %v11979_v38  ;;  %v11958_v35 = vadd.f32 %v11944_v62, %v11821_v31 }
 0x70a   :  { %v22864_v16 = vmul.f32 %v11991_v24, %v23691_v3  ;;  %vm11969_vm9 = vcmp.ge.f32.partialorder %v11957_v15, 0.0  ;;  %v11981_v25 = vmul.f32 0.01, %v11957_v15  ;;  %19139 = vrot.lane.b32.xlu1 %v22858_v41, %s19561_s20 }
 0x70b   :  { %vm11970_vm10 = vcmp.ge.f32.partialorder %v11958_v35, 0.0  ;;  %v11982_v42 = vmul.f32 0.01, %v11958_v35  ;;  %v11825_v17 = vpop.f32.mrb[38].mxu0  ;;  %v22870_v36 = vpack.i.bf16 %v22861_v58, %v22851_v47 }
 0x70c   :  { %v11993_v53 = vsel %vm11969_vm9, %v11957_v15, %v11981_v25  ;;  %v11960_v34 = vadd.f32 %v11949_v30, %v11825_v17  ;;  %v11827_v11 = vpop.f32.mrb[39].mxu0  ;;  %v22874_v61 = vpack.i.bf16 %v22864_v16, %v22861_v58 }
 0x70d   :  { %v22877_v9 = vmul.f32 %v11993_v53, %v23690_v23  ;;  %v11994_v0 = vsel %vm11970_vm10, %v11958_v35, %v11982_v42  ;;  %v11961_v13 = vadd.f32 %v11949_v30, %v11827_v11  ;;  %v16842_v11 = vpack.c.bf16 %v22861_v58, %v22851_v47  ;;  %v13067_v47 = vld [vmem:[#allocation7 + $0x2c0] sm:$0xff] }
 0x70e   :  { %v22880_v33 = vmul.f32 %v11994_v0, %v23691_v3  ;;  %vm11972_vm11 = vcmp.ge.f32.partialorder %v11960_v34, 0.0  ;;  %v11984_v21 = vmul.f32 0.01, %v11960_v34  ;;  %19144 = vrot.lane.b32.xlu0 %v22874_v61, %s19561_s20 }
 0x70f   :  { %vm11973_vm4 = vcmp.ge.f32.partialorder %v11961_v13, 0.0  ;;  %v11985_v46 = vmul.f32 0.01, %v11961_v13  ;;  %v15926_v63 = vpop.f32.mrb[40].mxu0 }
 0x710   :  { %v11996_v2 = vsel %vm11972_vm11, %v11960_v34, %v11984_v21  ;;  %v11956_v37 = vadd.f32 %v15926_v63, %v11939_v22  ;;  %v11896_v50 = vpop.f32.mrb[41].mxu0  ;;  %v22886_v1 = vpack.i.bf16 %v22880_v33, %v22877_v9  ;;  %v16840_v34 = vpack.c.bf16 %v22864_v16, %v22854_v20 }
 0x711   :  { %v22889_v60 = vmul.f32 %v11996_v2, %v23690_v23  ;;  %v11997_v28 = vsel %vm11973_vm4, %v11961_v13, %v11985_v46  ;;  %v11953_v45 = vadd.f32 %v11934_v6, %v11896_v50 }
 0x712   :  { %v22892_v10 = vmul.f32 %v11997_v28, %v23691_v3  ;;  %vm11968_vm12 = vcmp.ge.f32.partialorder %v11956_v37, 0.0  ;;  %v11980_v55 = vmul.f32 0.01, %v11956_v37  ;;  %19149 = vrot.lane.b32.xlu0 %v22886_v1, %s19561_s20 }
 0x713   :  { %vm11965_vm13 = vcmp.ge.f32.partialorder %v11953_v45, 0.0  ;;  %v11977_v22 = vmul.f32 0.01, %v11953_v45  ;;  %v15929_v40 = vpop.f32.mrb[42].mxu0  ;;  %v22898_v48 = vpack.i.bf16 %v22889_v60, %v22877_v9 }
 0x714   :  { %v11992_v19 = vsel %vm11968_vm12, %v11956_v37, %v11980_v55  ;;  %v11962_v18 = vadd.f32 %v15929_v40, %v11949_v30  ;;  %v11906_v12 = vpop.f32.mrb[43].mxu0  ;;  %v19153_v6 = vpack.i.bf16 %v22892_v10, %v22889_v60  ;;  %v16844_v0 = vpack.c.bf16 %v22892_v10, %v22880_v33 }
 0x715   :  { %v12004_v59 = vmul.f32 %v11992_v19, %v23692_v44  ;;  %v11989_v7 = vsel %vm11965_vm13, %v11953_v45, %v11977_v22  ;;  %v11959_v8 = vadd.f32 %v11944_v62, %v11906_v12 }
 0x716   :  { %v12001_v38 = vmul.f32 %v11989_v7, %v23692_v44  ;;  %vm11974_vm14 = vcmp.ge.f32.partialorder %v11962_v18, 0.0  ;;  %v11986_v54 = vmul.f32 0.01, %v11962_v18  ;;  %19159 = vrot.lane.b32.xlu0 %v23646_v52, %s19561_s20  ;;  %19154 = vrot.lane.b32.xlu1 %v19153_v6, %s19561_s20 }
 0x717   :  { %vm11971_vm15 = vcmp.ge.f32.partialorder %v11959_v8, 0.0  ;;  %v11983_v26 = vmul.f32 0.01, %v11959_v8  ;;  %v22908_v15 = vpack.i.bf16 %v12004_v59, %v22864_v16 }
 0x718   :  { %v11998_v31 = vsel %vm11974_vm14, %v11962_v18, %v11986_v54  ;;  %v19163_v24 = vpack.i.bf16 %v12004_v59, %v12001_v38  ;;  %v19293_v62 = vpack.i.bf16 %v12001_v38, %v22854_v20  ;;  %v22931_v21 = vpack.c.bf16 %v12004_v59, %v12001_v38 }
 0x719   :  { %v12010_v35 = vmul.f32 %v11998_v31, %v23692_v44  ;;  %v11995_v25 = vsel %vm11971_vm15, %v11959_v8, %v11983_v26 }
 0x71a   :  { %v12007_v30 = vmul.f32 %v11995_v25, %v23692_v44  ;;  %19164 = vrot.lane.b32.xlu1 %v19163_v24, %s19561_s20 }
 0x71b   :  { %v22915_v42 = vpack.i.bf16 %v12010_v35, %v22892_v10 }
 0x71c   :  { %v19173_v17 = vpack.i.bf16 %v12010_v35, %v12007_v30  ;;  %v22918_v53 = vpack.i.bf16 %v12007_v30, %v22880_v33  ;;  %v22933_v46 = vpack.c.bf16 %v12010_v35, %v12007_v30 }
 0x71e   :  { %19169 = vrot.lane.b32.xlu1 %v22858_v41, %s19562_s21  ;;  %19174 = vrot.lane.b32.xlu0 %v19173_v17, %s19561_s20 }
 0x722   :  { %19184 = vrot.lane.b32.xlu1 %v23646_v52, %s19562_s21  ;;  %19179 = vrot.lane.b32.xlu0 %v22874_v61, %s19562_s21 }
 0x726   :  { %19194 = vrot.lane.b32.xlu1 %v19153_v6, %s19562_s21  ;;  %19189 = vrot.lane.b32.xlu0 %v22886_v1, %s19562_s21 }
 0x72a   :  { %19204 = vrot.lane.b32.xlu1 %v19163_v24, %s19562_s21  ;;  %19199 = vrot.lane.b32.xlu0 %v23646_v52, %s19562_s21 }
 0x72e   :  { %19209 = vrot.lane.b32.xlu1 %v22858_v41, %s19563_s22  ;;  %19214 = vrot.lane.b32.xlu0 %v19173_v17, %s19562_s21 }
 0x732   :  { %19224 = vrot.lane.b32.xlu1 %v23646_v52, %s19563_s22  ;;  %19219 = vrot.lane.b32.xlu0 %v22874_v61, %s19563_s22 }
 0x736   :  { %19234 = vrot.lane.b32.xlu1 %v19153_v6, %s19563_s22  ;;  %19229 = vrot.lane.b32.xlu0 %v22886_v1, %s19563_s22 }
 0x73a   :  { %19244 = vrot.lane.b32.xlu1 %v19163_v24, %s19563_s22  ;;  %19239 = vrot.lane.b32.xlu0 %v23646_v52, %s19563_s22 }
 0x73e   :  { %19249 = vrot.lane.b32.xlu1 %v22858_v41, %s19564_s23  ;;  %19254 = vrot.lane.b32.xlu0 %v19173_v17, %s19563_s22  ;;  %v19135_v41 = vpop.permute.xlu1 %19134 }
 0x73f   :  { %v19137_v63 = vunpack.i.h.bf16 %v19135_v41  ;;  %v19136_v2 = vunpack.i.l.bf16 %v19135_v41 }
 0x742   :  { %19264 = vrot.lane.b32.xlu1 %v23646_v52, %s19564_s23  ;;  %19259 = vrot.lane.b32.xlu0 %v22874_v61, %s19564_s23 }
 0x746   :  { %19274 = vrot.lane.b32.xlu1 %v19153_v6, %s19564_s23  ;;  %19269 = vrot.lane.b32.xlu0 %v22886_v1, %s19564_s23 }
 0x74a   :  { %19284 = vrot.lane.b32.xlu1 %v19163_v24, %s19564_s23  ;;  %19279 = vrot.lane.b32.xlu0 %v23646_v52, %s19564_s23 }
 0x74e   :  { %19294 = vrot.lane.b32.xlu1 %v19293_v62, %s19565_s24  ;;  %19289 = vrot.lane.b32.xlu0 %v19173_v17, %s19564_s23 }
 0x752   :  { %19304 = vrot.lane.b32.xlu1 %v22870_v36, %s19565_s24  ;;  %19299 = vrot.lane.b32.xlu0 %v22908_v15, %s19565_s24 }
 0x756   :  { %19309 = vrot.lane.b32.xlu1 %v22915_v42, %s19565_s24  ;;  %19314 = vrot.lane.b32.xlu0 %v22918_v53, %s19565_s24 }
 0x75a   :  { %19324 = vrot.lane.b32.xlu1 %v23646_v52, %s19565_s24  ;;  %19319 = vrot.lane.b32.xlu0 %v22898_v48, %s19565_s24 }
 0x75e   :  { %19334 = vrot.lane.b32.xlu1 %v19293_v62, %s19566_s25  ;;  %19329 = vrot.lane.b32.xlu0 %v23646_v52, %s19565_s24 }
 0x762   :  { %19344 = vrot.lane.b32.xlu1 %v22870_v36, %s19566_s25  ;;  %19339 = vrot.lane.b32.xlu0 %v22908_v15, %s19566_s25 }
 0x766   :  { %19349 = vrot.lane.b32.xlu1 %v22915_v42, %s19566_s25  ;;  %19354 = vrot.lane.b32.xlu0 %v22918_v53, %s19566_s25 }
 0x76a   :  { %19364 = vrot.lane.b32.xlu1 %v23646_v52, %s19566_s25  ;;  %19359 = vrot.lane.b32.xlu0 %v22898_v48, %s19566_s25 }
 0x76e   :  { %19374 = vrot.lane.b32.xlu1 %v19293_v62, %s19567_s14  ;;  %19369 = vrot.lane.b32.xlu0 %v23646_v52, %s19566_s25 }
 0x772   :  { %19384 = vrot.lane.b32.xlu1 %v22870_v36, %s19567_s14  ;;  %19379 = vrot.lane.b32.xlu0 %v22908_v15, %s19567_s14 }
 0x776   :  { %19389 = vrot.lane.b32.xlu1 %v22915_v42, %s19567_s14  ;;  %19394 = vrot.lane.b32.xlu0 %v22918_v53, %s19567_s14 }
 0x77a   :  { %19404 = vrot.lane.b32.xlu1 %v23646_v52, %s19567_s14  ;;  %19399 = vrot.lane.b32.xlu0 %v22898_v48, %s19567_s14 }
 0x77c   :  { %v19140_v61 = vpop.permute.xlu1 %19139 }
 0x77d   :  { %v19142_v37 = vunpack.i.h.bf16 %v19140_v61  ;;  %v19141_v50 = vunpack.i.l.bf16 %v19140_v61 }
 0x77e   :  { %19414 = vrot.lane.b32.xlu1 %v19293_v62, %s19568_s15  ;;  %19409 = vrot.lane.b32.xlu0 %v23646_v52, %s19567_s14  ;;  %v14640_v62 = vld [vmem:[%s23566_s2 + $0x40] sm:$0xff] }
 0x77f   :  { %v12099_v55 = vsel %vm4948_vm5, %v19136_v2, %v19141_v50  ;;  %v12100_v40 = vsel %vm4948_vm5, %v19141_v50, %v19142_v37 }
 0x780   :  { %v19145_v1 = vpop.permute.xlu0 %19144 }
 0x781   :  { %v19147_v28 = vunpack.i.h.bf16 %v19145_v1  ;;  %v19146_v45 = vunpack.i.l.bf16 %v19145_v1 }
 0x782   :  { %19424 = vrot.lane.b32.xlu1 %v22870_v36, %s19568_s15  ;;  %19419 = vrot.lane.b32.xlu0 %v22908_v15, %s19568_s15 }
 0x783   :  { %v12102_v22 = vsel %vm4948_vm5, %v19137_v63, %v19146_v45  ;;  %v12103_v19 = vsel %vm4948_vm5, %v19146_v45, %v19147_v28  ;;  %v14642_v45 = vld [vmem:[%s23566_s2 + $0x50] sm:$0xff] }
 0x784   :  { %v16778_v18 = vpack.c.bf16 %v12102_v22, %v12099_v55  ;;  %v19150_v12 = vpop.permute.xlu0 %19149  ;;  %v16776_v6 = vpack.c.bf16 %v12103_v19, %v12100_v40  ;;  %v14641_v55 = vld [vmem:[%s23566_s2 + $0x48] sm:$0xff] }
 0x785   :  { %v19152_v59 = vunpack.i.h.bf16 %v19150_v12  ;;  %v19151_v36 = vunpack.i.l.bf16 %v19150_v12  ;;  %v12048_v19 = vld [vmem:[#allocation7 + $0x268] sm:$0xff] }
 0x786   :  { %16777 = vmatprep.subr.bf16.mxu1 %v16776_v6  ;;  %19429 = vrot.lane.b32.xlu1 %v22915_v42, %s19568_s15 }
 0x787   :  { %19434 = vrot.lane.b32.xlu0 %v22918_v53, %s19568_s15  ;;  %16779 = vmatpush1.bf16.msra.mxu1 %v16778_v18  ;;  %v12106_v35 = vsel %vm4948_vm5, %v19151_v36, %v19152_v59 }
 0x788   :  { %v19160_v7 = vpop.permute.xlu0 %19159  ;;  %v19155_v8 = vpop.permute.xlu1 %19154 }
 0x789   :  { %v19162_v38 = vunpack.i.h.bf16 %v19160_v7  ;;  %v19161_v54 = vunpack.i.l.bf16 %v19160_v7  ;;  %v19157_v26 = vunpack.i.h.bf16 %v19155_v8  ;;  %v19156_v15 = vunpack.i.l.bf16 %v19155_v8  ;;  %v14643_v7 = vld [vmem:[%s23566_s2 + $0x58] sm:$0xff]  ;;  %s19569_s2 = smov [#allocation9]  }
 0x78a   :  { %19444 = vrot.lane.b32.xlu1 %v23646_v52, %s19568_s15  ;;  %s14407_s23 = sshll.u32 %s19569_s2, 4  ;;  %s14408_s23 = int_to_ptr.vmem [resolvable:$true] %s14407_s23 }
 0x78b   :  { %v12105_v31 = vsel %vm4948_vm5, %v19161_v54, %v19151_v36  ;;  %v12108_v24 = vsel %vm4948_vm5, %v19162_v38, %v19156_v15  ;;  %19439 = vrot.lane.b32.xlu0 %v22898_v48, %s19568_s15  ;;  %v12109_v25 = vsel %vm4948_vm5, %v19156_v15, %v19157_v26  ;;  %v12047_v48 = vld [vmem:[#allocation7 + $0x260] sm:$0xff]  ;;  %s19509_s24 = scalar_lea.vmem %s14408_s23, 3072  ;;  %p19514_p3 = scmp.lt.s32.totalorder %s14408_s23, %s14408_s23 }
 0x78c   :  { %v16782_v30 = vpack.c.bf16 %v12108_v24, %v12105_v31  ;;  %v19165_v42 = vpop.permute.xlu1 %19164  ;;  %v16780_v17 = vpack.c.bf16 %v12109_v25, %v12106_v35  ;;  %p19510_p2 = scmp.ne.s32.totalorder %s14408_s23, %s19509_s24  ;;  %p19515_p4 = scmp.lt.s32.totalorder %s19509_s24, %s19509_s24 }
 0x78d   :  { %v19167_v53 = vunpack.i.h.bf16 %v19165_v42  ;;  %v19166_v41 = vunpack.i.l.bf16 %v19165_v42 }
 0x78e   :  { %16781 = vmatprep.subr.bf16.mxu1 %v16780_v17  ;;  %7176 = vperm.xlu1 %17852, %v14640_v62   ;;  %p19516_p5 = por %p19515_p4, %p19514_p3 }
 0x78f   :  { %19449 = vrot.lane.b32.xlu0 %v23646_v52, %s19568_s15  ;;  %16783 = vmatpush1.bf16.msra.mxu1 %v16782_v30  ;;  %v12101_v61 = vsel %vm4948_vm5, %v19142_v37, %v19166_v41  ;;  %v12104_v63 = vsel %vm4948_vm5, %v19147_v28, %v19167_v53  ;;  %v12050_v41 = vld [vmem:[#allocation7 + $0x278] sm:$0xff] }
 0x790   :  { %v23045_v2 = vpop.permute.xlu1 %19169  ;;  %v19175_v50 = vpop.permute.xlu0 %19174  ;;  %v16784_v1 = vpack.c.bf16 %v12104_v63, %v12101_v61  ;;  %p19517_p6 = pnand %p19516_p5, %p19510_p2 }
 0x791   :  { %v19177_v22 = vunpack.i.h.bf16 %v19175_v50  ;;  %v19176_v40 = vunpack.i.l.bf16 %v19175_v50  ;;  %v19172_v37 = vunpack.i.h.bf16 %v23045_v2  ;;  %v19171_v28 = vunpack.i.l.bf16 %v23045_v2  ;;  %v12043_v2 = vld [vmem:[#allocation7 + $0x240] sm:$0xff] }
 0x792   :  { %14792 = vmatmul.mubr.msk.f32.vlgmr.msra.gmra.mrb[28].mxu1 %vm165_vm0, %v12047_v48  ;;  %16785 = vmatprep.subr.bf16.mxu1 %v16784_v1 }
 0x793   :  { %7186 = vperm.xlu1 %17852, %v14642_v45   ;;  %7181 = vperm.xlu0 %17851, %v14641_v55   ;;  %v12107_v18 = vsel %vm4948_vm5, %v19152_v59, %v19176_v40  ;;  %v12110_v12 = vsel %vm4948_vm5, %v19157_v26, %v19177_v22  ;;  %v12049_v59 = vld [vmem:[#allocation7 + $0x270] sm:$0xff]  ;;  %v12342_v26 = vsel %vm5191_vm6, %v19171_v28, %v19172_v37  ;;  %vm23704_vm5 = vcmask 23552  }
 0x794   :  { %16787 = vmatpush3.bf16.msra.mxu1 %v16784_v1  ;;  %v19185_v6 = vpop.permute.xlu1 %19184  ;;  %v19180_v36 = vpop.permute.xlu0 %19179  ;;  %12205 = vmatprep.mubr.f32.mxu1 %v23646_v52  ;;  %v16788_v8 = vpack.c.bf16 %v12110_v12, %v12107_v18  ;;  %vm23707_vm9 = vmmov %vm23704_vm5 }
 0x795   :  { %v19182_v38 = vunpack.i.h.bf16 %v19180_v36  ;;  %v19181_v54 = vunpack.i.l.bf16 %v19180_v36  ;;  %v19187_v25 = vunpack.i.h.bf16 %v19185_v6  ;;  %v19186_v30 = vunpack.i.l.bf16 %v19185_v6  ;;  %vm23708_vm10 = vmmov %vm23704_vm5 }
 0x796   :  { %14793 = vmatmul.mubr.msk.f32.gmra.mrb[30].mxu1 %vm165_vm0, %v12048_v19  ;;  %16789 = vmatprep.subr.bf16.mxu1 %v16788_v8  ;;  %vm23709_vm11 = vmmov %vm23704_vm5 }
 0x797   :  { %14311 = vperm.xlu1 %17852, %v14640_v62   ;;  %7191 = vperm.xlu0 %17851, %v14643_v7   ;;  %v12345_v15 = vsel %vm5191_vm6, %v19181_v54, %v19182_v38  ;;  %v12341_v50 = vsel %vm5191_vm6, %v19186_v30, %v19171_v28  ;;  %v12344_v1 = vsel %vm5191_vm6, %v19187_v25, %v19181_v54  ;;  %vm23710_vm4 = vmmov %vm23704_vm5 }
 0x798   :  { %16791 = vmatpush3.bf16.msra.mxu1 %v16788_v8  ;;  %v19195_v31 = vpop.permute.xlu1 %19194  ;;  %v19190_v24 = vpop.permute.xlu0 %19189  ;;  %12211 = vmatprep.mubr.f32.mxu1 %v23646_v52  ;;  %v16792_v35 = vpack.c.bf16 %v12345_v15, %v12342_v26  ;;  %v16794_v8 = vpack.c.bf16 %v12344_v1, %v12341_v50  ;;  %v12044_v50 = vld [vmem:[#allocation7 + $0x248] sm:$0xff]  ;;  %vm23711_vm12 = vmmov %vm23710_vm4 }
 0x799   :  { %v19197_v62 = vunpack.i.h.bf16 %v19195_v31  ;;  %v19196_v42 = vunpack.i.l.bf16 %v19195_v31  ;;  %v19192_v17 = vunpack.i.h.bf16 %v19190_v24  ;;  %v19191_v53 = vunpack.i.l.bf16 %v19190_v24  ;;  %vm23712_vm13 = vmmov %vm23710_vm4 }
 0x79a   :  { %14794 = vmatmul.mubr.msk.f32.gmra.mrb[32].mxu1 %vm165_vm0, %v12049_v59  ;;  %16793 = vmatprep.subr.bf16.mxu1 %v16792_v35  ;;  %vm23713_vm14 = vmmov %vm23710_vm4 }
 0x79b   :  { %14321 = vperm.xlu1 %17852, %v14642_v45   ;;  %14316 = vperm.xlu0 %17851, %v14641_v55   ;;  %v12348_v45 = vsel %vm5191_vm6, %v19191_v53, %v19192_v17  ;;  %v12351_v55 = vsel %vm5191_vm6, %v19196_v42, %v19197_v62  ;;  %vm23714_vm15 = vmmov %vm23710_vm4 }
 0x79c   :  { %v19205_v61 = vpop.permute.xlu1 %19204  ;;  %v19200_v63 = vpop.permute.xlu0 %19199  ;;  %12217 = vmatprep.mubr.f32.mxu1 %v23646_v52  ;;  %v16796_v26 = vpack.c.bf16 %v12351_v55, %v12348_v45 }
 0x79d   :  { %v19202_v22 = vunpack.i.h.bf16 %v19200_v63  ;;  %v19201_v40 = vunpack.i.l.bf16 %v19200_v63  ;;  %v19207_v18 = vunpack.i.h.bf16 %v19205_v61  ;;  %v19206_v12 = vunpack.i.l.bf16 %v19205_v61 }
 0x79e   :  { %14795 = vmatmul.mubr.msk.f32.gmra.mrb[34].mxu1 %vm165_vm0, %v12050_v41 }
 0x79f   :  { %14326 = vperm.xlu0 %17851, %v14643_v7   ;;  %15938 = vmatprep.mubr.msk.f32.mxu1 %vm165_vm0, %v12047_v48  ;;  %v12350_v28 = vsel %vm5191_vm6, %v19202_v22, %v19196_v42  ;;  %v12347_v54 = vsel %vm5191_vm6, %v19201_v40, %v19191_v53  ;;  %v12343_v48 = vsel %vm5191_vm6, %v19172_v37, %v19206_v12 }
 0x7a0   :  { %v23076_v6 = vpop.permute.xlu1 %19209  ;;  %v19215_v36 = vpop.permute.xlu0 %19214  ;;  %v12346_v7 = vsel %vm5191_vm6, %v19182_v38, %v19207_v18  ;;  %v16798_v25 = vpack.c.bf16 %v12350_v28, %v12347_v54  ;;  %v12045_v18 = vld [vmem:[#allocation7 + $0x250] sm:$0xff] }
 0x7a1   :  { %v19217_v15 = vunpack.i.h.bf16 %v19215_v36  ;;  %v19216_v31 = vunpack.i.l.bf16 %v19215_v36  ;;  %v19211_v61 = vunpack.i.l.bf16 %v23076_v6 }
 0x7a2   :  { %15939 = vmatmul.mubr.msk.f32.vlgmr.msra.gmra.mrb[36].mxu1 %vm165_vm0, %v12048_v19  ;;  %v16800_v19 = vpack.c.bf16 %v12346_v7, %v12343_v48 }
 0x7a3   :  { %16795 = vmatpush1.bf16.msra.mxu1 %v16794_v8  ;;  %15941 = vmatprep.mubr.msk.f32.mxu1 %vm165_vm0, %v12049_v59  ;;  %v12349_v37 = vsel %vm5191_vm6, %v19192_v17, %v19216_v31  ;;  %v12352_v38 = vsel %vm5191_vm6, %v19197_v62, %v19217_v15  ;;  %vm23705_vm6 = vmmov %vm23704_vm5 }
 0x7a4   :  { %16797 = vmatprep.subr.bf16.mxu1 %v16796_v26  ;;  %v19225_v24 = vpop.permute.xlu1 %19224  ;;  %v23086_v35 = vpop.permute.xlu0 %19219  ;;  %v16804_v63 = vpack.c.bf16 %v12352_v38, %v12349_v37  ;;  %v12046_v26 = vld [vmem:[#allocation7 + $0x258] sm:$0xff] }
 0x7a5   :  { %v19222_v30 = vunpack.i.h.bf16 %v23086_v35  ;;  %v19221_v42 = vunpack.i.l.bf16 %v23086_v35  ;;  %v19227_v55 = vunpack.i.h.bf16 %v19225_v24 }
 0x7a6   :  { %15942 = vmatmul.mubr.msk.f32.gmra.mrb[38].mxu1 %vm165_vm0, %v12050_v41  ;;  %v19212_v41 = vunpack.i.h.bf16 %v23076_v6  ;;  %v19226_v6 = vunpack.i.l.bf16 %v19225_v24 }
 0x7a7   :  { %16799 = vmatpush1.bf16.msra.mxu1 %v16798_v25  ;;  %12441 = vmatprep.mubr.f32.mxu1 %v23646_v52  ;;  %v12591_v62 = vsel %vm5439_vm7, %v19221_v42, %v19222_v30  ;;  %v12590_v7 = vsel %vm5439_vm7, %v19227_v55, %v19221_v42 }
 0x7a8   :  { %16801 = vmatprep.subr.bf16.mxu1 %v16800_v19  ;;  %v23094_v59 = vpop.permute.xlu1 %19234  ;;  %v23096_v53 = vpop.permute.xlu0 %19229  ;;  %v12588_v22 = vsel %vm5439_vm7, %v19211_v61, %v19212_v41  ;;  %v12587_v48 = vsel %vm5439_vm7, %v19226_v6, %v19211_v61 }
 0x7a9   :  { %v16808_v40 = vpack.c.bf16 %v12591_v62, %v12588_v22  ;;  %v19237_v36 = vunpack.i.h.bf16 %v23094_v59  ;;  %v19236_v8 = vunpack.i.l.bf16 %v23094_v59  ;;  %v19232_v28 = vunpack.i.h.bf16 %v23096_v53 }
 0x7aa   :  { %14800 = vmatmul.mubr.msk.f32.vlgmr.msra.gmra.mrb[28].mxu1 %vm165_vm0, %v12043_v2  ;;  %v19231_v54 = vunpack.i.l.bf16 %v23096_v53  ;;  %v16810_v62 = vpack.c.bf16 %v12590_v7, %v12587_v48 }
 0x7ab   :  { %16803 = vmatpush3.bf16.msra.mxu1 %v16800_v19  ;;  %12447 = vmatprep.mubr.f32.mxu1 %v23646_v52  ;;  %v12597_v59 = vsel %vm5439_vm7, %v19236_v8, %v19237_v36 }
 0x7ac   :  { %16805 = vmatprep.subr.bf16.mxu1 %v16804_v63  ;;  %v19245_v17 = vpop.permute.xlu1 %19244  ;;  %v19240_v1 = vpop.permute.xlu0 %19239  ;;  %v12594_v38 = vsel %vm5439_vm7, %v19231_v54, %v19232_v28 }
 0x7ad   :  { %v19242_v24 = vunpack.i.h.bf16 %v19240_v1  ;;  %v19241_v25 = vunpack.i.l.bf16 %v19240_v1  ;;  %v19247_v19 = vunpack.i.h.bf16 %v19245_v17  ;;  %v19246_v37 = vunpack.i.l.bf16 %v19245_v17 }
 0x7ae   :  { %14801 = vmatmul.mubr.msk.f32.gmra.mrb[30].mxu1 %vm165_vm0, %v12044_v50  ;;  %v16812_v1 = vpack.c.bf16 %v12597_v59, %v12594_v38  ;;  %v12553_v38 = vld [vmem:[#allocation7 + $0x290] sm:$0xff] }
 0x7af   :  { %16807 = vmatpush3.bf16.msra.mxu1 %v16804_v63  ;;  %12453 = vmatprep.mubr.f32.mxu1 %v23646_v52  ;;  %v12596_v61 = vsel %vm5439_vm7, %v19242_v24, %v19236_v8  ;;  %v12593_v42 = vsel %vm5439_vm7, %v19241_v25, %v19231_v54  ;;  %v12552_v25 = vld [vmem:[#allocation7 + $0x288] sm:$0xff] }
 0x7b0   :  { %16809 = vmatprep.subr.bf16.mxu1 %v16808_v40  ;;  %v23108_v12 = vpop.permute.xlu1 %19249  ;;  %v19255_v45 = vpop.permute.xlu0 %19254  ;;  %v12592_v40 = vsel %vm5439_vm7, %v19222_v30, %v19247_v19  ;;  %v16814_v8 = vpack.c.bf16 %v12596_v61, %v12593_v42 }
 0x7b1   :  { %v19257_v22 = vunpack.i.h.bf16 %v19255_v45  ;;  %v19256_v17 = vunpack.i.l.bf16 %v19255_v45  ;;  %v19251_v7 = vunpack.i.l.bf16 %v23108_v12 }
 0x7b2   :  { %14802 = vmatmul.mubr.msk.f32.gmra.mrb[32].mxu1 %vm165_vm0, %v12045_v18 }
 0x7b3   :  { %12459 = vmatprep.mubr.f32.mxu1 %v23646_v52  ;;  %v12595_v35 = vsel %vm5439_vm7, %v19232_v28, %v19256_v17  ;;  %v12598_v30 = vsel %vm5439_vm7, %v19237_v36, %v19257_v22 }
 0x7b4   :  { %v23116_v15 = vpop.permute.xlu1 %19264  ;;  %v23118_v31 = vpop.permute.xlu0 %19259  ;;  %v16820_v24 = vpack.c.bf16 %v12598_v30, %v12595_v35 }
 0x7b5   :  { %v19262_v54 = vunpack.i.h.bf16 %v23118_v31  ;;  %v19261_v45 = vunpack.i.l.bf16 %v23118_v31  ;;  %v19267_v61 = vunpack.i.h.bf16 %v23116_v15  ;;  %v19266_v42 = vunpack.i.l.bf16 %v23116_v15 }
 0x7b6   :  { %14803 = vmatmul.mubr.msk.f32.gmra.mrb[34].mxu1 %vm165_vm0, %v12046_v26 }
 0x7b7   :  { %15952 = vmatprep.mubr.msk.f32.mxu1 %vm165_vm0, %v12043_v2  ;;  %v12589_v2 = vsel %vm5439_vm7, %v19212_v41, %v19246_v37  ;;  %v12551_v41 = vld [vmem:[#allocation7 + $0x280] sm:$0xff]  ;;  %v12849_v36 = vsel %vm23704_vm5, %v19261_v45, %v19262_v54  ;;  %vm23706_vm7 = vmmov %vm23704_vm5  ;;  %v12848_v15 = vsel %vm23707_vm9, %v19267_v61, %v19261_v45 }
 0x7b8   :  { %v23126_v53 = vpop.permute.xlu1 %19274  ;;  %v23128_v63 = vpop.permute.xlu0 %19269  ;;  %v12845_v35 = vsel %vm23706_vm7, %v19266_v42, %v19251_v7  ;;  %vm23715_vm5 = vmmov %vm23710_vm4 }
 0x7b9   :  { %v19276_v22 = vunpack.i.l.bf16 %v23126_v53  ;;  %v19272_v17 = vunpack.i.h.bf16 %v23128_v63 }
 0x7ba   :  { %15953 = vmatmul.mubr.msk.f32.vlgmr.msra.gmra.mrb[36].mxu1 %vm165_vm0, %v12044_v50  ;;  %v16816_v50 = vpack.c.bf16 %v12592_v40, %v12589_v2  ;;  %v19271_v2 = vunpack.i.l.bf16 %v23128_v63  ;;  %v12554_v40 = vld [vmem:[#allocation7 + $0x298] sm:$0xff] }
 0x7bb   :  { %16811 = vmatpush1.bf16.msra.mxu1 %v16810_v62  ;;  %15955 = vmatprep.mubr.msk.f32.mxu1 %vm165_vm0, %v12045_v18 }
 0x7bc   :  { %16813 = vmatprep.subr.bf16.mxu1 %v16812_v1  ;;  %v23138_v55 = vpop.permute.xlu1 %19284  ;;  %v19280_v6 = vpop.permute.xlu0 %19279  ;;  %v19277_v1 = vunpack.i.h.bf16 %v23126_v53  ;;  %v12852_v63 = vsel %vm23708_vm10, %v19271_v2, %v19272_v17 }
 0x7bd   :  { %v19282_v30 = vunpack.i.h.bf16 %v19280_v6  ;;  %v19287_v53 = vunpack.i.h.bf16 %v23138_v55 }
 0x7be   :  { %15956 = vmatmul.mubr.msk.f32.gmra.mrb[38].mxu1 %vm165_vm0, %v12046_v26  ;;  %v19252_v26 = vunpack.i.h.bf16 %v23108_v12 }
 0x7bf   :  { %16815 = vmatpush1.bf16.msra.mxu1 %v16814_v8  ;;  %12687 = vmatprep.mubr.f32.mxu1 %v23646_v52  ;;  %v12854_v45 = vsel %vm23710_vm4, %v19282_v30, %v19276_v22 }
 0x7c0   :  { %16817 = vmatprep.subr.bf16.mxu1 %v16816_v50  ;;  %v23146_v18 = vpop.permute.xlu1 %19294  ;;  %v23148_v48 = vpop.permute.xlu0 %19289  ;;  %v12846_v37 = vsel %vm23705_vm6, %v19251_v7, %v19252_v26  ;;  %v16826_v7 = vpack.c.bf16 %v12848_v15, %v12845_v35  ;;  %v12850_v35 = vsel %vm23713_vm14, %v19262_v54, %v19287_v53 }
 0x7c1   :  { %v16824_v12 = vpack.c.bf16 %v12849_v36, %v12846_v37  ;;  %v19286_v36 = vunpack.i.l.bf16 %v23138_v55  ;;  %v12855_v37 = vsel %vm23709_vm11, %v19276_v22, %v19277_v1  ;;  %v19292_v55 = vunpack.i.h.bf16 %v23148_v48 }
 0x7c2   :  { %14808 = vmatmul.mubr.msk.f32.vlgmr.msra.gmra.mrb[28].mxu1 %vm165_vm0, %v12551_v41  ;;  %v16828_v61 = vpack.c.bf16 %v12855_v37, %v12852_v63  ;;  %v12812_v63 = vld [vmem:[#allocation7 + $0x2b8] sm:$0xff]  ;;  %v19297_v33 = vunpack.i.h.bf16 %v23146_v18  ;;  %v19296_v10 = vunpack.i.l.bf16 %v23146_v18 }
 0x7c3   :  { %16819 = vmatpush3.bf16.msra.mxu1 %v16816_v50  ;;  %12693 = vmatprep.mubr.f32.mxu1 %v23646_v52  ;;  %v12847_v42 = vsel %vm23712_vm13, %v19252_v26, %v19286_v36  ;;  %v12856_v26 = vsel %vm23715_vm5, %v19277_v1, %v19292_v55  ;;  %v12811_v1 = vld [vmem:[#allocation7 + $0x2b0] sm:$0xff] }
 0x7c4   :  { %16821 = vmatprep.subr.bf16.mxu1 %v16820_v24  ;;  %v23157_v28 = vpop.permute.xlu1 %19304  ;;  %v23159_v19 = vpop.permute.xlu0 %19299  ;;  %v16832_v15 = vpack.c.bf16 %v12850_v35, %v12847_v42 }
 0x7c5   :  { %v19302_v16 = vunpack.i.h.bf16 %v23159_v19  ;;  %v19307_v55 = vunpack.i.h.bf16 %v23157_v28 }
 0x7c6   :  { %14809 = vmatmul.mubr.msk.f32.gmra.mrb[30].mxu1 %vm165_vm0, %v12552_v25 }
 0x7c7   :  { %16823 = vmatpush3.bf16.msra.mxu1 %v16820_v24  ;;  %12699 = vmatprep.mubr.f32.mxu1 %v23646_v52  ;;  %v19281_v24 = vunpack.i.l.bf16 %v19280_v6 }
 0x7c8   :  { %16825 = vmatprep.subr.bf16.mxu1 %v16824_v12  ;;  %v23164_v59 = vpop.permute.xlu1 %19309  ;;  %v23166_v62 = vpop.permute.xlu0 %19314 }
 0x7c9   :  { %v12851_v6 = vsel %vm23711_vm12, %v19281_v24, %v19271_v2  ;;  %v19312_v42 = vunpack.i.h.bf16 %v23164_v59  ;;  %v19311_v35 = vunpack.i.l.bf16 %v23164_v59 }
 0x7ca   :  { %14810 = vmatmul.mubr.msk.f32.gmra.mrb[32].mxu1 %vm165_vm0, %v12553_v38 }
 0x7cb   :  { %12705 = vmatprep.mubr.f32.mxu1 %v23646_v52  ;;  %v13319_v59 = vsel %vm6166_vm1, %v19311_v35, %v19312_v42 }
 0x7cc   :  { %v23176_v8 = vpop.permute.xlu1 %19324  ;;  %v23178_v50 = vpop.permute.xlu0 %19319 }
 0x7ce   :  { %14811 = vmatmul.mubr.msk.f32.gmra.mrb[34].mxu1 %vm165_vm0, %v12554_v40 }
 0x7cf   :  { %15966 = vmatprep.mubr.msk.f32.mxu1 %vm165_vm0, %v12551_v41  ;;  %v19291_v41 = vunpack.i.l.bf16 %v23148_v48  ;;  %v12809_v48 = vld [vmem:[#allocation7 + $0x2a0] sm:$0xff] }
 0x7d0   :  { %v23188_v12 = vpop.permute.xlu1 %19334  ;;  %v23190_v13 = vpop.permute.xlu0 %19329 }
 0x7d2   :  { %15967 = vmatmul.mubr.msk.f32.vlgmr.msra.gmra.mrb[36].mxu1 %vm165_vm0, %v12552_v25  ;;  %v16830_v25 = vpack.c.bf16 %v12854_v45, %v12851_v6  ;;  %v23716_v6 = vpack.c.bf16 %v22889_v60, %v22877_v9  ;;  %v13068_v9 = vld [vmem:[#allocation7 + $0x2c8] sm:$0xff] }
 0x7d3   :  { %16827 = vmatpush1.bf16.msra.mxu1 %v16826_v7  ;;  %15969 = vmatprep.mubr.msk.f32.mxu1 %vm165_vm0, %v12553_v38  ;;  %v12853_v38 = vsel %vm23714_vm15, %v19272_v17, %v19291_v41  ;;  %v19306_v41 = vunpack.i.l.bf16 %v23157_v28 }
 0x7d4   :  { %16829 = vmatprep.subr.bf16.mxu1 %v16828_v61  ;;  %v23202_v22 = vpop.permute.xlu1 %19344  ;;  %v23204_v2 = vpop.permute.xlu0 %19339  ;;  %v16836_v30 = vpack.c.bf16 %v12856_v26, %v12853_v38 }
 0x7d5   :  { %v13309_v38 = vsel %vm6166_vm1, %v19306_v41, %v19296_v10 }
 0x7d6   :  { %15970 = vmatmul.mubr.msk.f32.gmra.mrb[38].mxu1 %vm165_vm0, %v12554_v40  ;;  %v12810_v40 = vld [vmem:[#allocation7 + $0x2a8] sm:$0xff] }
 0x7d7   :  { %16831 = vmatpush1.bf16.msra.mxu1 %v16830_v25  ;;  %12945 = vmatprep.mubr.f32.mxu1 %v23646_v52  ;;  %v19317_v25 = vunpack.i.h.bf16 %v23166_v62 }
 0x7d8   :  { %16833 = vmatprep.subr.bf16.mxu1 %v16832_v15  ;;  %v23210_v31 = vpop.permute.xlu1 %19349  ;;  %v23212_v54 = vpop.permute.xlu0 %19354 }
 0x7da   :  { %14816 = vmatmul.mubr.msk.f32.vlgmr.msra.gmra.mrb[28].mxu1 %vm165_vm0, %v12809_v48 }
 0x7db   :  { %16835 = vmatpush3.bf16.msra.mxu1 %v16832_v15  ;;  %12951 = vmatprep.mubr.f32.mxu1 %v23646_v52  ;;  %v19316_v15 = vunpack.i.l.bf16 %v23166_v62  ;;  %v19326_v62 = vunpack.i.l.bf16 %v23176_v8 }
 0x7dc   :  { %16837 = vmatprep.subr.bf16.mxu1 %v16836_v30  ;;  %v23216_v24 = vpop.permute.xlu1 %19364  ;;  %v23218_v53 = vpop.permute.xlu0 %19359 }
 0x7de   :  { %14817 = vmatmul.mubr.msk.f32.gmra.mrb[30].mxu1 %vm165_vm0, %v12810_v40 }
 0x7df   :  { %16839 = vmatpush3.bf16.msra.mxu1 %v16836_v30  ;;  %12957 = vmatprep.mubr.f32.mxu1 %v23646_v52  ;;  %v13316_v30 = vsel %vm6166_vm1, %v19316_v15, %v19317_v25 }
 0x7e0   :  { %16841 = vmatprep.subr.bf16.mxu1 %v16840_v34  ;;  %v23225_v17 = vpop.permute.xlu1 %19374  ;;  %v23227_v36 = vpop.permute.xlu0 %19369  ;;  %v19301_v34 = vunpack.i.l.bf16 %v23159_v19 }
 0x7e2   :  { %14818 = vmatmul.mubr.msk.f32.gmra.mrb[32].mxu1 %vm165_vm0, %v12811_v1  ;;  %v13313_v60 = vsel %vm6166_vm1, %v19301_v34, %v19302_v16  ;;  %v13312_v28 = vsel %vm6166_vm1, %v19307_v55, %v19301_v34  ;;  %v16860_v34 = vpack.c.bf16 %v13319_v59, %v13316_v30  ;;  %v19331_v55 = vunpack.i.l.bf16 %v23190_v13 }
 0x7e3   :  { %12963 = vmatprep.mubr.f32.mxu1 %v23646_v52  ;;  %v19351_v59 = vunpack.i.l.bf16 %v23210_v31 }
 0x7e4   :  { %v23231_v37 = vpop.permute.xlu0 %19379  ;;  %v23233_v7 = vpop.permute.xlu1 %19384 }
 0x7e6   :  { %14819 = vmatmul.mubr.msk.f32.gmra.mrb[34].mxu1 %vm165_vm0, %v12812_v63 }
 0x7e7   :  { %15980 = vmatprep.mubr.msk.f32.mxu1 %vm165_vm0, %v12809_v48 }
 0x7e8   :  { %v23237_v45 = vpop.permute.xlu0 %19394  ;;  %v23240_v20 = vpop.permute.xlu1 %19389 }
 0x7ea   :  { %15981 = vmatmul.mubr.msk.f32.vlgmr.msra.gmra.mrb[36].mxu1 %vm165_vm0, %v12810_v40  ;;  %v19327_v40 = vunpack.i.h.bf16 %v23176_v8  ;;  %v13311_v8 = vsel %vm6166_vm1, %v19297_v33, %v19326_v62 }
 0x7eb   :  { %16843 = vmatpush1.bf16.msra.mxu1 %v16842_v11  ;;  %15983 = vmatprep.mubr.msk.f32.mxu1 %vm165_vm0, %v12811_v1  ;;  %v19322_v1 = vunpack.i.h.bf16 %v23178_v50 }
 0x7ec   :  { %16845 = vmatprep.subr.bf16.mxu1 %v16844_v0  ;;  %v23256_v58 = vpop.permute.xlu0 %19399  ;;  %v23261_v11 = vpop.permute.xlu1 %19404  ;;  %v13310_v0 = vsel %vm6166_vm1, %v19296_v10, %v19297_v33  ;;  %v19342_v33 = vunpack.i.h.bf16 %v23204_v2 }
 0x7ed   :  { %v16856_v18 = vpack.c.bf16 %v13313_v60, %v13310_v0  ;;  %v13318_v10 = vsel %vm6166_vm1, %v19322_v1, %v19311_v35 }
 0x7ee   :  { %15984 = vmatmul.mubr.msk.f32.gmra.mrb[38].mxu1 %vm165_vm0, %v12812_v63  ;;  %v19321_v63 = vunpack.i.l.bf16 %v23178_v50  ;;  %v19332_v50 = vunpack.i.h.bf16 %v23190_v13  ;;  %v19347_v13 = vunpack.i.h.bf16 %v23202_v22 }
 0x7ef   :  { %16847 = vmatpush1.bf16.msra.mxu1 %v23716_v6  ;;  %13147 = vmatprep.mubr.f32.mxu1 %v23646_v52  ;;  %v16858_v6 = vpack.c.bf16 %v13312_v28, %v13309_v38  ;;  %v19346_v38 = vunpack.i.l.bf16 %v23202_v22  ;;  %v13317_v28 = vsel %vm6166_vm1, %v19317_v25, %v19331_v55  ;;  %v19362_v22 = vunpack.i.h.bf16 %v23218_v53 }
 0x7f0   :  { %16849 = vmatprep.subr.bf16.mxu1 %v22931_v21  ;;  %v23269_v19 = vpop.permute.xlu0 %19409  ;;  %v23272_v61 = vpop.permute.xlu1 %19414  ;;  %v13315_v60 = vsel %vm6166_vm1, %v19321_v63, %v19316_v15  ;;  %v19337_v15 = vunpack.i.h.bf16 %v23188_v12  ;;  %v13320_v30 = vsel %vm6166_vm1, %v19312_v42, %v19332_v50  ;;  %v19361_v63 = vunpack.i.l.bf16 %v23218_v53 }
 0x7f1   :  { %v16868_v42 = vpack.c.bf16 %v13320_v30, %v13317_v28  ;;  %v19366_v50 = vunpack.i.l.bf16 %v23216_v24  ;;  %v23360_v55 = vsel %vm6426_vm8, %v19362_v22, %v19351_v59  ;;  %v23375_v30 = vld [vmem:[#allocation7 + $0x2f0] sm:$0xff] }
 0x7f2   :  { %14824 = vmatmul.mubr.msk.f32.vlgmr.msra.gmra.mrb[28].mxu1 %vm165_vm0, %v13067_v47 }
 0x7f3   :  { %16851 = vmatpush3.bf16.msra.mxu1 %v22931_v21  ;;  %13153 = vmatprep.mubr.f32.mxu1 %v23646_v52  ;;  %v13069_v21 = vld [vmem:[#allocation7 + $0x2d0] sm:$0xff]  ;;  %v23382_v22 = vsel %vm6426_vm8, %v19337_v15, %v19366_v50 }
 0x7f4   :  { %16853 = vmatprep.subr.bf16.mxu1 %v22933_v46  ;;  %v23284_v48 = vpop.permute.xlu0 %19419  ;;  %v23288_v26 = vpop.permute.xlu1 %19424 }
 0x7f6   :  { %14825 = vmatmul.mubr.msk.f32.gmra.mrb[30].mxu1 %vm165_vm0, %v13068_v9 }
 0x7f7   :  { %16855 = vmatpush3.bf16.msra.mxu1 %v22933_v46  ;;  %13159 = vmatprep.mubr.f32.mxu1 %v23646_v52  ;;  %v13070_v46 = vld [vmem:[#allocation7 + $0x2d8] sm:$0xff] }
 0x7f8   :  { %16857 = vmatprep.subr.bf16.mxu1 %v16856_v18  ;;  %v13314_v18 = vsel %vm6166_vm1, %v19302_v16, %v19327_v40  ;;  %v23307_v41 = vpop.permute.xlu1 %19429  ;;  %v19341_v16 = vunpack.i.l.bf16 %v23204_v2  ;;  %v23615_v40 = vunpack.i.h.bf16 %v23212_v54 }
 0x7f9   :  { %v23300_v0 = vpop.permute.xlu0 %19434  ;;  %v16864_v35 = vpack.c.bf16 %v13314_v18, %v13311_v8  ;;  %v19367_v18 = vunpack.i.h.bf16 %v23216_v24 }
 0x7fa   :  { %14826 = vmatmul.mubr.msk.f32.gmra.mrb[32].mxu1 %vm165_vm0, %v13069_v21  ;;  %v13571_v25 = vsel %vm6426_vm8, %v19341_v16, %v19342_v33  ;;  %v23345_v53 = vsel %vm6426_vm8, %v19347_v13, %v19341_v16 }
 0x7fb   :  { %13165 = vmatprep.mubr.f32.mxu1 %v23646_v52 }
 0x7fc   :  { %v23329_v1 = vpop.permute.xlu1 %19444 }
 0x7fd   :  { %v23326_v62 = vpop.permute.xlu0 %19439 }
 0x7fe   :  { %14827 = vmatmul.mubr.msk.f32.gmra.mrb[34].mxu1 %vm165_vm0, %v13070_v46 }
 0x7ff   :  { %15994 = vmatprep.mubr.msk.f32.mxu1 %vm165_vm0, %v13067_v47  ;;  %v16862_v47 = vpack.c.bf16 %v13318_v10, %v13315_v60 }
 0x801   :  { %v23365_v16 = vpop.permute.xlu0 %19449 }
 0x802   :  { %15995 = vmatmul.mubr.msk.f32.vlgmr.msra.gmra.mrb[36].mxu1 %vm165_vm0, %v13068_v9  ;;  %v19336_v9 = vunpack.i.l.bf16 %v23188_v12  ;;  %v23614_v12 = vunpack.i.h.bf16 %v23210_v31 }
 0x803   :  { %16859 = vmatpush1.bf16.msra.mxu1 %v16858_v6  ;;  %15997 = vmatprep.mubr.msk.f32.mxu1 %vm165_vm0, %v13069_v21  ;;  %v23318_v21 = vld [vmem:[#allocation7 + $0x2e0] sm:$0xff]  ;;  %v23338_v6 = vld [vmem:[#allocation7 + $0x2e8] sm:$0xff] }
 0x804   :  { %16861 = vmatprep.subr.bf16.mxu1 %v16860_v34  ;;  %v13568_v34 = vsel %vm6426_vm8, %v19336_v9, %v19337_v15  ;;  %v23342_v10 = vsel %vm6426_vm8, %v19346_v38, %v19336_v9  ;;  %v23355_v8 = vsel %vm6426_vm8, %v19351_v59, %v23614_v12 }
 0x805   :  { %v16874_v24 = vpack.c.bf16 %v23345_v53, %v23342_v10 }
 0x806   :  { %15998 = vmatmul.mubr.msk.f32.gmra.mrb[38].mxu1 %vm165_vm0, %v13070_v46  ;;  %v19356_v46 = vunpack.i.l.bf16 %v23212_v54 }
 0x807   :  { %16863 = vmatpush1.bf16.msra.mxu1 %v16862_v47  ;;  %13409 = vmatprep.mubr.f32.mxu1 %v23646_v52 }
 0x808   :  { %16865 = vmatprep.subr.bf16.mxu1 %v16864_v35  ;;  %v23350_v60 = vsel %vm6426_vm8, %v19356_v46, %v23615_v40  ;;  %v23363_v9 = vsel %vm6426_vm8, %v19361_v63, %v19356_v46  ;;  %v13272_v63 = vld [vmem:[#allocation7 + $0x2f8] sm:$0xff] }
 0x809   :  { %v16876_v59 = vpack.c.bf16 %v23355_v8, %v23350_v60  ;;  %v23718_v8 = vunpack.i.h.bf16 %v23227_v36 }
 0x80a   :  { %14832 = vmatmul.mubr.msk.f32.vlgmr.msra.gmra.mrb[28].mxu1 %vm165_vm0, %v23318_v21 }
 0x80b   :  { %16867 = vmatpush3.bf16.msra.mxu1 %v16864_v35  ;;  %13415 = vmatprep.mubr.f32.mxu1 %v23646_v52  ;;  %v16872_v35 = vpack.c.bf16 %v13571_v25, %v13568_v34 }
 0x80c   :  { %16869 = vmatprep.subr.bf16.mxu1 %v16868_v42 }
 0x80d   :  { %v7177_v47 = vpop.permute.xlu1 %7176 }
 0x80e   :  { %v7194_v13 = vadd.f32 %v7177_v47, %v22793_v27  ;;  %v7195_v38 = vadd.f32 %v7177_v47, %v22796_v5  ;;  %v7196_v28 = vadd.f32 %v7177_v47, %v22832_v4  ;;  %14833 = vmatmul.mubr.msk.f32.gmra.mrb[30].mxu1 %vm165_vm0, %v23338_v6 }
 0x80f   :  { %16871 = vmatpush3.bf16.msra.mxu1 %v16868_v42  ;;  %13421 = vmatprep.mubr.f32.mxu1 %v23646_v52  ;;  %v19371_v42 = vunpack.i.l.bf16 %v23227_v36  ;;  %v13531_v36 = vld [vmem:[#allocation7 + $0x300] sm:$0xff] }
 0x810   :  { %vm7206_vm1 = vcmp.ge.f32.partialorder %v7194_v13, 0.0  ;;  %vm7207_vm6 = vcmp.ge.f32.partialorder %v7195_v38, 0.0  ;;  %vm7208_vm7 = vcmp.ge.f32.partialorder %v7196_v28, 0.0  ;;  %v7218_v27 = vmul.f32 0.01, %v7194_v13  ;;  %16873 = vmatprep.subr.bf16.mxu1 %v16872_v35 }
 0x811   :  { %v7219_v4 = vmul.f32 0.01, %v7195_v38  ;;  %v7220_v46 = vmul.f32 0.01, %v7196_v28  ;;  %v23391_v35 = vsel %vm6426_vm8, %v19342_v33, %v19367_v18 }
 0x812   :  { %v7230_v25 = vsel %vm7206_vm1, %v7194_v13, %v7218_v27  ;;  %v7187_v34 = vpop.permute.xlu1 %7186  ;;  %v7182_v47 = vpop.permute.xlu0 %7181  ;;  %14834 = vmatmul.mubr.msk.f32.gmra.mrb[32].mxu1 %vm165_vm0, %v23375_v30  ;;  %v16880_v53 = vpack.c.bf16 %v23391_v35, %v23382_v22 }
 0x813   :  { %v7231_v5 = vsel %vm7207_vm6, %v7195_v38, %v7219_v4  ;;  %v7232_v12 = vsel %vm7208_vm7, %v7196_v28, %v7220_v46  ;;  %v7242_v15 = vmul.f32 %v7230_v25, %v23690_v23  ;;  %v7200_v50 = vadd.f32 %v7187_v34, %v22809_v39  ;;  %13427 = vmatprep.mubr.f32.mxu1 %v23646_v52 }
 0x814   :  { %v7243_v13 = vmul.f32 %v7231_v5, %v23691_v3  ;;  %v7244_v27 = vmul.f32 %v7232_v12, %v23692_v44  ;;  %v7201_v40 = vadd.f32 %v7187_v34, %v22813_v29  ;;  %v7202_v2 = vadd.f32 %v7187_v34, %v22838_v32 }
 0x815   :  { %7254 = vst [vmem:[#allocation9] sm:$0xff] %v7242_v15  ;;  %vm7212_vm9 = vcmp.ge.f32.partialorder %v7200_v50, 0.0  ;;  %v7224_v33 = vmul.f32 0.01, %v7200_v50  ;;  %v7197_v18 = vadd.f32 %v7182_v47, %v22799_v43  ;;  %v7198_v38 = vadd.f32 %v7182_v47, %v22804_v51 }
 0x816   :  { %7255 = vst [vmem:[#allocation9 + $0x8] sm:$0xff] %v7243_v13  ;;  %7256 = vst [vmem:[#allocation9 + $0x10] sm:$0xff] %v7244_v27  ;;  %vm7213_vm10 = vcmp.ge.f32.partialorder %v7201_v40, 0.0  ;;  %vm7214_vm11 = vcmp.ge.f32.partialorder %v7202_v2, 0.0  ;;  %v7225_v39 = vmul.f32 0.01, %v7201_v40  ;;  %14835 = vmatmul.mubr.msk.f32.gmra.mrb[34].mxu1 %vm165_vm0, %v13272_v63  ;;  %v7199_v29 = vadd.f32 %v22829_v49, %v7182_v47  ;;  %v7192_v32 = vpop.permute.xlu0 %7191 }
 0x817   :  { %v7226_v28 = vmul.f32 0.01, %v7202_v2  ;;  %v7236_v12 = vsel %vm7212_vm9, %v7200_v50, %v7224_v33  ;;  %vm7209_vm4 = vcmp.ge.f32.partialorder %v7197_v18, 0.0  ;;  %vm7210_vm12 = vcmp.ge.f32.partialorder %v7198_v38, 0.0  ;;  %16008 = vmatprep.mubr.msk.f32.mxu1 %vm165_vm0, %v23318_v21 }
 0x818   :  { %v7237_v43 = vsel %vm7213_vm10, %v7201_v40, %v7225_v39  ;;  %v7248_v51 = vmul.f32 %v7236_v12, %v23690_v23  ;;  %v7221_v4 = vmul.f32 0.01, %v7197_v18  ;;  %vm7211_vm13 = vcmp.ge.f32.partialorder %v7199_v29, 0.0  ;;  %v13533_v12 = vld [vmem:[#allocation7 + $0x310] sm:$0xff] }
 0x819   :  { %v7238_v5 = vsel %vm7214_vm11, %v7202_v2, %v7226_v28  ;;  %v7249_v46 = vmul.f32 %v7237_v43, %v23691_v3  ;;  %v7222_v34 = vmul.f32 0.01, %v7198_v38  ;;  %v7223_v15 = vmul.f32 0.01, %v7199_v29 }
 0x81a   :  { %v7250_v25 = vmul.f32 %v7238_v5, %v23692_v44  ;;  %7260 = vst [vmem:[#allocation9 + $0x30] sm:$0xff] %v7248_v51  ;;  %v7233_v49 = vsel %vm7209_vm4, %v7197_v18, %v7221_v4  ;;  %v7203_v47 = vadd.f32 %v7192_v32, %v22821_v57  ;;  %v7204_v50 = vadd.f32 %v7192_v32, %v22824_v56 }
 0x81b   :  { %16009 = vmatmul.mubr.msk.f32.vlgmr.msra.gmra.mrb[36].mxu1 %vm165_vm0, %v23338_v6  ;;  %7261 = vst [vmem:[#allocation9 + $0x38] sm:$0xff] %v7249_v46  ;;  %v7234_v21 = vsel %vm7210_vm12, %v7198_v38, %v7222_v34  ;;  %v7245_v40 = vmul.f32 %v7233_v49, %v23690_v23  ;;  %v7205_v13 = vadd.f32 %v22835_v14, %v7192_v32  ;;  %v19382_v2 = vunpack.i.h.bf16 %v23231_v37  ;;  %v13534_v46 = vld [vmem:[#allocation7 + $0x318] sm:$0xff] }
 0x81c   :  { %7262 = vst [vmem:[#allocation9 + $0x40] sm:$0xff] %v7250_v25  ;;  %16875 = vmatpush1.bf16.msra.mxu1 %v16874_v24  ;;  %16011 = vmatprep.mubr.msk.f32.mxu1 %vm165_vm0, %v23375_v30  ;;  %v7235_v57 = vsel %vm7211_vm13, %v7199_v29, %v7223_v15  ;;  %v7246_v56 = vmul.f32 %v7234_v21, %v23691_v3  ;;  %vm7215_vm14 = vcmp.ge.f32.partialorder %v7203_v47, 0.0  ;;  %vm7216_vm15 = vcmp.ge.f32.partialorder %v7204_v50, 0.0 }
 0x81d   :  { %16877 = vmatprep.subr.bf16.mxu1 %v16876_v59  ;;  %v7247_v6 = vmul.f32 %v7235_v57, %v23692_v44  ;;  %7257 = vst [vmem:[#allocation9 + $0x18] sm:$0xff] %v7245_v40  ;;  %vm7217_vm5 = vcmp.ge.f32.partialorder %v7205_v13, 0.0  ;;  %v7227_v14 = vmul.f32 0.01, %v7203_v47  ;;  %v7228_v27 = vmul.f32 0.01, %v7204_v50 }
 0x81e   :  { %7258 = vst [vmem:[#allocation9 + $0x20] sm:$0xff] %v7246_v56  ;;  %v7229_v10 = vmul.f32 0.01, %v7205_v13  ;;  %v23717_v24 = vunpack.i.h.bf16 %v23212_v54  ;;  %v23719_v30 = vunpack.i.h.bf16 %v23210_v31  ;;  %v19381_v33 = vunpack.i.l.bf16 %v23231_v37 }
 0x81f   :  { %16012 = vmatmul.mubr.msk.f32.gmra.mrb[38].mxu1 %vm165_vm0, %v13272_v63  ;;  %7259 = vst [vmem:[#allocation9 + $0x28] sm:$0xff] %v7247_v6  ;;  %v7239_v63 = vsel %vm7215_vm14, %v7203_v47, %v7227_v14  ;;  %v7240_v22 = vsel %vm7216_vm15, %v7204_v50, %v7228_v27  ;;  %v23720_v54 = vpack.c.bf16 %v23360_v55, %v23363_v9  ;;  %v19377_v37 = vunpack.i.h.bf16 %v23225_v17  ;;  %v13532_v9 = vld [vmem:[#allocation7 + $0x308] sm:$0xff] }
 0x820   :  { %v13575_v60 = vsel %vm6426_vm8, %v23717_v24, %v19371_v42  ;;  %v13578_v59 = vsel %vm6426_vm8, %v23719_v30, %v23718_v8  ;;  %13667 = vmatprep.mubr.f32.mxu1 %v23646_v52  ;;  %v7241_v31 = vsel %vm7217_vm5, %v7205_v13, %v7229_v10  ;;  %v7251_v42 = vmul.f32 %v7239_v63, %v23690_v23  ;;  %v13791_v63 = vld [vmem:[#allocation7 + $0x330] sm:$0xff] }
 0x821   :  { %16879 = vmatpush1.bf16.msra.mxu1 %v23720_v54  ;;  %v7252_v35 = vmul.f32 %v7240_v22, %v23691_v3  ;;  %v19376_v18 = vunpack.i.l.bf16 %v23225_v17  ;;  %v7253_v38 = vmul.f32 %v7241_v31, %v23692_v44  ;;  %v16884_v55 = vpack.c.bf16 %v13578_v59, %v13575_v60 }
 0x822   :  { %16881 = vmatprep.subr.bf16.mxu1 %v16880_v53  ;;  %7263 = vst [vmem:[#allocation9 + $0x48] sm:$0xff] %v7251_v42  ;;  %v13829_v39 = vsel %vm6686_vm2, %v19381_v33, %v19382_v2  ;;  %v19387_v29 = vunpack.i.h.bf16 %v23233_v7  ;;  %v19386_v32 = vunpack.i.l.bf16 %v23233_v7  ;;  %v19392_v43 = vunpack.i.h.bf16 %v23240_v20 }
 0x823   :  { %7264 = vst [vmem:[#allocation9 + $0x50] sm:$0xff] %v7252_v35  ;;  %7265 = vst [vmem:[#allocation9 + $0x58] sm:$0xff] %v7253_v38  ;;  %v13826_v28 = vsel %vm6686_vm2, %v19376_v18, %v19377_v37  ;;  %v19391_v5 = vunpack.i.l.bf16 %v23240_v20  ;;  %v19397_v51 = vunpack.i.h.bf16 %v23237_v45  ;;  %v19396_v4 = vunpack.i.l.bf16 %v23237_v45  ;;  %v13792_v35 = vld [vmem:[#allocation7 + $0x338] sm:$0xff] }
 0x824   :  { %14840 = vmatmul.mubr.msk.f32.vlgmr.msra.gmra.mrb[28].mxu1 %vm165_vm0, %v13531_v36  ;;  %v16888_v17 = vpack.c.bf16 %v13829_v39, %v13826_v28  ;;  %v13825_v25 = vsel %vm6686_vm2, %v19386_v32, %v19376_v18  ;;  %v13828_v34 = vsel %vm6686_vm2, %v19387_v29, %v19381_v33  ;;  %v19402_v15 = vunpack.i.h.bf16 %v23256_v58 }
 0x825   :  { %16883 = vmatpush3.bf16.msra.mxu1 %v16880_v53  ;;  %13673 = vmatprep.mubr.f32.mxu1 %v23646_v52  ;;  %v19401_v7 = vunpack.i.l.bf16 %v23256_v58  ;;  %v19407_v49 = vunpack.i.h.bf16 %v23261_v11  ;;  %v19406_v20 = vunpack.i.l.bf16 %v23261_v11  ;;  %v13832_v45 = vsel %vm6686_vm2, %v19396_v4, %v19397_v51 }
 0x826   :  { %16885 = vmatprep.subr.bf16.mxu1 %v16884_v55  ;;  %v13835_v47 = vsel %vm6686_vm2, %v19391_v5, %v19392_v43  ;;  %v16890_v50 = vpack.c.bf16 %v13828_v34, %v13825_v25  ;;  %v13834_v21 = vsel %vm6686_vm2, %v19402_v15, %v19391_v5  ;;  %v19412_v13 = vunpack.i.h.bf16 %v23269_v19  ;;  %v14048_v25 = vld [vmem:[#allocation7 + $0x348] sm:$0xff]  ;;  %v14049_v34 = vld [vmem:[#allocation7 + $0x350] sm:$0xff]  ;;  %v14050_v15 = vld [vmem:[#allocation7 + $0x358] sm:$0xff] }
 0x827   :  { %v13831_v40 = vsel %vm6686_vm2, %v19401_v7, %v19396_v4  ;;  %v16892_v58 = vpack.c.bf16 %v13835_v47, %v13832_v45  ;;  %v19411_v57 = vunpack.i.l.bf16 %v23269_v19  ;;  %v13827_v11 = vsel %vm6686_vm2, %v19377_v37, %v19406_v20  ;;  %v13789_v19 = vld [vmem:[#allocation7 + $0x320] sm:$0xff]  ;;  %v14312_v7 = vpop.permute.xlu1 %14311 }
 0x828   :  { %14841 = vmatmul.mubr.msk.f32.gmra.mrb[30].mxu1 %vm165_vm0, %v13532_v9  ;;  %v13830_v56 = vsel %vm6686_vm2, %v19382_v2, %v19407_v49  ;;  %v16894_v6 = vpack.c.bf16 %v13834_v21, %v13831_v40  ;;  %v19422_v27 = vunpack.i.h.bf16 %v23284_v48  ;;  %v19421_v10 = vunpack.i.l.bf16 %v23284_v48  ;;  %v13790_v48 = vld [vmem:[#allocation7 + $0x328] sm:$0xff]  ;;  %v14317_v21 = vpop.permute.xlu0 %14316 }
 0x829   :  { %16887 = vmatpush3.bf16.msra.mxu1 %v16884_v55  ;;  %13679 = vmatprep.mubr.f32.mxu1 %v23646_v52  ;;  %v16896_v14 = vpack.c.bf16 %v13830_v56, %v13827_v11  ;;  %v13833_v53 = vsel %vm6686_vm2, %v19397_v51, %v19411_v57  ;;  %v13836_v24 = vsel %vm6686_vm2, %v19392_v43, %v19412_v13  ;;  %v19417_v60 = vunpack.i.h.bf16 %v23272_v61  ;;  %v14047_v51 = vld [vmem:[#allocation7 + $0x340] sm:$0xff] }
 0x82a   :  { %16889 = vmatprep.subr.bf16.mxu1 %v16888_v17  ;;  %v19416_v8 = vunpack.i.l.bf16 %v23272_v61  ;;  %v16900_v30 = vpack.c.bf16 %v13836_v24, %v13833_v53  ;;  %v14087_v59 = vsel %vm6946_vm3, %v19421_v10, %v19422_v27  ;;  %v19427_v61 = vunpack.i.h.bf16 %v23288_v26 }
 0x82b   :  { %v19426_v22 = vunpack.i.l.bf16 %v23288_v26  ;;  %v19432_v54 = vunpack.i.h.bf16 %v23307_v41  ;;  %v19437_v31 = vunpack.i.h.bf16 %v23300_v0  ;;  %v19436_v42 = vunpack.i.l.bf16 %v23300_v0 }
 0x82c   :  { %14842 = vmatmul.mubr.msk.f32.gmra.mrb[32].mxu1 %vm165_vm0, %v13533_v12  ;;  %v14084_v2 = vsel %vm6946_vm3, %v19416_v8, %v19417_v60  ;;  %v14086_v18 = vsel %vm6946_vm3, %v19427_v61, %v19421_v10  ;;  %v19442_v38 = vunpack.i.h.bf16 %v23326_v62  ;;  %v19441_v26 = vunpack.i.l.bf16 %v23326_v62  ;;  %v14322_v10 = vpop.permute.xlu1 %14321 }
 0x82d   :  { %13685 = vmatprep.mubr.f32.mxu1 %v23646_v52  ;;  %v16904_v33 = vpack.c.bf16 %v14087_v59, %v14084_v2  ;;  %v14083_v37 = vsel %vm6946_vm3, %v19426_v22, %v19416_v8  ;;  %v19447_v55 = vunpack.i.h.bf16 %v23329_v1  ;;  %v14090_v0 = vsel %vm6946_vm3, %v19436_v42, %v19437_v31 }
 0x82e   :  { %v16906_v39 = vpack.c.bf16 %v14086_v18, %v14083_v37  ;;  %v14089_v17 = vsel %vm6946_vm3, %v19441_v26, %v19436_v42  ;;  %v19451_v29 = vunpack.i.l.bf16 %v23365_v16 }
 0x82f   :  { %v14088_v32 = vsel %vm6946_vm3, %v19422_v27, %v19447_v55 }
 0x830   :  { %14843 = vmatmul.mubr.msk.f32.gmra.mrb[34].mxu1 %vm165_vm0, %v13534_v46  ;;  %v14091_v4 = vsel %vm6946_vm3, %v19437_v31, %v19451_v29 }
 0x831   :  { %16022 = vmatprep.mubr.msk.f32.mxu1 %vm165_vm0, %v13531_v36  ;;  %v19431_v36 = vunpack.i.l.bf16 %v23307_v41  ;;  %v19446_v41 = vunpack.i.l.bf16 %v23329_v1 }
 0x833   :  { %v14092_v28 = vsel %vm6946_vm3, %v19442_v38, %v19431_v36  ;;  %v14085_v1 = vsel %vm6946_vm3, %v19417_v60, %v19446_v41 }
 0x834   :  { %16023 = vmatmul.mubr.msk.f32.vlgmr.msra.gmra.mrb[36].mxu1 %vm165_vm0, %v13532_v9  ;;  %v14093_v9 = vsel %vm6946_vm3, %v19431_v36, %v19432_v54  ;;  %v16910_v43 = vpack.c.bf16 %v14092_v28, %v14089_v17  ;;  %v16912_v5 = vpack.c.bf16 %v14088_v32, %v14085_v1 }
 0x835   :  { %16891 = vmatpush1.bf16.msra.mxu1 %v16890_v50  ;;  %16025 = vmatprep.mubr.msk.f32.mxu1 %vm165_vm0, %v13533_v12  ;;  %v16908_v62 = vpack.c.bf16 %v14093_v9, %v14090_v0  ;;  %v19452_v12 = vunpack.i.h.bf16 %v23365_v16 }
 0x836   :  { %16893 = vmatprep.subr.bf16.mxu1 %v16892_v58 }
 0x837   :  { %v14094_v16 = vsel %vm6946_vm3, %v19432_v54, %v19452_v12 }
 0x838   :  { %16026 = vmatmul.mubr.msk.f32.gmra.mrb[38].mxu1 %vm165_vm0, %v13534_v46  ;;  %v16916_v46 = vpack.c.bf16 %v14094_v16, %v14091_v4 }
 0x839   :  { %16895 = vmatpush1.bf16.msra.mxu1 %v16894_v6  ;;  %13925 = vmatprep.mubr.f32.mxu1 %v23646_v52 }
 0x83a   :  { %16897 = vmatprep.subr.bf16.mxu1 %v16896_v14 }
 0x83c   :  { %14848 = vmatmul.mubr.msk.f32.vlgmr.msra.gmra.mrb[28].mxu1 %vm165_vm0, %v13789_v19 }
 0x83d   :  { %16899 = vmatpush3.bf16.msra.mxu1 %v16896_v14  ;;  %13931 = vmatprep.mubr.f32.mxu1 %v23646_v52 }
 0x83e   :  { %16901 = vmatprep.subr.bf16.mxu1 %v16900_v30 }
 0x840   :  { %14849 = vmatmul.mubr.msk.f32.gmra.mrb[30].mxu1 %vm165_vm0, %v13790_v48 }
 0x841   :  { %16903 = vmatpush3.bf16.msra.mxu1 %v16900_v30  ;;  %13937 = vmatprep.mubr.f32.mxu1 %v23646_v52 }
 0x842   :  { %16905 = vmatprep.subr.bf16.mxu1 %v16904_v33 }
 0x844   :  { %14850 = vmatmul.mubr.msk.f32.gmra.mrb[32].mxu1 %vm165_vm0, %v13791_v63 }
 0x845   :  { %13943 = vmatprep.mubr.f32.mxu1 %v23646_v52 }
 0x848   :  { %14851 = vmatmul.mubr.msk.f32.gmra.mrb[34].mxu1 %vm165_vm0, %v13792_v35 }
 0x849   :  { %16036 = vmatprep.mubr.msk.f32.mxu1 %vm165_vm0, %v13789_v19 }
 0x84c   :  { %16037 = vmatmul.mubr.msk.f32.vlgmr.msra.gmra.mrb[36].mxu1 %vm165_vm0, %v13790_v48 }
 0x84d   :  { %16907 = vmatpush1.bf16.msra.mxu1 %v16906_v39  ;;  %16039 = vmatprep.mubr.msk.f32.mxu1 %vm165_vm0, %v13791_v63  ;;  %v14327_v63 = vpop.permute.xlu0 %14326 }
 0x84e   :  { %16909 = vmatprep.subr.bf16.mxu1 %v16908_v62 }
 0x850   :  { %16040 = vmatmul.mubr.msk.f32.gmra.mrb[38].mxu1 %vm165_vm0, %v13792_v35 }
 0x851   :  { %16911 = vmatpush1.bf16.msra.mxu1 %v16910_v43  ;;  %14183 = vmatprep.mubr.f32.mxu1 %v23646_v52 }
 0x852   :  { %16913 = vmatprep.subr.bf16.mxu1 %v16912_v5 }
 0x854   :  { %14856 = vmatmul.mubr.msk.f32.vlgmr.msra.gmra.mrb[28].mxu1 %vm165_vm0, %v14047_v51 }
 0x855   :  { %16915 = vmatpush3.bf16.msra.mxu1 %v16912_v5  ;;  %14189 = vmatprep.mubr.f32.mxu1 %v23646_v52 }
 0x856   :  { %16917 = vmatprep.subr.bf16.mxu1 %v16916_v46 }
 0x858   :  { %14857 = vmatmul.mubr.msk.f32.gmra.mrb[30].mxu1 %vm165_vm0, %v14048_v25 }
 0x859   :  { %16919 = vmatpush3.bf16.msra.mxu1 %v16916_v46  ;;  %14195 = vmatprep.mubr.f32.mxu1 %v23646_v52 }
 0x85c   :  { %14858 = vmatmul.mubr.msk.f32.gmra.mrb[32].mxu1 %vm165_vm0, %v14049_v34 }
 0x85d   :  { %14201 = vmatprep.mubr.f32.mxu1 %v23646_v52 }
 0x860   :  { %14859 = vmatmul.mubr.msk.f32.gmra.mrb[34].mxu1 %vm165_vm0, %v14050_v15 }
 0x861   :  { %16050 = vmatprep.mubr.msk.f32.mxu1 %vm165_vm0, %v14047_v51 }
 0x864   :  { %16051 = vmatmul.mubr.msk.f32.vlgmr.msra.gmra.mrb[36].mxu1 %vm165_vm0, %v14048_v25 }
 0x865   :  { %16053 = vmatprep.mubr.msk.f32.mxu1 %vm165_vm0, %v14049_v34 }
 0x868   :  { %16054 = vmatmul.mubr.msk.f32.gmra.mrb[38].mxu1 %vm165_vm0, %v14050_v15 }
 0x927   :  { %v14185_v49 = vpop.f32.mrb[28].mxu1 }
 0x928   :  { %v14329_v20 = vadd.f32 %v14312_v7, %v14185_v49  ;;  %v14187_v45 = vpop.f32.mrb[29].mxu1 }
 0x929   :  { %v14330_v47 = vadd.f32 %v14312_v7, %v14187_v45 }
 0x92a   :  { %vm14341_vm8 = vcmp.ge.f32.partialorder %v14329_v20, 0.0  ;;  %v14353_v50 = vmul.f32 0.01, %v14329_v20 }
 0x92b   :  { %vm14342_vm2 = vcmp.ge.f32.partialorder %v14330_v47, 0.0  ;;  %v14354_v52 = vmul.f32 0.01, %v14330_v47  ;;  %v14191_v40 = vpop.f32.mrb[30].mxu1 }
 0x92c   :  { %v14365_v58 = vsel %vm14341_vm8, %v14329_v20, %v14353_v50  ;;  %v14332_v13 = vadd.f32 %v14317_v21, %v14191_v40  ;;  %v14193_v57 = vpop.f32.mrb[31].mxu1 }
 0x92d   :  { %v14377_v11 = vmul.f32 %v14365_v58, %v23690_v23  ;;  %v14366_v56 = vsel %vm14342_vm2, %v14330_v47, %v14354_v52  ;;  %v14333_v6 = vadd.f32 %v14317_v21, %v14193_v57 }
 0x92e   :  { %v14378_v14 = vmul.f32 %v14366_v56, %v23691_v3  ;;  %vm14344_vm0 = vcmp.ge.f32.partialorder %v14332_v13, 0.0  ;;  %v14356_v27 = vmul.f32 0.01, %v14332_v13 }
 0x92f   :  { %14390 = vst [vmem:[#allocation9 + $0x60] sm:$0xff] %v14377_v11  ;;  %vm14345_vm3 = vcmp.ge.f32.partialorder %v14333_v6, 0.0  ;;  %v14357_v19 = vmul.f32 0.01, %v14333_v6  ;;  %v14197_v53 = vpop.f32.mrb[32].mxu1 }
 0x930   :  { %14391 = vst [vmem:[#allocation9 + $0x68] sm:$0xff] %v14378_v14  ;;  %v14368_v24 = vsel %vm14344_vm0, %v14332_v13, %v14356_v27  ;;  %v14335_v60 = vadd.f32 %v14322_v10, %v14197_v53  ;;  %v14199_v8 = vpop.f32.mrb[33].mxu1 }
 0x931   :  { %v14380_v30 = vmul.f32 %v14368_v24, %v23690_v23  ;;  %v14369_v48 = vsel %vm14345_vm3, %v14333_v6, %v14357_v19  ;;  %v14336_v59 = vadd.f32 %v14322_v10, %v14199_v8 }
 0x932   :  { %v14381_v2 = vmul.f32 %v14369_v48, %v23691_v3  ;;  %vm14347_vm1 = vcmp.ge.f32.partialorder %v14335_v60, 0.0  ;;  %v14359_v33 = vmul.f32 0.01, %v14335_v60 }
 0x933   :  { %14393 = vst [vmem:[#allocation9 + $0x78] sm:$0xff] %v14380_v30  ;;  %vm14348_vm6 = vcmp.ge.f32.partialorder %v14336_v59, 0.0  ;;  %v14360_v61 = vmul.f32 0.01, %v14336_v59  ;;  %v14203_v22 = vpop.f32.mrb[34].mxu1 }
 0x934   :  { %14394 = vst [vmem:[#allocation9 + $0x80] sm:$0xff] %v14381_v2  ;;  %v14371_v54 = vsel %vm14347_vm1, %v14335_v60, %v14359_v33  ;;  %v14338_v36 = vadd.f32 %v14327_v63, %v14203_v22  ;;  %v14205_v31 = vpop.f32.mrb[35].mxu1 }
 0x935   :  { %v14383_v42 = vmul.f32 %v14371_v54, %v23690_v23  ;;  %v14372_v35 = vsel %vm14348_vm6, %v14336_v59, %v14360_v61  ;;  %v14339_v37 = vadd.f32 %v14327_v63, %v14205_v31 }
 0x936   :  { %v14384_v18 = vmul.f32 %v14372_v35, %v23691_v3  ;;  %vm14350_vm7 = vcmp.ge.f32.partialorder %v14338_v36, 0.0  ;;  %v14362_v38 = vmul.f32 0.01, %v14338_v36 }
 0x937   :  { %14396 = vst [vmem:[#allocation9 + $0x90] sm:$0xff] %v14383_v42  ;;  %vm14351_vm9 = vcmp.ge.f32.partialorder %v14339_v37, 0.0  ;;  %v14363_v26 = vmul.f32 0.01, %v14339_v37  ;;  %v16052_v55 = vpop.f32.mrb[36].mxu1 }
 0x938   :  { %14397 = vst [vmem:[#allocation9 + $0x98] sm:$0xff] %v14384_v18  ;;  %v14374_v41 = vsel %vm14350_vm7, %v14338_v36, %v14362_v38  ;;  %v14334_v0 = vadd.f32 %v16052_v55, %v14317_v21  ;;  %v14274_v9 = vpop.f32.mrb[37].mxu1 }
 0x939   :  { %v14386_v39 = vmul.f32 %v14374_v41, %v23690_v23  ;;  %v14375_v28 = vsel %vm14351_vm9, %v14339_v37, %v14363_v26  ;;  %v14331_v17 = vadd.f32 %v14312_v7, %v14274_v9 }
 0x93a   :  { %v14387_v62 = vmul.f32 %v14375_v28, %v23691_v3  ;;  %vm14346_vm10 = vcmp.ge.f32.partialorder %v14334_v0, 0.0  ;;  %v14358_v12 = vmul.f32 0.01, %v14334_v0 }
 0x93b   :  { %14399 = vst [vmem:[#allocation9 + $0xa8] sm:$0xff] %v14386_v39  ;;  %vm14343_vm11 = vcmp.ge.f32.partialorder %v14331_v17, 0.0  ;;  %v14355_v29 = vmul.f32 0.01, %v14331_v17  ;;  %v16055_v1 = vpop.f32.mrb[38].mxu1 }
 0x93c   :  { %14400 = vst [vmem:[#allocation9 + $0xb0] sm:$0xff] %v14387_v62  ;;  %v14370_v32 = vsel %vm14346_vm10, %v14334_v0, %v14358_v12  ;;  %v14340_v43 = vadd.f32 %v16055_v1, %v14327_v63  ;;  %v14284_v5 = vpop.f32.mrb[39].mxu1 }
 0x93d   :  { %v14382_v51 = vmul.f32 %v14370_v32, %v23692_v44  ;;  %v14367_v4 = vsel %vm14343_vm11, %v14331_v17, %v14355_v29  ;;  %v14337_v16 = vadd.f32 %v14322_v10, %v14284_v5 }
 0x93e   :  { %v14379_v23 = vmul.f32 %v14367_v4, %v23692_v44  ;;  %vm14352_vm4 = vcmp.ge.f32.partialorder %v14340_v43, 0.0  ;;  %v14364_v46 = vmul.f32 0.01, %v14340_v43 }
 0x93f   :  { %14395 = vst [vmem:[#allocation9 + $0x88] sm:$0xff] %v14382_v51  ;;  %vm14349_vm12 = vcmp.ge.f32.partialorder %v14337_v16, 0.0  ;;  %v14361_v3 = vmul.f32 0.01, %v14337_v16 }
 0x940   :  { %14392 = vst [vmem:[#allocation9 + $0x70] sm:$0xff] %v14379_v23  ;;  %v14376_v25 = vsel %vm14352_vm4, %v14340_v43, %v14364_v46 }
 0x941   :  { %v14388_v34 = vmul.f32 %v14376_v25, %v23692_v44  ;;  %v14373_v15 = vsel %vm14349_vm12, %v14337_v16, %v14361_v3 }
 0x942   :  { %v14385_v7 = vmul.f32 %v14373_v15, %v23692_v44 }
 0x943   :  { %14401 = vst [vmem:[#allocation9 + $0xb8] sm:$0xff] %v14388_v34 }
 0x944   :  { %14398 = vst [vmem:[#allocation9 + $0xa0] sm:$0xff] %v14385_v7 }
 0x945   :  { %19520 = shalt.err (!%p19517_p6)
}
 0x946   :  { %s19521_s27 = scalar_lea.hbm %s23568_s4, 3072 }
 0x947   :  { %p19522_p7 = scmp.ne.s32.totalorder %s23568_s4, %s19521_s27  ;;  %p19525_p8 = scmp.lt.u32.totalorder %s19521_s27, %s23568_s4 }
 0x949   :  { %p19527_p9 = pnand %p19525_p8, %p19522_p7 }
 0x94b   :  { %19530 = shalt.err (!%p19527_p9)
}
 0x94c   :  { %s19570_s6 = smov 384   ;;  %s19571_s13 = smov 24  }
 0x94d   :  { %14413 = dma.vmem_to_hbm [thread:$0]  %s14408_s23, 3072, %s23568_s4, [#allocation6], %s19570_s6, %s19570_s6, %s19571_s13  }
 0x94e   :  { %19535 = dma.done.wait [#allocation6], 3072  }
 0x94f   :  { %19536 = vsyncadd [#allocation6], 4294964224 }
 0x950   :  { %14417 = vsyncpa [#allocation5], 1 }
 0x951   :  { %14418 = vsyncpa [#allocation8], 1 }
 0x952   :  { %14419 = vsyncpa [#allocation6], 1 }

</bundles_post_ra>
